<compile_context>
chip_gen: v5e
topology: v5e:2x2
jax: 0.10.0
libtpu: 0.0.40
codegen_flags: <defaults>
</compile_context>

<pallas_src>
import functools

import jax
import jax.numpy as jnp
from jax import lax
from jax.experimental import pallas as pl
from jax.experimental.pallas import tpu as pltpu


def _round_up(v, m):
    return (v + m - 1) // m * m


# ----------------------------------------------------------------------------
# Fused Encoder kernel: conv1..conv4 (+ relu / sigmoid) for one batch element.
# ----------------------------------------------------------------------------
def _encoder_kernel(x_ref, w1_ref, b1_ref, w2_ref, b2_ref, w3_ref, b3_ref,
                    w4_ref, b4_ref, o_ref,
                    xp2, xp3, col_a, col_b, *, dims):
    c8, k1, k2, l1, l1p, left, base1, base2, base4 = dims

    def im2col(load_shifted, col, k_size):
        # col[k*8:(k+1)*8, :] = window shifted by k.
        # Sublane offset k*8 and lane width l1p (multiple of 128) -> every store is
        # a full, aligned (8,128)-tile store; the shifted read is the only XLU work.
        for k in range(k_size):
            col[pl.ds(k * c8, c8), :] = load_shifted(k)

    def conv(col, w_ref, b_ref):
        # (8, CK) @ (CK, l1p) on the MXU, f32 accumulate, + bias.
        return jnp.dot(w_ref[...], col[...],
                       preferred_element_type=jnp.float32) + b_ref[...]

    lane = lax.broadcasted_iota(jnp.int32, (c8, l1p), 1)
    valid = lane < l1            # valid output lanes of conv1/2/3

    # ----- conv1 + relu ------------------------------------------------------
    # x_ref is already zero-padded on the host: channels->8, data at lane `left`.
    im2col(lambda k: x_ref[0, :, pl.ds(base1 + k, l1p)], col_a, k1)
    a1 = jnp.where(valid, jnp.maximum(conv(col_a, w1_ref, b1_ref), 0.0), 0.0)

    # ----- conv2 + relu ------------------------------------------------------
    xp2[...] = jnp.zeros_like(xp2)            # zero pad + overscan region (cheap)
    xp2[:, pl.ds(left, l1p)] = a1             # aligned, unmasked full-tile store
    im2col(lambda k: xp2[:, pl.ds(base2 + k, l1p)], col_b, k2)
    a2 = jnp.where(valid, jnp.maximum(conv(col_b, w2_ref, b2_ref), 0.0), 0.0)

    # ----- conv3 + relu ------------------------------------------------------
    xp3[...] = jnp.zeros_like(xp3)
    xp3[:, pl.ds(left, l1p)] = a2
    im2col(lambda k: xp3[:, pl.ds(base2 + k, l1p)], col_b, k2)
    a3 = jnp.where(valid, jnp.maximum(conv(col_b, w3_ref, b3_ref), 0.0), 0.0)

    # ----- conv4 (no padding) + sigmoid --------------------------------------
    xp3[:, pl.ds(left, l1p)] = a3             # reuse xp3; pads outside stay zero
    im2col(lambda k: xp3[:, pl.ds(base4 + k, l1p)], col_b, k2)
    y4 = conv(col_b, w4_ref, b4_ref)
    o_ref[0] = jax.nn.sigmoid(y4).astype(o_ref.dtype)   # full lane-dense store


# ----------------------------------------------------------------------------
# Host wrapper.
# ----------------------------------------------------------------------------
def _prep_conv_params(w, b, c8):
    """(C_out, C_in, K) -> zero-padded (8, K*8) weights (row order k*8+ci), (8,1) bias."""
    c_out, c_in, k = w.shape
    wp = jnp.zeros((c8, k, c8), jnp.float32)
    wp = wp.at[:c_out, :, :c_in].set(jnp.transpose(w, (0, 2, 1)).astype(jnp.float32))
    bp = jnp.zeros((c8, 1), jnp.float32).at[:c_out, 0].set(b.astype(jnp.float32))
    return wp.reshape(c8, k * c8), bp


def _encoder_forward_impl(params, x):
    """Matches Encoder.forward (dropout = inference-mode identity)."""
    B, c_in, l_in = x.shape
    w1, b1 = params["conv1"]
    w2, b2 = params["conv2"]
    w3, b3 = params["conv3"]
    w4, b4 = params["conv4"]
    c_out = w1.shape[0]                 # 6
    k1, k2 = w1.shape[2], w2.shape[2]   # 201, 51
    p1 = p2 = 25
    l1 = l_in + 2 * p1 - k1 + 1         # conv1/2/3 output length
    l4 = l1 - k2 + 1                    # conv4 output length
    assert l1 >= 1 and l4 >= 1, "input too short for the Encoder convolutions"

    C8 = 8                               # padded channel count (sublane alignment)
    L1P = _round_up(l1, 128)             # padded matmul N / column lane width
    LEFT = 128                           # 128-aligned zero prefix in padded buffers
    base1 = LEFT - p1                    # conv1 column-extraction start (103)
    base2 = LEFT - p2                    # conv2/3 column-extraction start (103)
    base4 = LEFT                         # conv4 (no padding) start (128)
    W1 = _round_up(base1 + (k1 - 1) + L1P, 128)   # padded-input width
    WH = _round_up(base4 + (k2 - 1) + L1P, 128)   # hidden-activation buffer width

    # Host-side zero padding of x: channels -> 8, data at lane offset LEFT.
    xp = jnp.zeros((B, C8, W1), jnp.float32)
    xp = xp.at[:, :c_in, LEFT:LEFT + l_in].set(x.astype(jnp.float32))

    w1f, b1c = _prep_conv_params(w1, b1, C8)
    w2f, b2c = _prep_conv_params(w2, b2, C8)
    w3f, b3c = _prep_conv_params(w3, b3, C8)
    w4f, b4c = _prep_conv_params(w4, b4, C8)

    dims = (C8, k1, k2, l1, L1P, LEFT, base1, base2, base4)
    kernel = functools.partial(_encoder_kernel, dims=dims)

    def full_spec(shape):
        return pl.BlockSpec(shape, lambda b: (0,) * len(shape))

    out = pl.pallas_call(
        kernel,
        out_shape=jax.ShapeDtypeStruct((B, C8, L1P), jnp.float32),
        grid_spec=pltpu.PrefetchScalarGridSpec(
            num_scalar_prefetch=0,
            grid=(B,),
            in_specs=[
                pl.BlockSpec((1, C8, W1), lambda b: (b, 0, 0)),        # padded x
                full_spec((C8, C8 * k1)), full_spec((C8, 1)),          # conv1
                full_spec((C8, C8 * k2)), full_spec((C8, 1)),          # conv2
                full_spec((C8, C8 * k2)), full_spec((C8, 1)),          # conv3
                full_spec((C8, C8 * k2)), full_spec((C8, 1)),          # conv4
            ],
            out_specs=pl.BlockSpec((1, C8, L1P), lambda b: (b, 0, 0)),
            scratch_shapes=[
                pltpu.VMEM((C8, WH), jnp.float32),          # xp2 (padded a1)
                pltpu.VMEM((C8, WH), jnp.float32),          # xp3 (padded a2, then a3)
                pltpu.VMEM((C8 * k1, L1P), jnp.float32),    # conv1 column matrix
                pltpu.VMEM((C8 * k2, L1P), jnp.float32),    # conv2-4 column matrix
            ],
        ),
        compiler_params=pltpu.CompilerParams(
            dimension_semantics=("parallel",)),
    )(xp, w1f, b1c, w2f, b2c, w3f, b3c, w4f, b4c)

    # Slice padded channels / lanes back off.
    return out[:, :c_out, :l4]


encoder_forward = jax.jit(_encoder_forward_impl)


# ----------------------------------------------------------------------------
# Parameter init (deterministic, mimics PyTorch Conv1d default uniform bounds).
# ----------------------------------------------------------------------------
def _init_conv_params(key, c_out, c_in, k):
    fan_in = c_in * k
    bound = 1.0 / jnp.sqrt(jnp.float32(fan_in))
    kw, kb = jax.random.split(key)
    w = jax.random.uniform(kw, (c_out, c_in, k), jnp.float32, -bound, bound)
    b = jax.random.uniform(kb, (c_out,), jnp.float32, -bound, bound)
    return w, b


def init_encoder_params(key, in_channels):
    k1, k2, k3, k4 = jax.random.split(key, 4)
    return {
        "conv1": _init_conv_params(k1, 6, in_channels, 201),
        "conv2": _init_conv_params(k2, 6, 6, 51),
        "conv3": _init_conv_params(k3, 6, 6, 51),
        "conv4": _init_conv_params(k4, 6, 6, 51),
    }


# ----------------------------------------------------------------------------
# Pure-JAX reference (for the correctness check only).
# ----------------------------------------------------------------------------
def _ref_conv(x, w, b, padding):
    y = lax.conv_general_dilated(
        x, w, window_strides=(1,), padding=[(padding, padding)],
        dimension_numbers=("NCH", "OIH", "NCH"),
        precision=lax.Precision.HIGHEST)
    return y + b[None, :, None]


def encoder_reference(params, x):
    w1, b1 = params["conv1"]
    w2, b2 = params["conv2"]
    w3, b3 = params["conv3"]
    w4, b4 = params["conv4"]
    x = jax.nn.relu(_ref_conv(x, w1, b1, 25))
    x = jax.nn.relu(_ref_conv(x, w2, b2, 25))
    x = jax.nn.relu(_ref_conv(x, w3, b3, 25))
    x = jax.nn.sigmoid(_ref_conv(x, w4, b4, 0))
    return x


if __name__ == "__main__":
    B, C_IN, L = 2, 4, 256  # L must be > 150 for the kernel_size=201 conv

    key = jax.random.PRNGKey(0)
    k_params, k_x = jax.random.split(key)
    params = init_encoder_params(k_params, C_IN)
    x = jax.random.normal(k_x, (B, C_IN, L), jnp.float32)

    out = jax.block_until_ready(encoder_forward(params, x))
    ref = jax.block_until_ready(encoder_reference(params, x))

    assert out.shape == ref.shape == (B, 6, L - 200), (out.shape, ref.shape)
    assert bool(jnp.all(jnp.isfinite(out)))
    # Tolerance leaves headroom for the MXU's multi-pass f32 matmul path.
    max_err = float(jnp.max(jnp.abs(out - ref)))
    assert jnp.allclose(out, ref, atol=5e-3, rtol=5e-3), max_err

    print("KERNEL_OK")
</pallas_src>

<mosaic_0001>
module attributes {stable_mosaic.version = 11 : i64} {
  func.func @_encoder_kernel(%arg0: i32, %arg1: memref<1x8x512xf32, #tpu.memory_space<vmem>>, %arg2: memref<8x1608xf32, #tpu.memory_space<vmem>>, %arg3: memref<8x1xf32, #tpu.memory_space<vmem>>, %arg4: memref<8x408xf32, #tpu.memory_space<vmem>>, %arg5: memref<8x1xf32, #tpu.memory_space<vmem>>, %arg6: memref<8x408xf32, #tpu.memory_space<vmem>>, %arg7: memref<8x1xf32, #tpu.memory_space<vmem>>, %arg8: memref<8x408xf32, #tpu.memory_space<vmem>>, %arg9: memref<8x1xf32, #tpu.memory_space<vmem>>, %arg10: memref<1x8x128xf32, #tpu.memory_space<vmem>>, %arg11: memref<8x384xf32, #tpu.memory_space<vmem>>, %arg12: memref<8x384xf32, #tpu.memory_space<vmem>>, %arg13: memref<1608x128xf32, #tpu.memory_space<vmem>>, %arg14: memref<408x128xf32, #tpu.memory_space<vmem>>) attributes {dimension_semantics = [#tpu.dimension_semantics<parallel>], iteration_bounds = array<i64: 2>, scalar_prefetch = 0 : i64, scratch_operands = 4 : i64, tpu.core_type = #tpu.core_type<tc>, window_params = [{transform_indices = @transform_0, window_bounds = array<i64: 1, 8, 512>}, {pipeline_mode = #tpu.pipeline_mode<synchronous>, transform_indices = @transform_1, window_bounds = array<i64: 8, 1608>}, {pipeline_mode = #tpu.pipeline_mode<synchronous>, transform_indices = @transform_2, window_bounds = array<i64: 8, 1>}, {pipeline_mode = #tpu.pipeline_mode<synchronous>, transform_indices = @transform_3, window_bounds = array<i64: 8, 408>}, {pipeline_mode = #tpu.pipeline_mode<synchronous>, transform_indices = @transform_4, window_bounds = array<i64: 8, 1>}, {pipeline_mode = #tpu.pipeline_mode<synchronous>, transform_indices = @transform_5, window_bounds = array<i64: 8, 408>}, {pipeline_mode = #tpu.pipeline_mode<synchronous>, transform_indices = @transform_6, window_bounds = array<i64: 8, 1>}, {pipeline_mode = #tpu.pipeline_mode<synchronous>, transform_indices = @transform_7, window_bounds = array<i64: 8, 408>}, {pipeline_mode = #tpu.pipeline_mode<synchronous>, transform_indices = @transform_8, window_bounds = array<i64: 8, 1>}, {transform_indices = @transform_9, window_bounds = array<i64: 1, 8, 128>}]} {
    %0 = tpu.iota {dimensions = array<i32: 1>} : vector<8x128xi32>
    %c106_i32 = arith.constant 106 : i32
    %1 = vector.broadcast %c106_i32 : i32 to vector<8x128xi32>
    %2 = arith.cmpi slt, %0, %1 : vector<8x128xi32>
    %c0 = arith.constant 0 : index
    %c0_0 = arith.constant 0 : index
    %c103 = arith.constant 103 : index
    %3 = vector.load %arg1[%c0, %c0_0, %c103] : memref<1x8x512xf32, #tpu.memory_space<vmem>>, vector<1x8x128xf32>
    %4 = vector.shape_cast %3 : vector<1x8x128xf32> to vector<8x128xf32>
    %c0_1 = arith.constant 0 : index
    %c0_2 = arith.constant 0 : index
    %5 = vector.load %arg13[%c0_1, %c0_2] : memref<1608x128xf32, #tpu.memory_space<vmem>>, vector<8x128xf32>
    tpu.vector_store %arg13[%c0_1, %c0_2], %4 {strides = array<i32>} : memref<1608x128xf32, #tpu.memory_space<vmem>>, vector<8x128xf32>,
    %c0_3 = arith.constant 0 : index
    %c0_4 = arith.constant 0 : index
    %c104 = arith.constant 104 : index
    %6 = vector.load %arg1[%c0_3, %c0_4, %c104] : memref<1x8x512xf32, #tpu.memory_space<vmem>>, vector<1x8x128xf32>
    %7 = vector.shape_cast %6 : vector<1x8x128xf32> to vector<8x128xf32>
    %c8 = arith.constant 8 : index
    %c0_5 = arith.constant 0 : index
    %8 = vector.load %arg13[%c8, %c0_5] : memref<1608x128xf32, #tpu.memory_space<vmem>>, vector<8x128xf32>
    tpu.vector_store %arg13[%c8, %c0_5], %7 {strides = array<i32>} : memref<1608x128xf32, #tpu.memory_space<vmem>>, vector<8x128xf32>,
    %c0_6 = arith.constant 0 : index
    %c0_7 = arith.constant 0 : index
    %c105 = arith.constant 105 : index
    %9 = vector.load %arg1[%c0_6, %c0_7, %c105] : memref<1x8x512xf32, #tpu.memory_space<vmem>>, vector<1x8x128xf32>
    %10 = vector.shape_cast %9 : vector<1x8x128xf32> to vector<8x128xf32>
    %c16 = arith.constant 16 : index
    %c0_8 = arith.constant 0 : index
    %11 = vector.load %arg13[%c16, %c0_8] : memref<1608x128xf32, #tpu.memory_space<vmem>>, vector<8x128xf32>
    tpu.vector_store %arg13[%c16, %c0_8], %10 {strides = array<i32>} : memref<1608x128xf32, #tpu.memory_space<vmem>>, vector<8x128xf32>,
    %c0_9 = arith.constant 0 : index
    %c0_10 = arith.constant 0 : index
    %c106 = arith.constant 106 : index
    %12 = vector.load %arg1[%c0_9, %c0_10, %c106] : memref<1x8x512xf32, #tpu.memory_space<vmem>>, vector<1x8x128xf32>
    %13 = vector.shape_cast %12 : vector<1x8x128xf32> to vector<8x128xf32>
    %c24 = arith.constant 24 : index
    %c0_11 = arith.constant 0 : index
    %14 = vector.load %arg13[%c24, %c0_11] : memref<1608x128xf32, #tpu.memory_space<vmem>>, vector<8x128xf32>
    tpu.vector_store %arg13[%c24, %c0_11], %13 {strides = array<i32>} : memref<1608x128xf32, #tpu.memory_space<vmem>>, vector<8x128xf32>,
    %c0_12 = arith.constant 0 : index
    %c0_13 = arith.constant 0 : index
    %c107 = arith.constant 107 : index
    %15 = vector.load %arg1[%c0_12, %c0_13, %c107] : memref<1x8x512xf32, #tpu.memory_space<vmem>>, vector<1x8x128xf32>
    %16 = vector.shape_cast %15 : vector<1x8x128xf32> to vector<8x128xf32>
    %c32 = arith.constant 32 : index
    %c0_14 = arith.constant 0 : index
    %17 = vector.load %arg13[%c32, %c0_14] : memref<1608x128xf32, #tpu.memory_space<vmem>>, vector<8x128xf32>
    tpu.vector_store %arg13[%c32, %c0_14], %16 {strides = array<i32>} : memref<1608x128xf32, #tpu.memory_space<vmem>>, vector<8x128xf32>,
    %c0_15 = arith.constant 0 : index
    %c0_16 = arith.constant 0 : index
    %c108 = arith.constant 108 : index
    %18 = vector.load %arg1[%c0_15, %c0_16, %c108] : memref<1x8x512xf32, #tpu.memory_space<vmem>>, vector<1x8x128xf32>
    %19 = vector.shape_cast %18 : vector<1x8x128xf32> to vector<8x128xf32>
    %c40 = arith.constant 40 : index
    %c0_17 = arith.constant 0 : index
    %20 = vector.load %arg13[%c40, %c0_17] : memref<1608x128xf32, #tpu.memory_space<vmem>>, vector<8x128xf32>
    tpu.vector_store %arg13[%c40, %c0_17], %19 {strides = array<i32>} : memref<1608x128xf32, #tpu.memory_space<vmem>>, vector<8x128xf32>,
    %c0_18 = arith.constant 0 : index
    %c0_19 = arith.constant 0 : index
    %c109 = arith.constant 109 : index
    %21 = vector.load %arg1[%c0_18, %c0_19, %c109] : memref<1x8x512xf32, #tpu.memory_space<vmem>>, vector<1x8x128xf32>
    %22 = vector.shape_cast %21 : vector<1x8x128xf32> to vector<8x128xf32>
    %c48 = arith.constant 48 : index
    %c0_20 = arith.constant 0 : index
    %23 = vector.load %arg13[%c48, %c0_20] : memref<1608x128xf32, #tpu.memory_space<vmem>>, vector<8x128xf32>
    tpu.vector_store %arg13[%c48, %c0_20], %22 {strides = array<i32>} : memref<1608x128xf32, #tpu.memory_space<vmem>>, vector<8x128xf32>,
    %c0_21 = arith.constant 0 : index
    %c0_22 = arith.constant 0 : index
    %c110 = arith.constant 110 : index
    %24 = vector.load %arg1[%c0_21, %c0_22, %c110] : memref<1x8x512xf32, #tpu.memory_space<vmem>>, vector<1x8x128xf32>
    %25 = vector.shape_cast %24 : vector<1x8x128xf32> to vector<8x128xf32>
    %c56 = arith.constant 56 : index
    %c0_23 = arith.constant 0 : index
    %26 = vector.load %arg13[%c56, %c0_23] : memref<1608x128xf32, #tpu.memory_space<vmem>>, vector<8x128xf32>
    tpu.vector_store %arg13[%c56, %c0_23], %25 {strides = array<i32>} : memref<1608x128xf32, #tpu.memory_space<vmem>>, vector<8x128xf32>,
    %c0_24 = arith.constant 0 : index
    %c0_25 = arith.constant 0 : index
    %c111 = arith.constant 111 : index
    %27 = vector.load %arg1[%c0_24, %c0_25, %c111] : memref<1x8x512xf32, #tpu.memory_space<vmem>>, vector<1x8x128xf32>
    %28 = vector.shape_cast %27 : vector<1x8x128xf32> to vector<8x128xf32>
    %c64 = arith.constant 64 : index
    %c0_26 = arith.constant 0 : index
    %29 = vector.load %arg13[%c64, %c0_26] : memref<1608x128xf32, #tpu.memory_space<vmem>>, vector<8x128xf32>
    tpu.vector_store %arg13[%c64, %c0_26], %28 {strides = array<i32>} : memref<1608x128xf32, #tpu.memory_space<vmem>>, vector<8x128xf32>,
    %c0_27 = arith.constant 0 : index
    %c0_28 = arith.constant 0 : index
    %c112 = arith.constant 112 : index
    %30 = vector.load %arg1[%c0_27, %c0_28, %c112] : memref<1x8x512xf32, #tpu.memory_space<vmem>>, vector<1x8x128xf32>
    %31 = vector.shape_cast %30 : vector<1x8x128xf32> to vector<8x128xf32>
    %c72 = arith.constant 72 : index
    %c0_29 = arith.constant 0 : index
    %32 = vector.load %arg13[%c72, %c0_29] : memref<1608x128xf32, #tpu.memory_space<vmem>>, vector<8x128xf32>
    tpu.vector_store %arg13[%c72, %c0_29], %31 {strides = array<i32>} : memref<1608x128xf32, #tpu.memory_space<vmem>>, vector<8x128xf32>,
    %c0_30 = arith.constant 0 : index
    %c0_31 = arith.constant 0 : index
    %c113 = arith.constant 113 : index
    %33 = vector.load %arg1[%c0_30, %c0_31, %c113] : memref<1x8x512xf32, #tpu.memory_space<vmem>>, vector<1x8x128xf32>
    %34 = vector.shape_cast %33 : vector<1x8x128xf32> to vector<8x128xf32>
    %c80 = arith.constant 80 : index
    %c0_32 = arith.constant 0 : index
    %35 = vector.load %arg13[%c80, %c0_32] : memref<1608x128xf32, #tpu.memory_space<vmem>>, vector<8x128xf32>
    tpu.vector_store %arg13[%c80, %c0_32], %34 {strides = array<i32>} : memref<1608x128xf32, #tpu.memory_space<vmem>>, vector<8x128xf32>,
    %c0_33 = arith.constant 0 : index
    %c0_34 = arith.constant 0 : index
    %c114 = arith.constant 114 : index
    %36 = vector.load %arg1[%c0_33, %c0_34, %c114] : memref<1x8x512xf32, #tpu.memory_space<vmem>>, vector<1x8x128xf32>
    %37 = vector.shape_cast %36 : vector<1x8x128xf32> to vector<8x128xf32>
    %c88 = arith.constant 88 : index
    %c0_35 = arith.constant 0 : index
    %38 = vector.load %arg13[%c88, %c0_35] : memref<1608x128xf32, #tpu.memory_space<vmem>>, vector<8x128xf32>
    tpu.vector_store %arg13[%c88, %c0_35], %37 {strides = array<i32>} : memref<1608x128xf32, #tpu.memory_space<vmem>>, vector<8x128xf32>,
    %c0_36 = arith.constant 0 : index
    %c0_37 = arith.constant 0 : index
    %c115 = arith.constant 115 : index
    %39 = vector.load %arg1[%c0_36, %c0_37, %c115] : memref<1x8x512xf32, #tpu.memory_space<vmem>>, vector<1x8x128xf32>
    %40 = vector.shape_cast %39 : vector<1x8x128xf32> to vector<8x128xf32>
    %c96 = arith.constant 96 : index
    %c0_38 = arith.constant 0 : index
    %41 = vector.load %arg13[%c96, %c0_38] : memref<1608x128xf32, #tpu.memory_space<vmem>>, vector<8x128xf32>
    tpu.vector_store %arg13[%c96, %c0_38], %40 {strides = array<i32>} : memref<1608x128xf32, #tpu.memory_space<vmem>>, vector<8x128xf32>,
    %c0_39 = arith.constant 0 : index
    %c0_40 = arith.constant 0 : index
    %c116 = arith.constant 116 : index
    %42 = vector.load %arg1[%c0_39, %c0_40, %c116] : memref<1x8x512xf32, #tpu.memory_space<vmem>>, vector<1x8x128xf32>
    %43 = vector.shape_cast %42 : vector<1x8x128xf32> to vector<8x128xf32>
    %c104_41 = arith.constant 104 : index
    %c0_42 = arith.constant 0 : index
    %44 = vector.load %arg13[%c104_41, %c0_42] : memref<1608x128xf32, #tpu.memory_space<vmem>>, vector<8x128xf32>
    tpu.vector_store %arg13[%c104_41, %c0_42], %43 {strides = array<i32>} : memref<1608x128xf32, #tpu.memory_space<vmem>>, vector<8x128xf32>,
    %c0_43 = arith.constant 0 : index
    %c0_44 = arith.constant 0 : index
    %c117 = arith.constant 117 : index
    %45 = vector.load %arg1[%c0_43, %c0_44, %c117] : memref<1x8x512xf32, #tpu.memory_space<vmem>>, vector<1x8x128xf32>
    %46 = vector.shape_cast %45 : vector<1x8x128xf32> to vector<8x128xf32>
    %c112_45 = arith.constant 112 : index
    %c0_46 = arith.constant 0 : index
    %47 = vector.load %arg13[%c112_45, %c0_46] : memref<1608x128xf32, #tpu.memory_space<vmem>>, vector<8x128xf32>
    tpu.vector_store %arg13[%c112_45, %c0_46], %46 {strides = array<i32>} : memref<1608x128xf32, #tpu.memory_space<vmem>>, vector<8x128xf32>,
    %c0_47 = arith.constant 0 : index
    %c0_48 = arith.constant 0 : index
    %c118 = arith.constant 118 : index
    %48 = vector.load %arg1[%c0_47, %c0_48, %c118] : memref<1x8x512xf32, #tpu.memory_space<vmem>>, vector<1x8x128xf32>
    %49 = vector.shape_cast %48 : vector<1x8x128xf32> to vector<8x128xf32>
    %c120 = arith.constant 120 : index
    %c0_49 = arith.constant 0 : index
    %50 = vector.load %arg13[%c120, %c0_49] : memref<1608x128xf32, #tpu.memory_space<vmem>>, vector<8x128xf32>
    tpu.vector_store %arg13[%c120, %c0_49], %49 {strides = array<i32>} : memref<1608x128xf32, #tpu.memory_space<vmem>>, vector<8x128xf32>,
    %c0_50 = arith.constant 0 : index
    %c0_51 = arith.constant 0 : index
    %c119 = arith.constant 119 : index
    %51 = vector.load %arg1[%c0_50, %c0_51, %c119] : memref<1x8x512xf32, #tpu.memory_space<vmem>>, vector<1x8x128xf32>
    %52 = vector.shape_cast %51 : vector<1x8x128xf32> to vector<8x128xf32>
    %c128 = arith.constant 128 : index
    %c0_52 = arith.constant 0 : index
    %53 = vector.load %arg13[%c128, %c0_52] : memref<1608x128xf32, #tpu.memory_space<vmem>>, vector<8x128xf32>
    tpu.vector_store %arg13[%c128, %c0_52], %52 {strides = array<i32>} : memref<1608x128xf32, #tpu.memory_space<vmem>>, vector<8x128xf32>,
    %c0_53 = arith.constant 0 : index
    %c0_54 = arith.constant 0 : index
    %c120_55 = arith.constant 120 : index
    %54 = vector.load %arg1[%c0_53, %c0_54, %c120_55] : memref<1x8x512xf32, #tpu.memory_space<vmem>>, vector<1x8x128xf32>
    %55 = vector.shape_cast %54 : vector<1x8x128xf32> to vector<8x128xf32>
    %c136 = arith.constant 136 : index
    %c0_56 = arith.constant 0 : index
    %56 = vector.load %arg13[%c136, %c0_56] : memref<1608x128xf32, #tpu.memory_space<vmem>>, vector<8x128xf32>
    tpu.vector_store %arg13[%c136, %c0_56], %55 {strides = array<i32>} : memref<1608x128xf32, #tpu.memory_space<vmem>>, vector<8x128xf32>,
    %c0_57 = arith.constant 0 : index
    %c0_58 = arith.constant 0 : index
    %c121 = arith.constant 121 : index
    %57 = vector.load %arg1[%c0_57, %c0_58, %c121] : memref<1x8x512xf32, #tpu.memory_space<vmem>>, vector<1x8x128xf32>
    %58 = vector.shape_cast %57 : vector<1x8x128xf32> to vector<8x128xf32>
    %c144 = arith.constant 144 : index
    %c0_59 = arith.constant 0 : index
    %59 = vector.load %arg13[%c144, %c0_59] : memref<1608x128xf32, #tpu.memory_space<vmem>>, vector<8x128xf32>
    tpu.vector_store %arg13[%c144, %c0_59], %58 {strides = array<i32>} : memref<1608x128xf32, #tpu.memory_space<vmem>>, vector<8x128xf32>,
    %c0_60 = arith.constant 0 : index
    %c0_61 = arith.constant 0 : index
    %c122 = arith.constant 122 : index
    %60 = vector.load %arg1[%c0_60, %c0_61, %c122] : memref<1x8x512xf32, #tpu.memory_space<vmem>>, vector<1x8x128xf32>
    %61 = vector.shape_cast %60 : vector<1x8x128xf32> to vector<8x128xf32>
    %c152 = arith.constant 152 : index
    %c0_62 = arith.constant 0 : index
    %62 = vector.load %arg13[%c152, %c0_62] : memref<1608x128xf32, #tpu.memory_space<vmem>>, vector<8x128xf32>
    tpu.vector_store %arg13[%c152, %c0_62], %61 {strides = array<i32>} : memref<1608x128xf32, #tpu.memory_space<vmem>>, vector<8x128xf32>,
    %c0_63 = arith.constant 0 : index
    %c0_64 = arith.constant 0 : index
    %c123 = arith.constant 123 : index
    %63 = vector.load %arg1[%c0_63, %c0_64, %c123] : memref<1x8x512xf32, #tpu.memory_space<vmem>>, vector<1x8x128xf32>
    %64 = vector.shape_cast %63 : vector<1x8x128xf32> to vector<8x128xf32>
    %c160 = arith.constant 160 : index
    %c0_65 = arith.constant 0 : index
    %65 = vector.load %arg13[%c160, %c0_65] : memref<1608x128xf32, #tpu.memory_space<vmem>>, vector<8x128xf32>
    tpu.vector_store %arg13[%c160, %c0_65], %64 {strides = array<i32>} : memref<1608x128xf32, #tpu.memory_space<vmem>>, vector<8x128xf32>,
    %c0_66 = arith.constant 0 : index
    %c0_67 = arith.constant 0 : index
    %c124 = arith.constant 124 : index
    %66 = vector.load %arg1[%c0_66, %c0_67, %c124] : memref<1x8x512xf32, #tpu.memory_space<vmem>>, vector<1x8x128xf32>
    %67 = vector.shape_cast %66 : vector<1x8x128xf32> to vector<8x128xf32>
    %c168 = arith.constant 168 : index
    %c0_68 = arith.constant 0 : index
    %68 = vector.load %arg13[%c168, %c0_68] : memref<1608x128xf32, #tpu.memory_space<vmem>>, vector<8x128xf32>
    tpu.vector_store %arg13[%c168, %c0_68], %67 {strides = array<i32>} : memref<1608x128xf32, #tpu.memory_space<vmem>>, vector<8x128xf32>,
    %c0_69 = arith.constant 0 : index
    %c0_70 = arith.constant 0 : index
    %c125 = arith.constant 125 : index
    %69 = vector.load %arg1[%c0_69, %c0_70, %c125] : memref<1x8x512xf32, #tpu.memory_space<vmem>>, vector<1x8x128xf32>
    %70 = vector.shape_cast %69 : vector<1x8x128xf32> to vector<8x128xf32>
    %c176 = arith.constant 176 : index
    %c0_71 = arith.constant 0 : index
    %71 = vector.load %arg13[%c176, %c0_71] : memref<1608x128xf32, #tpu.memory_space<vmem>>, vector<8x128xf32>
    tpu.vector_store %arg13[%c176, %c0_71], %70 {strides = array<i32>} : memref<1608x128xf32, #tpu.memory_space<vmem>>, vector<8x128xf32>,
    %c0_72 = arith.constant 0 : index
    %c0_73 = arith.constant 0 : index
    %c126 = arith.constant 126 : index
    %72 = vector.load %arg1[%c0_72, %c0_73, %c126] : memref<1x8x512xf32, #tpu.memory_space<vmem>>, vector<1x8x128xf32>
    %73 = vector.shape_cast %72 : vector<1x8x128xf32> to vector<8x128xf32>
    %c184 = arith.constant 184 : index
    %c0_74 = arith.constant 0 : index
    %74 = vector.load %arg13[%c184, %c0_74] : memref<1608x128xf32, #tpu.memory_space<vmem>>, vector<8x128xf32>
    tpu.vector_store %arg13[%c184, %c0_74], %73 {strides = array<i32>} : memref<1608x128xf32, #tpu.memory_space<vmem>>, vector<8x128xf32>,
    %c0_75 = arith.constant 0 : index
    %c0_76 = arith.constant 0 : index
    %c127 = arith.constant 127 : index
    %75 = vector.load %arg1[%c0_75, %c0_76, %c127] : memref<1x8x512xf32, #tpu.memory_space<vmem>>, vector<1x8x128xf32>
    %76 = vector.shape_cast %75 : vector<1x8x128xf32> to vector<8x128xf32>
    %c192 = arith.constant 192 : index
    %c0_77 = arith.constant 0 : index
    %77 = vector.load %arg13[%c192, %c0_77] : memref<1608x128xf32, #tpu.memory_space<vmem>>, vector<8x128xf32>
    tpu.vector_store %arg13[%c192, %c0_77], %76 {strides = array<i32>} : memref<1608x128xf32, #tpu.memory_space<vmem>>, vector<8x128xf32>,
    %c0_78 = arith.constant 0 : index
    %c0_79 = arith.constant 0 : index
    %c128_80 = arith.constant 128 : index
    %78 = vector.load %arg1[%c0_78, %c0_79, %c128_80] : memref<1x8x512xf32, #tpu.memory_space<vmem>>, vector<1x8x128xf32>
    %79 = vector.shape_cast %78 : vector<1x8x128xf32> to vector<8x128xf32>
    %c200 = arith.constant 200 : index
    %c0_81 = arith.constant 0 : index
    %80 = vector.load %arg13[%c200, %c0_81] : memref<1608x128xf32, #tpu.memory_space<vmem>>, vector<8x128xf32>
    tpu.vector_store %arg13[%c200, %c0_81], %79 {strides = array<i32>} : memref<1608x128xf32, #tpu.memory_space<vmem>>, vector<8x128xf32>,
    %c0_82 = arith.constant 0 : index
    %c0_83 = arith.constant 0 : index
    %c129 = arith.constant 129 : index
    %81 = vector.load %arg1[%c0_82, %c0_83, %c129] : memref<1x8x512xf32, #tpu.memory_space<vmem>>, vector<1x8x128xf32>
    %82 = vector.shape_cast %81 : vector<1x8x128xf32> to vector<8x128xf32>
    %c208 = arith.constant 208 : index
    %c0_84 = arith.constant 0 : index
    %83 = vector.load %arg13[%c208, %c0_84] : memref<1608x128xf32, #tpu.memory_space<vmem>>, vector<8x128xf32>
    tpu.vector_store %arg13[%c208, %c0_84], %82 {strides = array<i32>} : memref<1608x128xf32, #tpu.memory_space<vmem>>, vector<8x128xf32>,
    %c0_85 = arith.constant 0 : index
    %c0_86 = arith.constant 0 : index
    %c130 = arith.constant 130 : index
    %84 = vector.load %arg1[%c0_85, %c0_86, %c130] : memref<1x8x512xf32, #tpu.memory_space<vmem>>, vector<1x8x128xf32>
    %85 = vector.shape_cast %84 : vector<1x8x128xf32> to vector<8x128xf32>
    %c216 = arith.constant 216 : index
    %c0_87 = arith.constant 0 : index
    %86 = vector.load %arg13[%c216, %c0_87] : memref<1608x128xf32, #tpu.memory_space<vmem>>, vector<8x128xf32>
    tpu.vector_store %arg13[%c216, %c0_87], %85 {strides = array<i32>} : memref<1608x128xf32, #tpu.memory_space<vmem>>, vector<8x128xf32>,
    %c0_88 = arith.constant 0 : index
    %c0_89 = arith.constant 0 : index
    %c131 = arith.constant 131 : index
    %87 = vector.load %arg1[%c0_88, %c0_89, %c131] : memref<1x8x512xf32, #tpu.memory_space<vmem>>, vector<1x8x128xf32>
    %88 = vector.shape_cast %87 : vector<1x8x128xf32> to vector<8x128xf32>
    %c224 = arith.constant 224 : index
    %c0_90 = arith.constant 0 : index
    %89 = vector.load %arg13[%c224, %c0_90] : memref<1608x128xf32, #tpu.memory_space<vmem>>, vector<8x128xf32>
    tpu.vector_store %arg13[%c224, %c0_90], %88 {strides = array<i32>} : memref<1608x128xf32, #tpu.memory_space<vmem>>, vector<8x128xf32>,
    %c0_91 = arith.constant 0 : index
    %c0_92 = arith.constant 0 : index
    %c132 = arith.constant 132 : index
    %90 = vector.load %arg1[%c0_91, %c0_92, %c132] : memref<1x8x512xf32, #tpu.memory_space<vmem>>, vector<1x8x128xf32>
    %91 = vector.shape_cast %90 : vector<1x8x128xf32> to vector<8x128xf32>
    %c232 = arith.constant 232 : index
    %c0_93 = arith.constant 0 : index
    %92 = vector.load %arg13[%c232, %c0_93] : memref<1608x128xf32, #tpu.memory_space<vmem>>, vector<8x128xf32>
    tpu.vector_store %arg13[%c232, %c0_93], %91 {strides = array<i32>} : memref<1608x128xf32, #tpu.memory_space<vmem>>, vector<8x128xf32>,
    %c0_94 = arith.constant 0 : index
    %c0_95 = arith.constant 0 : index
    %c133 = arith.constant 133 : index
    %93 = vector.load %arg1[%c0_94, %c0_95, %c133] : memref<1x8x512xf32, #tpu.memory_space<vmem>>, vector<1x8x128xf32>
    %94 = vector.shape_cast %93 : vector<1x8x128xf32> to vector<8x128xf32>
    %c240 = arith.constant 240 : index
    %c0_96 = arith.constant 0 : index
    %95 = vector.load %arg13[%c240, %c0_96] : memref<1608x128xf32, #tpu.memory_space<vmem>>, vector<8x128xf32>
    tpu.vector_store %arg13[%c240, %c0_96], %94 {strides = array<i32>} : memref<1608x128xf32, #tpu.memory_space<vmem>>, vector<8x128xf32>,
    %c0_97 = arith.constant 0 : index
    %c0_98 = arith.constant 0 : index
    %c134 = arith.constant 134 : index
    %96 = vector.load %arg1[%c0_97, %c0_98, %c134] : memref<1x8x512xf32, #tpu.memory_space<vmem>>, vector<1x8x128xf32>
    %97 = vector.shape_cast %96 : vector<1x8x128xf32> to vector<8x128xf32>
    %c248 = arith.constant 248 : index
    %c0_99 = arith.constant 0 : index
    %98 = vector.load %arg13[%c248, %c0_99] : memref<1608x128xf32, #tpu.memory_space<vmem>>, vector<8x128xf32>
    tpu.vector_store %arg13[%c248, %c0_99], %97 {strides = array<i32>} : memref<1608x128xf32, #tpu.memory_space<vmem>>, vector<8x128xf32>,
    %c0_100 = arith.constant 0 : index
    %c0_101 = arith.constant 0 : index
    %c135 = arith.constant 135 : index
    %99 = vector.load %arg1[%c0_100, %c0_101, %c135] : memref<1x8x512xf32, #tpu.memory_space<vmem>>, vector<1x8x128xf32>
    %100 = vector.shape_cast %99 : vector<1x8x128xf32> to vector<8x128xf32>
    %c256 = arith.constant 256 : index
    %c0_102 = arith.constant 0 : index
    %101 = vector.load %arg13[%c256, %c0_102] : memref<1608x128xf32, #tpu.memory_space<vmem>>, vector<8x128xf32>
    tpu.vector_store %arg13[%c256, %c0_102], %100 {strides = array<i32>} : memref<1608x128xf32, #tpu.memory_space<vmem>>, vector<8x128xf32>,
    %c0_103 = arith.constant 0 : index
    %c0_104 = arith.constant 0 : index
    %c136_105 = arith.constant 136 : index
    %102 = vector.load %arg1[%c0_103, %c0_104, %c136_105] : memref<1x8x512xf32, #tpu.memory_space<vmem>>, vector<1x8x128xf32>
    %103 = vector.shape_cast %102 : vector<1x8x128xf32> to vector<8x128xf32>
    %c264 = arith.constant 264 : index
    %c0_106 = arith.constant 0 : index
    %104 = vector.load %arg13[%c264, %c0_106] : memref<1608x128xf32, #tpu.memory_space<vmem>>, vector<8x128xf32>
    tpu.vector_store %arg13[%c264, %c0_106], %103 {strides = array<i32>} : memref<1608x128xf32, #tpu.memory_space<vmem>>, vector<8x128xf32>,
    %c0_107 = arith.constant 0 : index
    %c0_108 = arith.constant 0 : index
    %c137 = arith.constant 137 : index
    %105 = vector.load %arg1[%c0_107, %c0_108, %c137] : memref<1x8x512xf32, #tpu.memory_space<vmem>>, vector<1x8x128xf32>
    %106 = vector.shape_cast %105 : vector<1x8x128xf32> to vector<8x128xf32>
    %c272 = arith.constant 272 : index
    %c0_109 = arith.constant 0 : index
    %107 = vector.load %arg13[%c272, %c0_109] : memref<1608x128xf32, #tpu.memory_space<vmem>>, vector<8x128xf32>
    tpu.vector_store %arg13[%c272, %c0_109], %106 {strides = array<i32>} : memref<1608x128xf32, #tpu.memory_space<vmem>>, vector<8x128xf32>,
    %c0_110 = arith.constant 0 : index
    %c0_111 = arith.constant 0 : index
    %c138 = arith.constant 138 : index
    %108 = vector.load %arg1[%c0_110, %c0_111, %c138] : memref<1x8x512xf32, #tpu.memory_space<vmem>>, vector<1x8x128xf32>
    %109 = vector.shape_cast %108 : vector<1x8x128xf32> to vector<8x128xf32>
    %c280 = arith.constant 280 : index
    %c0_112 = arith.constant 0 : index
    %110 = vector.load %arg13[%c280, %c0_112] : memref<1608x128xf32, #tpu.memory_space<vmem>>, vector<8x128xf32>
    tpu.vector_store %arg13[%c280, %c0_112], %109 {strides = array<i32>} : memref<1608x128xf32, #tpu.memory_space<vmem>>, vector<8x128xf32>,
    %c0_113 = arith.constant 0 : index
    %c0_114 = arith.constant 0 : index
    %c139 = arith.constant 139 : index
    %111 = vector.load %arg1[%c0_113, %c0_114, %c139] : memref<1x8x512xf32, #tpu.memory_space<vmem>>, vector<1x8x128xf32>
    %112 = vector.shape_cast %111 : vector<1x8x128xf32> to vector<8x128xf32>
    %c288 = arith.constant 288 : index
    %c0_115 = arith.constant 0 : index
    %113 = vector.load %arg13[%c288, %c0_115] : memref<1608x128xf32, #tpu.memory_space<vmem>>, vector<8x128xf32>
    tpu.vector_store %arg13[%c288, %c0_115], %112 {strides = array<i32>} : memref<1608x128xf32, #tpu.memory_space<vmem>>, vector<8x128xf32>,
    %c0_116 = arith.constant 0 : index
    %c0_117 = arith.constant 0 : index
    %c140 = arith.constant 140 : index
    %114 = vector.load %arg1[%c0_116, %c0_117, %c140] : memref<1x8x512xf32, #tpu.memory_space<vmem>>, vector<1x8x128xf32>
    %115 = vector.shape_cast %114 : vector<1x8x128xf32> to vector<8x128xf32>
    %c296 = arith.constant 296 : index
    %c0_118 = arith.constant 0 : index
    %116 = vector.load %arg13[%c296, %c0_118] : memref<1608x128xf32, #tpu.memory_space<vmem>>, vector<8x128xf32>
    tpu.vector_store %arg13[%c296, %c0_118], %115 {strides = array<i32>} : memref<1608x128xf32, #tpu.memory_space<vmem>>, vector<8x128xf32>,
    %c0_119 = arith.constant 0 : index
    %c0_120 = arith.constant 0 : index
    %c141 = arith.constant 141 : index
    %117 = vector.load %arg1[%c0_119, %c0_120, %c141] : memref<1x8x512xf32, #tpu.memory_space<vmem>>, vector<1x8x128xf32>
    %118 = vector.shape_cast %117 : vector<1x8x128xf32> to vector<8x128xf32>
    %c304 = arith.constant 304 : index
    %c0_121 = arith.constant 0 : index
    %119 = vector.load %arg13[%c304, %c0_121] : memref<1608x128xf32, #tpu.memory_space<vmem>>, vector<8x128xf32>
    tpu.vector_store %arg13[%c304, %c0_121], %118 {strides = array<i32>} : memref<1608x128xf32, #tpu.memory_space<vmem>>, vector<8x128xf32>,
    %c0_122 = arith.constant 0 : index
    %c0_123 = arith.constant 0 : index
    %c142 = arith.constant 142 : index
    %120 = vector.load %arg1[%c0_122, %c0_123, %c142] : memref<1x8x512xf32, #tpu.memory_space<vmem>>, vector<1x8x128xf32>
    %121 = vector.shape_cast %120 : vector<1x8x128xf32> to vector<8x128xf32>
    %c312 = arith.constant 312 : index
    %c0_124 = arith.constant 0 : index
    %122 = vector.load %arg13[%c312, %c0_124] : memref<1608x128xf32, #tpu.memory_space<vmem>>, vector<8x128xf32>
    tpu.vector_store %arg13[%c312, %c0_124], %121 {strides = array<i32>} : memref<1608x128xf32, #tpu.memory_space<vmem>>, vector<8x128xf32>,
    %c0_125 = arith.constant 0 : index
    %c0_126 = arith.constant 0 : index
    %c143 = arith.constant 143 : index
    %123 = vector.load %arg1[%c0_125, %c0_126, %c143] : memref<1x8x512xf32, #tpu.memory_space<vmem>>, vector<1x8x128xf32>
    %124 = vector.shape_cast %123 : vector<1x8x128xf32> to vector<8x128xf32>
    %c320 = arith.constant 320 : index
    %c0_127 = arith.constant 0 : index
    %125 = vector.load %arg13[%c320, %c0_127] : memref<1608x128xf32, #tpu.memory_space<vmem>>, vector<8x128xf32>
    tpu.vector_store %arg13[%c320, %c0_127], %124 {strides = array<i32>} : memref<1608x128xf32, #tpu.memory_space<vmem>>, vector<8x128xf32>,
    %c0_128 = arith.constant 0 : index
    %c0_129 = arith.constant 0 : index
    %c144_130 = arith.constant 144 : index
    %126 = vector.load %arg1[%c0_128, %c0_129, %c144_130] : memref<1x8x512xf32, #tpu.memory_space<vmem>>, vector<1x8x128xf32>
    %127 = vector.shape_cast %126 : vector<1x8x128xf32> to vector<8x128xf32>
    %c328 = arith.constant 328 : index
    %c0_131 = arith.constant 0 : index
    %128 = vector.load %arg13[%c328, %c0_131] : memref<1608x128xf32, #tpu.memory_space<vmem>>, vector<8x128xf32>
    tpu.vector_store %arg13[%c328, %c0_131], %127 {strides = array<i32>} : memref<1608x128xf32, #tpu.memory_space<vmem>>, vector<8x128xf32>,
    %c0_132 = arith.constant 0 : index
    %c0_133 = arith.constant 0 : index
    %c145 = arith.constant 145 : index
    %129 = vector.load %arg1[%c0_132, %c0_133, %c145] : memref<1x8x512xf32, #tpu.memory_space<vmem>>, vector<1x8x128xf32>
    %130 = vector.shape_cast %129 : vector<1x8x128xf32> to vector<8x128xf32>
    %c336 = arith.constant 336 : index
    %c0_134 = arith.constant 0 : index
    %131 = vector.load %arg13[%c336, %c0_134] : memref<1608x128xf32, #tpu.memory_space<vmem>>, vector<8x128xf32>
    tpu.vector_store %arg13[%c336, %c0_134], %130 {strides = array<i32>} : memref<1608x128xf32, #tpu.memory_space<vmem>>, vector<8x128xf32>,
    %c0_135 = arith.constant 0 : index
    %c0_136 = arith.constant 0 : index
    %c146 = arith.constant 146 : index
    %132 = vector.load %arg1[%c0_135, %c0_136, %c146] : memref<1x8x512xf32, #tpu.memory_space<vmem>>, vector<1x8x128xf32>
    %133 = vector.shape_cast %132 : vector<1x8x128xf32> to vector<8x128xf32>
    %c344 = arith.constant 344 : index
    %c0_137 = arith.constant 0 : index
    %134 = vector.load %arg13[%c344, %c0_137] : memref<1608x128xf32, #tpu.memory_space<vmem>>, vector<8x128xf32>
    tpu.vector_store %arg13[%c344, %c0_137], %133 {strides = array<i32>} : memref<1608x128xf32, #tpu.memory_space<vmem>>, vector<8x128xf32>,
    %c0_138 = arith.constant 0 : index
    %c0_139 = arith.constant 0 : index
    %c147 = arith.constant 147 : index
    %135 = vector.load %arg1[%c0_138, %c0_139, %c147] : memref<1x8x512xf32, #tpu.memory_space<vmem>>, vector<1x8x128xf32>
    %136 = vector.shape_cast %135 : vector<1x8x128xf32> to vector<8x128xf32>
    %c352 = arith.constant 352 : index
    %c0_140 = arith.constant 0 : index
    %137 = vector.load %arg13[%c352, %c0_140] : memref<1608x128xf32, #tpu.memory_space<vmem>>, vector<8x128xf32>
    tpu.vector_store %arg13[%c352, %c0_140], %136 {strides = array<i32>} : memref<1608x128xf32, #tpu.memory_space<vmem>>, vector<8x128xf32>,
    %c0_141 = arith.constant 0 : index
    %c0_142 = arith.constant 0 : index
    %c148 = arith.constant 148 : index
    %138 = vector.load %arg1[%c0_141, %c0_142, %c148] : memref<1x8x512xf32, #tpu.memory_space<vmem>>, vector<1x8x128xf32>
    %139 = vector.shape_cast %138 : vector<1x8x128xf32> to vector<8x128xf32>
    %c360 = arith.constant 360 : index
    %c0_143 = arith.constant 0 : index
    %140 = vector.load %arg13[%c360, %c0_143] : memref<1608x128xf32, #tpu.memory_space<vmem>>, vector<8x128xf32>
    tpu.vector_store %arg13[%c360, %c0_143], %139 {strides = array<i32>} : memref<1608x128xf32, #tpu.memory_space<vmem>>, vector<8x128xf32>,
    %c0_144 = arith.constant 0 : index
    %c0_145 = arith.constant 0 : index
    %c149 = arith.constant 149 : index
    %141 = vector.load %arg1[%c0_144, %c0_145, %c149] : memref<1x8x512xf32, #tpu.memory_space<vmem>>, vector<1x8x128xf32>
    %142 = vector.shape_cast %141 : vector<1x8x128xf32> to vector<8x128xf32>
    %c368 = arith.constant 368 : index
    %c0_146 = arith.constant 0 : index
    %143 = vector.load %arg13[%c368, %c0_146] : memref<1608x128xf32, #tpu.memory_space<vmem>>, vector<8x128xf32>
    tpu.vector_store %arg13[%c368, %c0_146], %142 {strides = array<i32>} : memref<1608x128xf32, #tpu.memory_space<vmem>>, vector<8x128xf32>,
    %c0_147 = arith.constant 0 : index
    %c0_148 = arith.constant 0 : index
    %c150 = arith.constant 150 : index
    %144 = vector.load %arg1[%c0_147, %c0_148, %c150] : memref<1x8x512xf32, #tpu.memory_space<vmem>>, vector<1x8x128xf32>
    %145 = vector.shape_cast %144 : vector<1x8x128xf32> to vector<8x128xf32>
    %c376 = arith.constant 376 : index
    %c0_149 = arith.constant 0 : index
    %146 = vector.load %arg13[%c376, %c0_149] : memref<1608x128xf32, #tpu.memory_space<vmem>>, vector<8x128xf32>
    tpu.vector_store %arg13[%c376, %c0_149], %145 {strides = array<i32>} : memref<1608x128xf32, #tpu.memory_space<vmem>>, vector<8x128xf32>,
    %c0_150 = arith.constant 0 : index
    %c0_151 = arith.constant 0 : index
    %c151 = arith.constant 151 : index
    %147 = vector.load %arg1[%c0_150, %c0_151, %c151] : memref<1x8x512xf32, #tpu.memory_space<vmem>>, vector<1x8x128xf32>
    %148 = vector.shape_cast %147 : vector<1x8x128xf32> to vector<8x128xf32>
    %c384 = arith.constant 384 : index
    %c0_152 = arith.constant 0 : index
    %149 = vector.load %arg13[%c384, %c0_152] : memref<1608x128xf32, #tpu.memory_space<vmem>>, vector<8x128xf32>
    tpu.vector_store %arg13[%c384, %c0_152], %148 {strides = array<i32>} : memref<1608x128xf32, #tpu.memory_space<vmem>>, vector<8x128xf32>,
    %c0_153 = arith.constant 0 : index
    %c0_154 = arith.constant 0 : index
    %c152_155 = arith.constant 152 : index
    %150 = vector.load %arg1[%c0_153, %c0_154, %c152_155] : memref<1x8x512xf32, #tpu.memory_space<vmem>>, vector<1x8x128xf32>
    %151 = vector.shape_cast %150 : vector<1x8x128xf32> to vector<8x128xf32>
    %c392 = arith.constant 392 : index
    %c0_156 = arith.constant 0 : index
    %152 = vector.load %arg13[%c392, %c0_156] : memref<1608x128xf32, #tpu.memory_space<vmem>>, vector<8x128xf32>
    tpu.vector_store %arg13[%c392, %c0_156], %151 {strides = array<i32>} : memref<1608x128xf32, #tpu.memory_space<vmem>>, vector<8x128xf32>,
    %c0_157 = arith.constant 0 : index
    %c0_158 = arith.constant 0 : index
    %c153 = arith.constant 153 : index
    %153 = vector.load %arg1[%c0_157, %c0_158, %c153] : memref<1x8x512xf32, #tpu.memory_space<vmem>>, vector<1x8x128xf32>
    %154 = vector.shape_cast %153 : vector<1x8x128xf32> to vector<8x128xf32>
    %c400 = arith.constant 400 : index
    %c0_159 = arith.constant 0 : index
    %155 = vector.load %arg13[%c400, %c0_159] : memref<1608x128xf32, #tpu.memory_space<vmem>>, vector<8x128xf32>
    tpu.vector_store %arg13[%c400, %c0_159], %154 {strides = array<i32>} : memref<1608x128xf32, #tpu.memory_space<vmem>>, vector<8x128xf32>,
    %c0_160 = arith.constant 0 : index
    %c0_161 = arith.constant 0 : index
    %c154 = arith.constant 154 : index
    %156 = vector.load %arg1[%c0_160, %c0_161, %c154] : memref<1x8x512xf32, #tpu.memory_space<vmem>>, vector<1x8x128xf32>
    %157 = vector.shape_cast %156 : vector<1x8x128xf32> to vector<8x128xf32>
    %c408 = arith.constant 408 : index
    %c0_162 = arith.constant 0 : index
    %158 = vector.load %arg13[%c408, %c0_162] : memref<1608x128xf32, #tpu.memory_space<vmem>>, vector<8x128xf32>
    tpu.vector_store %arg13[%c408, %c0_162], %157 {strides = array<i32>} : memref<1608x128xf32, #tpu.memory_space<vmem>>, vector<8x128xf32>,
    %c0_163 = arith.constant 0 : index
    %c0_164 = arith.constant 0 : index
    %c155 = arith.constant 155 : index
    %159 = vector.load %arg1[%c0_163, %c0_164, %c155] : memref<1x8x512xf32, #tpu.memory_space<vmem>>, vector<1x8x128xf32>
    %160 = vector.shape_cast %159 : vector<1x8x128xf32> to vector<8x128xf32>
    %c416 = arith.constant 416 : index
    %c0_165 = arith.constant 0 : index
    %161 = vector.load %arg13[%c416, %c0_165] : memref<1608x128xf32, #tpu.memory_space<vmem>>, vector<8x128xf32>
    tpu.vector_store %arg13[%c416, %c0_165], %160 {strides = array<i32>} : memref<1608x128xf32, #tpu.memory_space<vmem>>, vector<8x128xf32>,
    %c0_166 = arith.constant 0 : index
    %c0_167 = arith.constant 0 : index
    %c156 = arith.constant 156 : index
    %162 = vector.load %arg1[%c0_166, %c0_167, %c156] : memref<1x8x512xf32, #tpu.memory_space<vmem>>, vector<1x8x128xf32>
    %163 = vector.shape_cast %162 : vector<1x8x128xf32> to vector<8x128xf32>
    %c424 = arith.constant 424 : index
    %c0_168 = arith.constant 0 : index
    %164 = vector.load %arg13[%c424, %c0_168] : memref<1608x128xf32, #tpu.memory_space<vmem>>, vector<8x128xf32>
    tpu.vector_store %arg13[%c424, %c0_168], %163 {strides = array<i32>} : memref<1608x128xf32, #tpu.memory_space<vmem>>, vector<8x128xf32>,
    %c0_169 = arith.constant 0 : index
    %c0_170 = arith.constant 0 : index
    %c157 = arith.constant 157 : index
    %165 = vector.load %arg1[%c0_169, %c0_170, %c157] : memref<1x8x512xf32, #tpu.memory_space<vmem>>, vector<1x8x128xf32>
    %166 = vector.shape_cast %165 : vector<1x8x128xf32> to vector<8x128xf32>
    %c432 = arith.constant 432 : index
    %c0_171 = arith.constant 0 : index
    %167 = vector.load %arg13[%c432, %c0_171] : memref<1608x128xf32, #tpu.memory_space<vmem>>, vector<8x128xf32>
    tpu.vector_store %arg13[%c432, %c0_171], %166 {strides = array<i32>} : memref<1608x128xf32, #tpu.memory_space<vmem>>, vector<8x128xf32>,
    %c0_172 = arith.constant 0 : index
    %c0_173 = arith.constant 0 : index
    %c158 = arith.constant 158 : index
    %168 = vector.load %arg1[%c0_172, %c0_173, %c158] : memref<1x8x512xf32, #tpu.memory_space<vmem>>, vector<1x8x128xf32>
    %169 = vector.shape_cast %168 : vector<1x8x128xf32> to vector<8x128xf32>
    %c440 = arith.constant 440 : index
    %c0_174 = arith.constant 0 : index
    %170 = vector.load %arg13[%c440, %c0_174] : memref<1608x128xf32, #tpu.memory_space<vmem>>, vector<8x128xf32>
    tpu.vector_store %arg13[%c440, %c0_174], %169 {strides = array<i32>} : memref<1608x128xf32, #tpu.memory_space<vmem>>, vector<8x128xf32>,
    %c0_175 = arith.constant 0 : index
    %c0_176 = arith.constant 0 : index
    %c159 = arith.constant 159 : index
    %171 = vector.load %arg1[%c0_175, %c0_176, %c159] : memref<1x8x512xf32, #tpu.memory_space<vmem>>, vector<1x8x128xf32>
    %172 = vector.shape_cast %171 : vector<1x8x128xf32> to vector<8x128xf32>
    %c448 = arith.constant 448 : index
    %c0_177 = arith.constant 0 : index
    %173 = vector.load %arg13[%c448, %c0_177] : memref<1608x128xf32, #tpu.memory_space<vmem>>, vector<8x128xf32>
    tpu.vector_store %arg13[%c448, %c0_177], %172 {strides = array<i32>} : memref<1608x128xf32, #tpu.memory_space<vmem>>, vector<8x128xf32>,
    %c0_178 = arith.constant 0 : index
    %c0_179 = arith.constant 0 : index
    %c160_180 = arith.constant 160 : index
    %174 = vector.load %arg1[%c0_178, %c0_179, %c160_180] : memref<1x8x512xf32, #tpu.memory_space<vmem>>, vector<1x8x128xf32>
    %175 = vector.shape_cast %174 : vector<1x8x128xf32> to vector<8x128xf32>
    %c456 = arith.constant 456 : index
    %c0_181 = arith.constant 0 : index
    %176 = vector.load %arg13[%c456, %c0_181] : memref<1608x128xf32, #tpu.memory_space<vmem>>, vector<8x128xf32>
    tpu.vector_store %arg13[%c456, %c0_181], %175 {strides = array<i32>} : memref<1608x128xf32, #tpu.memory_space<vmem>>, vector<8x128xf32>,
    %c0_182 = arith.constant 0 : index
    %c0_183 = arith.constant 0 : index
    %c161 = arith.constant 161 : index
    %177 = vector.load %arg1[%c0_182, %c0_183, %c161] : memref<1x8x512xf32, #tpu.memory_space<vmem>>, vector<1x8x128xf32>
    %178 = vector.shape_cast %177 : vector<1x8x128xf32> to vector<8x128xf32>
    %c464 = arith.constant 464 : index
    %c0_184 = arith.constant 0 : index
    %179 = vector.load %arg13[%c464, %c0_184] : memref<1608x128xf32, #tpu.memory_space<vmem>>, vector<8x128xf32>
    tpu.vector_store %arg13[%c464, %c0_184], %178 {strides = array<i32>} : memref<1608x128xf32, #tpu.memory_space<vmem>>, vector<8x128xf32>,
    %c0_185 = arith.constant 0 : index
    %c0_186 = arith.constant 0 : index
    %c162 = arith.constant 162 : index
    %180 = vector.load %arg1[%c0_185, %c0_186, %c162] : memref<1x8x512xf32, #tpu.memory_space<vmem>>, vector<1x8x128xf32>
    %181 = vector.shape_cast %180 : vector<1x8x128xf32> to vector<8x128xf32>
    %c472 = arith.constant 472 : index
    %c0_187 = arith.constant 0 : index
    %182 = vector.load %arg13[%c472, %c0_187] : memref<1608x128xf32, #tpu.memory_space<vmem>>, vector<8x128xf32>
    tpu.vector_store %arg13[%c472, %c0_187], %181 {strides = array<i32>} : memref<1608x128xf32, #tpu.memory_space<vmem>>, vector<8x128xf32>,
    %c0_188 = arith.constant 0 : index
    %c0_189 = arith.constant 0 : index
    %c163 = arith.constant 163 : index
    %183 = vector.load %arg1[%c0_188, %c0_189, %c163] : memref<1x8x512xf32, #tpu.memory_space<vmem>>, vector<1x8x128xf32>
    %184 = vector.shape_cast %183 : vector<1x8x128xf32> to vector<8x128xf32>
    %c480 = arith.constant 480 : index
    %c0_190 = arith.constant 0 : index
    %185 = vector.load %arg13[%c480, %c0_190] : memref<1608x128xf32, #tpu.memory_space<vmem>>, vector<8x128xf32>
    tpu.vector_store %arg13[%c480, %c0_190], %184 {strides = array<i32>} : memref<1608x128xf32, #tpu.memory_space<vmem>>, vector<8x128xf32>,
    %c0_191 = arith.constant 0 : index
    %c0_192 = arith.constant 0 : index
    %c164 = arith.constant 164 : index
    %186 = vector.load %arg1[%c0_191, %c0_192, %c164] : memref<1x8x512xf32, #tpu.memory_space<vmem>>, vector<1x8x128xf32>
    %187 = vector.shape_cast %186 : vector<1x8x128xf32> to vector<8x128xf32>
    %c488 = arith.constant 488 : index
    %c0_193 = arith.constant 0 : index
    %188 = vector.load %arg13[%c488, %c0_193] : memref<1608x128xf32, #tpu.memory_space<vmem>>, vector<8x128xf32>
    tpu.vector_store %arg13[%c488, %c0_193], %187 {strides = array<i32>} : memref<1608x128xf32, #tpu.memory_space<vmem>>, vector<8x128xf32>,
    %c0_194 = arith.constant 0 : index
    %c0_195 = arith.constant 0 : index
    %c165 = arith.constant 165 : index
    %189 = vector.load %arg1[%c0_194, %c0_195, %c165] : memref<1x8x512xf32, #tpu.memory_space<vmem>>, vector<1x8x128xf32>
    %190 = vector.shape_cast %189 : vector<1x8x128xf32> to vector<8x128xf32>
    %c496 = arith.constant 496 : index
    %c0_196 = arith.constant 0 : index
    %191 = vector.load %arg13[%c496, %c0_196] : memref<1608x128xf32, #tpu.memory_space<vmem>>, vector<8x128xf32>
    tpu.vector_store %arg13[%c496, %c0_196], %190 {strides = array<i32>} : memref<1608x128xf32, #tpu.memory_space<vmem>>, vector<8x128xf32>,
    %c0_197 = arith.constant 0 : index
    %c0_198 = arith.constant 0 : index
    %c166 = arith.constant 166 : index
    %192 = vector.load %arg1[%c0_197, %c0_198, %c166] : memref<1x8x512xf32, #tpu.memory_space<vmem>>, vector<1x8x128xf32>
    %193 = vector.shape_cast %192 : vector<1x8x128xf32> to vector<8x128xf32>
    %c504 = arith.constant 504 : index
    %c0_199 = arith.constant 0 : index
    %194 = vector.load %arg13[%c504, %c0_199] : memref<1608x128xf32, #tpu.memory_space<vmem>>, vector<8x128xf32>
    tpu.vector_store %arg13[%c504, %c0_199], %193 {strides = array<i32>} : memref<1608x128xf32, #tpu.memory_space<vmem>>, vector<8x128xf32>,
    %c0_200 = arith.constant 0 : index
    %c0_201 = arith.constant 0 : index
    %c167 = arith.constant 167 : index
    %195 = vector.load %arg1[%c0_200, %c0_201, %c167] : memref<1x8x512xf32, #tpu.memory_space<vmem>>, vector<1x8x128xf32>
    %196 = vector.shape_cast %195 : vector<1x8x128xf32> to vector<8x128xf32>
    %c512 = arith.constant 512 : index
    %c0_202 = arith.constant 0 : index
    %197 = vector.load %arg13[%c512, %c0_202] : memref<1608x128xf32, #tpu.memory_space<vmem>>, vector<8x128xf32>
    tpu.vector_store %arg13[%c512, %c0_202], %196 {strides = array<i32>} : memref<1608x128xf32, #tpu.memory_space<vmem>>, vector<8x128xf32>,
    %c0_203 = arith.constant 0 : index
    %c0_204 = arith.constant 0 : index
    %c168_205 = arith.constant 168 : index
    %198 = vector.load %arg1[%c0_203, %c0_204, %c168_205] : memref<1x8x512xf32, #tpu.memory_space<vmem>>, vector<1x8x128xf32>
    %199 = vector.shape_cast %198 : vector<1x8x128xf32> to vector<8x128xf32>
    %c520 = arith.constant 520 : index
    %c0_206 = arith.constant 0 : index
    %200 = vector.load %arg13[%c520, %c0_206] : memref<1608x128xf32, #tpu.memory_space<vmem>>, vector<8x128xf32>
    tpu.vector_store %arg13[%c520, %c0_206], %199 {strides = array<i32>} : memref<1608x128xf32, #tpu.memory_space<vmem>>, vector<8x128xf32>,
    %c0_207 = arith.constant 0 : index
    %c0_208 = arith.constant 0 : index
    %c169 = arith.constant 169 : index
    %201 = vector.load %arg1[%c0_207, %c0_208, %c169] : memref<1x8x512xf32, #tpu.memory_space<vmem>>, vector<1x8x128xf32>
    %202 = vector.shape_cast %201 : vector<1x8x128xf32> to vector<8x128xf32>
    %c528 = arith.constant 528 : index
    %c0_209 = arith.constant 0 : index
    %203 = vector.load %arg13[%c528, %c0_209] : memref<1608x128xf32, #tpu.memory_space<vmem>>, vector<8x128xf32>
    tpu.vector_store %arg13[%c528, %c0_209], %202 {strides = array<i32>} : memref<1608x128xf32, #tpu.memory_space<vmem>>, vector<8x128xf32>,
    %c0_210 = arith.constant 0 : index
    %c0_211 = arith.constant 0 : index
    %c170 = arith.constant 170 : index
    %204 = vector.load %arg1[%c0_210, %c0_211, %c170] : memref<1x8x512xf32, #tpu.memory_space<vmem>>, vector<1x8x128xf32>
    %205 = vector.shape_cast %204 : vector<1x8x128xf32> to vector<8x128xf32>
    %c536 = arith.constant 536 : index
    %c0_212 = arith.constant 0 : index
    %206 = vector.load %arg13[%c536, %c0_212] : memref<1608x128xf32, #tpu.memory_space<vmem>>, vector<8x128xf32>
    tpu.vector_store %arg13[%c536, %c0_212], %205 {strides = array<i32>} : memref<1608x128xf32, #tpu.memory_space<vmem>>, vector<8x128xf32>,
    %c0_213 = arith.constant 0 : index
    %c0_214 = arith.constant 0 : index
    %c171 = arith.constant 171 : index
    %207 = vector.load %arg1[%c0_213, %c0_214, %c171] : memref<1x8x512xf32, #tpu.memory_space<vmem>>, vector<1x8x128xf32>
    %208 = vector.shape_cast %207 : vector<1x8x128xf32> to vector<8x128xf32>
    %c544 = arith.constant 544 : index
    %c0_215 = arith.constant 0 : index
    %209 = vector.load %arg13[%c544, %c0_215] : memref<1608x128xf32, #tpu.memory_space<vmem>>, vector<8x128xf32>
    tpu.vector_store %arg13[%c544, %c0_215], %208 {strides = array<i32>} : memref<1608x128xf32, #tpu.memory_space<vmem>>, vector<8x128xf32>,
    %c0_216 = arith.constant 0 : index
    %c0_217 = arith.constant 0 : index
    %c172 = arith.constant 172 : index
    %210 = vector.load %arg1[%c0_216, %c0_217, %c172] : memref<1x8x512xf32, #tpu.memory_space<vmem>>, vector<1x8x128xf32>
    %211 = vector.shape_cast %210 : vector<1x8x128xf32> to vector<8x128xf32>
    %c552 = arith.constant 552 : index
    %c0_218 = arith.constant 0 : index
    %212 = vector.load %arg13[%c552, %c0_218] : memref<1608x128xf32, #tpu.memory_space<vmem>>, vector<8x128xf32>
    tpu.vector_store %arg13[%c552, %c0_218], %211 {strides = array<i32>} : memref<1608x128xf32, #tpu.memory_space<vmem>>, vector<8x128xf32>,
    %c0_219 = arith.constant 0 : index
    %c0_220 = arith.constant 0 : index
    %c173 = arith.constant 173 : index
    %213 = vector.load %arg1[%c0_219, %c0_220, %c173] : memref<1x8x512xf32, #tpu.memory_space<vmem>>, vector<1x8x128xf32>
    %214 = vector.shape_cast %213 : vector<1x8x128xf32> to vector<8x128xf32>
    %c560 = arith.constant 560 : index
    %c0_221 = arith.constant 0 : index
    %215 = vector.load %arg13[%c560, %c0_221] : memref<1608x128xf32, #tpu.memory_space<vmem>>, vector<8x128xf32>
    tpu.vector_store %arg13[%c560, %c0_221], %214 {strides = array<i32>} : memref<1608x128xf32, #tpu.memory_space<vmem>>, vector<8x128xf32>,
    %c0_222 = arith.constant 0 : index
    %c0_223 = arith.constant 0 : index
    %c174 = arith.constant 174 : index
    %216 = vector.load %arg1[%c0_222, %c0_223, %c174] : memref<1x8x512xf32, #tpu.memory_space<vmem>>, vector<1x8x128xf32>
    %217 = vector.shape_cast %216 : vector<1x8x128xf32> to vector<8x128xf32>
    %c568 = arith.constant 568 : index
    %c0_224 = arith.constant 0 : index
    %218 = vector.load %arg13[%c568, %c0_224] : memref<1608x128xf32, #tpu.memory_space<vmem>>, vector<8x128xf32>
    tpu.vector_store %arg13[%c568, %c0_224], %217 {strides = array<i32>} : memref<1608x128xf32, #tpu.memory_space<vmem>>, vector<8x128xf32>,
    %c0_225 = arith.constant 0 : index
    %c0_226 = arith.constant 0 : index
    %c175 = arith.constant 175 : index
    %219 = vector.load %arg1[%c0_225, %c0_226, %c175] : memref<1x8x512xf32, #tpu.memory_space<vmem>>, vector<1x8x128xf32>
    %220 = vector.shape_cast %219 : vector<1x8x128xf32> to vector<8x128xf32>
    %c576 = arith.constant 576 : index
    %c0_227 = arith.constant 0 : index
    %221 = vector.load %arg13[%c576, %c0_227] : memref<1608x128xf32, #tpu.memory_space<vmem>>, vector<8x128xf32>
    tpu.vector_store %arg13[%c576, %c0_227], %220 {strides = array<i32>} : memref<1608x128xf32, #tpu.memory_space<vmem>>, vector<8x128xf32>,
    %c0_228 = arith.constant 0 : index
    %c0_229 = arith.constant 0 : index
    %c176_230 = arith.constant 176 : index
    %222 = vector.load %arg1[%c0_228, %c0_229, %c176_230] : memref<1x8x512xf32, #tpu.memory_space<vmem>>, vector<1x8x128xf32>
    %223 = vector.shape_cast %222 : vector<1x8x128xf32> to vector<8x128xf32>
    %c584 = arith.constant 584 : index
    %c0_231 = arith.constant 0 : index
    %224 = vector.load %arg13[%c584, %c0_231] : memref<1608x128xf32, #tpu.memory_space<vmem>>, vector<8x128xf32>
    tpu.vector_store %arg13[%c584, %c0_231], %223 {strides = array<i32>} : memref<1608x128xf32, #tpu.memory_space<vmem>>, vector<8x128xf32>,
    %c0_232 = arith.constant 0 : index
    %c0_233 = arith.constant 0 : index
    %c177 = arith.constant 177 : index
    %225 = vector.load %arg1[%c0_232, %c0_233, %c177] : memref<1x8x512xf32, #tpu.memory_space<vmem>>, vector<1x8x128xf32>
    %226 = vector.shape_cast %225 : vector<1x8x128xf32> to vector<8x128xf32>
    %c592 = arith.constant 592 : index
    %c0_234 = arith.constant 0 : index
    %227 = vector.load %arg13[%c592, %c0_234] : memref<1608x128xf32, #tpu.memory_space<vmem>>, vector<8x128xf32>
    tpu.vector_store %arg13[%c592, %c0_234], %226 {strides = array<i32>} : memref<1608x128xf32, #tpu.memory_space<vmem>>, vector<8x128xf32>,
    %c0_235 = arith.constant 0 : index
    %c0_236 = arith.constant 0 : index
    %c178 = arith.constant 178 : index
    %228 = vector.load %arg1[%c0_235, %c0_236, %c178] : memref<1x8x512xf32, #tpu.memory_space<vmem>>, vector<1x8x128xf32>
    %229 = vector.shape_cast %228 : vector<1x8x128xf32> to vector<8x128xf32>
    %c600 = arith.constant 600 : index
    %c0_237 = arith.constant 0 : index
    %230 = vector.load %arg13[%c600, %c0_237] : memref<1608x128xf32, #tpu.memory_space<vmem>>, vector<8x128xf32>
    tpu.vector_store %arg13[%c600, %c0_237], %229 {strides = array<i32>} : memref<1608x128xf32, #tpu.memory_space<vmem>>, vector<8x128xf32>,
    %c0_238 = arith.constant 0 : index
    %c0_239 = arith.constant 0 : index
    %c179 = arith.constant 179 : index
    %231 = vector.load %arg1[%c0_238, %c0_239, %c179] : memref<1x8x512xf32, #tpu.memory_space<vmem>>, vector<1x8x128xf32>
    %232 = vector.shape_cast %231 : vector<1x8x128xf32> to vector<8x128xf32>
    %c608 = arith.constant 608 : index
    %c0_240 = arith.constant 0 : index
    %233 = vector.load %arg13[%c608, %c0_240] : memref<1608x128xf32, #tpu.memory_space<vmem>>, vector<8x128xf32>
    tpu.vector_store %arg13[%c608, %c0_240], %232 {strides = array<i32>} : memref<1608x128xf32, #tpu.memory_space<vmem>>, vector<8x128xf32>,
    %c0_241 = arith.constant 0 : index
    %c0_242 = arith.constant 0 : index
    %c180 = arith.constant 180 : index
    %234 = vector.load %arg1[%c0_241, %c0_242, %c180] : memref<1x8x512xf32, #tpu.memory_space<vmem>>, vector<1x8x128xf32>
    %235 = vector.shape_cast %234 : vector<1x8x128xf32> to vector<8x128xf32>
    %c616 = arith.constant 616 : index
    %c0_243 = arith.constant 0 : index
    %236 = vector.load %arg13[%c616, %c0_243] : memref<1608x128xf32, #tpu.memory_space<vmem>>, vector<8x128xf32>
    tpu.vector_store %arg13[%c616, %c0_243], %235 {strides = array<i32>} : memref<1608x128xf32, #tpu.memory_space<vmem>>, vector<8x128xf32>,
    %c0_244 = arith.constant 0 : index
    %c0_245 = arith.constant 0 : index
    %c181 = arith.constant 181 : index
    %237 = vector.load %arg1[%c0_244, %c0_245, %c181] : memref<1x8x512xf32, #tpu.memory_space<vmem>>, vector<1x8x128xf32>
    %238 = vector.shape_cast %237 : vector<1x8x128xf32> to vector<8x128xf32>
    %c624 = arith.constant 624 : index
    %c0_246 = arith.constant 0 : index
    %239 = vector.load %arg13[%c624, %c0_246] : memref<1608x128xf32, #tpu.memory_space<vmem>>, vector<8x128xf32>
    tpu.vector_store %arg13[%c624, %c0_246], %238 {strides = array<i32>} : memref<1608x128xf32, #tpu.memory_space<vmem>>, vector<8x128xf32>,
    %c0_247 = arith.constant 0 : index
    %c0_248 = arith.constant 0 : index
    %c182 = arith.constant 182 : index
    %240 = vector.load %arg1[%c0_247, %c0_248, %c182] : memref<1x8x512xf32, #tpu.memory_space<vmem>>, vector<1x8x128xf32>
    %241 = vector.shape_cast %240 : vector<1x8x128xf32> to vector<8x128xf32>
    %c632 = arith.constant 632 : index
    %c0_249 = arith.constant 0 : index
    %242 = vector.load %arg13[%c632, %c0_249] : memref<1608x128xf32, #tpu.memory_space<vmem>>, vector<8x128xf32>
    tpu.vector_store %arg13[%c632, %c0_249], %241 {strides = array<i32>} : memref<1608x128xf32, #tpu.memory_space<vmem>>, vector<8x128xf32>,
    %c0_250 = arith.constant 0 : index
    %c0_251 = arith.constant 0 : index
    %c183 = arith.constant 183 : index
    %243 = vector.load %arg1[%c0_250, %c0_251, %c183] : memref<1x8x512xf32, #tpu.memory_space<vmem>>, vector<1x8x128xf32>
    %244 = vector.shape_cast %243 : vector<1x8x128xf32> to vector<8x128xf32>
    %c640 = arith.constant 640 : index
    %c0_252 = arith.constant 0 : index
    %245 = vector.load %arg13[%c640, %c0_252] : memref<1608x128xf32, #tpu.memory_space<vmem>>, vector<8x128xf32>
    tpu.vector_store %arg13[%c640, %c0_252], %244 {strides = array<i32>} : memref<1608x128xf32, #tpu.memory_space<vmem>>, vector<8x128xf32>,
    %c0_253 = arith.constant 0 : index
    %c0_254 = arith.constant 0 : index
    %c184_255 = arith.constant 184 : index
    %246 = vector.load %arg1[%c0_253, %c0_254, %c184_255] : memref<1x8x512xf32, #tpu.memory_space<vmem>>, vector<1x8x128xf32>
    %247 = vector.shape_cast %246 : vector<1x8x128xf32> to vector<8x128xf32>
    %c648 = arith.constant 648 : index
    %c0_256 = arith.constant 0 : index
    %248 = vector.load %arg13[%c648, %c0_256] : memref<1608x128xf32, #tpu.memory_space<vmem>>, vector<8x128xf32>
    tpu.vector_store %arg13[%c648, %c0_256], %247 {strides = array<i32>} : memref<1608x128xf32, #tpu.memory_space<vmem>>, vector<8x128xf32>,
    %c0_257 = arith.constant 0 : index
    %c0_258 = arith.constant 0 : index
    %c185 = arith.constant 185 : index
    %249 = vector.load %arg1[%c0_257, %c0_258, %c185] : memref<1x8x512xf32, #tpu.memory_space<vmem>>, vector<1x8x128xf32>
    %250 = vector.shape_cast %249 : vector<1x8x128xf32> to vector<8x128xf32>
    %c656 = arith.constant 656 : index
    %c0_259 = arith.constant 0 : index
    %251 = vector.load %arg13[%c656, %c0_259] : memref<1608x128xf32, #tpu.memory_space<vmem>>, vector<8x128xf32>
    tpu.vector_store %arg13[%c656, %c0_259], %250 {strides = array<i32>} : memref<1608x128xf32, #tpu.memory_space<vmem>>, vector<8x128xf32>,
    %c0_260 = arith.constant 0 : index
    %c0_261 = arith.constant 0 : index
    %c186 = arith.constant 186 : index
    %252 = vector.load %arg1[%c0_260, %c0_261, %c186] : memref<1x8x512xf32, #tpu.memory_space<vmem>>, vector<1x8x128xf32>
    %253 = vector.shape_cast %252 : vector<1x8x128xf32> to vector<8x128xf32>
    %c664 = arith.constant 664 : index
    %c0_262 = arith.constant 0 : index
    %254 = vector.load %arg13[%c664, %c0_262] : memref<1608x128xf32, #tpu.memory_space<vmem>>, vector<8x128xf32>
    tpu.vector_store %arg13[%c664, %c0_262], %253 {strides = array<i32>} : memref<1608x128xf32, #tpu.memory_space<vmem>>, vector<8x128xf32>,
    %c0_263 = arith.constant 0 : index
    %c0_264 = arith.constant 0 : index
    %c187 = arith.constant 187 : index
    %255 = vector.load %arg1[%c0_263, %c0_264, %c187] : memref<1x8x512xf32, #tpu.memory_space<vmem>>, vector<1x8x128xf32>
    %256 = vector.shape_cast %255 : vector<1x8x128xf32> to vector<8x128xf32>
    %c672 = arith.constant 672 : index
    %c0_265 = arith.constant 0 : index
    %257 = vector.load %arg13[%c672, %c0_265] : memref<1608x128xf32, #tpu.memory_space<vmem>>, vector<8x128xf32>
    tpu.vector_store %arg13[%c672, %c0_265], %256 {strides = array<i32>} : memref<1608x128xf32, #tpu.memory_space<vmem>>, vector<8x128xf32>,
    %c0_266 = arith.constant 0 : index
    %c0_267 = arith.constant 0 : index
    %c188 = arith.constant 188 : index
    %258 = vector.load %arg1[%c0_266, %c0_267, %c188] : memref<1x8x512xf32, #tpu.memory_space<vmem>>, vector<1x8x128xf32>
    %259 = vector.shape_cast %258 : vector<1x8x128xf32> to vector<8x128xf32>
    %c680 = arith.constant 680 : index
    %c0_268 = arith.constant 0 : index
    %260 = vector.load %arg13[%c680, %c0_268] : memref<1608x128xf32, #tpu.memory_space<vmem>>, vector<8x128xf32>
    tpu.vector_store %arg13[%c680, %c0_268], %259 {strides = array<i32>} : memref<1608x128xf32, #tpu.memory_space<vmem>>, vector<8x128xf32>,
    %c0_269 = arith.constant 0 : index
    %c0_270 = arith.constant 0 : index
    %c189 = arith.constant 189 : index
    %261 = vector.load %arg1[%c0_269, %c0_270, %c189] : memref<1x8x512xf32, #tpu.memory_space<vmem>>, vector<1x8x128xf32>
    %262 = vector.shape_cast %261 : vector<1x8x128xf32> to vector<8x128xf32>
    %c688 = arith.constant 688 : index
    %c0_271 = arith.constant 0 : index
    %263 = vector.load %arg13[%c688, %c0_271] : memref<1608x128xf32, #tpu.memory_space<vmem>>, vector<8x128xf32>
    tpu.vector_store %arg13[%c688, %c0_271], %262 {strides = array<i32>} : memref<1608x128xf32, #tpu.memory_space<vmem>>, vector<8x128xf32>,
    %c0_272 = arith.constant 0 : index
    %c0_273 = arith.constant 0 : index
    %c190 = arith.constant 190 : index
    %264 = vector.load %arg1[%c0_272, %c0_273, %c190] : memref<1x8x512xf32, #tpu.memory_space<vmem>>, vector<1x8x128xf32>
    %265 = vector.shape_cast %264 : vector<1x8x128xf32> to vector<8x128xf32>
    %c696 = arith.constant 696 : index
    %c0_274 = arith.constant 0 : index
    %266 = vector.load %arg13[%c696, %c0_274] : memref<1608x128xf32, #tpu.memory_space<vmem>>, vector<8x128xf32>
    tpu.vector_store %arg13[%c696, %c0_274], %265 {strides = array<i32>} : memref<1608x128xf32, #tpu.memory_space<vmem>>, vector<8x128xf32>,
    %c0_275 = arith.constant 0 : index
    %c0_276 = arith.constant 0 : index
    %c191 = arith.constant 191 : index
    %267 = vector.load %arg1[%c0_275, %c0_276, %c191] : memref<1x8x512xf32, #tpu.memory_space<vmem>>, vector<1x8x128xf32>
    %268 = vector.shape_cast %267 : vector<1x8x128xf32> to vector<8x128xf32>
    %c704 = arith.constant 704 : index
    %c0_277 = arith.constant 0 : index
    %269 = vector.load %arg13[%c704, %c0_277] : memref<1608x128xf32, #tpu.memory_space<vmem>>, vector<8x128xf32>
    tpu.vector_store %arg13[%c704, %c0_277], %268 {strides = array<i32>} : memref<1608x128xf32, #tpu.memory_space<vmem>>, vector<8x128xf32>,
    %c0_278 = arith.constant 0 : index
    %c0_279 = arith.constant 0 : index
    %c192_280 = arith.constant 192 : index
    %270 = vector.load %arg1[%c0_278, %c0_279, %c192_280] : memref<1x8x512xf32, #tpu.memory_space<vmem>>, vector<1x8x128xf32>
    %271 = vector.shape_cast %270 : vector<1x8x128xf32> to vector<8x128xf32>
    %c712 = arith.constant 712 : index
    %c0_281 = arith.constant 0 : index
    %272 = vector.load %arg13[%c712, %c0_281] : memref<1608x128xf32, #tpu.memory_space<vmem>>, vector<8x128xf32>
    tpu.vector_store %arg13[%c712, %c0_281], %271 {strides = array<i32>} : memref<1608x128xf32, #tpu.memory_space<vmem>>, vector<8x128xf32>,
    %c0_282 = arith.constant 0 : index
    %c0_283 = arith.constant 0 : index
    %c193 = arith.constant 193 : index
    %273 = vector.load %arg1[%c0_282, %c0_283, %c193] : memref<1x8x512xf32, #tpu.memory_space<vmem>>, vector<1x8x128xf32>
    %274 = vector.shape_cast %273 : vector<1x8x128xf32> to vector<8x128xf32>
    %c720 = arith.constant 720 : index
    %c0_284 = arith.constant 0 : index
    %275 = vector.load %arg13[%c720, %c0_284] : memref<1608x128xf32, #tpu.memory_space<vmem>>, vector<8x128xf32>
    tpu.vector_store %arg13[%c720, %c0_284], %274 {strides = array<i32>} : memref<1608x128xf32, #tpu.memory_space<vmem>>, vector<8x128xf32>,
    %c0_285 = arith.constant 0 : index
    %c0_286 = arith.constant 0 : index
    %c194 = arith.constant 194 : index
    %276 = vector.load %arg1[%c0_285, %c0_286, %c194] : memref<1x8x512xf32, #tpu.memory_space<vmem>>, vector<1x8x128xf32>
    %277 = vector.shape_cast %276 : vector<1x8x128xf32> to vector<8x128xf32>
    %c728 = arith.constant 728 : index
    %c0_287 = arith.constant 0 : index
    %278 = vector.load %arg13[%c728, %c0_287] : memref<1608x128xf32, #tpu.memory_space<vmem>>, vector<8x128xf32>
    tpu.vector_store %arg13[%c728, %c0_287], %277 {strides = array<i32>} : memref<1608x128xf32, #tpu.memory_space<vmem>>, vector<8x128xf32>,
    %c0_288 = arith.constant 0 : index
    %c0_289 = arith.constant 0 : index
    %c195 = arith.constant 195 : index
    %279 = vector.load %arg1[%c0_288, %c0_289, %c195] : memref<1x8x512xf32, #tpu.memory_space<vmem>>, vector<1x8x128xf32>
    %280 = vector.shape_cast %279 : vector<1x8x128xf32> to vector<8x128xf32>
    %c736 = arith.constant 736 : index
    %c0_290 = arith.constant 0 : index
    %281 = vector.load %arg13[%c736, %c0_290] : memref<1608x128xf32, #tpu.memory_space<vmem>>, vector<8x128xf32>
    tpu.vector_store %arg13[%c736, %c0_290], %280 {strides = array<i32>} : memref<1608x128xf32, #tpu.memory_space<vmem>>, vector<8x128xf32>,
    %c0_291 = arith.constant 0 : index
    %c0_292 = arith.constant 0 : index
    %c196 = arith.constant 196 : index
    %282 = vector.load %arg1[%c0_291, %c0_292, %c196] : memref<1x8x512xf32, #tpu.memory_space<vmem>>, vector<1x8x128xf32>
    %283 = vector.shape_cast %282 : vector<1x8x128xf32> to vector<8x128xf32>
    %c744 = arith.constant 744 : index
    %c0_293 = arith.constant 0 : index
    %284 = vector.load %arg13[%c744, %c0_293] : memref<1608x128xf32, #tpu.memory_space<vmem>>, vector<8x128xf32>
    tpu.vector_store %arg13[%c744, %c0_293], %283 {strides = array<i32>} : memref<1608x128xf32, #tpu.memory_space<vmem>>, vector<8x128xf32>,
    %c0_294 = arith.constant 0 : index
    %c0_295 = arith.constant 0 : index
    %c197 = arith.constant 197 : index
    %285 = vector.load %arg1[%c0_294, %c0_295, %c197] : memref<1x8x512xf32, #tpu.memory_space<vmem>>, vector<1x8x128xf32>
    %286 = vector.shape_cast %285 : vector<1x8x128xf32> to vector<8x128xf32>
    %c752 = arith.constant 752 : index
    %c0_296 = arith.constant 0 : index
    %287 = vector.load %arg13[%c752, %c0_296] : memref<1608x128xf32, #tpu.memory_space<vmem>>, vector<8x128xf32>
    tpu.vector_store %arg13[%c752, %c0_296], %286 {strides = array<i32>} : memref<1608x128xf32, #tpu.memory_space<vmem>>, vector<8x128xf32>,
    %c0_297 = arith.constant 0 : index
    %c0_298 = arith.constant 0 : index
    %c198 = arith.constant 198 : index
    %288 = vector.load %arg1[%c0_297, %c0_298, %c198] : memref<1x8x512xf32, #tpu.memory_space<vmem>>, vector<1x8x128xf32>
    %289 = vector.shape_cast %288 : vector<1x8x128xf32> to vector<8x128xf32>
    %c760 = arith.constant 760 : index
    %c0_299 = arith.constant 0 : index
    %290 = vector.load %arg13[%c760, %c0_299] : memref<1608x128xf32, #tpu.memory_space<vmem>>, vector<8x128xf32>
    tpu.vector_store %arg13[%c760, %c0_299], %289 {strides = array<i32>} : memref<1608x128xf32, #tpu.memory_space<vmem>>, vector<8x128xf32>,
    %c0_300 = arith.constant 0 : index
    %c0_301 = arith.constant 0 : index
    %c199 = arith.constant 199 : index
    %291 = vector.load %arg1[%c0_300, %c0_301, %c199] : memref<1x8x512xf32, #tpu.memory_space<vmem>>, vector<1x8x128xf32>
    %292 = vector.shape_cast %291 : vector<1x8x128xf32> to vector<8x128xf32>
    %c768 = arith.constant 768 : index
    %c0_302 = arith.constant 0 : index
    %293 = vector.load %arg13[%c768, %c0_302] : memref<1608x128xf32, #tpu.memory_space<vmem>>, vector<8x128xf32>
    tpu.vector_store %arg13[%c768, %c0_302], %292 {strides = array<i32>} : memref<1608x128xf32, #tpu.memory_space<vmem>>, vector<8x128xf32>,
    %c0_303 = arith.constant 0 : index
    %c0_304 = arith.constant 0 : index
    %c200_305 = arith.constant 200 : index
    %294 = vector.load %arg1[%c0_303, %c0_304, %c200_305] : memref<1x8x512xf32, #tpu.memory_space<vmem>>, vector<1x8x128xf32>
    %295 = vector.shape_cast %294 : vector<1x8x128xf32> to vector<8x128xf32>
    %c776 = arith.constant 776 : index
    %c0_306 = arith.constant 0 : index
    %296 = vector.load %arg13[%c776, %c0_306] : memref<1608x128xf32, #tpu.memory_space<vmem>>, vector<8x128xf32>
    tpu.vector_store %arg13[%c776, %c0_306], %295 {strides = array<i32>} : memref<1608x128xf32, #tpu.memory_space<vmem>>, vector<8x128xf32>,
    %c0_307 = arith.constant 0 : index
    %c0_308 = arith.constant 0 : index
    %c201 = arith.constant 201 : index
    %297 = vector.load %arg1[%c0_307, %c0_308, %c201] : memref<1x8x512xf32, #tpu.memory_space<vmem>>, vector<1x8x128xf32>
    %298 = vector.shape_cast %297 : vector<1x8x128xf32> to vector<8x128xf32>
    %c784 = arith.constant 784 : index
    %c0_309 = arith.constant 0 : index
    %299 = vector.load %arg13[%c784, %c0_309] : memref<1608x128xf32, #tpu.memory_space<vmem>>, vector<8x128xf32>
    tpu.vector_store %arg13[%c784, %c0_309], %298 {strides = array<i32>} : memref<1608x128xf32, #tpu.memory_space<vmem>>, vector<8x128xf32>,
    %c0_310 = arith.constant 0 : index
    %c0_311 = arith.constant 0 : index
    %c202 = arith.constant 202 : index
    %300 = vector.load %arg1[%c0_310, %c0_311, %c202] : memref<1x8x512xf32, #tpu.memory_space<vmem>>, vector<1x8x128xf32>
    %301 = vector.shape_cast %300 : vector<1x8x128xf32> to vector<8x128xf32>
    %c792 = arith.constant 792 : index
    %c0_312 = arith.constant 0 : index
    %302 = vector.load %arg13[%c792, %c0_312] : memref<1608x128xf32, #tpu.memory_space<vmem>>, vector<8x128xf32>
    tpu.vector_store %arg13[%c792, %c0_312], %301 {strides = array<i32>} : memref<1608x128xf32, #tpu.memory_space<vmem>>, vector<8x128xf32>,
    %c0_313 = arith.constant 0 : index
    %c0_314 = arith.constant 0 : index
    %c203 = arith.constant 203 : index
    %303 = vector.load %arg1[%c0_313, %c0_314, %c203] : memref<1x8x512xf32, #tpu.memory_space<vmem>>, vector<1x8x128xf32>
    %304 = vector.shape_cast %303 : vector<1x8x128xf32> to vector<8x128xf32>
    %c800 = arith.constant 800 : index
    %c0_315 = arith.constant 0 : index
    %305 = vector.load %arg13[%c800, %c0_315] : memref<1608x128xf32, #tpu.memory_space<vmem>>, vector<8x128xf32>
    tpu.vector_store %arg13[%c800, %c0_315], %304 {strides = array<i32>} : memref<1608x128xf32, #tpu.memory_space<vmem>>, vector<8x128xf32>,
    %c0_316 = arith.constant 0 : index
    %c0_317 = arith.constant 0 : index
    %c204 = arith.constant 204 : index
    %306 = vector.load %arg1[%c0_316, %c0_317, %c204] : memref<1x8x512xf32, #tpu.memory_space<vmem>>, vector<1x8x128xf32>
    %307 = vector.shape_cast %306 : vector<1x8x128xf32> to vector<8x128xf32>
    %c808 = arith.constant 808 : index
    %c0_318 = arith.constant 0 : index
    %308 = vector.load %arg13[%c808, %c0_318] : memref<1608x128xf32, #tpu.memory_space<vmem>>, vector<8x128xf32>
    tpu.vector_store %arg13[%c808, %c0_318], %307 {strides = array<i32>} : memref<1608x128xf32, #tpu.memory_space<vmem>>, vector<8x128xf32>,
    %c0_319 = arith.constant 0 : index
    %c0_320 = arith.constant 0 : index
    %c205 = arith.constant 205 : index
    %309 = vector.load %arg1[%c0_319, %c0_320, %c205] : memref<1x8x512xf32, #tpu.memory_space<vmem>>, vector<1x8x128xf32>
    %310 = vector.shape_cast %309 : vector<1x8x128xf32> to vector<8x128xf32>
    %c816 = arith.constant 816 : index
    %c0_321 = arith.constant 0 : index
    %311 = vector.load %arg13[%c816, %c0_321] : memref<1608x128xf32, #tpu.memory_space<vmem>>, vector<8x128xf32>
    tpu.vector_store %arg13[%c816, %c0_321], %310 {strides = array<i32>} : memref<1608x128xf32, #tpu.memory_space<vmem>>, vector<8x128xf32>,
    %c0_322 = arith.constant 0 : index
    %c0_323 = arith.constant 0 : index
    %c206 = arith.constant 206 : index
    %312 = vector.load %arg1[%c0_322, %c0_323, %c206] : memref<1x8x512xf32, #tpu.memory_space<vmem>>, vector<1x8x128xf32>
    %313 = vector.shape_cast %312 : vector<1x8x128xf32> to vector<8x128xf32>
    %c824 = arith.constant 824 : index
    %c0_324 = arith.constant 0 : index
    %314 = vector.load %arg13[%c824, %c0_324] : memref<1608x128xf32, #tpu.memory_space<vmem>>, vector<8x128xf32>
    tpu.vector_store %arg13[%c824, %c0_324], %313 {strides = array<i32>} : memref<1608x128xf32, #tpu.memory_space<vmem>>, vector<8x128xf32>,
    %c0_325 = arith.constant 0 : index
    %c0_326 = arith.constant 0 : index
    %c207 = arith.constant 207 : index
    %315 = vector.load %arg1[%c0_325, %c0_326, %c207] : memref<1x8x512xf32, #tpu.memory_space<vmem>>, vector<1x8x128xf32>
    %316 = vector.shape_cast %315 : vector<1x8x128xf32> to vector<8x128xf32>
    %c832 = arith.constant 832 : index
    %c0_327 = arith.constant 0 : index
    %317 = vector.load %arg13[%c832, %c0_327] : memref<1608x128xf32, #tpu.memory_space<vmem>>, vector<8x128xf32>
    tpu.vector_store %arg13[%c832, %c0_327], %316 {strides = array<i32>} : memref<1608x128xf32, #tpu.memory_space<vmem>>, vector<8x128xf32>,
    %c0_328 = arith.constant 0 : index
    %c0_329 = arith.constant 0 : index
    %c208_330 = arith.constant 208 : index
    %318 = vector.load %arg1[%c0_328, %c0_329, %c208_330] : memref<1x8x512xf32, #tpu.memory_space<vmem>>, vector<1x8x128xf32>
    %319 = vector.shape_cast %318 : vector<1x8x128xf32> to vector<8x128xf32>
    %c840 = arith.constant 840 : index
    %c0_331 = arith.constant 0 : index
    %320 = vector.load %arg13[%c840, %c0_331] : memref<1608x128xf32, #tpu.memory_space<vmem>>, vector<8x128xf32>
    tpu.vector_store %arg13[%c840, %c0_331], %319 {strides = array<i32>} : memref<1608x128xf32, #tpu.memory_space<vmem>>, vector<8x128xf32>,
    %c0_332 = arith.constant 0 : index
    %c0_333 = arith.constant 0 : index
    %c209 = arith.constant 209 : index
    %321 = vector.load %arg1[%c0_332, %c0_333, %c209] : memref<1x8x512xf32, #tpu.memory_space<vmem>>, vector<1x8x128xf32>
    %322 = vector.shape_cast %321 : vector<1x8x128xf32> to vector<8x128xf32>
    %c848 = arith.constant 848 : index
    %c0_334 = arith.constant 0 : index
    %323 = vector.load %arg13[%c848, %c0_334] : memref<1608x128xf32, #tpu.memory_space<vmem>>, vector<8x128xf32>
    tpu.vector_store %arg13[%c848, %c0_334], %322 {strides = array<i32>} : memref<1608x128xf32, #tpu.memory_space<vmem>>, vector<8x128xf32>,
    %c0_335 = arith.constant 0 : index
    %c0_336 = arith.constant 0 : index
    %c210 = arith.constant 210 : index
    %324 = vector.load %arg1[%c0_335, %c0_336, %c210] : memref<1x8x512xf32, #tpu.memory_space<vmem>>, vector<1x8x128xf32>
    %325 = vector.shape_cast %324 : vector<1x8x128xf32> to vector<8x128xf32>
    %c856 = arith.constant 856 : index
    %c0_337 = arith.constant 0 : index
    %326 = vector.load %arg13[%c856, %c0_337] : memref<1608x128xf32, #tpu.memory_space<vmem>>, vector<8x128xf32>
    tpu.vector_store %arg13[%c856, %c0_337], %325 {strides = array<i32>} : memref<1608x128xf32, #tpu.memory_space<vmem>>, vector<8x128xf32>,
    %c0_338 = arith.constant 0 : index
    %c0_339 = arith.constant 0 : index
    %c211 = arith.constant 211 : index
    %327 = vector.load %arg1[%c0_338, %c0_339, %c211] : memref<1x8x512xf32, #tpu.memory_space<vmem>>, vector<1x8x128xf32>
    %328 = vector.shape_cast %327 : vector<1x8x128xf32> to vector<8x128xf32>
    %c864 = arith.constant 864 : index
    %c0_340 = arith.constant 0 : index
    %329 = vector.load %arg13[%c864, %c0_340] : memref<1608x128xf32, #tpu.memory_space<vmem>>, vector<8x128xf32>
    tpu.vector_store %arg13[%c864, %c0_340], %328 {strides = array<i32>} : memref<1608x128xf32, #tpu.memory_space<vmem>>, vector<8x128xf32>,
    %c0_341 = arith.constant 0 : index
    %c0_342 = arith.constant 0 : index
    %c212 = arith.constant 212 : index
    %330 = vector.load %arg1[%c0_341, %c0_342, %c212] : memref<1x8x512xf32, #tpu.memory_space<vmem>>, vector<1x8x128xf32>
    %331 = vector.shape_cast %330 : vector<1x8x128xf32> to vector<8x128xf32>
    %c872 = arith.constant 872 : index
    %c0_343 = arith.constant 0 : index
    %332 = vector.load %arg13[%c872, %c0_343] : memref<1608x128xf32, #tpu.memory_space<vmem>>, vector<8x128xf32>
    tpu.vector_store %arg13[%c872, %c0_343], %331 {strides = array<i32>} : memref<1608x128xf32, #tpu.memory_space<vmem>>, vector<8x128xf32>,
    %c0_344 = arith.constant 0 : index
    %c0_345 = arith.constant 0 : index
    %c213 = arith.constant 213 : index
    %333 = vector.load %arg1[%c0_344, %c0_345, %c213] : memref<1x8x512xf32, #tpu.memory_space<vmem>>, vector<1x8x128xf32>
    %334 = vector.shape_cast %333 : vector<1x8x128xf32> to vector<8x128xf32>
    %c880 = arith.constant 880 : index
    %c0_346 = arith.constant 0 : index
    %335 = vector.load %arg13[%c880, %c0_346] : memref<1608x128xf32, #tpu.memory_space<vmem>>, vector<8x128xf32>
    tpu.vector_store %arg13[%c880, %c0_346], %334 {strides = array<i32>} : memref<1608x128xf32, #tpu.memory_space<vmem>>, vector<8x128xf32>,
    %c0_347 = arith.constant 0 : index
    %c0_348 = arith.constant 0 : index
    %c214 = arith.constant 214 : index
    %336 = vector.load %arg1[%c0_347, %c0_348, %c214] : memref<1x8x512xf32, #tpu.memory_space<vmem>>, vector<1x8x128xf32>
    %337 = vector.shape_cast %336 : vector<1x8x128xf32> to vector<8x128xf32>
    %c888 = arith.constant 888 : index
    %c0_349 = arith.constant 0 : index
    %338 = vector.load %arg13[%c888, %c0_349] : memref<1608x128xf32, #tpu.memory_space<vmem>>, vector<8x128xf32>
    tpu.vector_store %arg13[%c888, %c0_349], %337 {strides = array<i32>} : memref<1608x128xf32, #tpu.memory_space<vmem>>, vector<8x128xf32>,
    %c0_350 = arith.constant 0 : index
    %c0_351 = arith.constant 0 : index
    %c215 = arith.constant 215 : index
    %339 = vector.load %arg1[%c0_350, %c0_351, %c215] : memref<1x8x512xf32, #tpu.memory_space<vmem>>, vector<1x8x128xf32>
    %340 = vector.shape_cast %339 : vector<1x8x128xf32> to vector<8x128xf32>
    %c896 = arith.constant 896 : index
    %c0_352 = arith.constant 0 : index
    %341 = vector.load %arg13[%c896, %c0_352] : memref<1608x128xf32, #tpu.memory_space<vmem>>, vector<8x128xf32>
    tpu.vector_store %arg13[%c896, %c0_352], %340 {strides = array<i32>} : memref<1608x128xf32, #tpu.memory_space<vmem>>, vector<8x128xf32>,
    %c0_353 = arith.constant 0 : index
    %c0_354 = arith.constant 0 : index
    %c216_355 = arith.constant 216 : index
    %342 = vector.load %arg1[%c0_353, %c0_354, %c216_355] : memref<1x8x512xf32, #tpu.memory_space<vmem>>, vector<1x8x128xf32>
    %343 = vector.shape_cast %342 : vector<1x8x128xf32> to vector<8x128xf32>
    %c904 = arith.constant 904 : index
    %c0_356 = arith.constant 0 : index
    %344 = vector.load %arg13[%c904, %c0_356] : memref<1608x128xf32, #tpu.memory_space<vmem>>, vector<8x128xf32>
    tpu.vector_store %arg13[%c904, %c0_356], %343 {strides = array<i32>} : memref<1608x128xf32, #tpu.memory_space<vmem>>, vector<8x128xf32>,
    %c0_357 = arith.constant 0 : index
    %c0_358 = arith.constant 0 : index
    %c217 = arith.constant 217 : index
    %345 = vector.load %arg1[%c0_357, %c0_358, %c217] : memref<1x8x512xf32, #tpu.memory_space<vmem>>, vector<1x8x128xf32>
    %346 = vector.shape_cast %345 : vector<1x8x128xf32> to vector<8x128xf32>
    %c912 = arith.constant 912 : index
    %c0_359 = arith.constant 0 : index
    %347 = vector.load %arg13[%c912, %c0_359] : memref<1608x128xf32, #tpu.memory_space<vmem>>, vector<8x128xf32>
    tpu.vector_store %arg13[%c912, %c0_359], %346 {strides = array<i32>} : memref<1608x128xf32, #tpu.memory_space<vmem>>, vector<8x128xf32>,
    %c0_360 = arith.constant 0 : index
    %c0_361 = arith.constant 0 : index
    %c218 = arith.constant 218 : index
    %348 = vector.load %arg1[%c0_360, %c0_361, %c218] : memref<1x8x512xf32, #tpu.memory_space<vmem>>, vector<1x8x128xf32>
    %349 = vector.shape_cast %348 : vector<1x8x128xf32> to vector<8x128xf32>
    %c920 = arith.constant 920 : index
    %c0_362 = arith.constant 0 : index
    %350 = vector.load %arg13[%c920, %c0_362] : memref<1608x128xf32, #tpu.memory_space<vmem>>, vector<8x128xf32>
    tpu.vector_store %arg13[%c920, %c0_362], %349 {strides = array<i32>} : memref<1608x128xf32, #tpu.memory_space<vmem>>, vector<8x128xf32>,
    %c0_363 = arith.constant 0 : index
    %c0_364 = arith.constant 0 : index
    %c219 = arith.constant 219 : index
    %351 = vector.load %arg1[%c0_363, %c0_364, %c219] : memref<1x8x512xf32, #tpu.memory_space<vmem>>, vector<1x8x128xf32>
    %352 = vector.shape_cast %351 : vector<1x8x128xf32> to vector<8x128xf32>
    %c928 = arith.constant 928 : index
    %c0_365 = arith.constant 0 : index
    %353 = vector.load %arg13[%c928, %c0_365] : memref<1608x128xf32, #tpu.memory_space<vmem>>, vector<8x128xf32>
    tpu.vector_store %arg13[%c928, %c0_365], %352 {strides = array<i32>} : memref<1608x128xf32, #tpu.memory_space<vmem>>, vector<8x128xf32>,
    %c0_366 = arith.constant 0 : index
    %c0_367 = arith.constant 0 : index
    %c220 = arith.constant 220 : index
    %354 = vector.load %arg1[%c0_366, %c0_367, %c220] : memref<1x8x512xf32, #tpu.memory_space<vmem>>, vector<1x8x128xf32>
    %355 = vector.shape_cast %354 : vector<1x8x128xf32> to vector<8x128xf32>
    %c936 = arith.constant 936 : index
    %c0_368 = arith.constant 0 : index
    %356 = vector.load %arg13[%c936, %c0_368] : memref<1608x128xf32, #tpu.memory_space<vmem>>, vector<8x128xf32>
    tpu.vector_store %arg13[%c936, %c0_368], %355 {strides = array<i32>} : memref<1608x128xf32, #tpu.memory_space<vmem>>, vector<8x128xf32>,
    %c0_369 = arith.constant 0 : index
    %c0_370 = arith.constant 0 : index
    %c221 = arith.constant 221 : index
    %357 = vector.load %arg1[%c0_369, %c0_370, %c221] : memref<1x8x512xf32, #tpu.memory_space<vmem>>, vector<1x8x128xf32>
    %358 = vector.shape_cast %357 : vector<1x8x128xf32> to vector<8x128xf32>
    %c944 = arith.constant 944 : index
    %c0_371 = arith.constant 0 : index
    %359 = vector.load %arg13[%c944, %c0_371] : memref<1608x128xf32, #tpu.memory_space<vmem>>, vector<8x128xf32>
    tpu.vector_store %arg13[%c944, %c0_371], %358 {strides = array<i32>} : memref<1608x128xf32, #tpu.memory_space<vmem>>, vector<8x128xf32>,
    %c0_372 = arith.constant 0 : index
    %c0_373 = arith.constant 0 : index
    %c222 = arith.constant 222 : index
    %360 = vector.load %arg1[%c0_372, %c0_373, %c222] : memref<1x8x512xf32, #tpu.memory_space<vmem>>, vector<1x8x128xf32>
    %361 = vector.shape_cast %360 : vector<1x8x128xf32> to vector<8x128xf32>
    %c952 = arith.constant 952 : index
    %c0_374 = arith.constant 0 : index
    %362 = vector.load %arg13[%c952, %c0_374] : memref<1608x128xf32, #tpu.memory_space<vmem>>, vector<8x128xf32>
    tpu.vector_store %arg13[%c952, %c0_374], %361 {strides = array<i32>} : memref<1608x128xf32, #tpu.memory_space<vmem>>, vector<8x128xf32>,
    %c0_375 = arith.constant 0 : index
    %c0_376 = arith.constant 0 : index
    %c223 = arith.constant 223 : index
    %363 = vector.load %arg1[%c0_375, %c0_376, %c223] : memref<1x8x512xf32, #tpu.memory_space<vmem>>, vector<1x8x128xf32>
    %364 = vector.shape_cast %363 : vector<1x8x128xf32> to vector<8x128xf32>
    %c960 = arith.constant 960 : index
    %c0_377 = arith.constant 0 : index
    %365 = vector.load %arg13[%c960, %c0_377] : memref<1608x128xf32, #tpu.memory_space<vmem>>, vector<8x128xf32>
    tpu.vector_store %arg13[%c960, %c0_377], %364 {strides = array<i32>} : memref<1608x128xf32, #tpu.memory_space<vmem>>, vector<8x128xf32>,
    %c0_378 = arith.constant 0 : index
    %c0_379 = arith.constant 0 : index
    %c224_380 = arith.constant 224 : index
    %366 = vector.load %arg1[%c0_378, %c0_379, %c224_380] : memref<1x8x512xf32, #tpu.memory_space<vmem>>, vector<1x8x128xf32>
    %367 = vector.shape_cast %366 : vector<1x8x128xf32> to vector<8x128xf32>
    %c968 = arith.constant 968 : index
    %c0_381 = arith.constant 0 : index
    %368 = vector.load %arg13[%c968, %c0_381] : memref<1608x128xf32, #tpu.memory_space<vmem>>, vector<8x128xf32>
    tpu.vector_store %arg13[%c968, %c0_381], %367 {strides = array<i32>} : memref<1608x128xf32, #tpu.memory_space<vmem>>, vector<8x128xf32>,
    %c0_382 = arith.constant 0 : index
    %c0_383 = arith.constant 0 : index
    %c225 = arith.constant 225 : index
    %369 = vector.load %arg1[%c0_382, %c0_383, %c225] : memref<1x8x512xf32, #tpu.memory_space<vmem>>, vector<1x8x128xf32>
    %370 = vector.shape_cast %369 : vector<1x8x128xf32> to vector<8x128xf32>
    %c976 = arith.constant 976 : index
    %c0_384 = arith.constant 0 : index
    %371 = vector.load %arg13[%c976, %c0_384] : memref<1608x128xf32, #tpu.memory_space<vmem>>, vector<8x128xf32>
    tpu.vector_store %arg13[%c976, %c0_384], %370 {strides = array<i32>} : memref<1608x128xf32, #tpu.memory_space<vmem>>, vector<8x128xf32>,
    %c0_385 = arith.constant 0 : index
    %c0_386 = arith.constant 0 : index
    %c226 = arith.constant 226 : index
    %372 = vector.load %arg1[%c0_385, %c0_386, %c226] : memref<1x8x512xf32, #tpu.memory_space<vmem>>, vector<1x8x128xf32>
    %373 = vector.shape_cast %372 : vector<1x8x128xf32> to vector<8x128xf32>
    %c984 = arith.constant 984 : index
    %c0_387 = arith.constant 0 : index
    %374 = vector.load %arg13[%c984, %c0_387] : memref<1608x128xf32, #tpu.memory_space<vmem>>, vector<8x128xf32>
    tpu.vector_store %arg13[%c984, %c0_387], %373 {strides = array<i32>} : memref<1608x128xf32, #tpu.memory_space<vmem>>, vector<8x128xf32>,
    %c0_388 = arith.constant 0 : index
    %c0_389 = arith.constant 0 : index
    %c227 = arith.constant 227 : index
    %375 = vector.load %arg1[%c0_388, %c0_389, %c227] : memref<1x8x512xf32, #tpu.memory_space<vmem>>, vector<1x8x128xf32>
    %376 = vector.shape_cast %375 : vector<1x8x128xf32> to vector<8x128xf32>
    %c992 = arith.constant 992 : index
    %c0_390 = arith.constant 0 : index
    %377 = vector.load %arg13[%c992, %c0_390] : memref<1608x128xf32, #tpu.memory_space<vmem>>, vector<8x128xf32>
    tpu.vector_store %arg13[%c992, %c0_390], %376 {strides = array<i32>} : memref<1608x128xf32, #tpu.memory_space<vmem>>, vector<8x128xf32>,
    %c0_391 = arith.constant 0 : index
    %c0_392 = arith.constant 0 : index
    %c228 = arith.constant 228 : index
    %378 = vector.load %arg1[%c0_391, %c0_392, %c228] : memref<1x8x512xf32, #tpu.memory_space<vmem>>, vector<1x8x128xf32>
    %379 = vector.shape_cast %378 : vector<1x8x128xf32> to vector<8x128xf32>
    %c1000 = arith.constant 1000 : index
    %c0_393 = arith.constant 0 : index
    %380 = vector.load %arg13[%c1000, %c0_393] : memref<1608x128xf32, #tpu.memory_space<vmem>>, vector<8x128xf32>
    tpu.vector_store %arg13[%c1000, %c0_393], %379 {strides = array<i32>} : memref<1608x128xf32, #tpu.memory_space<vmem>>, vector<8x128xf32>,
    %c0_394 = arith.constant 0 : index
    %c0_395 = arith.constant 0 : index
    %c229 = arith.constant 229 : index
    %381 = vector.load %arg1[%c0_394, %c0_395, %c229] : memref<1x8x512xf32, #tpu.memory_space<vmem>>, vector<1x8x128xf32>
    %382 = vector.shape_cast %381 : vector<1x8x128xf32> to vector<8x128xf32>
    %c1008 = arith.constant 1008 : index
    %c0_396 = arith.constant 0 : index
    %383 = vector.load %arg13[%c1008, %c0_396] : memref<1608x128xf32, #tpu.memory_space<vmem>>, vector<8x128xf32>
    tpu.vector_store %arg13[%c1008, %c0_396], %382 {strides = array<i32>} : memref<1608x128xf32, #tpu.memory_space<vmem>>, vector<8x128xf32>,
    %c0_397 = arith.constant 0 : index
    %c0_398 = arith.constant 0 : index
    %c230 = arith.constant 230 : index
    %384 = vector.load %arg1[%c0_397, %c0_398, %c230] : memref<1x8x512xf32, #tpu.memory_space<vmem>>, vector<1x8x128xf32>
    %385 = vector.shape_cast %384 : vector<1x8x128xf32> to vector<8x128xf32>
    %c1016 = arith.constant 1016 : index
    %c0_399 = arith.constant 0 : index
    %386 = vector.load %arg13[%c1016, %c0_399] : memref<1608x128xf32, #tpu.memory_space<vmem>>, vector<8x128xf32>
    tpu.vector_store %arg13[%c1016, %c0_399], %385 {strides = array<i32>} : memref<1608x128xf32, #tpu.memory_space<vmem>>, vector<8x128xf32>,
    %c0_400 = arith.constant 0 : index
    %c0_401 = arith.constant 0 : index
    %c231 = arith.constant 231 : index
    %387 = vector.load %arg1[%c0_400, %c0_401, %c231] : memref<1x8x512xf32, #tpu.memory_space<vmem>>, vector<1x8x128xf32>
    %388 = vector.shape_cast %387 : vector<1x8x128xf32> to vector<8x128xf32>
    %c1024 = arith.constant 1024 : index
    %c0_402 = arith.constant 0 : index
    %389 = vector.load %arg13[%c1024, %c0_402] : memref<1608x128xf32, #tpu.memory_space<vmem>>, vector<8x128xf32>
    tpu.vector_store %arg13[%c1024, %c0_402], %388 {strides = array<i32>} : memref<1608x128xf32, #tpu.memory_space<vmem>>, vector<8x128xf32>,
    %c0_403 = arith.constant 0 : index
    %c0_404 = arith.constant 0 : index
    %c232_405 = arith.constant 232 : index
    %390 = vector.load %arg1[%c0_403, %c0_404, %c232_405] : memref<1x8x512xf32, #tpu.memory_space<vmem>>, vector<1x8x128xf32>
    %391 = vector.shape_cast %390 : vector<1x8x128xf32> to vector<8x128xf32>
    %c1032 = arith.constant 1032 : index
    %c0_406 = arith.constant 0 : index
    %392 = vector.load %arg13[%c1032, %c0_406] : memref<1608x128xf32, #tpu.memory_space<vmem>>, vector<8x128xf32>
    tpu.vector_store %arg13[%c1032, %c0_406], %391 {strides = array<i32>} : memref<1608x128xf32, #tpu.memory_space<vmem>>, vector<8x128xf32>,
    %c0_407 = arith.constant 0 : index
    %c0_408 = arith.constant 0 : index
    %c233 = arith.constant 233 : index
    %393 = vector.load %arg1[%c0_407, %c0_408, %c233] : memref<1x8x512xf32, #tpu.memory_space<vmem>>, vector<1x8x128xf32>
    %394 = vector.shape_cast %393 : vector<1x8x128xf32> to vector<8x128xf32>
    %c1040 = arith.constant 1040 : index
    %c0_409 = arith.constant 0 : index
    %395 = vector.load %arg13[%c1040, %c0_409] : memref<1608x128xf32, #tpu.memory_space<vmem>>, vector<8x128xf32>
    tpu.vector_store %arg13[%c1040, %c0_409], %394 {strides = array<i32>} : memref<1608x128xf32, #tpu.memory_space<vmem>>, vector<8x128xf32>,
    %c0_410 = arith.constant 0 : index
    %c0_411 = arith.constant 0 : index
    %c234 = arith.constant 234 : index
    %396 = vector.load %arg1[%c0_410, %c0_411, %c234] : memref<1x8x512xf32, #tpu.memory_space<vmem>>, vector<1x8x128xf32>
    %397 = vector.shape_cast %396 : vector<1x8x128xf32> to vector<8x128xf32>
    %c1048 = arith.constant 1048 : index
    %c0_412 = arith.constant 0 : index
    %398 = vector.load %arg13[%c1048, %c0_412] : memref<1608x128xf32, #tpu.memory_space<vmem>>, vector<8x128xf32>
    tpu.vector_store %arg13[%c1048, %c0_412], %397 {strides = array<i32>} : memref<1608x128xf32, #tpu.memory_space<vmem>>, vector<8x128xf32>,
    %c0_413 = arith.constant 0 : index
    %c0_414 = arith.constant 0 : index
    %c235 = arith.constant 235 : index
    %399 = vector.load %arg1[%c0_413, %c0_414, %c235] : memref<1x8x512xf32, #tpu.memory_space<vmem>>, vector<1x8x128xf32>
    %400 = vector.shape_cast %399 : vector<1x8x128xf32> to vector<8x128xf32>
    %c1056 = arith.constant 1056 : index
    %c0_415 = arith.constant 0 : index
    %401 = vector.load %arg13[%c1056, %c0_415] : memref<1608x128xf32, #tpu.memory_space<vmem>>, vector<8x128xf32>
    tpu.vector_store %arg13[%c1056, %c0_415], %400 {strides = array<i32>} : memref<1608x128xf32, #tpu.memory_space<vmem>>, vector<8x128xf32>,
    %c0_416 = arith.constant 0 : index
    %c0_417 = arith.constant 0 : index
    %c236 = arith.constant 236 : index
    %402 = vector.load %arg1[%c0_416, %c0_417, %c236] : memref<1x8x512xf32, #tpu.memory_space<vmem>>, vector<1x8x128xf32>
    %403 = vector.shape_cast %402 : vector<1x8x128xf32> to vector<8x128xf32>
    %c1064 = arith.constant 1064 : index
    %c0_418 = arith.constant 0 : index
    %404 = vector.load %arg13[%c1064, %c0_418] : memref<1608x128xf32, #tpu.memory_space<vmem>>, vector<8x128xf32>
    tpu.vector_store %arg13[%c1064, %c0_418], %403 {strides = array<i32>} : memref<1608x128xf32, #tpu.memory_space<vmem>>, vector<8x128xf32>,
    %c0_419 = arith.constant 0 : index
    %c0_420 = arith.constant 0 : index
    %c237 = arith.constant 237 : index
    %405 = vector.load %arg1[%c0_419, %c0_420, %c237] : memref<1x8x512xf32, #tpu.memory_space<vmem>>, vector<1x8x128xf32>
    %406 = vector.shape_cast %405 : vector<1x8x128xf32> to vector<8x128xf32>
    %c1072 = arith.constant 1072 : index
    %c0_421 = arith.constant 0 : index
    %407 = vector.load %arg13[%c1072, %c0_421] : memref<1608x128xf32, #tpu.memory_space<vmem>>, vector<8x128xf32>
    tpu.vector_store %arg13[%c1072, %c0_421], %406 {strides = array<i32>} : memref<1608x128xf32, #tpu.memory_space<vmem>>, vector<8x128xf32>,
    %c0_422 = arith.constant 0 : index
    %c0_423 = arith.constant 0 : index
    %c238 = arith.constant 238 : index
    %408 = vector.load %arg1[%c0_422, %c0_423, %c238] : memref<1x8x512xf32, #tpu.memory_space<vmem>>, vector<1x8x128xf32>
    %409 = vector.shape_cast %408 : vector<1x8x128xf32> to vector<8x128xf32>
    %c1080 = arith.constant 1080 : index
    %c0_424 = arith.constant 0 : index
    %410 = vector.load %arg13[%c1080, %c0_424] : memref<1608x128xf32, #tpu.memory_space<vmem>>, vector<8x128xf32>
    tpu.vector_store %arg13[%c1080, %c0_424], %409 {strides = array<i32>} : memref<1608x128xf32, #tpu.memory_space<vmem>>, vector<8x128xf32>,
    %c0_425 = arith.constant 0 : index
    %c0_426 = arith.constant 0 : index
    %c239 = arith.constant 239 : index
    %411 = vector.load %arg1[%c0_425, %c0_426, %c239] : memref<1x8x512xf32, #tpu.memory_space<vmem>>, vector<1x8x128xf32>
    %412 = vector.shape_cast %411 : vector<1x8x128xf32> to vector<8x128xf32>
    %c1088 = arith.constant 1088 : index
    %c0_427 = arith.constant 0 : index
    %413 = vector.load %arg13[%c1088, %c0_427] : memref<1608x128xf32, #tpu.memory_space<vmem>>, vector<8x128xf32>
    tpu.vector_store %arg13[%c1088, %c0_427], %412 {strides = array<i32>} : memref<1608x128xf32, #tpu.memory_space<vmem>>, vector<8x128xf32>,
    %c0_428 = arith.constant 0 : index
    %c0_429 = arith.constant 0 : index
    %c240_430 = arith.constant 240 : index
    %414 = vector.load %arg1[%c0_428, %c0_429, %c240_430] : memref<1x8x512xf32, #tpu.memory_space<vmem>>, vector<1x8x128xf32>
    %415 = vector.shape_cast %414 : vector<1x8x128xf32> to vector<8x128xf32>
    %c1096 = arith.constant 1096 : index
    %c0_431 = arith.constant 0 : index
    %416 = vector.load %arg13[%c1096, %c0_431] : memref<1608x128xf32, #tpu.memory_space<vmem>>, vector<8x128xf32>
    tpu.vector_store %arg13[%c1096, %c0_431], %415 {strides = array<i32>} : memref<1608x128xf32, #tpu.memory_space<vmem>>, vector<8x128xf32>,
    %c0_432 = arith.constant 0 : index
    %c0_433 = arith.constant 0 : index
    %c241 = arith.constant 241 : index
    %417 = vector.load %arg1[%c0_432, %c0_433, %c241] : memref<1x8x512xf32, #tpu.memory_space<vmem>>, vector<1x8x128xf32>
    %418 = vector.shape_cast %417 : vector<1x8x128xf32> to vector<8x128xf32>
    %c1104 = arith.constant 1104 : index
    %c0_434 = arith.constant 0 : index
    %419 = vector.load %arg13[%c1104, %c0_434] : memref<1608x128xf32, #tpu.memory_space<vmem>>, vector<8x128xf32>
    tpu.vector_store %arg13[%c1104, %c0_434], %418 {strides = array<i32>} : memref<1608x128xf32, #tpu.memory_space<vmem>>, vector<8x128xf32>,
    %c0_435 = arith.constant 0 : index
    %c0_436 = arith.constant 0 : index
    %c242 = arith.constant 242 : index
    %420 = vector.load %arg1[%c0_435, %c0_436, %c242] : memref<1x8x512xf32, #tpu.memory_space<vmem>>, vector<1x8x128xf32>
    %421 = vector.shape_cast %420 : vector<1x8x128xf32> to vector<8x128xf32>
    %c1112 = arith.constant 1112 : index
    %c0_437 = arith.constant 0 : index
    %422 = vector.load %arg13[%c1112, %c0_437] : memref<1608x128xf32, #tpu.memory_space<vmem>>, vector<8x128xf32>
    tpu.vector_store %arg13[%c1112, %c0_437], %421 {strides = array<i32>} : memref<1608x128xf32, #tpu.memory_space<vmem>>, vector<8x128xf32>,
    %c0_438 = arith.constant 0 : index
    %c0_439 = arith.constant 0 : index
    %c243 = arith.constant 243 : index
    %423 = vector.load %arg1[%c0_438, %c0_439, %c243] : memref<1x8x512xf32, #tpu.memory_space<vmem>>, vector<1x8x128xf32>
    %424 = vector.shape_cast %423 : vector<1x8x128xf32> to vector<8x128xf32>
    %c1120 = arith.constant 1120 : index
    %c0_440 = arith.constant 0 : index
    %425 = vector.load %arg13[%c1120, %c0_440] : memref<1608x128xf32, #tpu.memory_space<vmem>>, vector<8x128xf32>
    tpu.vector_store %arg13[%c1120, %c0_440], %424 {strides = array<i32>} : memref<1608x128xf32, #tpu.memory_space<vmem>>, vector<8x128xf32>,
    %c0_441 = arith.constant 0 : index
    %c0_442 = arith.constant 0 : index
    %c244 = arith.constant 244 : index
    %426 = vector.load %arg1[%c0_441, %c0_442, %c244] : memref<1x8x512xf32, #tpu.memory_space<vmem>>, vector<1x8x128xf32>
    %427 = vector.shape_cast %426 : vector<1x8x128xf32> to vector<8x128xf32>
    %c1128 = arith.constant 1128 : index
    %c0_443 = arith.constant 0 : index
    %428 = vector.load %arg13[%c1128, %c0_443] : memref<1608x128xf32, #tpu.memory_space<vmem>>, vector<8x128xf32>
    tpu.vector_store %arg13[%c1128, %c0_443], %427 {strides = array<i32>} : memref<1608x128xf32, #tpu.memory_space<vmem>>, vector<8x128xf32>,
    %c0_444 = arith.constant 0 : index
    %c0_445 = arith.constant 0 : index
    %c245 = arith.constant 245 : index
    %429 = vector.load %arg1[%c0_444, %c0_445, %c245] : memref<1x8x512xf32, #tpu.memory_space<vmem>>, vector<1x8x128xf32>
    %430 = vector.shape_cast %429 : vector<1x8x128xf32> to vector<8x128xf32>
    %c1136 = arith.constant 1136 : index
    %c0_446 = arith.constant 0 : index
    %431 = vector.load %arg13[%c1136, %c0_446] : memref<1608x128xf32, #tpu.memory_space<vmem>>, vector<8x128xf32>
    tpu.vector_store %arg13[%c1136, %c0_446], %430 {strides = array<i32>} : memref<1608x128xf32, #tpu.memory_space<vmem>>, vector<8x128xf32>,
    %c0_447 = arith.constant 0 : index
    %c0_448 = arith.constant 0 : index
    %c246 = arith.constant 246 : index
    %432 = vector.load %arg1[%c0_447, %c0_448, %c246] : memref<1x8x512xf32, #tpu.memory_space<vmem>>, vector<1x8x128xf32>
    %433 = vector.shape_cast %432 : vector<1x8x128xf32> to vector<8x128xf32>
    %c1144 = arith.constant 1144 : index
    %c0_449 = arith.constant 0 : index
    %434 = vector.load %arg13[%c1144, %c0_449] : memref<1608x128xf32, #tpu.memory_space<vmem>>, vector<8x128xf32>
    tpu.vector_store %arg13[%c1144, %c0_449], %433 {strides = array<i32>} : memref<1608x128xf32, #tpu.memory_space<vmem>>, vector<8x128xf32>,
    %c0_450 = arith.constant 0 : index
    %c0_451 = arith.constant 0 : index
    %c247 = arith.constant 247 : index
    %435 = vector.load %arg1[%c0_450, %c0_451, %c247] : memref<1x8x512xf32, #tpu.memory_space<vmem>>, vector<1x8x128xf32>
    %436 = vector.shape_cast %435 : vector<1x8x128xf32> to vector<8x128xf32>
    %c1152 = arith.constant 1152 : index
    %c0_452 = arith.constant 0 : index
    %437 = vector.load %arg13[%c1152, %c0_452] : memref<1608x128xf32, #tpu.memory_space<vmem>>, vector<8x128xf32>
    tpu.vector_store %arg13[%c1152, %c0_452], %436 {strides = array<i32>} : memref<1608x128xf32, #tpu.memory_space<vmem>>, vector<8x128xf32>,
    %c0_453 = arith.constant 0 : index
    %c0_454 = arith.constant 0 : index
    %c248_455 = arith.constant 248 : index
    %438 = vector.load %arg1[%c0_453, %c0_454, %c248_455] : memref<1x8x512xf32, #tpu.memory_space<vmem>>, vector<1x8x128xf32>
    %439 = vector.shape_cast %438 : vector<1x8x128xf32> to vector<8x128xf32>
    %c1160 = arith.constant 1160 : index
    %c0_456 = arith.constant 0 : index
    %440 = vector.load %arg13[%c1160, %c0_456] : memref<1608x128xf32, #tpu.memory_space<vmem>>, vector<8x128xf32>
    tpu.vector_store %arg13[%c1160, %c0_456], %439 {strides = array<i32>} : memref<1608x128xf32, #tpu.memory_space<vmem>>, vector<8x128xf32>,
    %c0_457 = arith.constant 0 : index
    %c0_458 = arith.constant 0 : index
    %c249 = arith.constant 249 : index
    %441 = vector.load %arg1[%c0_457, %c0_458, %c249] : memref<1x8x512xf32, #tpu.memory_space<vmem>>, vector<1x8x128xf32>
    %442 = vector.shape_cast %441 : vector<1x8x128xf32> to vector<8x128xf32>
    %c1168 = arith.constant 1168 : index
    %c0_459 = arith.constant 0 : index
    %443 = vector.load %arg13[%c1168, %c0_459] : memref<1608x128xf32, #tpu.memory_space<vmem>>, vector<8x128xf32>
    tpu.vector_store %arg13[%c1168, %c0_459], %442 {strides = array<i32>} : memref<1608x128xf32, #tpu.memory_space<vmem>>, vector<8x128xf32>,
    %c0_460 = arith.constant 0 : index
    %c0_461 = arith.constant 0 : index
    %c250 = arith.constant 250 : index
    %444 = vector.load %arg1[%c0_460, %c0_461, %c250] : memref<1x8x512xf32, #tpu.memory_space<vmem>>, vector<1x8x128xf32>
    %445 = vector.shape_cast %444 : vector<1x8x128xf32> to vector<8x128xf32>
    %c1176 = arith.constant 1176 : index
    %c0_462 = arith.constant 0 : index
    %446 = vector.load %arg13[%c1176, %c0_462] : memref<1608x128xf32, #tpu.memory_space<vmem>>, vector<8x128xf32>
    tpu.vector_store %arg13[%c1176, %c0_462], %445 {strides = array<i32>} : memref<1608x128xf32, #tpu.memory_space<vmem>>, vector<8x128xf32>,
    %c0_463 = arith.constant 0 : index
    %c0_464 = arith.constant 0 : index
    %c251 = arith.constant 251 : index
    %447 = vector.load %arg1[%c0_463, %c0_464, %c251] : memref<1x8x512xf32, #tpu.memory_space<vmem>>, vector<1x8x128xf32>
    %448 = vector.shape_cast %447 : vector<1x8x128xf32> to vector<8x128xf32>
    %c1184 = arith.constant 1184 : index
    %c0_465 = arith.constant 0 : index
    %449 = vector.load %arg13[%c1184, %c0_465] : memref<1608x128xf32, #tpu.memory_space<vmem>>, vector<8x128xf32>
    tpu.vector_store %arg13[%c1184, %c0_465], %448 {strides = array<i32>} : memref<1608x128xf32, #tpu.memory_space<vmem>>, vector<8x128xf32>,
    %c0_466 = arith.constant 0 : index
    %c0_467 = arith.constant 0 : index
    %c252 = arith.constant 252 : index
    %450 = vector.load %arg1[%c0_466, %c0_467, %c252] : memref<1x8x512xf32, #tpu.memory_space<vmem>>, vector<1x8x128xf32>
    %451 = vector.shape_cast %450 : vector<1x8x128xf32> to vector<8x128xf32>
    %c1192 = arith.constant 1192 : index
    %c0_468 = arith.constant 0 : index
    %452 = vector.load %arg13[%c1192, %c0_468] : memref<1608x128xf32, #tpu.memory_space<vmem>>, vector<8x128xf32>
    tpu.vector_store %arg13[%c1192, %c0_468], %451 {strides = array<i32>} : memref<1608x128xf32, #tpu.memory_space<vmem>>, vector<8x128xf32>,
    %c0_469 = arith.constant 0 : index
    %c0_470 = arith.constant 0 : index
    %c253 = arith.constant 253 : index
    %453 = vector.load %arg1[%c0_469, %c0_470, %c253] : memref<1x8x512xf32, #tpu.memory_space<vmem>>, vector<1x8x128xf32>
    %454 = vector.shape_cast %453 : vector<1x8x128xf32> to vector<8x128xf32>
    %c1200 = arith.constant 1200 : index
    %c0_471 = arith.constant 0 : index
    %455 = vector.load %arg13[%c1200, %c0_471] : memref<1608x128xf32, #tpu.memory_space<vmem>>, vector<8x128xf32>
    tpu.vector_store %arg13[%c1200, %c0_471], %454 {strides = array<i32>} : memref<1608x128xf32, #tpu.memory_space<vmem>>, vector<8x128xf32>,
    %c0_472 = arith.constant 0 : index
    %c0_473 = arith.constant 0 : index
    %c254 = arith.constant 254 : index
    %456 = vector.load %arg1[%c0_472, %c0_473, %c254] : memref<1x8x512xf32, #tpu.memory_space<vmem>>, vector<1x8x128xf32>
    %457 = vector.shape_cast %456 : vector<1x8x128xf32> to vector<8x128xf32>
    %c1208 = arith.constant 1208 : index
    %c0_474 = arith.constant 0 : index
    %458 = vector.load %arg13[%c1208, %c0_474] : memref<1608x128xf32, #tpu.memory_space<vmem>>, vector<8x128xf32>
    tpu.vector_store %arg13[%c1208, %c0_474], %457 {strides = array<i32>} : memref<1608x128xf32, #tpu.memory_space<vmem>>, vector<8x128xf32>,
    %c0_475 = arith.constant 0 : index
    %c0_476 = arith.constant 0 : index
    %c255 = arith.constant 255 : index
    %459 = vector.load %arg1[%c0_475, %c0_476, %c255] : memref<1x8x512xf32, #tpu.memory_space<vmem>>, vector<1x8x128xf32>
    %460 = vector.shape_cast %459 : vector<1x8x128xf32> to vector<8x128xf32>
    %c1216 = arith.constant 1216 : index
    %c0_477 = arith.constant 0 : index
    %461 = vector.load %arg13[%c1216, %c0_477] : memref<1608x128xf32, #tpu.memory_space<vmem>>, vector<8x128xf32>
    tpu.vector_store %arg13[%c1216, %c0_477], %460 {strides = array<i32>} : memref<1608x128xf32, #tpu.memory_space<vmem>>, vector<8x128xf32>,
    %c0_478 = arith.constant 0 : index
    %c0_479 = arith.constant 0 : index
    %c256_480 = arith.constant 256 : index
    %462 = vector.load %arg1[%c0_478, %c0_479, %c256_480] : memref<1x8x512xf32, #tpu.memory_space<vmem>>, vector<1x8x128xf32>
    %463 = vector.shape_cast %462 : vector<1x8x128xf32> to vector<8x128xf32>
    %c1224 = arith.constant 1224 : index
    %c0_481 = arith.constant 0 : index
    %464 = vector.load %arg13[%c1224, %c0_481] : memref<1608x128xf32, #tpu.memory_space<vmem>>, vector<8x128xf32>
    tpu.vector_store %arg13[%c1224, %c0_481], %463 {strides = array<i32>} : memref<1608x128xf32, #tpu.memory_space<vmem>>, vector<8x128xf32>,
    %c0_482 = arith.constant 0 : index
    %c0_483 = arith.constant 0 : index
    %c257 = arith.constant 257 : index
    %465 = vector.load %arg1[%c0_482, %c0_483, %c257] : memref<1x8x512xf32, #tpu.memory_space<vmem>>, vector<1x8x128xf32>
    %466 = vector.shape_cast %465 : vector<1x8x128xf32> to vector<8x128xf32>
    %c1232 = arith.constant 1232 : index
    %c0_484 = arith.constant 0 : index
    %467 = vector.load %arg13[%c1232, %c0_484] : memref<1608x128xf32, #tpu.memory_space<vmem>>, vector<8x128xf32>
    tpu.vector_store %arg13[%c1232, %c0_484], %466 {strides = array<i32>} : memref<1608x128xf32, #tpu.memory_space<vmem>>, vector<8x128xf32>,
    %c0_485 = arith.constant 0 : index
    %c0_486 = arith.constant 0 : index
    %c258 = arith.constant 258 : index
    %468 = vector.load %arg1[%c0_485, %c0_486, %c258] : memref<1x8x512xf32, #tpu.memory_space<vmem>>, vector<1x8x128xf32>
    %469 = vector.shape_cast %468 : vector<1x8x128xf32> to vector<8x128xf32>
    %c1240 = arith.constant 1240 : index
    %c0_487 = arith.constant 0 : index
    %470 = vector.load %arg13[%c1240, %c0_487] : memref<1608x128xf32, #tpu.memory_space<vmem>>, vector<8x128xf32>
    tpu.vector_store %arg13[%c1240, %c0_487], %469 {strides = array<i32>} : memref<1608x128xf32, #tpu.memory_space<vmem>>, vector<8x128xf32>,
    %c0_488 = arith.constant 0 : index
    %c0_489 = arith.constant 0 : index
    %c259 = arith.constant 259 : index
    %471 = vector.load %arg1[%c0_488, %c0_489, %c259] : memref<1x8x512xf32, #tpu.memory_space<vmem>>, vector<1x8x128xf32>
    %472 = vector.shape_cast %471 : vector<1x8x128xf32> to vector<8x128xf32>
    %c1248 = arith.constant 1248 : index
    %c0_490 = arith.constant 0 : index
    %473 = vector.load %arg13[%c1248, %c0_490] : memref<1608x128xf32, #tpu.memory_space<vmem>>, vector<8x128xf32>
    tpu.vector_store %arg13[%c1248, %c0_490], %472 {strides = array<i32>} : memref<1608x128xf32, #tpu.memory_space<vmem>>, vector<8x128xf32>,
    %c0_491 = arith.constant 0 : index
    %c0_492 = arith.constant 0 : index
    %c260 = arith.constant 260 : index
    %474 = vector.load %arg1[%c0_491, %c0_492, %c260] : memref<1x8x512xf32, #tpu.memory_space<vmem>>, vector<1x8x128xf32>
    %475 = vector.shape_cast %474 : vector<1x8x128xf32> to vector<8x128xf32>
    %c1256 = arith.constant 1256 : index
    %c0_493 = arith.constant 0 : index
    %476 = vector.load %arg13[%c1256, %c0_493] : memref<1608x128xf32, #tpu.memory_space<vmem>>, vector<8x128xf32>
    tpu.vector_store %arg13[%c1256, %c0_493], %475 {strides = array<i32>} : memref<1608x128xf32, #tpu.memory_space<vmem>>, vector<8x128xf32>,
    %c0_494 = arith.constant 0 : index
    %c0_495 = arith.constant 0 : index
    %c261 = arith.constant 261 : index
    %477 = vector.load %arg1[%c0_494, %c0_495, %c261] : memref<1x8x512xf32, #tpu.memory_space<vmem>>, vector<1x8x128xf32>
    %478 = vector.shape_cast %477 : vector<1x8x128xf32> to vector<8x128xf32>
    %c1264 = arith.constant 1264 : index
    %c0_496 = arith.constant 0 : index
    %479 = vector.load %arg13[%c1264, %c0_496] : memref<1608x128xf32, #tpu.memory_space<vmem>>, vector<8x128xf32>
    tpu.vector_store %arg13[%c1264, %c0_496], %478 {strides = array<i32>} : memref<1608x128xf32, #tpu.memory_space<vmem>>, vector<8x128xf32>,
    %c0_497 = arith.constant 0 : index
    %c0_498 = arith.constant 0 : index
    %c262 = arith.constant 262 : index
    %480 = vector.load %arg1[%c0_497, %c0_498, %c262] : memref<1x8x512xf32, #tpu.memory_space<vmem>>, vector<1x8x128xf32>
    %481 = vector.shape_cast %480 : vector<1x8x128xf32> to vector<8x128xf32>
    %c1272 = arith.constant 1272 : index
    %c0_499 = arith.constant 0 : index
    %482 = vector.load %arg13[%c1272, %c0_499] : memref<1608x128xf32, #tpu.memory_space<vmem>>, vector<8x128xf32>
    tpu.vector_store %arg13[%c1272, %c0_499], %481 {strides = array<i32>} : memref<1608x128xf32, #tpu.memory_space<vmem>>, vector<8x128xf32>,
    %c0_500 = arith.constant 0 : index
    %c0_501 = arith.constant 0 : index
    %c263 = arith.constant 263 : index
    %483 = vector.load %arg1[%c0_500, %c0_501, %c263] : memref<1x8x512xf32, #tpu.memory_space<vmem>>, vector<1x8x128xf32>
    %484 = vector.shape_cast %483 : vector<1x8x128xf32> to vector<8x128xf32>
    %c1280 = arith.constant 1280 : index
    %c0_502 = arith.constant 0 : index
    %485 = vector.load %arg13[%c1280, %c0_502] : memref<1608x128xf32, #tpu.memory_space<vmem>>, vector<8x128xf32>
    tpu.vector_store %arg13[%c1280, %c0_502], %484 {strides = array<i32>} : memref<1608x128xf32, #tpu.memory_space<vmem>>, vector<8x128xf32>,
    %c0_503 = arith.constant 0 : index
    %c0_504 = arith.constant 0 : index
    %c264_505 = arith.constant 264 : index
    %486 = vector.load %arg1[%c0_503, %c0_504, %c264_505] : memref<1x8x512xf32, #tpu.memory_space<vmem>>, vector<1x8x128xf32>
    %487 = vector.shape_cast %486 : vector<1x8x128xf32> to vector<8x128xf32>
    %c1288 = arith.constant 1288 : index
    %c0_506 = arith.constant 0 : index
    %488 = vector.load %arg13[%c1288, %c0_506] : memref<1608x128xf32, #tpu.memory_space<vmem>>, vector<8x128xf32>
    tpu.vector_store %arg13[%c1288, %c0_506], %487 {strides = array<i32>} : memref<1608x128xf32, #tpu.memory_space<vmem>>, vector<8x128xf32>,
    %c0_507 = arith.constant 0 : index
    %c0_508 = arith.constant 0 : index
    %c265 = arith.constant 265 : index
    %489 = vector.load %arg1[%c0_507, %c0_508, %c265] : memref<1x8x512xf32, #tpu.memory_space<vmem>>, vector<1x8x128xf32>
    %490 = vector.shape_cast %489 : vector<1x8x128xf32> to vector<8x128xf32>
    %c1296 = arith.constant 1296 : index
    %c0_509 = arith.constant 0 : index
    %491 = vector.load %arg13[%c1296, %c0_509] : memref<1608x128xf32, #tpu.memory_space<vmem>>, vector<8x128xf32>
    tpu.vector_store %arg13[%c1296, %c0_509], %490 {strides = array<i32>} : memref<1608x128xf32, #tpu.memory_space<vmem>>, vector<8x128xf32>,
    %c0_510 = arith.constant 0 : index
    %c0_511 = arith.constant 0 : index
    %c266 = arith.constant 266 : index
    %492 = vector.load %arg1[%c0_510, %c0_511, %c266] : memref<1x8x512xf32, #tpu.memory_space<vmem>>, vector<1x8x128xf32>
    %493 = vector.shape_cast %492 : vector<1x8x128xf32> to vector<8x128xf32>
    %c1304 = arith.constant 1304 : index
    %c0_512 = arith.constant 0 : index
    %494 = vector.load %arg13[%c1304, %c0_512] : memref<1608x128xf32, #tpu.memory_space<vmem>>, vector<8x128xf32>
    tpu.vector_store %arg13[%c1304, %c0_512], %493 {strides = array<i32>} : memref<1608x128xf32, #tpu.memory_space<vmem>>, vector<8x128xf32>,
    %c0_513 = arith.constant 0 : index
    %c0_514 = arith.constant 0 : index
    %c267 = arith.constant 267 : index
    %495 = vector.load %arg1[%c0_513, %c0_514, %c267] : memref<1x8x512xf32, #tpu.memory_space<vmem>>, vector<1x8x128xf32>
    %496 = vector.shape_cast %495 : vector<1x8x128xf32> to vector<8x128xf32>
    %c1312 = arith.constant 1312 : index
    %c0_515 = arith.constant 0 : index
    %497 = vector.load %arg13[%c1312, %c0_515] : memref<1608x128xf32, #tpu.memory_space<vmem>>, vector<8x128xf32>
    tpu.vector_store %arg13[%c1312, %c0_515], %496 {strides = array<i32>} : memref<1608x128xf32, #tpu.memory_space<vmem>>, vector<8x128xf32>,
    %c0_516 = arith.constant 0 : index
    %c0_517 = arith.constant 0 : index
    %c268 = arith.constant 268 : index
    %498 = vector.load %arg1[%c0_516, %c0_517, %c268] : memref<1x8x512xf32, #tpu.memory_space<vmem>>, vector<1x8x128xf32>
    %499 = vector.shape_cast %498 : vector<1x8x128xf32> to vector<8x128xf32>
    %c1320 = arith.constant 1320 : index
    %c0_518 = arith.constant 0 : index
    %500 = vector.load %arg13[%c1320, %c0_518] : memref<1608x128xf32, #tpu.memory_space<vmem>>, vector<8x128xf32>
    tpu.vector_store %arg13[%c1320, %c0_518], %499 {strides = array<i32>} : memref<1608x128xf32, #tpu.memory_space<vmem>>, vector<8x128xf32>,
    %c0_519 = arith.constant 0 : index
    %c0_520 = arith.constant 0 : index
    %c269 = arith.constant 269 : index
    %501 = vector.load %arg1[%c0_519, %c0_520, %c269] : memref<1x8x512xf32, #tpu.memory_space<vmem>>, vector<1x8x128xf32>
    %502 = vector.shape_cast %501 : vector<1x8x128xf32> to vector<8x128xf32>
    %c1328 = arith.constant 1328 : index
    %c0_521 = arith.constant 0 : index
    %503 = vector.load %arg13[%c1328, %c0_521] : memref<1608x128xf32, #tpu.memory_space<vmem>>, vector<8x128xf32>
    tpu.vector_store %arg13[%c1328, %c0_521], %502 {strides = array<i32>} : memref<1608x128xf32, #tpu.memory_space<vmem>>, vector<8x128xf32>,
    %c0_522 = arith.constant 0 : index
    %c0_523 = arith.constant 0 : index
    %c270 = arith.constant 270 : index
    %504 = vector.load %arg1[%c0_522, %c0_523, %c270] : memref<1x8x512xf32, #tpu.memory_space<vmem>>, vector<1x8x128xf32>
    %505 = vector.shape_cast %504 : vector<1x8x128xf32> to vector<8x128xf32>
    %c1336 = arith.constant 1336 : index
    %c0_524 = arith.constant 0 : index
    %506 = vector.load %arg13[%c1336, %c0_524] : memref<1608x128xf32, #tpu.memory_space<vmem>>, vector<8x128xf32>
    tpu.vector_store %arg13[%c1336, %c0_524], %505 {strides = array<i32>} : memref<1608x128xf32, #tpu.memory_space<vmem>>, vector<8x128xf32>,
    %c0_525 = arith.constant 0 : index
    %c0_526 = arith.constant 0 : index
    %c271 = arith.constant 271 : index
    %507 = vector.load %arg1[%c0_525, %c0_526, %c271] : memref<1x8x512xf32, #tpu.memory_space<vmem>>, vector<1x8x128xf32>
    %508 = vector.shape_cast %507 : vector<1x8x128xf32> to vector<8x128xf32>
    %c1344 = arith.constant 1344 : index
    %c0_527 = arith.constant 0 : index
    %509 = vector.load %arg13[%c1344, %c0_527] : memref<1608x128xf32, #tpu.memory_space<vmem>>, vector<8x128xf32>
    tpu.vector_store %arg13[%c1344, %c0_527], %508 {strides = array<i32>} : memref<1608x128xf32, #tpu.memory_space<vmem>>, vector<8x128xf32>,
    %c0_528 = arith.constant 0 : index
    %c0_529 = arith.constant 0 : index
    %c272_530 = arith.constant 272 : index
    %510 = vector.load %arg1[%c0_528, %c0_529, %c272_530] : memref<1x8x512xf32, #tpu.memory_space<vmem>>, vector<1x8x128xf32>
    %511 = vector.shape_cast %510 : vector<1x8x128xf32> to vector<8x128xf32>
    %c1352 = arith.constant 1352 : index
    %c0_531 = arith.constant 0 : index
    %512 = vector.load %arg13[%c1352, %c0_531] : memref<1608x128xf32, #tpu.memory_space<vmem>>, vector<8x128xf32>
    tpu.vector_store %arg13[%c1352, %c0_531], %511 {strides = array<i32>} : memref<1608x128xf32, #tpu.memory_space<vmem>>, vector<8x128xf32>,
    %c0_532 = arith.constant 0 : index
    %c0_533 = arith.constant 0 : index
    %c273 = arith.constant 273 : index
    %513 = vector.load %arg1[%c0_532, %c0_533, %c273] : memref<1x8x512xf32, #tpu.memory_space<vmem>>, vector<1x8x128xf32>
    %514 = vector.shape_cast %513 : vector<1x8x128xf32> to vector<8x128xf32>
    %c1360 = arith.constant 1360 : index
    %c0_534 = arith.constant 0 : index
    %515 = vector.load %arg13[%c1360, %c0_534] : memref<1608x128xf32, #tpu.memory_space<vmem>>, vector<8x128xf32>
    tpu.vector_store %arg13[%c1360, %c0_534], %514 {strides = array<i32>} : memref<1608x128xf32, #tpu.memory_space<vmem>>, vector<8x128xf32>,
    %c0_535 = arith.constant 0 : index
    %c0_536 = arith.constant 0 : index
    %c274 = arith.constant 274 : index
    %516 = vector.load %arg1[%c0_535, %c0_536, %c274] : memref<1x8x512xf32, #tpu.memory_space<vmem>>, vector<1x8x128xf32>
    %517 = vector.shape_cast %516 : vector<1x8x128xf32> to vector<8x128xf32>
    %c1368 = arith.constant 1368 : index
    %c0_537 = arith.constant 0 : index
    %518 = vector.load %arg13[%c1368, %c0_537] : memref<1608x128xf32, #tpu.memory_space<vmem>>, vector<8x128xf32>
    tpu.vector_store %arg13[%c1368, %c0_537], %517 {strides = array<i32>} : memref<1608x128xf32, #tpu.memory_space<vmem>>, vector<8x128xf32>,
    %c0_538 = arith.constant 0 : index
    %c0_539 = arith.constant 0 : index
    %c275 = arith.constant 275 : index
    %519 = vector.load %arg1[%c0_538, %c0_539, %c275] : memref<1x8x512xf32, #tpu.memory_space<vmem>>, vector<1x8x128xf32>
    %520 = vector.shape_cast %519 : vector<1x8x128xf32> to vector<8x128xf32>
    %c1376 = arith.constant 1376 : index
    %c0_540 = arith.constant 0 : index
    %521 = vector.load %arg13[%c1376, %c0_540] : memref<1608x128xf32, #tpu.memory_space<vmem>>, vector<8x128xf32>
    tpu.vector_store %arg13[%c1376, %c0_540], %520 {strides = array<i32>} : memref<1608x128xf32, #tpu.memory_space<vmem>>, vector<8x128xf32>,
    %c0_541 = arith.constant 0 : index
    %c0_542 = arith.constant 0 : index
    %c276 = arith.constant 276 : index
    %522 = vector.load %arg1[%c0_541, %c0_542, %c276] : memref<1x8x512xf32, #tpu.memory_space<vmem>>, vector<1x8x128xf32>
    %523 = vector.shape_cast %522 : vector<1x8x128xf32> to vector<8x128xf32>
    %c1384 = arith.constant 1384 : index
    %c0_543 = arith.constant 0 : index
    %524 = vector.load %arg13[%c1384, %c0_543] : memref<1608x128xf32, #tpu.memory_space<vmem>>, vector<8x128xf32>
    tpu.vector_store %arg13[%c1384, %c0_543], %523 {strides = array<i32>} : memref<1608x128xf32, #tpu.memory_space<vmem>>, vector<8x128xf32>,
    %c0_544 = arith.constant 0 : index
    %c0_545 = arith.constant 0 : index
    %c277 = arith.constant 277 : index
    %525 = vector.load %arg1[%c0_544, %c0_545, %c277] : memref<1x8x512xf32, #tpu.memory_space<vmem>>, vector<1x8x128xf32>
    %526 = vector.shape_cast %525 : vector<1x8x128xf32> to vector<8x128xf32>
    %c1392 = arith.constant 1392 : index
    %c0_546 = arith.constant 0 : index
    %527 = vector.load %arg13[%c1392, %c0_546] : memref<1608x128xf32, #tpu.memory_space<vmem>>, vector<8x128xf32>
    tpu.vector_store %arg13[%c1392, %c0_546], %526 {strides = array<i32>} : memref<1608x128xf32, #tpu.memory_space<vmem>>, vector<8x128xf32>,
    %c0_547 = arith.constant 0 : index
    %c0_548 = arith.constant 0 : index
    %c278 = arith.constant 278 : index
    %528 = vector.load %arg1[%c0_547, %c0_548, %c278] : memref<1x8x512xf32, #tpu.memory_space<vmem>>, vector<1x8x128xf32>
    %529 = vector.shape_cast %528 : vector<1x8x128xf32> to vector<8x128xf32>
    %c1400 = arith.constant 1400 : index
    %c0_549 = arith.constant 0 : index
    %530 = vector.load %arg13[%c1400, %c0_549] : memref<1608x128xf32, #tpu.memory_space<vmem>>, vector<8x128xf32>
    tpu.vector_store %arg13[%c1400, %c0_549], %529 {strides = array<i32>} : memref<1608x128xf32, #tpu.memory_space<vmem>>, vector<8x128xf32>,
    %c0_550 = arith.constant 0 : index
    %c0_551 = arith.constant 0 : index
    %c279 = arith.constant 279 : index
    %531 = vector.load %arg1[%c0_550, %c0_551, %c279] : memref<1x8x512xf32, #tpu.memory_space<vmem>>, vector<1x8x128xf32>
    %532 = vector.shape_cast %531 : vector<1x8x128xf32> to vector<8x128xf32>
    %c1408 = arith.constant 1408 : index
    %c0_552 = arith.constant 0 : index
    %533 = vector.load %arg13[%c1408, %c0_552] : memref<1608x128xf32, #tpu.memory_space<vmem>>, vector<8x128xf32>
    tpu.vector_store %arg13[%c1408, %c0_552], %532 {strides = array<i32>} : memref<1608x128xf32, #tpu.memory_space<vmem>>, vector<8x128xf32>,
    %c0_553 = arith.constant 0 : index
    %c0_554 = arith.constant 0 : index
    %c280_555 = arith.constant 280 : index
    %534 = vector.load %arg1[%c0_553, %c0_554, %c280_555] : memref<1x8x512xf32, #tpu.memory_space<vmem>>, vector<1x8x128xf32>
    %535 = vector.shape_cast %534 : vector<1x8x128xf32> to vector<8x128xf32>
    %c1416 = arith.constant 1416 : index
    %c0_556 = arith.constant 0 : index
    %536 = vector.load %arg13[%c1416, %c0_556] : memref<1608x128xf32, #tpu.memory_space<vmem>>, vector<8x128xf32>
    tpu.vector_store %arg13[%c1416, %c0_556], %535 {strides = array<i32>} : memref<1608x128xf32, #tpu.memory_space<vmem>>, vector<8x128xf32>,
    %c0_557 = arith.constant 0 : index
    %c0_558 = arith.constant 0 : index
    %c281 = arith.constant 281 : index
    %537 = vector.load %arg1[%c0_557, %c0_558, %c281] : memref<1x8x512xf32, #tpu.memory_space<vmem>>, vector<1x8x128xf32>
    %538 = vector.shape_cast %537 : vector<1x8x128xf32> to vector<8x128xf32>
    %c1424 = arith.constant 1424 : index
    %c0_559 = arith.constant 0 : index
    %539 = vector.load %arg13[%c1424, %c0_559] : memref<1608x128xf32, #tpu.memory_space<vmem>>, vector<8x128xf32>
    tpu.vector_store %arg13[%c1424, %c0_559], %538 {strides = array<i32>} : memref<1608x128xf32, #tpu.memory_space<vmem>>, vector<8x128xf32>,
    %c0_560 = arith.constant 0 : index
    %c0_561 = arith.constant 0 : index
    %c282 = arith.constant 282 : index
    %540 = vector.load %arg1[%c0_560, %c0_561, %c282] : memref<1x8x512xf32, #tpu.memory_space<vmem>>, vector<1x8x128xf32>
    %541 = vector.shape_cast %540 : vector<1x8x128xf32> to vector<8x128xf32>
    %c1432 = arith.constant 1432 : index
    %c0_562 = arith.constant 0 : index
    %542 = vector.load %arg13[%c1432, %c0_562] : memref<1608x128xf32, #tpu.memory_space<vmem>>, vector<8x128xf32>
    tpu.vector_store %arg13[%c1432, %c0_562], %541 {strides = array<i32>} : memref<1608x128xf32, #tpu.memory_space<vmem>>, vector<8x128xf32>,
    %c0_563 = arith.constant 0 : index
    %c0_564 = arith.constant 0 : index
    %c283 = arith.constant 283 : index
    %543 = vector.load %arg1[%c0_563, %c0_564, %c283] : memref<1x8x512xf32, #tpu.memory_space<vmem>>, vector<1x8x128xf32>
    %544 = vector.shape_cast %543 : vector<1x8x128xf32> to vector<8x128xf32>
    %c1440 = arith.constant 1440 : index
    %c0_565 = arith.constant 0 : index
    %545 = vector.load %arg13[%c1440, %c0_565] : memref<1608x128xf32, #tpu.memory_space<vmem>>, vector<8x128xf32>
    tpu.vector_store %arg13[%c1440, %c0_565], %544 {strides = array<i32>} : memref<1608x128xf32, #tpu.memory_space<vmem>>, vector<8x128xf32>,
    %c0_566 = arith.constant 0 : index
    %c0_567 = arith.constant 0 : index
    %c284 = arith.constant 284 : index
    %546 = vector.load %arg1[%c0_566, %c0_567, %c284] : memref<1x8x512xf32, #tpu.memory_space<vmem>>, vector<1x8x128xf32>
    %547 = vector.shape_cast %546 : vector<1x8x128xf32> to vector<8x128xf32>
    %c1448 = arith.constant 1448 : index
    %c0_568 = arith.constant 0 : index
    %548 = vector.load %arg13[%c1448, %c0_568] : memref<1608x128xf32, #tpu.memory_space<vmem>>, vector<8x128xf32>
    tpu.vector_store %arg13[%c1448, %c0_568], %547 {strides = array<i32>} : memref<1608x128xf32, #tpu.memory_space<vmem>>, vector<8x128xf32>,
    %c0_569 = arith.constant 0 : index
    %c0_570 = arith.constant 0 : index
    %c285 = arith.constant 285 : index
    %549 = vector.load %arg1[%c0_569, %c0_570, %c285] : memref<1x8x512xf32, #tpu.memory_space<vmem>>, vector<1x8x128xf32>
    %550 = vector.shape_cast %549 : vector<1x8x128xf32> to vector<8x128xf32>
    %c1456 = arith.constant 1456 : index
    %c0_571 = arith.constant 0 : index
    %551 = vector.load %arg13[%c1456, %c0_571] : memref<1608x128xf32, #tpu.memory_space<vmem>>, vector<8x128xf32>
    tpu.vector_store %arg13[%c1456, %c0_571], %550 {strides = array<i32>} : memref<1608x128xf32, #tpu.memory_space<vmem>>, vector<8x128xf32>,
    %c0_572 = arith.constant 0 : index
    %c0_573 = arith.constant 0 : index
    %c286 = arith.constant 286 : index
    %552 = vector.load %arg1[%c0_572, %c0_573, %c286] : memref<1x8x512xf32, #tpu.memory_space<vmem>>, vector<1x8x128xf32>
    %553 = vector.shape_cast %552 : vector<1x8x128xf32> to vector<8x128xf32>
    %c1464 = arith.constant 1464 : index
    %c0_574 = arith.constant 0 : index
    %554 = vector.load %arg13[%c1464, %c0_574] : memref<1608x128xf32, #tpu.memory_space<vmem>>, vector<8x128xf32>
    tpu.vector_store %arg13[%c1464, %c0_574], %553 {strides = array<i32>} : memref<1608x128xf32, #tpu.memory_space<vmem>>, vector<8x128xf32>,
    %c0_575 = arith.constant 0 : index
    %c0_576 = arith.constant 0 : index
    %c287 = arith.constant 287 : index
    %555 = vector.load %arg1[%c0_575, %c0_576, %c287] : memref<1x8x512xf32, #tpu.memory_space<vmem>>, vector<1x8x128xf32>
    %556 = vector.shape_cast %555 : vector<1x8x128xf32> to vector<8x128xf32>
    %c1472 = arith.constant 1472 : index
    %c0_577 = arith.constant 0 : index
    %557 = vector.load %arg13[%c1472, %c0_577] : memref<1608x128xf32, #tpu.memory_space<vmem>>, vector<8x128xf32>
    tpu.vector_store %arg13[%c1472, %c0_577], %556 {strides = array<i32>} : memref<1608x128xf32, #tpu.memory_space<vmem>>, vector<8x128xf32>,
    %c0_578 = arith.constant 0 : index
    %c0_579 = arith.constant 0 : index
    %c288_580 = arith.constant 288 : index
    %558 = vector.load %arg1[%c0_578, %c0_579, %c288_580] : memref<1x8x512xf32, #tpu.memory_space<vmem>>, vector<1x8x128xf32>
    %559 = vector.shape_cast %558 : vector<1x8x128xf32> to vector<8x128xf32>
    %c1480 = arith.constant 1480 : index
    %c0_581 = arith.constant 0 : index
    %560 = vector.load %arg13[%c1480, %c0_581] : memref<1608x128xf32, #tpu.memory_space<vmem>>, vector<8x128xf32>
    tpu.vector_store %arg13[%c1480, %c0_581], %559 {strides = array<i32>} : memref<1608x128xf32, #tpu.memory_space<vmem>>, vector<8x128xf32>,
    %c0_582 = arith.constant 0 : index
    %c0_583 = arith.constant 0 : index
    %c289 = arith.constant 289 : index
    %561 = vector.load %arg1[%c0_582, %c0_583, %c289] : memref<1x8x512xf32, #tpu.memory_space<vmem>>, vector<1x8x128xf32>
    %562 = vector.shape_cast %561 : vector<1x8x128xf32> to vector<8x128xf32>
    %c1488 = arith.constant 1488 : index
    %c0_584 = arith.constant 0 : index
    %563 = vector.load %arg13[%c1488, %c0_584] : memref<1608x128xf32, #tpu.memory_space<vmem>>, vector<8x128xf32>
    tpu.vector_store %arg13[%c1488, %c0_584], %562 {strides = array<i32>} : memref<1608x128xf32, #tpu.memory_space<vmem>>, vector<8x128xf32>,
    %c0_585 = arith.constant 0 : index
    %c0_586 = arith.constant 0 : index
    %c290 = arith.constant 290 : index
    %564 = vector.load %arg1[%c0_585, %c0_586, %c290] : memref<1x8x512xf32, #tpu.memory_space<vmem>>, vector<1x8x128xf32>
    %565 = vector.shape_cast %564 : vector<1x8x128xf32> to vector<8x128xf32>
    %c1496 = arith.constant 1496 : index
    %c0_587 = arith.constant 0 : index
    %566 = vector.load %arg13[%c1496, %c0_587] : memref<1608x128xf32, #tpu.memory_space<vmem>>, vector<8x128xf32>
    tpu.vector_store %arg13[%c1496, %c0_587], %565 {strides = array<i32>} : memref<1608x128xf32, #tpu.memory_space<vmem>>, vector<8x128xf32>,
    %c0_588 = arith.constant 0 : index
    %c0_589 = arith.constant 0 : index
    %c291 = arith.constant 291 : index
    %567 = vector.load %arg1[%c0_588, %c0_589, %c291] : memref<1x8x512xf32, #tpu.memory_space<vmem>>, vector<1x8x128xf32>
    %568 = vector.shape_cast %567 : vector<1x8x128xf32> to vector<8x128xf32>
    %c1504 = arith.constant 1504 : index
    %c0_590 = arith.constant 0 : index
    %569 = vector.load %arg13[%c1504, %c0_590] : memref<1608x128xf32, #tpu.memory_space<vmem>>, vector<8x128xf32>
    tpu.vector_store %arg13[%c1504, %c0_590], %568 {strides = array<i32>} : memref<1608x128xf32, #tpu.memory_space<vmem>>, vector<8x128xf32>,
    %c0_591 = arith.constant 0 : index
    %c0_592 = arith.constant 0 : index
    %c292 = arith.constant 292 : index
    %570 = vector.load %arg1[%c0_591, %c0_592, %c292] : memref<1x8x512xf32, #tpu.memory_space<vmem>>, vector<1x8x128xf32>
    %571 = vector.shape_cast %570 : vector<1x8x128xf32> to vector<8x128xf32>
    %c1512 = arith.constant 1512 : index
    %c0_593 = arith.constant 0 : index
    %572 = vector.load %arg13[%c1512, %c0_593] : memref<1608x128xf32, #tpu.memory_space<vmem>>, vector<8x128xf32>
    tpu.vector_store %arg13[%c1512, %c0_593], %571 {strides = array<i32>} : memref<1608x128xf32, #tpu.memory_space<vmem>>, vector<8x128xf32>,
    %c0_594 = arith.constant 0 : index
    %c0_595 = arith.constant 0 : index
    %c293 = arith.constant 293 : index
    %573 = vector.load %arg1[%c0_594, %c0_595, %c293] : memref<1x8x512xf32, #tpu.memory_space<vmem>>, vector<1x8x128xf32>
    %574 = vector.shape_cast %573 : vector<1x8x128xf32> to vector<8x128xf32>
    %c1520 = arith.constant 1520 : index
    %c0_596 = arith.constant 0 : index
    %575 = vector.load %arg13[%c1520, %c0_596] : memref<1608x128xf32, #tpu.memory_space<vmem>>, vector<8x128xf32>
    tpu.vector_store %arg13[%c1520, %c0_596], %574 {strides = array<i32>} : memref<1608x128xf32, #tpu.memory_space<vmem>>, vector<8x128xf32>,
    %c0_597 = arith.constant 0 : index
    %c0_598 = arith.constant 0 : index
    %c294 = arith.constant 294 : index
    %576 = vector.load %arg1[%c0_597, %c0_598, %c294] : memref<1x8x512xf32, #tpu.memory_space<vmem>>, vector<1x8x128xf32>
    %577 = vector.shape_cast %576 : vector<1x8x128xf32> to vector<8x128xf32>
    %c1528 = arith.constant 1528 : index
    %c0_599 = arith.constant 0 : index
    %578 = vector.load %arg13[%c1528, %c0_599] : memref<1608x128xf32, #tpu.memory_space<vmem>>, vector<8x128xf32>
    tpu.vector_store %arg13[%c1528, %c0_599], %577 {strides = array<i32>} : memref<1608x128xf32, #tpu.memory_space<vmem>>, vector<8x128xf32>,
    %c0_600 = arith.constant 0 : index
    %c0_601 = arith.constant 0 : index
    %c295 = arith.constant 295 : index
    %579 = vector.load %arg1[%c0_600, %c0_601, %c295] : memref<1x8x512xf32, #tpu.memory_space<vmem>>, vector<1x8x128xf32>
    %580 = vector.shape_cast %579 : vector<1x8x128xf32> to vector<8x128xf32>
    %c1536 = arith.constant 1536 : index
    %c0_602 = arith.constant 0 : index
    %581 = vector.load %arg13[%c1536, %c0_602] : memref<1608x128xf32, #tpu.memory_space<vmem>>, vector<8x128xf32>
    tpu.vector_store %arg13[%c1536, %c0_602], %580 {strides = array<i32>} : memref<1608x128xf32, #tpu.memory_space<vmem>>, vector<8x128xf32>,
    %c0_603 = arith.constant 0 : index
    %c0_604 = arith.constant 0 : index
    %c296_605 = arith.constant 296 : index
    %582 = vector.load %arg1[%c0_603, %c0_604, %c296_605] : memref<1x8x512xf32, #tpu.memory_space<vmem>>, vector<1x8x128xf32>
    %583 = vector.shape_cast %582 : vector<1x8x128xf32> to vector<8x128xf32>
    %c1544 = arith.constant 1544 : index
    %c0_606 = arith.constant 0 : index
    %584 = vector.load %arg13[%c1544, %c0_606] : memref<1608x128xf32, #tpu.memory_space<vmem>>, vector<8x128xf32>
    tpu.vector_store %arg13[%c1544, %c0_606], %583 {strides = array<i32>} : memref<1608x128xf32, #tpu.memory_space<vmem>>, vector<8x128xf32>,
    %c0_607 = arith.constant 0 : index
    %c0_608 = arith.constant 0 : index
    %c297 = arith.constant 297 : index
    %585 = vector.load %arg1[%c0_607, %c0_608, %c297] : memref<1x8x512xf32, #tpu.memory_space<vmem>>, vector<1x8x128xf32>
    %586 = vector.shape_cast %585 : vector<1x8x128xf32> to vector<8x128xf32>
    %c1552 = arith.constant 1552 : index
    %c0_609 = arith.constant 0 : index
    %587 = vector.load %arg13[%c1552, %c0_609] : memref<1608x128xf32, #tpu.memory_space<vmem>>, vector<8x128xf32>
    tpu.vector_store %arg13[%c1552, %c0_609], %586 {strides = array<i32>} : memref<1608x128xf32, #tpu.memory_space<vmem>>, vector<8x128xf32>,
    %c0_610 = arith.constant 0 : index
    %c0_611 = arith.constant 0 : index
    %c298 = arith.constant 298 : index
    %588 = vector.load %arg1[%c0_610, %c0_611, %c298] : memref<1x8x512xf32, #tpu.memory_space<vmem>>, vector<1x8x128xf32>
    %589 = vector.shape_cast %588 : vector<1x8x128xf32> to vector<8x128xf32>
    %c1560 = arith.constant 1560 : index
    %c0_612 = arith.constant 0 : index
    %590 = vector.load %arg13[%c1560, %c0_612] : memref<1608x128xf32, #tpu.memory_space<vmem>>, vector<8x128xf32>
    tpu.vector_store %arg13[%c1560, %c0_612], %589 {strides = array<i32>} : memref<1608x128xf32, #tpu.memory_space<vmem>>, vector<8x128xf32>,
    %c0_613 = arith.constant 0 : index
    %c0_614 = arith.constant 0 : index
    %c299 = arith.constant 299 : index
    %591 = vector.load %arg1[%c0_613, %c0_614, %c299] : memref<1x8x512xf32, #tpu.memory_space<vmem>>, vector<1x8x128xf32>
    %592 = vector.shape_cast %591 : vector<1x8x128xf32> to vector<8x128xf32>
    %c1568 = arith.constant 1568 : index
    %c0_615 = arith.constant 0 : index
    %593 = vector.load %arg13[%c1568, %c0_615] : memref<1608x128xf32, #tpu.memory_space<vmem>>, vector<8x128xf32>
    tpu.vector_store %arg13[%c1568, %c0_615], %592 {strides = array<i32>} : memref<1608x128xf32, #tpu.memory_space<vmem>>, vector<8x128xf32>,
    %c0_616 = arith.constant 0 : index
    %c0_617 = arith.constant 0 : index
    %c300 = arith.constant 300 : index
    %594 = vector.load %arg1[%c0_616, %c0_617, %c300] : memref<1x8x512xf32, #tpu.memory_space<vmem>>, vector<1x8x128xf32>
    %595 = vector.shape_cast %594 : vector<1x8x128xf32> to vector<8x128xf32>
    %c1576 = arith.constant 1576 : index
    %c0_618 = arith.constant 0 : index
    %596 = vector.load %arg13[%c1576, %c0_618] : memref<1608x128xf32, #tpu.memory_space<vmem>>, vector<8x128xf32>
    tpu.vector_store %arg13[%c1576, %c0_618], %595 {strides = array<i32>} : memref<1608x128xf32, #tpu.memory_space<vmem>>, vector<8x128xf32>,
    %c0_619 = arith.constant 0 : index
    %c0_620 = arith.constant 0 : index
    %c301 = arith.constant 301 : index
    %597 = vector.load %arg1[%c0_619, %c0_620, %c301] : memref<1x8x512xf32, #tpu.memory_space<vmem>>, vector<1x8x128xf32>
    %598 = vector.shape_cast %597 : vector<1x8x128xf32> to vector<8x128xf32>
    %c1584 = arith.constant 1584 : index
    %c0_621 = arith.constant 0 : index
    %599 = vector.load %arg13[%c1584, %c0_621] : memref<1608x128xf32, #tpu.memory_space<vmem>>, vector<8x128xf32>
    tpu.vector_store %arg13[%c1584, %c0_621], %598 {strides = array<i32>} : memref<1608x128xf32, #tpu.memory_space<vmem>>, vector<8x128xf32>,
    %c0_622 = arith.constant 0 : index
    %c0_623 = arith.constant 0 : index
    %c302 = arith.constant 302 : index
    %600 = vector.load %arg1[%c0_622, %c0_623, %c302] : memref<1x8x512xf32, #tpu.memory_space<vmem>>, vector<1x8x128xf32>
    %601 = vector.shape_cast %600 : vector<1x8x128xf32> to vector<8x128xf32>
    %c1592 = arith.constant 1592 : index
    %c0_624 = arith.constant 0 : index
    %602 = vector.load %arg13[%c1592, %c0_624] : memref<1608x128xf32, #tpu.memory_space<vmem>>, vector<8x128xf32>
    tpu.vector_store %arg13[%c1592, %c0_624], %601 {strides = array<i32>} : memref<1608x128xf32, #tpu.memory_space<vmem>>, vector<8x128xf32>,
    %c0_625 = arith.constant 0 : index
    %c0_626 = arith.constant 0 : index
    %c303 = arith.constant 303 : index
    %603 = vector.load %arg1[%c0_625, %c0_626, %c303] : memref<1x8x512xf32, #tpu.memory_space<vmem>>, vector<1x8x128xf32>
    %604 = vector.shape_cast %603 : vector<1x8x128xf32> to vector<8x128xf32>
    %c1600 = arith.constant 1600 : index
    %c0_627 = arith.constant 0 : index
    %605 = vector.load %arg13[%c1600, %c0_627] : memref<1608x128xf32, #tpu.memory_space<vmem>>, vector<8x128xf32>
    tpu.vector_store %arg13[%c1600, %c0_627], %604 {strides = array<i32>} : memref<1608x128xf32, #tpu.memory_space<vmem>>, vector<8x128xf32>,
    %c0_628 = arith.constant 0 : index
    %c0_629 = arith.constant 0 : index
    %606 = vector.load %arg2[%c0_628, %c0_629] : memref<8x1608xf32, #tpu.memory_space<vmem>>, vector<8x1608xf32>
    %c0_630 = arith.constant 0 : index
    %c0_631 = arith.constant 0 : index
    %607 = vector.load %arg13[%c0_630, %c0_631] : memref<1608x128xf32, #tpu.memory_space<vmem>>, vector<1608x128xf32>
    %cst = arith.constant dense<0.000000e+00> : vector<8x128xf32>
    %608 = tpu.matmul %606, %607, %cst {dimension_numbers = #tpu.dot_dimension_numbers<[1], [0], [0], [1], [0, 0, 1, 1], [], []>} : vector<8x1608xf32>, vector<1608x128xf32>, vector<8x128xf32> -> vector<8x128xf32>
    %c0_632 = arith.constant 0 : index
    %c0_633 = arith.constant 0 : index
    %609 = vector.load %arg3[%c0_632, %c0_633] : memref<8x1xf32, #tpu.memory_space<vmem>>, vector<8x1xf32>
    %610 = vector.broadcast %609 : vector<8x1xf32> to vector<8x128xf32>
    %611 = arith.addf %608, %610 : vector<8x128xf32>
    %cst_634 = arith.constant 0.000000e+00 : f32
    %612 = vector.broadcast %cst_634 : f32 to vector<8x128xf32>
    %613 = arith.maximumf %611, %612 : vector<8x128xf32>
    %cst_635 = arith.constant 0.000000e+00 : f32
    %614 = vector.broadcast %cst_635 : f32 to vector<8x128xf32>
    %615 = arith.select %2, %613, %614 : vector<8x128xi1>, vector<8x128xf32>
    %cst_636 = arith.constant 0.000000e+00 : f32
    %616 = vector.broadcast %cst_636 : f32 to vector<8x384xf32>
    %c0_637 = arith.constant 0 : index
    %c0_638 = arith.constant 0 : index
    %617 = vector.load %arg11[%c0_637, %c0_638] : memref<8x384xf32, #tpu.memory_space<vmem>>, vector<8x384xf32>
    tpu.vector_store %arg11[%c0_637, %c0_638], %616 {strides = array<i32>} : memref<8x384xf32, #tpu.memory_space<vmem>>, vector<8x384xf32>,
    %c0_639 = arith.constant 0 : index
    %c128_640 = arith.constant 128 : index
    %618 = vector.load %arg11[%c0_639, %c128_640] : memref<8x384xf32, #tpu.memory_space<vmem>>, vector<8x128xf32>
    tpu.vector_store %arg11[%c0_639, %c128_640], %615 {strides = array<i32>} : memref<8x384xf32, #tpu.memory_space<vmem>>, vector<8x128xf32>,
    %c0_641 = arith.constant 0 : index
    %c103_642 = arith.constant 103 : index
    %619 = vector.load %arg11[%c0_641, %c103_642] : memref<8x384xf32, #tpu.memory_space<vmem>>, vector<8x128xf32>
    %c0_643 = arith.constant 0 : index
    %c0_644 = arith.constant 0 : index
    %620 = vector.load %arg14[%c0_643, %c0_644] : memref<408x128xf32, #tpu.memory_space<vmem>>, vector<8x128xf32>
    tpu.vector_store %arg14[%c0_643, %c0_644], %619 {strides = array<i32>} : memref<408x128xf32, #tpu.memory_space<vmem>>, vector<8x128xf32>,
    %c0_645 = arith.constant 0 : index
    %c104_646 = arith.constant 104 : index
    %621 = vector.load %arg11[%c0_645, %c104_646] : memref<8x384xf32, #tpu.memory_space<vmem>>, vector<8x128xf32>
    %c8_647 = arith.constant 8 : index
    %c0_648 = arith.constant 0 : index
    %622 = vector.load %arg14[%c8_647, %c0_648] : memref<408x128xf32, #tpu.memory_space<vmem>>, vector<8x128xf32>
    tpu.vector_store %arg14[%c8_647, %c0_648], %621 {strides = array<i32>} : memref<408x128xf32, #tpu.memory_space<vmem>>, vector<8x128xf32>,
    %c0_649 = arith.constant 0 : index
    %c105_650 = arith.constant 105 : index
    %623 = vector.load %arg11[%c0_649, %c105_650] : memref<8x384xf32, #tpu.memory_space<vmem>>, vector<8x128xf32>
    %c16_651 = arith.constant 16 : index
    %c0_652 = arith.constant 0 : index
    %624 = vector.load %arg14[%c16_651, %c0_652] : memref<408x128xf32, #tpu.memory_space<vmem>>, vector<8x128xf32>
    tpu.vector_store %arg14[%c16_651, %c0_652], %623 {strides = array<i32>} : memref<408x128xf32, #tpu.memory_space<vmem>>, vector<8x128xf32>,
    %c0_653 = arith.constant 0 : index
    %c106_654 = arith.constant 106 : index
    %625 = vector.load %arg11[%c0_653, %c106_654] : memref<8x384xf32, #tpu.memory_space<vmem>>, vector<8x128xf32>
    %c24_655 = arith.constant 24 : index
    %c0_656 = arith.constant 0 : index
    %626 = vector.load %arg14[%c24_655, %c0_656] : memref<408x128xf32, #tpu.memory_space<vmem>>, vector<8x128xf32>
    tpu.vector_store %arg14[%c24_655, %c0_656], %625 {strides = array<i32>} : memref<408x128xf32, #tpu.memory_space<vmem>>, vector<8x128xf32>,
    %c0_657 = arith.constant 0 : index
    %c107_658 = arith.constant 107 : index
    %627 = vector.load %arg11[%c0_657, %c107_658] : memref<8x384xf32, #tpu.memory_space<vmem>>, vector<8x128xf32>
    %c32_659 = arith.constant 32 : index
    %c0_660 = arith.constant 0 : index
    %628 = vector.load %arg14[%c32_659, %c0_660] : memref<408x128xf32, #tpu.memory_space<vmem>>, vector<8x128xf32>
    tpu.vector_store %arg14[%c32_659, %c0_660], %627 {strides = array<i32>} : memref<408x128xf32, #tpu.memory_space<vmem>>, vector<8x128xf32>,
    %c0_661 = arith.constant 0 : index
    %c108_662 = arith.constant 108 : index
    %629 = vector.load %arg11[%c0_661, %c108_662] : memref<8x384xf32, #tpu.memory_space<vmem>>, vector<8x128xf32>
    %c40_663 = arith.constant 40 : index
    %c0_664 = arith.constant 0 : index
    %630 = vector.load %arg14[%c40_663, %c0_664] : memref<408x128xf32, #tpu.memory_space<vmem>>, vector<8x128xf32>
    tpu.vector_store %arg14[%c40_663, %c0_664], %629 {strides = array<i32>} : memref<408x128xf32, #tpu.memory_space<vmem>>, vector<8x128xf32>,
    %c0_665 = arith.constant 0 : index
    %c109_666 = arith.constant 109 : index
    %631 = vector.load %arg11[%c0_665, %c109_666] : memref<8x384xf32, #tpu.memory_space<vmem>>, vector<8x128xf32>
    %c48_667 = arith.constant 48 : index
    %c0_668 = arith.constant 0 : index
    %632 = vector.load %arg14[%c48_667, %c0_668] : memref<408x128xf32, #tpu.memory_space<vmem>>, vector<8x128xf32>
    tpu.vector_store %arg14[%c48_667, %c0_668], %631 {strides = array<i32>} : memref<408x128xf32, #tpu.memory_space<vmem>>, vector<8x128xf32>,
    %c0_669 = arith.constant 0 : index
    %c110_670 = arith.constant 110 : index
    %633 = vector.load %arg11[%c0_669, %c110_670] : memref<8x384xf32, #tpu.memory_space<vmem>>, vector<8x128xf32>
    %c56_671 = arith.constant 56 : index
    %c0_672 = arith.constant 0 : index
    %634 = vector.load %arg14[%c56_671, %c0_672] : memref<408x128xf32, #tpu.memory_space<vmem>>, vector<8x128xf32>
    tpu.vector_store %arg14[%c56_671, %c0_672], %633 {strides = array<i32>} : memref<408x128xf32, #tpu.memory_space<vmem>>, vector<8x128xf32>,
    %c0_673 = arith.constant 0 : index
    %c111_674 = arith.constant 111 : index
    %635 = vector.load %arg11[%c0_673, %c111_674] : memref<8x384xf32, #tpu.memory_space<vmem>>, vector<8x128xf32>
    %c64_675 = arith.constant 64 : index
    %c0_676 = arith.constant 0 : index
    %636 = vector.load %arg14[%c64_675, %c0_676] : memref<408x128xf32, #tpu.memory_space<vmem>>, vector<8x128xf32>
    tpu.vector_store %arg14[%c64_675, %c0_676], %635 {strides = array<i32>} : memref<408x128xf32, #tpu.memory_space<vmem>>, vector<8x128xf32>,
    %c0_677 = arith.constant 0 : index
    %c112_678 = arith.constant 112 : index
    %637 = vector.load %arg11[%c0_677, %c112_678] : memref<8x384xf32, #tpu.memory_space<vmem>>, vector<8x128xf32>
    %c72_679 = arith.constant 72 : index
    %c0_680 = arith.constant 0 : index
    %638 = vector.load %arg14[%c72_679, %c0_680] : memref<408x128xf32, #tpu.memory_space<vmem>>, vector<8x128xf32>
    tpu.vector_store %arg14[%c72_679, %c0_680], %637 {strides = array<i32>} : memref<408x128xf32, #tpu.memory_space<vmem>>, vector<8x128xf32>,
    %c0_681 = arith.constant 0 : index
    %c113_682 = arith.constant 113 : index
    %639 = vector.load %arg11[%c0_681, %c113_682] : memref<8x384xf32, #tpu.memory_space<vmem>>, vector<8x128xf32>
    %c80_683 = arith.constant 80 : index
    %c0_684 = arith.constant 0 : index
    %640 = vector.load %arg14[%c80_683, %c0_684] : memref<408x128xf32, #tpu.memory_space<vmem>>, vector<8x128xf32>
    tpu.vector_store %arg14[%c80_683, %c0_684], %639 {strides = array<i32>} : memref<408x128xf32, #tpu.memory_space<vmem>>, vector<8x128xf32>,
    %c0_685 = arith.constant 0 : index
    %c114_686 = arith.constant 114 : index
    %641 = vector.load %arg11[%c0_685, %c114_686] : memref<8x384xf32, #tpu.memory_space<vmem>>, vector<8x128xf32>
    %c88_687 = arith.constant 88 : index
    %c0_688 = arith.constant 0 : index
    %642 = vector.load %arg14[%c88_687, %c0_688] : memref<408x128xf32, #tpu.memory_space<vmem>>, vector<8x128xf32>
    tpu.vector_store %arg14[%c88_687, %c0_688], %641 {strides = array<i32>} : memref<408x128xf32, #tpu.memory_space<vmem>>, vector<8x128xf32>,
    %c0_689 = arith.constant 0 : index
    %c115_690 = arith.constant 115 : index
    %643 = vector.load %arg11[%c0_689, %c115_690] : memref<8x384xf32, #tpu.memory_space<vmem>>, vector<8x128xf32>
    %c96_691 = arith.constant 96 : index
    %c0_692 = arith.constant 0 : index
    %644 = vector.load %arg14[%c96_691, %c0_692] : memref<408x128xf32, #tpu.memory_space<vmem>>, vector<8x128xf32>
    tpu.vector_store %arg14[%c96_691, %c0_692], %643 {strides = array<i32>} : memref<408x128xf32, #tpu.memory_space<vmem>>, vector<8x128xf32>,
    %c0_693 = arith.constant 0 : index
    %c116_694 = arith.constant 116 : index
    %645 = vector.load %arg11[%c0_693, %c116_694] : memref<8x384xf32, #tpu.memory_space<vmem>>, vector<8x128xf32>
    %c104_695 = arith.constant 104 : index
    %c0_696 = arith.constant 0 : index
    %646 = vector.load %arg14[%c104_695, %c0_696] : memref<408x128xf32, #tpu.memory_space<vmem>>, vector<8x128xf32>
    tpu.vector_store %arg14[%c104_695, %c0_696], %645 {strides = array<i32>} : memref<408x128xf32, #tpu.memory_space<vmem>>, vector<8x128xf32>,
    %c0_697 = arith.constant 0 : index
    %c117_698 = arith.constant 117 : index
    %647 = vector.load %arg11[%c0_697, %c117_698] : memref<8x384xf32, #tpu.memory_space<vmem>>, vector<8x128xf32>
    %c112_699 = arith.constant 112 : index
    %c0_700 = arith.constant 0 : index
    %648 = vector.load %arg14[%c112_699, %c0_700] : memref<408x128xf32, #tpu.memory_space<vmem>>, vector<8x128xf32>
    tpu.vector_store %arg14[%c112_699, %c0_700], %647 {strides = array<i32>} : memref<408x128xf32, #tpu.memory_space<vmem>>, vector<8x128xf32>,
    %c0_701 = arith.constant 0 : index
    %c118_702 = arith.constant 118 : index
    %649 = vector.load %arg11[%c0_701, %c118_702] : memref<8x384xf32, #tpu.memory_space<vmem>>, vector<8x128xf32>
    %c120_703 = arith.constant 120 : index
    %c0_704 = arith.constant 0 : index
    %650 = vector.load %arg14[%c120_703, %c0_704] : memref<408x128xf32, #tpu.memory_space<vmem>>, vector<8x128xf32>
    tpu.vector_store %arg14[%c120_703, %c0_704], %649 {strides = array<i32>} : memref<408x128xf32, #tpu.memory_space<vmem>>, vector<8x128xf32>,
    %c0_705 = arith.constant 0 : index
    %c119_706 = arith.constant 119 : index
    %651 = vector.load %arg11[%c0_705, %c119_706] : memref<8x384xf32, #tpu.memory_space<vmem>>, vector<8x128xf32>
    %c128_707 = arith.constant 128 : index
    %c0_708 = arith.constant 0 : index
    %652 = vector.load %arg14[%c128_707, %c0_708] : memref<408x128xf32, #tpu.memory_space<vmem>>, vector<8x128xf32>
    tpu.vector_store %arg14[%c128_707, %c0_708], %651 {strides = array<i32>} : memref<408x128xf32, #tpu.memory_space<vmem>>, vector<8x128xf32>,
    %c0_709 = arith.constant 0 : index
    %c120_710 = arith.constant 120 : index
    %653 = vector.load %arg11[%c0_709, %c120_710] : memref<8x384xf32, #tpu.memory_space<vmem>>, vector<8x128xf32>
    %c136_711 = arith.constant 136 : index
    %c0_712 = arith.constant 0 : index
    %654 = vector.load %arg14[%c136_711, %c0_712] : memref<408x128xf32, #tpu.memory_space<vmem>>, vector<8x128xf32>
    tpu.vector_store %arg14[%c136_711, %c0_712], %653 {strides = array<i32>} : memref<408x128xf32, #tpu.memory_space<vmem>>, vector<8x128xf32>,
    %c0_713 = arith.constant 0 : index
    %c121_714 = arith.constant 121 : index
    %655 = vector.load %arg11[%c0_713, %c121_714] : memref<8x384xf32, #tpu.memory_space<vmem>>, vector<8x128xf32>
    %c144_715 = arith.constant 144 : index
    %c0_716 = arith.constant 0 : index
    %656 = vector.load %arg14[%c144_715, %c0_716] : memref<408x128xf32, #tpu.memory_space<vmem>>, vector<8x128xf32>
    tpu.vector_store %arg14[%c144_715, %c0_716], %655 {strides = array<i32>} : memref<408x128xf32, #tpu.memory_space<vmem>>, vector<8x128xf32>,
    %c0_717 = arith.constant 0 : index
    %c122_718 = arith.constant 122 : index
    %657 = vector.load %arg11[%c0_717, %c122_718] : memref<8x384xf32, #tpu.memory_space<vmem>>, vector<8x128xf32>
    %c152_719 = arith.constant 152 : index
    %c0_720 = arith.constant 0 : index
    %658 = vector.load %arg14[%c152_719, %c0_720] : memref<408x128xf32, #tpu.memory_space<vmem>>, vector<8x128xf32>
    tpu.vector_store %arg14[%c152_719, %c0_720], %657 {strides = array<i32>} : memref<408x128xf32, #tpu.memory_space<vmem>>, vector<8x128xf32>,
    %c0_721 = arith.constant 0 : index
    %c123_722 = arith.constant 123 : index
    %659 = vector.load %arg11[%c0_721, %c123_722] : memref<8x384xf32, #tpu.memory_space<vmem>>, vector<8x128xf32>
    %c160_723 = arith.constant 160 : index
    %c0_724 = arith.constant 0 : index
    %660 = vector.load %arg14[%c160_723, %c0_724] : memref<408x128xf32, #tpu.memory_space<vmem>>, vector<8x128xf32>
    tpu.vector_store %arg14[%c160_723, %c0_724], %659 {strides = array<i32>} : memref<408x128xf32, #tpu.memory_space<vmem>>, vector<8x128xf32>,
    %c0_725 = arith.constant 0 : index
    %c124_726 = arith.constant 124 : index
    %661 = vector.load %arg11[%c0_725, %c124_726] : memref<8x384xf32, #tpu.memory_space<vmem>>, vector<8x128xf32>
    %c168_727 = arith.constant 168 : index
    %c0_728 = arith.constant 0 : index
    %662 = vector.load %arg14[%c168_727, %c0_728] : memref<408x128xf32, #tpu.memory_space<vmem>>, vector<8x128xf32>
    tpu.vector_store %arg14[%c168_727, %c0_728], %661 {strides = array<i32>} : memref<408x128xf32, #tpu.memory_space<vmem>>, vector<8x128xf32>,
    %c0_729 = arith.constant 0 : index
    %c125_730 = arith.constant 125 : index
    %663 = vector.load %arg11[%c0_729, %c125_730] : memref<8x384xf32, #tpu.memory_space<vmem>>, vector<8x128xf32>
    %c176_731 = arith.constant 176 : index
    %c0_732 = arith.constant 0 : index
    %664 = vector.load %arg14[%c176_731, %c0_732] : memref<408x128xf32, #tpu.memory_space<vmem>>, vector<8x128xf32>
    tpu.vector_store %arg14[%c176_731, %c0_732], %663 {strides = array<i32>} : memref<408x128xf32, #tpu.memory_space<vmem>>, vector<8x128xf32>,
    %c0_733 = arith.constant 0 : index
    %c126_734 = arith.constant 126 : index
    %665 = vector.load %arg11[%c0_733, %c126_734] : memref<8x384xf32, #tpu.memory_space<vmem>>, vector<8x128xf32>
    %c184_735 = arith.constant 184 : index
    %c0_736 = arith.constant 0 : index
    %666 = vector.load %arg14[%c184_735, %c0_736] : memref<408x128xf32, #tpu.memory_space<vmem>>, vector<8x128xf32>
    tpu.vector_store %arg14[%c184_735, %c0_736], %665 {strides = array<i32>} : memref<408x128xf32, #tpu.memory_space<vmem>>, vector<8x128xf32>,
    %c0_737 = arith.constant 0 : index
    %c127_738 = arith.constant 127 : index
    %667 = vector.load %arg11[%c0_737, %c127_738] : memref<8x384xf32, #tpu.memory_space<vmem>>, vector<8x128xf32>
    %c192_739 = arith.constant 192 : index
    %c0_740 = arith.constant 0 : index
    %668 = vector.load %arg14[%c192_739, %c0_740] : memref<408x128xf32, #tpu.memory_space<vmem>>, vector<8x128xf32>
    tpu.vector_store %arg14[%c192_739, %c0_740], %667 {strides = array<i32>} : memref<408x128xf32, #tpu.memory_space<vmem>>, vector<8x128xf32>,
    %c0_741 = arith.constant 0 : index
    %c128_742 = arith.constant 128 : index
    %669 = vector.load %arg11[%c0_741, %c128_742] : memref<8x384xf32, #tpu.memory_space<vmem>>, vector<8x128xf32>
    %c200_743 = arith.constant 200 : index
    %c0_744 = arith.constant 0 : index
    %670 = vector.load %arg14[%c200_743, %c0_744] : memref<408x128xf32, #tpu.memory_space<vmem>>, vector<8x128xf32>
    tpu.vector_store %arg14[%c200_743, %c0_744], %669 {strides = array<i32>} : memref<408x128xf32, #tpu.memory_space<vmem>>, vector<8x128xf32>,
    %c0_745 = arith.constant 0 : index
    %c129_746 = arith.constant 129 : index
    %671 = vector.load %arg11[%c0_745, %c129_746] : memref<8x384xf32, #tpu.memory_space<vmem>>, vector<8x128xf32>
    %c208_747 = arith.constant 208 : index
    %c0_748 = arith.constant 0 : index
    %672 = vector.load %arg14[%c208_747, %c0_748] : memref<408x128xf32, #tpu.memory_space<vmem>>, vector<8x128xf32>
    tpu.vector_store %arg14[%c208_747, %c0_748], %671 {strides = array<i32>} : memref<408x128xf32, #tpu.memory_space<vmem>>, vector<8x128xf32>,
    %c0_749 = arith.constant 0 : index
    %c130_750 = arith.constant 130 : index
    %673 = vector.load %arg11[%c0_749, %c130_750] : memref<8x384xf32, #tpu.memory_space<vmem>>, vector<8x128xf32>
    %c216_751 = arith.constant 216 : index
    %c0_752 = arith.constant 0 : index
    %674 = vector.load %arg14[%c216_751, %c0_752] : memref<408x128xf32, #tpu.memory_space<vmem>>, vector<8x128xf32>
    tpu.vector_store %arg14[%c216_751, %c0_752], %673 {strides = array<i32>} : memref<408x128xf32, #tpu.memory_space<vmem>>, vector<8x128xf32>,
    %c0_753 = arith.constant 0 : index
    %c131_754 = arith.constant 131 : index
    %675 = vector.load %arg11[%c0_753, %c131_754] : memref<8x384xf32, #tpu.memory_space<vmem>>, vector<8x128xf32>
    %c224_755 = arith.constant 224 : index
    %c0_756 = arith.constant 0 : index
    %676 = vector.load %arg14[%c224_755, %c0_756] : memref<408x128xf32, #tpu.memory_space<vmem>>, vector<8x128xf32>
    tpu.vector_store %arg14[%c224_755, %c0_756], %675 {strides = array<i32>} : memref<408x128xf32, #tpu.memory_space<vmem>>, vector<8x128xf32>,
    %c0_757 = arith.constant 0 : index
    %c132_758 = arith.constant 132 : index
    %677 = vector.load %arg11[%c0_757, %c132_758] : memref<8x384xf32, #tpu.memory_space<vmem>>, vector<8x128xf32>
    %c232_759 = arith.constant 232 : index
    %c0_760 = arith.constant 0 : index
    %678 = vector.load %arg14[%c232_759, %c0_760] : memref<408x128xf32, #tpu.memory_space<vmem>>, vector<8x128xf32>
    tpu.vector_store %arg14[%c232_759, %c0_760], %677 {strides = array<i32>} : memref<408x128xf32, #tpu.memory_space<vmem>>, vector<8x128xf32>,
    %c0_761 = arith.constant 0 : index
    %c133_762 = arith.constant 133 : index
    %679 = vector.load %arg11[%c0_761, %c133_762] : memref<8x384xf32, #tpu.memory_space<vmem>>, vector<8x128xf32>
    %c240_763 = arith.constant 240 : index
    %c0_764 = arith.constant 0 : index
    %680 = vector.load %arg14[%c240_763, %c0_764] : memref<408x128xf32, #tpu.memory_space<vmem>>, vector<8x128xf32>
    tpu.vector_store %arg14[%c240_763, %c0_764], %679 {strides = array<i32>} : memref<408x128xf32, #tpu.memory_space<vmem>>, vector<8x128xf32>,
    %c0_765 = arith.constant 0 : index
    %c134_766 = arith.constant 134 : index
    %681 = vector.load %arg11[%c0_765, %c134_766] : memref<8x384xf32, #tpu.memory_space<vmem>>, vector<8x128xf32>
    %c248_767 = arith.constant 248 : index
    %c0_768 = arith.constant 0 : index
    %682 = vector.load %arg14[%c248_767, %c0_768] : memref<408x128xf32, #tpu.memory_space<vmem>>, vector<8x128xf32>
    tpu.vector_store %arg14[%c248_767, %c0_768], %681 {strides = array<i32>} : memref<408x128xf32, #tpu.memory_space<vmem>>, vector<8x128xf32>,
    %c0_769 = arith.constant 0 : index
    %c135_770 = arith.constant 135 : index
    %683 = vector.load %arg11[%c0_769, %c135_770] : memref<8x384xf32, #tpu.memory_space<vmem>>, vector<8x128xf32>
    %c256_771 = arith.constant 256 : index
    %c0_772 = arith.constant 0 : index
    %684 = vector.load %arg14[%c256_771, %c0_772] : memref<408x128xf32, #tpu.memory_space<vmem>>, vector<8x128xf32>
    tpu.vector_store %arg14[%c256_771, %c0_772], %683 {strides = array<i32>} : memref<408x128xf32, #tpu.memory_space<vmem>>, vector<8x128xf32>,
    %c0_773 = arith.constant 0 : index
    %c136_774 = arith.constant 136 : index
    %685 = vector.load %arg11[%c0_773, %c136_774] : memref<8x384xf32, #tpu.memory_space<vmem>>, vector<8x128xf32>
    %c264_775 = arith.constant 264 : index
    %c0_776 = arith.constant 0 : index
    %686 = vector.load %arg14[%c264_775, %c0_776] : memref<408x128xf32, #tpu.memory_space<vmem>>, vector<8x128xf32>
    tpu.vector_store %arg14[%c264_775, %c0_776], %685 {strides = array<i32>} : memref<408x128xf32, #tpu.memory_space<vmem>>, vector<8x128xf32>,
    %c0_777 = arith.constant 0 : index
    %c137_778 = arith.constant 137 : index
    %687 = vector.load %arg11[%c0_777, %c137_778] : memref<8x384xf32, #tpu.memory_space<vmem>>, vector<8x128xf32>
    %c272_779 = arith.constant 272 : index
    %c0_780 = arith.constant 0 : index
    %688 = vector.load %arg14[%c272_779, %c0_780] : memref<408x128xf32, #tpu.memory_space<vmem>>, vector<8x128xf32>
    tpu.vector_store %arg14[%c272_779, %c0_780], %687 {strides = array<i32>} : memref<408x128xf32, #tpu.memory_space<vmem>>, vector<8x128xf32>,
    %c0_781 = arith.constant 0 : index
    %c138_782 = arith.constant 138 : index
    %689 = vector.load %arg11[%c0_781, %c138_782] : memref<8x384xf32, #tpu.memory_space<vmem>>, vector<8x128xf32>
    %c280_783 = arith.constant 280 : index
    %c0_784 = arith.constant 0 : index
    %690 = vector.load %arg14[%c280_783, %c0_784] : memref<408x128xf32, #tpu.memory_space<vmem>>, vector<8x128xf32>
    tpu.vector_store %arg14[%c280_783, %c0_784], %689 {strides = array<i32>} : memref<408x128xf32, #tpu.memory_space<vmem>>, vector<8x128xf32>,
    %c0_785 = arith.constant 0 : index
    %c139_786 = arith.constant 139 : index
    %691 = vector.load %arg11[%c0_785, %c139_786] : memref<8x384xf32, #tpu.memory_space<vmem>>, vector<8x128xf32>
    %c288_787 = arith.constant 288 : index
    %c0_788 = arith.constant 0 : index
    %692 = vector.load %arg14[%c288_787, %c0_788] : memref<408x128xf32, #tpu.memory_space<vmem>>, vector<8x128xf32>
    tpu.vector_store %arg14[%c288_787, %c0_788], %691 {strides = array<i32>} : memref<408x128xf32, #tpu.memory_space<vmem>>, vector<8x128xf32>,
    %c0_789 = arith.constant 0 : index
    %c140_790 = arith.constant 140 : index
    %693 = vector.load %arg11[%c0_789, %c140_790] : memref<8x384xf32, #tpu.memory_space<vmem>>, vector<8x128xf32>
    %c296_791 = arith.constant 296 : index
    %c0_792 = arith.constant 0 : index
    %694 = vector.load %arg14[%c296_791, %c0_792] : memref<408x128xf32, #tpu.memory_space<vmem>>, vector<8x128xf32>
    tpu.vector_store %arg14[%c296_791, %c0_792], %693 {strides = array<i32>} : memref<408x128xf32, #tpu.memory_space<vmem>>, vector<8x128xf32>,
    %c0_793 = arith.constant 0 : index
    %c141_794 = arith.constant 141 : index
    %695 = vector.load %arg11[%c0_793, %c141_794] : memref<8x384xf32, #tpu.memory_space<vmem>>, vector<8x128xf32>
    %c304_795 = arith.constant 304 : index
    %c0_796 = arith.constant 0 : index
    %696 = vector.load %arg14[%c304_795, %c0_796] : memref<408x128xf32, #tpu.memory_space<vmem>>, vector<8x128xf32>
    tpu.vector_store %arg14[%c304_795, %c0_796], %695 {strides = array<i32>} : memref<408x128xf32, #tpu.memory_space<vmem>>, vector<8x128xf32>,
    %c0_797 = arith.constant 0 : index
    %c142_798 = arith.constant 142 : index
    %697 = vector.load %arg11[%c0_797, %c142_798] : memref<8x384xf32, #tpu.memory_space<vmem>>, vector<8x128xf32>
    %c312_799 = arith.constant 312 : index
    %c0_800 = arith.constant 0 : index
    %698 = vector.load %arg14[%c312_799, %c0_800] : memref<408x128xf32, #tpu.memory_space<vmem>>, vector<8x128xf32>
    tpu.vector_store %arg14[%c312_799, %c0_800], %697 {strides = array<i32>} : memref<408x128xf32, #tpu.memory_space<vmem>>, vector<8x128xf32>,
    %c0_801 = arith.constant 0 : index
    %c143_802 = arith.constant 143 : index
    %699 = vector.load %arg11[%c0_801, %c143_802] : memref<8x384xf32, #tpu.memory_space<vmem>>, vector<8x128xf32>
    %c320_803 = arith.constant 320 : index
    %c0_804 = arith.constant 0 : index
    %700 = vector.load %arg14[%c320_803, %c0_804] : memref<408x128xf32, #tpu.memory_space<vmem>>, vector<8x128xf32>
    tpu.vector_store %arg14[%c320_803, %c0_804], %699 {strides = array<i32>} : memref<408x128xf32, #tpu.memory_space<vmem>>, vector<8x128xf32>,
    %c0_805 = arith.constant 0 : index
    %c144_806 = arith.constant 144 : index
    %701 = vector.load %arg11[%c0_805, %c144_806] : memref<8x384xf32, #tpu.memory_space<vmem>>, vector<8x128xf32>
    %c328_807 = arith.constant 328 : index
    %c0_808 = arith.constant 0 : index
    %702 = vector.load %arg14[%c328_807, %c0_808] : memref<408x128xf32, #tpu.memory_space<vmem>>, vector<8x128xf32>
    tpu.vector_store %arg14[%c328_807, %c0_808], %701 {strides = array<i32>} : memref<408x128xf32, #tpu.memory_space<vmem>>, vector<8x128xf32>,
    %c0_809 = arith.constant 0 : index
    %c145_810 = arith.constant 145 : index
    %703 = vector.load %arg11[%c0_809, %c145_810] : memref<8x384xf32, #tpu.memory_space<vmem>>, vector<8x128xf32>
    %c336_811 = arith.constant 336 : index
    %c0_812 = arith.constant 0 : index
    %704 = vector.load %arg14[%c336_811, %c0_812] : memref<408x128xf32, #tpu.memory_space<vmem>>, vector<8x128xf32>
    tpu.vector_store %arg14[%c336_811, %c0_812], %703 {strides = array<i32>} : memref<408x128xf32, #tpu.memory_space<vmem>>, vector<8x128xf32>,
    %c0_813 = arith.constant 0 : index
    %c146_814 = arith.constant 146 : index
    %705 = vector.load %arg11[%c0_813, %c146_814] : memref<8x384xf32, #tpu.memory_space<vmem>>, vector<8x128xf32>
    %c344_815 = arith.constant 344 : index
    %c0_816 = arith.constant 0 : index
    %706 = vector.load %arg14[%c344_815, %c0_816] : memref<408x128xf32, #tpu.memory_space<vmem>>, vector<8x128xf32>
    tpu.vector_store %arg14[%c344_815, %c0_816], %705 {strides = array<i32>} : memref<408x128xf32, #tpu.memory_space<vmem>>, vector<8x128xf32>,
    %c0_817 = arith.constant 0 : index
    %c147_818 = arith.constant 147 : index
    %707 = vector.load %arg11[%c0_817, %c147_818] : memref<8x384xf32, #tpu.memory_space<vmem>>, vector<8x128xf32>
    %c352_819 = arith.constant 352 : index
    %c0_820 = arith.constant 0 : index
    %708 = vector.load %arg14[%c352_819, %c0_820] : memref<408x128xf32, #tpu.memory_space<vmem>>, vector<8x128xf32>
    tpu.vector_store %arg14[%c352_819, %c0_820], %707 {strides = array<i32>} : memref<408x128xf32, #tpu.memory_space<vmem>>, vector<8x128xf32>,
    %c0_821 = arith.constant 0 : index
    %c148_822 = arith.constant 148 : index
    %709 = vector.load %arg11[%c0_821, %c148_822] : memref<8x384xf32, #tpu.memory_space<vmem>>, vector<8x128xf32>
    %c360_823 = arith.constant 360 : index
    %c0_824 = arith.constant 0 : index
    %710 = vector.load %arg14[%c360_823, %c0_824] : memref<408x128xf32, #tpu.memory_space<vmem>>, vector<8x128xf32>
    tpu.vector_store %arg14[%c360_823, %c0_824], %709 {strides = array<i32>} : memref<408x128xf32, #tpu.memory_space<vmem>>, vector<8x128xf32>,
    %c0_825 = arith.constant 0 : index
    %c149_826 = arith.constant 149 : index
    %711 = vector.load %arg11[%c0_825, %c149_826] : memref<8x384xf32, #tpu.memory_space<vmem>>, vector<8x128xf32>
    %c368_827 = arith.constant 368 : index
    %c0_828 = arith.constant 0 : index
    %712 = vector.load %arg14[%c368_827, %c0_828] : memref<408x128xf32, #tpu.memory_space<vmem>>, vector<8x128xf32>
    tpu.vector_store %arg14[%c368_827, %c0_828], %711 {strides = array<i32>} : memref<408x128xf32, #tpu.memory_space<vmem>>, vector<8x128xf32>,
    %c0_829 = arith.constant 0 : index
    %c150_830 = arith.constant 150 : index
    %713 = vector.load %arg11[%c0_829, %c150_830] : memref<8x384xf32, #tpu.memory_space<vmem>>, vector<8x128xf32>
    %c376_831 = arith.constant 376 : index
    %c0_832 = arith.constant 0 : index
    %714 = vector.load %arg14[%c376_831, %c0_832] : memref<408x128xf32, #tpu.memory_space<vmem>>, vector<8x128xf32>
    tpu.vector_store %arg14[%c376_831, %c0_832], %713 {strides = array<i32>} : memref<408x128xf32, #tpu.memory_space<vmem>>, vector<8x128xf32>,
    %c0_833 = arith.constant 0 : index
    %c151_834 = arith.constant 151 : index
    %715 = vector.load %arg11[%c0_833, %c151_834] : memref<8x384xf32, #tpu.memory_space<vmem>>, vector<8x128xf32>
    %c384_835 = arith.constant 384 : index
    %c0_836 = arith.constant 0 : index
    %716 = vector.load %arg14[%c384_835, %c0_836] : memref<408x128xf32, #tpu.memory_space<vmem>>, vector<8x128xf32>
    tpu.vector_store %arg14[%c384_835, %c0_836], %715 {strides = array<i32>} : memref<408x128xf32, #tpu.memory_space<vmem>>, vector<8x128xf32>,
    %c0_837 = arith.constant 0 : index
    %c152_838 = arith.constant 152 : index
    %717 = vector.load %arg11[%c0_837, %c152_838] : memref<8x384xf32, #tpu.memory_space<vmem>>, vector<8x128xf32>
    %c392_839 = arith.constant 392 : index
    %c0_840 = arith.constant 0 : index
    %718 = vector.load %arg14[%c392_839, %c0_840] : memref<408x128xf32, #tpu.memory_space<vmem>>, vector<8x128xf32>
    tpu.vector_store %arg14[%c392_839, %c0_840], %717 {strides = array<i32>} : memref<408x128xf32, #tpu.memory_space<vmem>>, vector<8x128xf32>,
    %c0_841 = arith.constant 0 : index
    %c153_842 = arith.constant 153 : index
    %719 = vector.load %arg11[%c0_841, %c153_842] : memref<8x384xf32, #tpu.memory_space<vmem>>, vector<8x128xf32>
    %c400_843 = arith.constant 400 : index
    %c0_844 = arith.constant 0 : index
    %720 = vector.load %arg14[%c400_843, %c0_844] : memref<408x128xf32, #tpu.memory_space<vmem>>, vector<8x128xf32>
    tpu.vector_store %arg14[%c400_843, %c0_844], %719 {strides = array<i32>} : memref<408x128xf32, #tpu.memory_space<vmem>>, vector<8x128xf32>,
    %c0_845 = arith.constant 0 : index
    %c0_846 = arith.constant 0 : index
    %721 = vector.load %arg4[%c0_845, %c0_846] : memref<8x408xf32, #tpu.memory_space<vmem>>, vector<8x408xf32>
    %c0_847 = arith.constant 0 : index
    %c0_848 = arith.constant 0 : index
    %722 = vector.load %arg14[%c0_847, %c0_848] : memref<408x128xf32, #tpu.memory_space<vmem>>, vector<408x128xf32>
    %cst_849 = arith.constant dense<0.000000e+00> : vector<8x128xf32>
    %723 = tpu.matmul %721, %722, %cst_849 {dimension_numbers = #tpu.dot_dimension_numbers<[1], [0], [0], [1], [0, 0, 1, 1], [], []>} : vector<8x408xf32>, vector<408x128xf32>, vector<8x128xf32> -> vector<8x128xf32>
    %c0_850 = arith.constant 0 : index
    %c0_851 = arith.constant 0 : index
    %724 = vector.load %arg5[%c0_850, %c0_851] : memref<8x1xf32, #tpu.memory_space<vmem>>, vector<8x1xf32>
    %725 = vector.broadcast %724 : vector<8x1xf32> to vector<8x128xf32>
    %726 = arith.addf %723, %725 : vector<8x128xf32>
    %cst_852 = arith.constant 0.000000e+00 : f32
    %727 = vector.broadcast %cst_852 : f32 to vector<8x128xf32>
    %728 = arith.maximumf %726, %727 : vector<8x128xf32>
    %cst_853 = arith.constant 0.000000e+00 : f32
    %729 = vector.broadcast %cst_853 : f32 to vector<8x128xf32>
    %730 = arith.select %2, %728, %729 : vector<8x128xi1>, vector<8x128xf32>
    %cst_854 = arith.constant 0.000000e+00 : f32
    %731 = vector.broadcast %cst_854 : f32 to vector<8x384xf32>
    %c0_855 = arith.constant 0 : index
    %c0_856 = arith.constant 0 : index
    %732 = vector.load %arg12[%c0_855, %c0_856] : memref<8x384xf32, #tpu.memory_space<vmem>>, vector<8x384xf32>
    tpu.vector_store %arg12[%c0_855, %c0_856], %731 {strides = array<i32>} : memref<8x384xf32, #tpu.memory_space<vmem>>, vector<8x384xf32>,
    %c0_857 = arith.constant 0 : index
    %c128_858 = arith.constant 128 : index
    %733 = vector.load %arg12[%c0_857, %c128_858] : memref<8x384xf32, #tpu.memory_space<vmem>>, vector<8x128xf32>
    tpu.vector_store %arg12[%c0_857, %c128_858], %730 {strides = array<i32>} : memref<8x384xf32, #tpu.memory_space<vmem>>, vector<8x128xf32>,
    %c0_859 = arith.constant 0 : index
    %c103_860 = arith.constant 103 : index
    %734 = vector.load %arg12[%c0_859, %c103_860] : memref<8x384xf32, #tpu.memory_space<vmem>>, vector<8x128xf32>
    %c0_861 = arith.constant 0 : index
    %c0_862 = arith.constant 0 : index
    %735 = vector.load %arg14[%c0_861, %c0_862] : memref<408x128xf32, #tpu.memory_space<vmem>>, vector<8x128xf32>
    tpu.vector_store %arg14[%c0_861, %c0_862], %734 {strides = array<i32>} : memref<408x128xf32, #tpu.memory_space<vmem>>, vector<8x128xf32>,
    %c0_863 = arith.constant 0 : index
    %c104_864 = arith.constant 104 : index
    %736 = vector.load %arg12[%c0_863, %c104_864] : memref<8x384xf32, #tpu.memory_space<vmem>>, vector<8x128xf32>
    %c8_865 = arith.constant 8 : index
    %c0_866 = arith.constant 0 : index
    %737 = vector.load %arg14[%c8_865, %c0_866] : memref<408x128xf32, #tpu.memory_space<vmem>>, vector<8x128xf32>
    tpu.vector_store %arg14[%c8_865, %c0_866], %736 {strides = array<i32>} : memref<408x128xf32, #tpu.memory_space<vmem>>, vector<8x128xf32>,
    %c0_867 = arith.constant 0 : index
    %c105_868 = arith.constant 105 : index
    %738 = vector.load %arg12[%c0_867, %c105_868] : memref<8x384xf32, #tpu.memory_space<vmem>>, vector<8x128xf32>
    %c16_869 = arith.constant 16 : index
    %c0_870 = arith.constant 0 : index
    %739 = vector.load %arg14[%c16_869, %c0_870] : memref<408x128xf32, #tpu.memory_space<vmem>>, vector<8x128xf32>
    tpu.vector_store %arg14[%c16_869, %c0_870], %738 {strides = array<i32>} : memref<408x128xf32, #tpu.memory_space<vmem>>, vector<8x128xf32>,
    %c0_871 = arith.constant 0 : index
    %c106_872 = arith.constant 106 : index
    %740 = vector.load %arg12[%c0_871, %c106_872] : memref<8x384xf32, #tpu.memory_space<vmem>>, vector<8x128xf32>
    %c24_873 = arith.constant 24 : index
    %c0_874 = arith.constant 0 : index
    %741 = vector.load %arg14[%c24_873, %c0_874] : memref<408x128xf32, #tpu.memory_space<vmem>>, vector<8x128xf32>
    tpu.vector_store %arg14[%c24_873, %c0_874], %740 {strides = array<i32>} : memref<408x128xf32, #tpu.memory_space<vmem>>, vector<8x128xf32>,
    %c0_875 = arith.constant 0 : index
    %c107_876 = arith.constant 107 : index
    %742 = vector.load %arg12[%c0_875, %c107_876] : memref<8x384xf32, #tpu.memory_space<vmem>>, vector<8x128xf32>
    %c32_877 = arith.constant 32 : index
    %c0_878 = arith.constant 0 : index
    %743 = vector.load %arg14[%c32_877, %c0_878] : memref<408x128xf32, #tpu.memory_space<vmem>>, vector<8x128xf32>
    tpu.vector_store %arg14[%c32_877, %c0_878], %742 {strides = array<i32>} : memref<408x128xf32, #tpu.memory_space<vmem>>, vector<8x128xf32>,
    %c0_879 = arith.constant 0 : index
    %c108_880 = arith.constant 108 : index
    %744 = vector.load %arg12[%c0_879, %c108_880] : memref<8x384xf32, #tpu.memory_space<vmem>>, vector<8x128xf32>
    %c40_881 = arith.constant 40 : index
    %c0_882 = arith.constant 0 : index
    %745 = vector.load %arg14[%c40_881, %c0_882] : memref<408x128xf32, #tpu.memory_space<vmem>>, vector<8x128xf32>
    tpu.vector_store %arg14[%c40_881, %c0_882], %744 {strides = array<i32>} : memref<408x128xf32, #tpu.memory_space<vmem>>, vector<8x128xf32>,
    %c0_883 = arith.constant 0 : index
    %c109_884 = arith.constant 109 : index
    %746 = vector.load %arg12[%c0_883, %c109_884] : memref<8x384xf32, #tpu.memory_space<vmem>>, vector<8x128xf32>
    %c48_885 = arith.constant 48 : index
    %c0_886 = arith.constant 0 : index
    %747 = vector.load %arg14[%c48_885, %c0_886] : memref<408x128xf32, #tpu.memory_space<vmem>>, vector<8x128xf32>
    tpu.vector_store %arg14[%c48_885, %c0_886], %746 {strides = array<i32>} : memref<408x128xf32, #tpu.memory_space<vmem>>, vector<8x128xf32>,
    %c0_887 = arith.constant 0 : index
    %c110_888 = arith.constant 110 : index
    %748 = vector.load %arg12[%c0_887, %c110_888] : memref<8x384xf32, #tpu.memory_space<vmem>>, vector<8x128xf32>
    %c56_889 = arith.constant 56 : index
    %c0_890 = arith.constant 0 : index
    %749 = vector.load %arg14[%c56_889, %c0_890] : memref<408x128xf32, #tpu.memory_space<vmem>>, vector<8x128xf32>
    tpu.vector_store %arg14[%c56_889, %c0_890], %748 {strides = array<i32>} : memref<408x128xf32, #tpu.memory_space<vmem>>, vector<8x128xf32>,
    %c0_891 = arith.constant 0 : index
    %c111_892 = arith.constant 111 : index
    %750 = vector.load %arg12[%c0_891, %c111_892] : memref<8x384xf32, #tpu.memory_space<vmem>>, vector<8x128xf32>
    %c64_893 = arith.constant 64 : index
    %c0_894 = arith.constant 0 : index
    %751 = vector.load %arg14[%c64_893, %c0_894] : memref<408x128xf32, #tpu.memory_space<vmem>>, vector<8x128xf32>
    tpu.vector_store %arg14[%c64_893, %c0_894], %750 {strides = array<i32>} : memref<408x128xf32, #tpu.memory_space<vmem>>, vector<8x128xf32>,
    %c0_895 = arith.constant 0 : index
    %c112_896 = arith.constant 112 : index
    %752 = vector.load %arg12[%c0_895, %c112_896] : memref<8x384xf32, #tpu.memory_space<vmem>>, vector<8x128xf32>
    %c72_897 = arith.constant 72 : index
    %c0_898 = arith.constant 0 : index
    %753 = vector.load %arg14[%c72_897, %c0_898] : memref<408x128xf32, #tpu.memory_space<vmem>>, vector<8x128xf32>
    tpu.vector_store %arg14[%c72_897, %c0_898], %752 {strides = array<i32>} : memref<408x128xf32, #tpu.memory_space<vmem>>, vector<8x128xf32>,
    %c0_899 = arith.constant 0 : index
    %c113_900 = arith.constant 113 : index
    %754 = vector.load %arg12[%c0_899, %c113_900] : memref<8x384xf32, #tpu.memory_space<vmem>>, vector<8x128xf32>
    %c80_901 = arith.constant 80 : index
    %c0_902 = arith.constant 0 : index
    %755 = vector.load %arg14[%c80_901, %c0_902] : memref<408x128xf32, #tpu.memory_space<vmem>>, vector<8x128xf32>
    tpu.vector_store %arg14[%c80_901, %c0_902], %754 {strides = array<i32>} : memref<408x128xf32, #tpu.memory_space<vmem>>, vector<8x128xf32>,
    %c0_903 = arith.constant 0 : index
    %c114_904 = arith.constant 114 : index
    %756 = vector.load %arg12[%c0_903, %c114_904] : memref<8x384xf32, #tpu.memory_space<vmem>>, vector<8x128xf32>
    %c88_905 = arith.constant 88 : index
    %c0_906 = arith.constant 0 : index
    %757 = vector.load %arg14[%c88_905, %c0_906] : memref<408x128xf32, #tpu.memory_space<vmem>>, vector<8x128xf32>
    tpu.vector_store %arg14[%c88_905, %c0_906], %756 {strides = array<i32>} : memref<408x128xf32, #tpu.memory_space<vmem>>, vector<8x128xf32>,
    %c0_907 = arith.constant 0 : index
    %c115_908 = arith.constant 115 : index
    %758 = vector.load %arg12[%c0_907, %c115_908] : memref<8x384xf32, #tpu.memory_space<vmem>>, vector<8x128xf32>
    %c96_909 = arith.constant 96 : index
    %c0_910 = arith.constant 0 : index
    %759 = vector.load %arg14[%c96_909, %c0_910] : memref<408x128xf32, #tpu.memory_space<vmem>>, vector<8x128xf32>
    tpu.vector_store %arg14[%c96_909, %c0_910], %758 {strides = array<i32>} : memref<408x128xf32, #tpu.memory_space<vmem>>, vector<8x128xf32>,
    %c0_911 = arith.constant 0 : index
    %c116_912 = arith.constant 116 : index
    %760 = vector.load %arg12[%c0_911, %c116_912] : memref<8x384xf32, #tpu.memory_space<vmem>>, vector<8x128xf32>
    %c104_913 = arith.constant 104 : index
    %c0_914 = arith.constant 0 : index
    %761 = vector.load %arg14[%c104_913, %c0_914] : memref<408x128xf32, #tpu.memory_space<vmem>>, vector<8x128xf32>
    tpu.vector_store %arg14[%c104_913, %c0_914], %760 {strides = array<i32>} : memref<408x128xf32, #tpu.memory_space<vmem>>, vector<8x128xf32>,
    %c0_915 = arith.constant 0 : index
    %c117_916 = arith.constant 117 : index
    %762 = vector.load %arg12[%c0_915, %c117_916] : memref<8x384xf32, #tpu.memory_space<vmem>>, vector<8x128xf32>
    %c112_917 = arith.constant 112 : index
    %c0_918 = arith.constant 0 : index
    %763 = vector.load %arg14[%c112_917, %c0_918] : memref<408x128xf32, #tpu.memory_space<vmem>>, vector<8x128xf32>
    tpu.vector_store %arg14[%c112_917, %c0_918], %762 {strides = array<i32>} : memref<408x128xf32, #tpu.memory_space<vmem>>, vector<8x128xf32>,
    %c0_919 = arith.constant 0 : index
    %c118_920 = arith.constant 118 : index
    %764 = vector.load %arg12[%c0_919, %c118_920] : memref<8x384xf32, #tpu.memory_space<vmem>>, vector<8x128xf32>
    %c120_921 = arith.constant 120 : index
    %c0_922 = arith.constant 0 : index
    %765 = vector.load %arg14[%c120_921, %c0_922] : memref<408x128xf32, #tpu.memory_space<vmem>>, vector<8x128xf32>
    tpu.vector_store %arg14[%c120_921, %c0_922], %764 {strides = array<i32>} : memref<408x128xf32, #tpu.memory_space<vmem>>, vector<8x128xf32>,
    %c0_923 = arith.constant 0 : index
    %c119_924 = arith.constant 119 : index
    %766 = vector.load %arg12[%c0_923, %c119_924] : memref<8x384xf32, #tpu.memory_space<vmem>>, vector<8x128xf32>
    %c128_925 = arith.constant 128 : index
    %c0_926 = arith.constant 0 : index
    %767 = vector.load %arg14[%c128_925, %c0_926] : memref<408x128xf32, #tpu.memory_space<vmem>>, vector<8x128xf32>
    tpu.vector_store %arg14[%c128_925, %c0_926], %766 {strides = array<i32>} : memref<408x128xf32, #tpu.memory_space<vmem>>, vector<8x128xf32>,
    %c0_927 = arith.constant 0 : index
    %c120_928 = arith.constant 120 : index
    %768 = vector.load %arg12[%c0_927, %c120_928] : memref<8x384xf32, #tpu.memory_space<vmem>>, vector<8x128xf32>
    %c136_929 = arith.constant 136 : index
    %c0_930 = arith.constant 0 : index
    %769 = vector.load %arg14[%c136_929, %c0_930] : memref<408x128xf32, #tpu.memory_space<vmem>>, vector<8x128xf32>
    tpu.vector_store %arg14[%c136_929, %c0_930], %768 {strides = array<i32>} : memref<408x128xf32, #tpu.memory_space<vmem>>, vector<8x128xf32>,
    %c0_931 = arith.constant 0 : index
    %c121_932 = arith.constant 121 : index
    %770 = vector.load %arg12[%c0_931, %c121_932] : memref<8x384xf32, #tpu.memory_space<vmem>>, vector<8x128xf32>
    %c144_933 = arith.constant 144 : index
    %c0_934 = arith.constant 0 : index
    %771 = vector.load %arg14[%c144_933, %c0_934] : memref<408x128xf32, #tpu.memory_space<vmem>>, vector<8x128xf32>
    tpu.vector_store %arg14[%c144_933, %c0_934], %770 {strides = array<i32>} : memref<408x128xf32, #tpu.memory_space<vmem>>, vector<8x128xf32>,
    %c0_935 = arith.constant 0 : index
    %c122_936 = arith.constant 122 : index
    %772 = vector.load %arg12[%c0_935, %c122_936] : memref<8x384xf32, #tpu.memory_space<vmem>>, vector<8x128xf32>
    %c152_937 = arith.constant 152 : index
    %c0_938 = arith.constant 0 : index
    %773 = vector.load %arg14[%c152_937, %c0_938] : memref<408x128xf32, #tpu.memory_space<vmem>>, vector<8x128xf32>
    tpu.vector_store %arg14[%c152_937, %c0_938], %772 {strides = array<i32>} : memref<408x128xf32, #tpu.memory_space<vmem>>, vector<8x128xf32>,
    %c0_939 = arith.constant 0 : index
    %c123_940 = arith.constant 123 : index
    %774 = vector.load %arg12[%c0_939, %c123_940] : memref<8x384xf32, #tpu.memory_space<vmem>>, vector<8x128xf32>
    %c160_941 = arith.constant 160 : index
    %c0_942 = arith.constant 0 : index
    %775 = vector.load %arg14[%c160_941, %c0_942] : memref<408x128xf32, #tpu.memory_space<vmem>>, vector<8x128xf32>
    tpu.vector_store %arg14[%c160_941, %c0_942], %774 {strides = array<i32>} : memref<408x128xf32, #tpu.memory_space<vmem>>, vector<8x128xf32>,
    %c0_943 = arith.constant 0 : index
    %c124_944 = arith.constant 124 : index
    %776 = vector.load %arg12[%c0_943, %c124_944] : memref<8x384xf32, #tpu.memory_space<vmem>>, vector<8x128xf32>
    %c168_945 = arith.constant 168 : index
    %c0_946 = arith.constant 0 : index
    %777 = vector.load %arg14[%c168_945, %c0_946] : memref<408x128xf32, #tpu.memory_space<vmem>>, vector<8x128xf32>
    tpu.vector_store %arg14[%c168_945, %c0_946], %776 {strides = array<i32>} : memref<408x128xf32, #tpu.memory_space<vmem>>, vector<8x128xf32>,
    %c0_947 = arith.constant 0 : index
    %c125_948 = arith.constant 125 : index
    %778 = vector.load %arg12[%c0_947, %c125_948] : memref<8x384xf32, #tpu.memory_space<vmem>>, vector<8x128xf32>
    %c176_949 = arith.constant 176 : index
    %c0_950 = arith.constant 0 : index
    %779 = vector.load %arg14[%c176_949, %c0_950] : memref<408x128xf32, #tpu.memory_space<vmem>>, vector<8x128xf32>
    tpu.vector_store %arg14[%c176_949, %c0_950], %778 {strides = array<i32>} : memref<408x128xf32, #tpu.memory_space<vmem>>, vector<8x128xf32>,
    %c0_951 = arith.constant 0 : index
    %c126_952 = arith.constant 126 : index
    %780 = vector.load %arg12[%c0_951, %c126_952] : memref<8x384xf32, #tpu.memory_space<vmem>>, vector<8x128xf32>
    %c184_953 = arith.constant 184 : index
    %c0_954 = arith.constant 0 : index
    %781 = vector.load %arg14[%c184_953, %c0_954] : memref<408x128xf32, #tpu.memory_space<vmem>>, vector<8x128xf32>
    tpu.vector_store %arg14[%c184_953, %c0_954], %780 {strides = array<i32>} : memref<408x128xf32, #tpu.memory_space<vmem>>, vector<8x128xf32>,
    %c0_955 = arith.constant 0 : index
    %c127_956 = arith.constant 127 : index
    %782 = vector.load %arg12[%c0_955, %c127_956] : memref<8x384xf32, #tpu.memory_space<vmem>>, vector<8x128xf32>
    %c192_957 = arith.constant 192 : index
    %c0_958 = arith.constant 0 : index
    %783 = vector.load %arg14[%c192_957, %c0_958] : memref<408x128xf32, #tpu.memory_space<vmem>>, vector<8x128xf32>
    tpu.vector_store %arg14[%c192_957, %c0_958], %782 {strides = array<i32>} : memref<408x128xf32, #tpu.memory_space<vmem>>, vector<8x128xf32>,
    %c0_959 = arith.constant 0 : index
    %c128_960 = arith.constant 128 : index
    %784 = vector.load %arg12[%c0_959, %c128_960] : memref<8x384xf32, #tpu.memory_space<vmem>>, vector<8x128xf32>
    %c200_961 = arith.constant 200 : index
    %c0_962 = arith.constant 0 : index
    %785 = vector.load %arg14[%c200_961, %c0_962] : memref<408x128xf32, #tpu.memory_space<vmem>>, vector<8x128xf32>
    tpu.vector_store %arg14[%c200_961, %c0_962], %784 {strides = array<i32>} : memref<408x128xf32, #tpu.memory_space<vmem>>, vector<8x128xf32>,
    %c0_963 = arith.constant 0 : index
    %c129_964 = arith.constant 129 : index
    %786 = vector.load %arg12[%c0_963, %c129_964] : memref<8x384xf32, #tpu.memory_space<vmem>>, vector<8x128xf32>
    %c208_965 = arith.constant 208 : index
    %c0_966 = arith.constant 0 : index
    %787 = vector.load %arg14[%c208_965, %c0_966] : memref<408x128xf32, #tpu.memory_space<vmem>>, vector<8x128xf32>
    tpu.vector_store %arg14[%c208_965, %c0_966], %786 {strides = array<i32>} : memref<408x128xf32, #tpu.memory_space<vmem>>, vector<8x128xf32>,
    %c0_967 = arith.constant 0 : index
    %c130_968 = arith.constant 130 : index
    %788 = vector.load %arg12[%c0_967, %c130_968] : memref<8x384xf32, #tpu.memory_space<vmem>>, vector<8x128xf32>
    %c216_969 = arith.constant 216 : index
    %c0_970 = arith.constant 0 : index
    %789 = vector.load %arg14[%c216_969, %c0_970] : memref<408x128xf32, #tpu.memory_space<vmem>>, vector<8x128xf32>
    tpu.vector_store %arg14[%c216_969, %c0_970], %788 {strides = array<i32>} : memref<408x128xf32, #tpu.memory_space<vmem>>, vector<8x128xf32>,
    %c0_971 = arith.constant 0 : index
    %c131_972 = arith.constant 131 : index
    %790 = vector.load %arg12[%c0_971, %c131_972] : memref<8x384xf32, #tpu.memory_space<vmem>>, vector<8x128xf32>
    %c224_973 = arith.constant 224 : index
    %c0_974 = arith.constant 0 : index
    %791 = vector.load %arg14[%c224_973, %c0_974] : memref<408x128xf32, #tpu.memory_space<vmem>>, vector<8x128xf32>
    tpu.vector_store %arg14[%c224_973, %c0_974], %790 {strides = array<i32>} : memref<408x128xf32, #tpu.memory_space<vmem>>, vector<8x128xf32>,
    %c0_975 = arith.constant 0 : index
    %c132_976 = arith.constant 132 : index
    %792 = vector.load %arg12[%c0_975, %c132_976] : memref<8x384xf32, #tpu.memory_space<vmem>>, vector<8x128xf32>
    %c232_977 = arith.constant 232 : index
    %c0_978 = arith.constant 0 : index
    %793 = vector.load %arg14[%c232_977, %c0_978] : memref<408x128xf32, #tpu.memory_space<vmem>>, vector<8x128xf32>
    tpu.vector_store %arg14[%c232_977, %c0_978], %792 {strides = array<i32>} : memref<408x128xf32, #tpu.memory_space<vmem>>, vector<8x128xf32>,
    %c0_979 = arith.constant 0 : index
    %c133_980 = arith.constant 133 : index
    %794 = vector.load %arg12[%c0_979, %c133_980] : memref<8x384xf32, #tpu.memory_space<vmem>>, vector<8x128xf32>
    %c240_981 = arith.constant 240 : index
    %c0_982 = arith.constant 0 : index
    %795 = vector.load %arg14[%c240_981, %c0_982] : memref<408x128xf32, #tpu.memory_space<vmem>>, vector<8x128xf32>
    tpu.vector_store %arg14[%c240_981, %c0_982], %794 {strides = array<i32>} : memref<408x128xf32, #tpu.memory_space<vmem>>, vector<8x128xf32>,
    %c0_983 = arith.constant 0 : index
    %c134_984 = arith.constant 134 : index
    %796 = vector.load %arg12[%c0_983, %c134_984] : memref<8x384xf32, #tpu.memory_space<vmem>>, vector<8x128xf32>
    %c248_985 = arith.constant 248 : index
    %c0_986 = arith.constant 0 : index
    %797 = vector.load %arg14[%c248_985, %c0_986] : memref<408x128xf32, #tpu.memory_space<vmem>>, vector<8x128xf32>
    tpu.vector_store %arg14[%c248_985, %c0_986], %796 {strides = array<i32>} : memref<408x128xf32, #tpu.memory_space<vmem>>, vector<8x128xf32>,
    %c0_987 = arith.constant 0 : index
    %c135_988 = arith.constant 135 : index
    %798 = vector.load %arg12[%c0_987, %c135_988] : memref<8x384xf32, #tpu.memory_space<vmem>>, vector<8x128xf32>
    %c256_989 = arith.constant 256 : index
    %c0_990 = arith.constant 0 : index
    %799 = vector.load %arg14[%c256_989, %c0_990] : memref<408x128xf32, #tpu.memory_space<vmem>>, vector<8x128xf32>
    tpu.vector_store %arg14[%c256_989, %c0_990], %798 {strides = array<i32>} : memref<408x128xf32, #tpu.memory_space<vmem>>, vector<8x128xf32>,
    %c0_991 = arith.constant 0 : index
    %c136_992 = arith.constant 136 : index
    %800 = vector.load %arg12[%c0_991, %c136_992] : memref<8x384xf32, #tpu.memory_space<vmem>>, vector<8x128xf32>
    %c264_993 = arith.constant 264 : index
    %c0_994 = arith.constant 0 : index
    %801 = vector.load %arg14[%c264_993, %c0_994] : memref<408x128xf32, #tpu.memory_space<vmem>>, vector<8x128xf32>
    tpu.vector_store %arg14[%c264_993, %c0_994], %800 {strides = array<i32>} : memref<408x128xf32, #tpu.memory_space<vmem>>, vector<8x128xf32>,
    %c0_995 = arith.constant 0 : index
    %c137_996 = arith.constant 137 : index
    %802 = vector.load %arg12[%c0_995, %c137_996] : memref<8x384xf32, #tpu.memory_space<vmem>>, vector<8x128xf32>
    %c272_997 = arith.constant 272 : index
    %c0_998 = arith.constant 0 : index
    %803 = vector.load %arg14[%c272_997, %c0_998] : memref<408x128xf32, #tpu.memory_space<vmem>>, vector<8x128xf32>
    tpu.vector_store %arg14[%c272_997, %c0_998], %802 {strides = array<i32>} : memref<408x128xf32, #tpu.memory_space<vmem>>, vector<8x128xf32>,
    %c0_999 = arith.constant 0 : index
    %c138_1000 = arith.constant 138 : index
    %804 = vector.load %arg12[%c0_999, %c138_1000] : memref<8x384xf32, #tpu.memory_space<vmem>>, vector<8x128xf32>
    %c280_1001 = arith.constant 280 : index
    %c0_1002 = arith.constant 0 : index
    %805 = vector.load %arg14[%c280_1001, %c0_1002] : memref<408x128xf32, #tpu.memory_space<vmem>>, vector<8x128xf32>
    tpu.vector_store %arg14[%c280_1001, %c0_1002], %804 {strides = array<i32>} : memref<408x128xf32, #tpu.memory_space<vmem>>, vector<8x128xf32>,
    %c0_1003 = arith.constant 0 : index
    %c139_1004 = arith.constant 139 : index
    %806 = vector.load %arg12[%c0_1003, %c139_1004] : memref<8x384xf32, #tpu.memory_space<vmem>>, vector<8x128xf32>
    %c288_1005 = arith.constant 288 : index
    %c0_1006 = arith.constant 0 : index
    %807 = vector.load %arg14[%c288_1005, %c0_1006] : memref<408x128xf32, #tpu.memory_space<vmem>>, vector<8x128xf32>
    tpu.vector_store %arg14[%c288_1005, %c0_1006], %806 {strides = array<i32>} : memref<408x128xf32, #tpu.memory_space<vmem>>, vector<8x128xf32>,
    %c0_1007 = arith.constant 0 : index
    %c140_1008 = arith.constant 140 : index
    %808 = vector.load %arg12[%c0_1007, %c140_1008] : memref<8x384xf32, #tpu.memory_space<vmem>>, vector<8x128xf32>
    %c296_1009 = arith.constant 296 : index
    %c0_1010 = arith.constant 0 : index
    %809 = vector.load %arg14[%c296_1009, %c0_1010] : memref<408x128xf32, #tpu.memory_space<vmem>>, vector<8x128xf32>
    tpu.vector_store %arg14[%c296_1009, %c0_1010], %808 {strides = array<i32>} : memref<408x128xf32, #tpu.memory_space<vmem>>, vector<8x128xf32>,
    %c0_1011 = arith.constant 0 : index
    %c141_1012 = arith.constant 141 : index
    %810 = vector.load %arg12[%c0_1011, %c141_1012] : memref<8x384xf32, #tpu.memory_space<vmem>>, vector<8x128xf32>
    %c304_1013 = arith.constant 304 : index
    %c0_1014 = arith.constant 0 : index
    %811 = vector.load %arg14[%c304_1013, %c0_1014] : memref<408x128xf32, #tpu.memory_space<vmem>>, vector<8x128xf32>
    tpu.vector_store %arg14[%c304_1013, %c0_1014], %810 {strides = array<i32>} : memref<408x128xf32, #tpu.memory_space<vmem>>, vector<8x128xf32>,
    %c0_1015 = arith.constant 0 : index
    %c142_1016 = arith.constant 142 : index
    %812 = vector.load %arg12[%c0_1015, %c142_1016] : memref<8x384xf32, #tpu.memory_space<vmem>>, vector<8x128xf32>
    %c312_1017 = arith.constant 312 : index
    %c0_1018 = arith.constant 0 : index
    %813 = vector.load %arg14[%c312_1017, %c0_1018] : memref<408x128xf32, #tpu.memory_space<vmem>>, vector<8x128xf32>
    tpu.vector_store %arg14[%c312_1017, %c0_1018], %812 {strides = array<i32>} : memref<408x128xf32, #tpu.memory_space<vmem>>, vector<8x128xf32>,
    %c0_1019 = arith.constant 0 : index
    %c143_1020 = arith.constant 143 : index
    %814 = vector.load %arg12[%c0_1019, %c143_1020] : memref<8x384xf32, #tpu.memory_space<vmem>>, vector<8x128xf32>
    %c320_1021 = arith.constant 320 : index
    %c0_1022 = arith.constant 0 : index
    %815 = vector.load %arg14[%c320_1021, %c0_1022] : memref<408x128xf32, #tpu.memory_space<vmem>>, vector<8x128xf32>
    tpu.vector_store %arg14[%c320_1021, %c0_1022], %814 {strides = array<i32>} : memref<408x128xf32, #tpu.memory_space<vmem>>, vector<8x128xf32>,
    %c0_1023 = arith.constant 0 : index
    %c144_1024 = arith.constant 144 : index
    %816 = vector.load %arg12[%c0_1023, %c144_1024] : memref<8x384xf32, #tpu.memory_space<vmem>>, vector<8x128xf32>
    %c328_1025 = arith.constant 328 : index
    %c0_1026 = arith.constant 0 : index
    %817 = vector.load %arg14[%c328_1025, %c0_1026] : memref<408x128xf32, #tpu.memory_space<vmem>>, vector<8x128xf32>
    tpu.vector_store %arg14[%c328_1025, %c0_1026], %816 {strides = array<i32>} : memref<408x128xf32, #tpu.memory_space<vmem>>, vector<8x128xf32>,
    %c0_1027 = arith.constant 0 : index
    %c145_1028 = arith.constant 145 : index
    %818 = vector.load %arg12[%c0_1027, %c145_1028] : memref<8x384xf32, #tpu.memory_space<vmem>>, vector<8x128xf32>
    %c336_1029 = arith.constant 336 : index
    %c0_1030 = arith.constant 0 : index
    %819 = vector.load %arg14[%c336_1029, %c0_1030] : memref<408x128xf32, #tpu.memory_space<vmem>>, vector<8x128xf32>
    tpu.vector_store %arg14[%c336_1029, %c0_1030], %818 {strides = array<i32>} : memref<408x128xf32, #tpu.memory_space<vmem>>, vector<8x128xf32>,
    %c0_1031 = arith.constant 0 : index
    %c146_1032 = arith.constant 146 : index
    %820 = vector.load %arg12[%c0_1031, %c146_1032] : memref<8x384xf32, #tpu.memory_space<vmem>>, vector<8x128xf32>
    %c344_1033 = arith.constant 344 : index
    %c0_1034 = arith.constant 0 : index
    %821 = vector.load %arg14[%c344_1033, %c0_1034] : memref<408x128xf32, #tpu.memory_space<vmem>>, vector<8x128xf32>
    tpu.vector_store %arg14[%c344_1033, %c0_1034], %820 {strides = array<i32>} : memref<408x128xf32, #tpu.memory_space<vmem>>, vector<8x128xf32>,
    %c0_1035 = arith.constant 0 : index
    %c147_1036 = arith.constant 147 : index
    %822 = vector.load %arg12[%c0_1035, %c147_1036] : memref<8x384xf32, #tpu.memory_space<vmem>>, vector<8x128xf32>
    %c352_1037 = arith.constant 352 : index
    %c0_1038 = arith.constant 0 : index
    %823 = vector.load %arg14[%c352_1037, %c0_1038] : memref<408x128xf32, #tpu.memory_space<vmem>>, vector<8x128xf32>
    tpu.vector_store %arg14[%c352_1037, %c0_1038], %822 {strides = array<i32>} : memref<408x128xf32, #tpu.memory_space<vmem>>, vector<8x128xf32>,
    %c0_1039 = arith.constant 0 : index
    %c148_1040 = arith.constant 148 : index
    %824 = vector.load %arg12[%c0_1039, %c148_1040] : memref<8x384xf32, #tpu.memory_space<vmem>>, vector<8x128xf32>
    %c360_1041 = arith.constant 360 : index
    %c0_1042 = arith.constant 0 : index
    %825 = vector.load %arg14[%c360_1041, %c0_1042] : memref<408x128xf32, #tpu.memory_space<vmem>>, vector<8x128xf32>
    tpu.vector_store %arg14[%c360_1041, %c0_1042], %824 {strides = array<i32>} : memref<408x128xf32, #tpu.memory_space<vmem>>, vector<8x128xf32>,
    %c0_1043 = arith.constant 0 : index
    %c149_1044 = arith.constant 149 : index
    %826 = vector.load %arg12[%c0_1043, %c149_1044] : memref<8x384xf32, #tpu.memory_space<vmem>>, vector<8x128xf32>
    %c368_1045 = arith.constant 368 : index
    %c0_1046 = arith.constant 0 : index
    %827 = vector.load %arg14[%c368_1045, %c0_1046] : memref<408x128xf32, #tpu.memory_space<vmem>>, vector<8x128xf32>
    tpu.vector_store %arg14[%c368_1045, %c0_1046], %826 {strides = array<i32>} : memref<408x128xf32, #tpu.memory_space<vmem>>, vector<8x128xf32>,
    %c0_1047 = arith.constant 0 : index
    %c150_1048 = arith.constant 150 : index
    %828 = vector.load %arg12[%c0_1047, %c150_1048] : memref<8x384xf32, #tpu.memory_space<vmem>>, vector<8x128xf32>
    %c376_1049 = arith.constant 376 : index
    %c0_1050 = arith.constant 0 : index
    %829 = vector.load %arg14[%c376_1049, %c0_1050] : memref<408x128xf32, #tpu.memory_space<vmem>>, vector<8x128xf32>
    tpu.vector_store %arg14[%c376_1049, %c0_1050], %828 {strides = array<i32>} : memref<408x128xf32, #tpu.memory_space<vmem>>, vector<8x128xf32>,
    %c0_1051 = arith.constant 0 : index
    %c151_1052 = arith.constant 151 : index
    %830 = vector.load %arg12[%c0_1051, %c151_1052] : memref<8x384xf32, #tpu.memory_space<vmem>>, vector<8x128xf32>
    %c384_1053 = arith.constant 384 : index
    %c0_1054 = arith.constant 0 : index
    %831 = vector.load %arg14[%c384_1053, %c0_1054] : memref<408x128xf32, #tpu.memory_space<vmem>>, vector<8x128xf32>
    tpu.vector_store %arg14[%c384_1053, %c0_1054], %830 {strides = array<i32>} : memref<408x128xf32, #tpu.memory_space<vmem>>, vector<8x128xf32>,
    %c0_1055 = arith.constant 0 : index
    %c152_1056 = arith.constant 152 : index
    %832 = vector.load %arg12[%c0_1055, %c152_1056] : memref<8x384xf32, #tpu.memory_space<vmem>>, vector<8x128xf32>
    %c392_1057 = arith.constant 392 : index
    %c0_1058 = arith.constant 0 : index
    %833 = vector.load %arg14[%c392_1057, %c0_1058] : memref<408x128xf32, #tpu.memory_space<vmem>>, vector<8x128xf32>
    tpu.vector_store %arg14[%c392_1057, %c0_1058], %832 {strides = array<i32>} : memref<408x128xf32, #tpu.memory_space<vmem>>, vector<8x128xf32>,
    %c0_1059 = arith.constant 0 : index
    %c153_1060 = arith.constant 153 : index
    %834 = vector.load %arg12[%c0_1059, %c153_1060] : memref<8x384xf32, #tpu.memory_space<vmem>>, vector<8x128xf32>
    %c400_1061 = arith.constant 400 : index
    %c0_1062 = arith.constant 0 : index
    %835 = vector.load %arg14[%c400_1061, %c0_1062] : memref<408x128xf32, #tpu.memory_space<vmem>>, vector<8x128xf32>
    tpu.vector_store %arg14[%c400_1061, %c0_1062], %834 {strides = array<i32>} : memref<408x128xf32, #tpu.memory_space<vmem>>, vector<8x128xf32>,
    %c0_1063 = arith.constant 0 : index
    %c0_1064 = arith.constant 0 : index
    %836 = vector.load %arg6[%c0_1063, %c0_1064] : memref<8x408xf32, #tpu.memory_space<vmem>>, vector<8x408xf32>
    %c0_1065 = arith.constant 0 : index
    %c0_1066 = arith.constant 0 : index
    %837 = vector.load %arg14[%c0_1065, %c0_1066] : memref<408x128xf32, #tpu.memory_space<vmem>>, vector<408x128xf32>
    %cst_1067 = arith.constant dense<0.000000e+00> : vector<8x128xf32>
    %838 = tpu.matmul %836, %837, %cst_1067 {dimension_numbers = #tpu.dot_dimension_numbers<[1], [0], [0], [1], [0, 0, 1, 1], [], []>} : vector<8x408xf32>, vector<408x128xf32>, vector<8x128xf32> -> vector<8x128xf32>
    %c0_1068 = arith.constant 0 : index
    %c0_1069 = arith.constant 0 : index
    %839 = vector.load %arg7[%c0_1068, %c0_1069] : memref<8x1xf32, #tpu.memory_space<vmem>>, vector<8x1xf32>
    %840 = vector.broadcast %839 : vector<8x1xf32> to vector<8x128xf32>
    %841 = arith.addf %838, %840 : vector<8x128xf32>
    %cst_1070 = arith.constant 0.000000e+00 : f32
    %842 = vector.broadcast %cst_1070 : f32 to vector<8x128xf32>
    %843 = arith.maximumf %841, %842 : vector<8x128xf32>
    %cst_1071 = arith.constant 0.000000e+00 : f32
    %844 = vector.broadcast %cst_1071 : f32 to vector<8x128xf32>
    %845 = arith.select %2, %843, %844 : vector<8x128xi1>, vector<8x128xf32>
    %c0_1072 = arith.constant 0 : index
    %c128_1073 = arith.constant 128 : index
    %846 = vector.load %arg12[%c0_1072, %c128_1073] : memref<8x384xf32, #tpu.memory_space<vmem>>, vector<8x128xf32>
    tpu.vector_store %arg12[%c0_1072, %c128_1073], %845 {strides = array<i32>} : memref<8x384xf32, #tpu.memory_space<vmem>>, vector<8x128xf32>,
    %c0_1074 = arith.constant 0 : index
    %c128_1075 = arith.constant 128 : index
    %847 = vector.load %arg12[%c0_1074, %c128_1075] : memref<8x384xf32, #tpu.memory_space<vmem>>, vector<8x128xf32>
    %c0_1076 = arith.constant 0 : index
    %c0_1077 = arith.constant 0 : index
    %848 = vector.load %arg14[%c0_1076, %c0_1077] : memref<408x128xf32, #tpu.memory_space<vmem>>, vector<8x128xf32>
    tpu.vector_store %arg14[%c0_1076, %c0_1077], %847 {strides = array<i32>} : memref<408x128xf32, #tpu.memory_space<vmem>>, vector<8x128xf32>,
    %c0_1078 = arith.constant 0 : index
    %c129_1079 = arith.constant 129 : index
    %849 = vector.load %arg12[%c0_1078, %c129_1079] : memref<8x384xf32, #tpu.memory_space<vmem>>, vector<8x128xf32>
    %c8_1080 = arith.constant 8 : index
    %c0_1081 = arith.constant 0 : index
    %850 = vector.load %arg14[%c8_1080, %c0_1081] : memref<408x128xf32, #tpu.memory_space<vmem>>, vector<8x128xf32>
    tpu.vector_store %arg14[%c8_1080, %c0_1081], %849 {strides = array<i32>} : memref<408x128xf32, #tpu.memory_space<vmem>>, vector<8x128xf32>,
    %c0_1082 = arith.constant 0 : index
    %c130_1083 = arith.constant 130 : index
    %851 = vector.load %arg12[%c0_1082, %c130_1083] : memref<8x384xf32, #tpu.memory_space<vmem>>, vector<8x128xf32>
    %c16_1084 = arith.constant 16 : index
    %c0_1085 = arith.constant 0 : index
    %852 = vector.load %arg14[%c16_1084, %c0_1085] : memref<408x128xf32, #tpu.memory_space<vmem>>, vector<8x128xf32>
    tpu.vector_store %arg14[%c16_1084, %c0_1085], %851 {strides = array<i32>} : memref<408x128xf32, #tpu.memory_space<vmem>>, vector<8x128xf32>,
    %c0_1086 = arith.constant 0 : index
    %c131_1087 = arith.constant 131 : index
    %853 = vector.load %arg12[%c0_1086, %c131_1087] : memref<8x384xf32, #tpu.memory_space<vmem>>, vector<8x128xf32>
    %c24_1088 = arith.constant 24 : index
    %c0_1089 = arith.constant 0 : index
    %854 = vector.load %arg14[%c24_1088, %c0_1089] : memref<408x128xf32, #tpu.memory_space<vmem>>, vector<8x128xf32>
    tpu.vector_store %arg14[%c24_1088, %c0_1089], %853 {strides = array<i32>} : memref<408x128xf32, #tpu.memory_space<vmem>>, vector<8x128xf32>,
    %c0_1090 = arith.constant 0 : index
    %c132_1091 = arith.constant 132 : index
    %855 = vector.load %arg12[%c0_1090, %c132_1091] : memref<8x384xf32, #tpu.memory_space<vmem>>, vector<8x128xf32>
    %c32_1092 = arith.constant 32 : index
    %c0_1093 = arith.constant 0 : index
    %856 = vector.load %arg14[%c32_1092, %c0_1093] : memref<408x128xf32, #tpu.memory_space<vmem>>, vector<8x128xf32>
    tpu.vector_store %arg14[%c32_1092, %c0_1093], %855 {strides = array<i32>} : memref<408x128xf32, #tpu.memory_space<vmem>>, vector<8x128xf32>,
    %c0_1094 = arith.constant 0 : index
    %c133_1095 = arith.constant 133 : index
    %857 = vector.load %arg12[%c0_1094, %c133_1095] : memref<8x384xf32, #tpu.memory_space<vmem>>, vector<8x128xf32>
    %c40_1096 = arith.constant 40 : index
    %c0_1097 = arith.constant 0 : index
    %858 = vector.load %arg14[%c40_1096, %c0_1097] : memref<408x128xf32, #tpu.memory_space<vmem>>, vector<8x128xf32>
    tpu.vector_store %arg14[%c40_1096, %c0_1097], %857 {strides = array<i32>} : memref<408x128xf32, #tpu.memory_space<vmem>>, vector<8x128xf32>,
    %c0_1098 = arith.constant 0 : index
    %c134_1099 = arith.constant 134 : index
    %859 = vector.load %arg12[%c0_1098, %c134_1099] : memref<8x384xf32, #tpu.memory_space<vmem>>, vector<8x128xf32>
    %c48_1100 = arith.constant 48 : index
    %c0_1101 = arith.constant 0 : index
    %860 = vector.load %arg14[%c48_1100, %c0_1101] : memref<408x128xf32, #tpu.memory_space<vmem>>, vector<8x128xf32>
    tpu.vector_store %arg14[%c48_1100, %c0_1101], %859 {strides = array<i32>} : memref<408x128xf32, #tpu.memory_space<vmem>>, vector<8x128xf32>,
    %c0_1102 = arith.constant 0 : index
    %c135_1103 = arith.constant 135 : index
    %861 = vector.load %arg12[%c0_1102, %c135_1103] : memref<8x384xf32, #tpu.memory_space<vmem>>, vector<8x128xf32>
    %c56_1104 = arith.constant 56 : index
    %c0_1105 = arith.constant 0 : index
    %862 = vector.load %arg14[%c56_1104, %c0_1105] : memref<408x128xf32, #tpu.memory_space<vmem>>, vector<8x128xf32>
    tpu.vector_store %arg14[%c56_1104, %c0_1105], %861 {strides = array<i32>} : memref<408x128xf32, #tpu.memory_space<vmem>>, vector<8x128xf32>,
    %c0_1106 = arith.constant 0 : index
    %c136_1107 = arith.constant 136 : index
    %863 = vector.load %arg12[%c0_1106, %c136_1107] : memref<8x384xf32, #tpu.memory_space<vmem>>, vector<8x128xf32>
    %c64_1108 = arith.constant 64 : index
    %c0_1109 = arith.constant 0 : index
    %864 = vector.load %arg14[%c64_1108, %c0_1109] : memref<408x128xf32, #tpu.memory_space<vmem>>, vector<8x128xf32>
    tpu.vector_store %arg14[%c64_1108, %c0_1109], %863 {strides = array<i32>} : memref<408x128xf32, #tpu.memory_space<vmem>>, vector<8x128xf32>,
    %c0_1110 = arith.constant 0 : index
    %c137_1111 = arith.constant 137 : index
    %865 = vector.load %arg12[%c0_1110, %c137_1111] : memref<8x384xf32, #tpu.memory_space<vmem>>, vector<8x128xf32>
    %c72_1112 = arith.constant 72 : index
    %c0_1113 = arith.constant 0 : index
    %866 = vector.load %arg14[%c72_1112, %c0_1113] : memref<408x128xf32, #tpu.memory_space<vmem>>, vector<8x128xf32>
    tpu.vector_store %arg14[%c72_1112, %c0_1113], %865 {strides = array<i32>} : memref<408x128xf32, #tpu.memory_space<vmem>>, vector<8x128xf32>,
    %c0_1114 = arith.constant 0 : index
    %c138_1115 = arith.constant 138 : index
    %867 = vector.load %arg12[%c0_1114, %c138_1115] : memref<8x384xf32, #tpu.memory_space<vmem>>, vector<8x128xf32>
    %c80_1116 = arith.constant 80 : index
    %c0_1117 = arith.constant 0 : index
    %868 = vector.load %arg14[%c80_1116, %c0_1117] : memref<408x128xf32, #tpu.memory_space<vmem>>, vector<8x128xf32>
    tpu.vector_store %arg14[%c80_1116, %c0_1117], %867 {strides = array<i32>} : memref<408x128xf32, #tpu.memory_space<vmem>>, vector<8x128xf32>,
    %c0_1118 = arith.constant 0 : index
    %c139_1119 = arith.constant 139 : index
    %869 = vector.load %arg12[%c0_1118, %c139_1119] : memref<8x384xf32, #tpu.memory_space<vmem>>, vector<8x128xf32>
    %c88_1120 = arith.constant 88 : index
    %c0_1121 = arith.constant 0 : index
    %870 = vector.load %arg14[%c88_1120, %c0_1121] : memref<408x128xf32, #tpu.memory_space<vmem>>, vector<8x128xf32>
    tpu.vector_store %arg14[%c88_1120, %c0_1121], %869 {strides = array<i32>} : memref<408x128xf32, #tpu.memory_space<vmem>>, vector<8x128xf32>,
    %c0_1122 = arith.constant 0 : index
    %c140_1123 = arith.constant 140 : index
    %871 = vector.load %arg12[%c0_1122, %c140_1123] : memref<8x384xf32, #tpu.memory_space<vmem>>, vector<8x128xf32>
    %c96_1124 = arith.constant 96 : index
    %c0_1125 = arith.constant 0 : index
    %872 = vector.load %arg14[%c96_1124, %c0_1125] : memref<408x128xf32, #tpu.memory_space<vmem>>, vector<8x128xf32>
    tpu.vector_store %arg14[%c96_1124, %c0_1125], %871 {strides = array<i32>} : memref<408x128xf32, #tpu.memory_space<vmem>>, vector<8x128xf32>,
    %c0_1126 = arith.constant 0 : index
    %c141_1127 = arith.constant 141 : index
    %873 = vector.load %arg12[%c0_1126, %c141_1127] : memref<8x384xf32, #tpu.memory_space<vmem>>, vector<8x128xf32>
    %c104_1128 = arith.constant 104 : index
    %c0_1129 = arith.constant 0 : index
    %874 = vector.load %arg14[%c104_1128, %c0_1129] : memref<408x128xf32, #tpu.memory_space<vmem>>, vector<8x128xf32>
    tpu.vector_store %arg14[%c104_1128, %c0_1129], %873 {strides = array<i32>} : memref<408x128xf32, #tpu.memory_space<vmem>>, vector<8x128xf32>,
    %c0_1130 = arith.constant 0 : index
    %c142_1131 = arith.constant 142 : index
    %875 = vector.load %arg12[%c0_1130, %c142_1131] : memref<8x384xf32, #tpu.memory_space<vmem>>, vector<8x128xf32>
    %c112_1132 = arith.constant 112 : index
    %c0_1133 = arith.constant 0 : index
    %876 = vector.load %arg14[%c112_1132, %c0_1133] : memref<408x128xf32, #tpu.memory_space<vmem>>, vector<8x128xf32>
    tpu.vector_store %arg14[%c112_1132, %c0_1133], %875 {strides = array<i32>} : memref<408x128xf32, #tpu.memory_space<vmem>>, vector<8x128xf32>,
    %c0_1134 = arith.constant 0 : index
    %c143_1135 = arith.constant 143 : index
    %877 = vector.load %arg12[%c0_1134, %c143_1135] : memref<8x384xf32, #tpu.memory_space<vmem>>, vector<8x128xf32>
    %c120_1136 = arith.constant 120 : index
    %c0_1137 = arith.constant 0 : index
    %878 = vector.load %arg14[%c120_1136, %c0_1137] : memref<408x128xf32, #tpu.memory_space<vmem>>, vector<8x128xf32>
    tpu.vector_store %arg14[%c120_1136, %c0_1137], %877 {strides = array<i32>} : memref<408x128xf32, #tpu.memory_space<vmem>>, vector<8x128xf32>,
    %c0_1138 = arith.constant 0 : index
    %c144_1139 = arith.constant 144 : index
    %879 = vector.load %arg12[%c0_1138, %c144_1139] : memref<8x384xf32, #tpu.memory_space<vmem>>, vector<8x128xf32>
    %c128_1140 = arith.constant 128 : index
    %c0_1141 = arith.constant 0 : index
    %880 = vector.load %arg14[%c128_1140, %c0_1141] : memref<408x128xf32, #tpu.memory_space<vmem>>, vector<8x128xf32>
    tpu.vector_store %arg14[%c128_1140, %c0_1141], %879 {strides = array<i32>} : memref<408x128xf32, #tpu.memory_space<vmem>>, vector<8x128xf32>,
    %c0_1142 = arith.constant 0 : index
    %c145_1143 = arith.constant 145 : index
    %881 = vector.load %arg12[%c0_1142, %c145_1143] : memref<8x384xf32, #tpu.memory_space<vmem>>, vector<8x128xf32>
    %c136_1144 = arith.constant 136 : index
    %c0_1145 = arith.constant 0 : index
    %882 = vector.load %arg14[%c136_1144, %c0_1145] : memref<408x128xf32, #tpu.memory_space<vmem>>, vector<8x128xf32>
    tpu.vector_store %arg14[%c136_1144, %c0_1145], %881 {strides = array<i32>} : memref<408x128xf32, #tpu.memory_space<vmem>>, vector<8x128xf32>,
    %c0_1146 = arith.constant 0 : index
    %c146_1147 = arith.constant 146 : index
    %883 = vector.load %arg12[%c0_1146, %c146_1147] : memref<8x384xf32, #tpu.memory_space<vmem>>, vector<8x128xf32>
    %c144_1148 = arith.constant 144 : index
    %c0_1149 = arith.constant 0 : index
    %884 = vector.load %arg14[%c144_1148, %c0_1149] : memref<408x128xf32, #tpu.memory_space<vmem>>, vector<8x128xf32>
    tpu.vector_store %arg14[%c144_1148, %c0_1149], %883 {strides = array<i32>} : memref<408x128xf32, #tpu.memory_space<vmem>>, vector<8x128xf32>,
    %c0_1150 = arith.constant 0 : index
    %c147_1151 = arith.constant 147 : index
    %885 = vector.load %arg12[%c0_1150, %c147_1151] : memref<8x384xf32, #tpu.memory_space<vmem>>, vector<8x128xf32>
    %c152_1152 = arith.constant 152 : index
    %c0_1153 = arith.constant 0 : index
    %886 = vector.load %arg14[%c152_1152, %c0_1153] : memref<408x128xf32, #tpu.memory_space<vmem>>, vector<8x128xf32>
    tpu.vector_store %arg14[%c152_1152, %c0_1153], %885 {strides = array<i32>} : memref<408x128xf32, #tpu.memory_space<vmem>>, vector<8x128xf32>,
    %c0_1154 = arith.constant 0 : index
    %c148_1155 = arith.constant 148 : index
    %887 = vector.load %arg12[%c0_1154, %c148_1155] : memref<8x384xf32, #tpu.memory_space<vmem>>, vector<8x128xf32>
    %c160_1156 = arith.constant 160 : index
    %c0_1157 = arith.constant 0 : index
    %888 = vector.load %arg14[%c160_1156, %c0_1157] : memref<408x128xf32, #tpu.memory_space<vmem>>, vector<8x128xf32>
    tpu.vector_store %arg14[%c160_1156, %c0_1157], %887 {strides = array<i32>} : memref<408x128xf32, #tpu.memory_space<vmem>>, vector<8x128xf32>,
    %c0_1158 = arith.constant 0 : index
    %c149_1159 = arith.constant 149 : index
    %889 = vector.load %arg12[%c0_1158, %c149_1159] : memref<8x384xf32, #tpu.memory_space<vmem>>, vector<8x128xf32>
    %c168_1160 = arith.constant 168 : index
    %c0_1161 = arith.constant 0 : index
    %890 = vector.load %arg14[%c168_1160, %c0_1161] : memref<408x128xf32, #tpu.memory_space<vmem>>, vector<8x128xf32>
    tpu.vector_store %arg14[%c168_1160, %c0_1161], %889 {strides = array<i32>} : memref<408x128xf32, #tpu.memory_space<vmem>>, vector<8x128xf32>,
    %c0_1162 = arith.constant 0 : index
    %c150_1163 = arith.constant 150 : index
    %891 = vector.load %arg12[%c0_1162, %c150_1163] : memref<8x384xf32, #tpu.memory_space<vmem>>, vector<8x128xf32>
    %c176_1164 = arith.constant 176 : index
    %c0_1165 = arith.constant 0 : index
    %892 = vector.load %arg14[%c176_1164, %c0_1165] : memref<408x128xf32, #tpu.memory_space<vmem>>, vector<8x128xf32>
    tpu.vector_store %arg14[%c176_1164, %c0_1165], %891 {strides = array<i32>} : memref<408x128xf32, #tpu.memory_space<vmem>>, vector<8x128xf32>,
    %c0_1166 = arith.constant 0 : index
    %c151_1167 = arith.constant 151 : index
    %893 = vector.load %arg12[%c0_1166, %c151_1167] : memref<8x384xf32, #tpu.memory_space<vmem>>, vector<8x128xf32>
    %c184_1168 = arith.constant 184 : index
    %c0_1169 = arith.constant 0 : index
    %894 = vector.load %arg14[%c184_1168, %c0_1169] : memref<408x128xf32, #tpu.memory_space<vmem>>, vector<8x128xf32>
    tpu.vector_store %arg14[%c184_1168, %c0_1169], %893 {strides = array<i32>} : memref<408x128xf32, #tpu.memory_space<vmem>>, vector<8x128xf32>,
    %c0_1170 = arith.constant 0 : index
    %c152_1171 = arith.constant 152 : index
    %895 = vector.load %arg12[%c0_1170, %c152_1171] : memref<8x384xf32, #tpu.memory_space<vmem>>, vector<8x128xf32>
    %c192_1172 = arith.constant 192 : index
    %c0_1173 = arith.constant 0 : index
    %896 = vector.load %arg14[%c192_1172, %c0_1173] : memref<408x128xf32, #tpu.memory_space<vmem>>, vector<8x128xf32>
    tpu.vector_store %arg14[%c192_1172, %c0_1173], %895 {strides = array<i32>} : memref<408x128xf32, #tpu.memory_space<vmem>>, vector<8x128xf32>,
    %c0_1174 = arith.constant 0 : index
    %c153_1175 = arith.constant 153 : index
    %897 = vector.load %arg12[%c0_1174, %c153_1175] : memref<8x384xf32, #tpu.memory_space<vmem>>, vector<8x128xf32>
    %c200_1176 = arith.constant 200 : index
    %c0_1177 = arith.constant 0 : index
    %898 = vector.load %arg14[%c200_1176, %c0_1177] : memref<408x128xf32, #tpu.memory_space<vmem>>, vector<8x128xf32>
    tpu.vector_store %arg14[%c200_1176, %c0_1177], %897 {strides = array<i32>} : memref<408x128xf32, #tpu.memory_space<vmem>>, vector<8x128xf32>,
    %c0_1178 = arith.constant 0 : index
    %c154_1179 = arith.constant 154 : index
    %899 = vector.load %arg12[%c0_1178, %c154_1179] : memref<8x384xf32, #tpu.memory_space<vmem>>, vector<8x128xf32>
    %c208_1180 = arith.constant 208 : index
    %c0_1181 = arith.constant 0 : index
    %900 = vector.load %arg14[%c208_1180, %c0_1181] : memref<408x128xf32, #tpu.memory_space<vmem>>, vector<8x128xf32>
    tpu.vector_store %arg14[%c208_1180, %c0_1181], %899 {strides = array<i32>} : memref<408x128xf32, #tpu.memory_space<vmem>>, vector<8x128xf32>,
    %c0_1182 = arith.constant 0 : index
    %c155_1183 = arith.constant 155 : index
    %901 = vector.load %arg12[%c0_1182, %c155_1183] : memref<8x384xf32, #tpu.memory_space<vmem>>, vector<8x128xf32>
    %c216_1184 = arith.constant 216 : index
    %c0_1185 = arith.constant 0 : index
    %902 = vector.load %arg14[%c216_1184, %c0_1185] : memref<408x128xf32, #tpu.memory_space<vmem>>, vector<8x128xf32>
    tpu.vector_store %arg14[%c216_1184, %c0_1185], %901 {strides = array<i32>} : memref<408x128xf32, #tpu.memory_space<vmem>>, vector<8x128xf32>,
    %c0_1186 = arith.constant 0 : index
    %c156_1187 = arith.constant 156 : index
    %903 = vector.load %arg12[%c0_1186, %c156_1187] : memref<8x384xf32, #tpu.memory_space<vmem>>, vector<8x128xf32>
    %c224_1188 = arith.constant 224 : index
    %c0_1189 = arith.constant 0 : index
    %904 = vector.load %arg14[%c224_1188, %c0_1189] : memref<408x128xf32, #tpu.memory_space<vmem>>, vector<8x128xf32>
    tpu.vector_store %arg14[%c224_1188, %c0_1189], %903 {strides = array<i32>} : memref<408x128xf32, #tpu.memory_space<vmem>>, vector<8x128xf32>,
    %c0_1190 = arith.constant 0 : index
    %c157_1191 = arith.constant 157 : index
    %905 = vector.load %arg12[%c0_1190, %c157_1191] : memref<8x384xf32, #tpu.memory_space<vmem>>, vector<8x128xf32>
    %c232_1192 = arith.constant 232 : index
    %c0_1193 = arith.constant 0 : index
    %906 = vector.load %arg14[%c232_1192, %c0_1193] : memref<408x128xf32, #tpu.memory_space<vmem>>, vector<8x128xf32>
    tpu.vector_store %arg14[%c232_1192, %c0_1193], %905 {strides = array<i32>} : memref<408x128xf32, #tpu.memory_space<vmem>>, vector<8x128xf32>,
    %c0_1194 = arith.constant 0 : index
    %c158_1195 = arith.constant 158 : index
    %907 = vector.load %arg12[%c0_1194, %c158_1195] : memref<8x384xf32, #tpu.memory_space<vmem>>, vector<8x128xf32>
    %c240_1196 = arith.constant 240 : index
    %c0_1197 = arith.constant 0 : index
    %908 = vector.load %arg14[%c240_1196, %c0_1197] : memref<408x128xf32, #tpu.memory_space<vmem>>, vector<8x128xf32>
    tpu.vector_store %arg14[%c240_1196, %c0_1197], %907 {strides = array<i32>} : memref<408x128xf32, #tpu.memory_space<vmem>>, vector<8x128xf32>,
    %c0_1198 = arith.constant 0 : index
    %c159_1199 = arith.constant 159 : index
    %909 = vector.load %arg12[%c0_1198, %c159_1199] : memref<8x384xf32, #tpu.memory_space<vmem>>, vector<8x128xf32>
    %c248_1200 = arith.constant 248 : index
    %c0_1201 = arith.constant 0 : index
    %910 = vector.load %arg14[%c248_1200, %c0_1201] : memref<408x128xf32, #tpu.memory_space<vmem>>, vector<8x128xf32>
    tpu.vector_store %arg14[%c248_1200, %c0_1201], %909 {strides = array<i32>} : memref<408x128xf32, #tpu.memory_space<vmem>>, vector<8x128xf32>,
    %c0_1202 = arith.constant 0 : index
    %c160_1203 = arith.constant 160 : index
    %911 = vector.load %arg12[%c0_1202, %c160_1203] : memref<8x384xf32, #tpu.memory_space<vmem>>, vector<8x128xf32>
    %c256_1204 = arith.constant 256 : index
    %c0_1205 = arith.constant 0 : index
    %912 = vector.load %arg14[%c256_1204, %c0_1205] : memref<408x128xf32, #tpu.memory_space<vmem>>, vector<8x128xf32>
    tpu.vector_store %arg14[%c256_1204, %c0_1205], %911 {strides = array<i32>} : memref<408x128xf32, #tpu.memory_space<vmem>>, vector<8x128xf32>,
    %c0_1206 = arith.constant 0 : index
    %c161_1207 = arith.constant 161 : index
    %913 = vector.load %arg12[%c0_1206, %c161_1207] : memref<8x384xf32, #tpu.memory_space<vmem>>, vector<8x128xf32>
    %c264_1208 = arith.constant 264 : index
    %c0_1209 = arith.constant 0 : index
    %914 = vector.load %arg14[%c264_1208, %c0_1209] : memref<408x128xf32, #tpu.memory_space<vmem>>, vector<8x128xf32>
    tpu.vector_store %arg14[%c264_1208, %c0_1209], %913 {strides = array<i32>} : memref<408x128xf32, #tpu.memory_space<vmem>>, vector<8x128xf32>,
    %c0_1210 = arith.constant 0 : index
    %c162_1211 = arith.constant 162 : index
    %915 = vector.load %arg12[%c0_1210, %c162_1211] : memref<8x384xf32, #tpu.memory_space<vmem>>, vector<8x128xf32>
    %c272_1212 = arith.constant 272 : index
    %c0_1213 = arith.constant 0 : index
    %916 = vector.load %arg14[%c272_1212, %c0_1213] : memref<408x128xf32, #tpu.memory_space<vmem>>, vector<8x128xf32>
    tpu.vector_store %arg14[%c272_1212, %c0_1213], %915 {strides = array<i32>} : memref<408x128xf32, #tpu.memory_space<vmem>>, vector<8x128xf32>,
    %c0_1214 = arith.constant 0 : index
    %c163_1215 = arith.constant 163 : index
    %917 = vector.load %arg12[%c0_1214, %c163_1215] : memref<8x384xf32, #tpu.memory_space<vmem>>, vector<8x128xf32>
    %c280_1216 = arith.constant 280 : index
    %c0_1217 = arith.constant 0 : index
    %918 = vector.load %arg14[%c280_1216, %c0_1217] : memref<408x128xf32, #tpu.memory_space<vmem>>, vector<8x128xf32>
    tpu.vector_store %arg14[%c280_1216, %c0_1217], %917 {strides = array<i32>} : memref<408x128xf32, #tpu.memory_space<vmem>>, vector<8x128xf32>,
    %c0_1218 = arith.constant 0 : index
    %c164_1219 = arith.constant 164 : index
    %919 = vector.load %arg12[%c0_1218, %c164_1219] : memref<8x384xf32, #tpu.memory_space<vmem>>, vector<8x128xf32>
    %c288_1220 = arith.constant 288 : index
    %c0_1221 = arith.constant 0 : index
    %920 = vector.load %arg14[%c288_1220, %c0_1221] : memref<408x128xf32, #tpu.memory_space<vmem>>, vector<8x128xf32>
    tpu.vector_store %arg14[%c288_1220, %c0_1221], %919 {strides = array<i32>} : memref<408x128xf32, #tpu.memory_space<vmem>>, vector<8x128xf32>,
    %c0_1222 = arith.constant 0 : index
    %c165_1223 = arith.constant 165 : index
    %921 = vector.load %arg12[%c0_1222, %c165_1223] : memref<8x384xf32, #tpu.memory_space<vmem>>, vector<8x128xf32>
    %c296_1224 = arith.constant 296 : index
    %c0_1225 = arith.constant 0 : index
    %922 = vector.load %arg14[%c296_1224, %c0_1225] : memref<408x128xf32, #tpu.memory_space<vmem>>, vector<8x128xf32>
    tpu.vector_store %arg14[%c296_1224, %c0_1225], %921 {strides = array<i32>} : memref<408x128xf32, #tpu.memory_space<vmem>>, vector<8x128xf32>,
    %c0_1226 = arith.constant 0 : index
    %c166_1227 = arith.constant 166 : index
    %923 = vector.load %arg12[%c0_1226, %c166_1227] : memref<8x384xf32, #tpu.memory_space<vmem>>, vector<8x128xf32>
    %c304_1228 = arith.constant 304 : index
    %c0_1229 = arith.constant 0 : index
    %924 = vector.load %arg14[%c304_1228, %c0_1229] : memref<408x128xf32, #tpu.memory_space<vmem>>, vector<8x128xf32>
    tpu.vector_store %arg14[%c304_1228, %c0_1229], %923 {strides = array<i32>} : memref<408x128xf32, #tpu.memory_space<vmem>>, vector<8x128xf32>,
    %c0_1230 = arith.constant 0 : index
    %c167_1231 = arith.constant 167 : index
    %925 = vector.load %arg12[%c0_1230, %c167_1231] : memref<8x384xf32, #tpu.memory_space<vmem>>, vector<8x128xf32>
    %c312_1232 = arith.constant 312 : index
    %c0_1233 = arith.constant 0 : index
    %926 = vector.load %arg14[%c312_1232, %c0_1233] : memref<408x128xf32, #tpu.memory_space<vmem>>, vector<8x128xf32>
    tpu.vector_store %arg14[%c312_1232, %c0_1233], %925 {strides = array<i32>} : memref<408x128xf32, #tpu.memory_space<vmem>>, vector<8x128xf32>,
    %c0_1234 = arith.constant 0 : index
    %c168_1235 = arith.constant 168 : index
    %927 = vector.load %arg12[%c0_1234, %c168_1235] : memref<8x384xf32, #tpu.memory_space<vmem>>, vector<8x128xf32>
    %c320_1236 = arith.constant 320 : index
    %c0_1237 = arith.constant 0 : index
    %928 = vector.load %arg14[%c320_1236, %c0_1237] : memref<408x128xf32, #tpu.memory_space<vmem>>, vector<8x128xf32>
    tpu.vector_store %arg14[%c320_1236, %c0_1237], %927 {strides = array<i32>} : memref<408x128xf32, #tpu.memory_space<vmem>>, vector<8x128xf32>,
    %c0_1238 = arith.constant 0 : index
    %c169_1239 = arith.constant 169 : index
    %929 = vector.load %arg12[%c0_1238, %c169_1239] : memref<8x384xf32, #tpu.memory_space<vmem>>, vector<8x128xf32>
    %c328_1240 = arith.constant 328 : index
    %c0_1241 = arith.constant 0 : index
    %930 = vector.load %arg14[%c328_1240, %c0_1241] : memref<408x128xf32, #tpu.memory_space<vmem>>, vector<8x128xf32>
    tpu.vector_store %arg14[%c328_1240, %c0_1241], %929 {strides = array<i32>} : memref<408x128xf32, #tpu.memory_space<vmem>>, vector<8x128xf32>,
    %c0_1242 = arith.constant 0 : index
    %c170_1243 = arith.constant 170 : index
    %931 = vector.load %arg12[%c0_1242, %c170_1243] : memref<8x384xf32, #tpu.memory_space<vmem>>, vector<8x128xf32>
    %c336_1244 = arith.constant 336 : index
    %c0_1245 = arith.constant 0 : index
    %932 = vector.load %arg14[%c336_1244, %c0_1245] : memref<408x128xf32, #tpu.memory_space<vmem>>, vector<8x128xf32>
    tpu.vector_store %arg14[%c336_1244, %c0_1245], %931 {strides = array<i32>} : memref<408x128xf32, #tpu.memory_space<vmem>>, vector<8x128xf32>,
    %c0_1246 = arith.constant 0 : index
    %c171_1247 = arith.constant 171 : index
    %933 = vector.load %arg12[%c0_1246, %c171_1247] : memref<8x384xf32, #tpu.memory_space<vmem>>, vector<8x128xf32>
    %c344_1248 = arith.constant 344 : index
    %c0_1249 = arith.constant 0 : index
    %934 = vector.load %arg14[%c344_1248, %c0_1249] : memref<408x128xf32, #tpu.memory_space<vmem>>, vector<8x128xf32>
    tpu.vector_store %arg14[%c344_1248, %c0_1249], %933 {strides = array<i32>} : memref<408x128xf32, #tpu.memory_space<vmem>>, vector<8x128xf32>,
    %c0_1250 = arith.constant 0 : index
    %c172_1251 = arith.constant 172 : index
    %935 = vector.load %arg12[%c0_1250, %c172_1251] : memref<8x384xf32, #tpu.memory_space<vmem>>, vector<8x128xf32>
    %c352_1252 = arith.constant 352 : index
    %c0_1253 = arith.constant 0 : index
    %936 = vector.load %arg14[%c352_1252, %c0_1253] : memref<408x128xf32, #tpu.memory_space<vmem>>, vector<8x128xf32>
    tpu.vector_store %arg14[%c352_1252, %c0_1253], %935 {strides = array<i32>} : memref<408x128xf32, #tpu.memory_space<vmem>>, vector<8x128xf32>,
    %c0_1254 = arith.constant 0 : index
    %c173_1255 = arith.constant 173 : index
    %937 = vector.load %arg12[%c0_1254, %c173_1255] : memref<8x384xf32, #tpu.memory_space<vmem>>, vector<8x128xf32>
    %c360_1256 = arith.constant 360 : index
    %c0_1257 = arith.constant 0 : index
    %938 = vector.load %arg14[%c360_1256, %c0_1257] : memref<408x128xf32, #tpu.memory_space<vmem>>, vector<8x128xf32>
    tpu.vector_store %arg14[%c360_1256, %c0_1257], %937 {strides = array<i32>} : memref<408x128xf32, #tpu.memory_space<vmem>>, vector<8x128xf32>,
    %c0_1258 = arith.constant 0 : index
    %c174_1259 = arith.constant 174 : index
    %939 = vector.load %arg12[%c0_1258, %c174_1259] : memref<8x384xf32, #tpu.memory_space<vmem>>, vector<8x128xf32>
    %c368_1260 = arith.constant 368 : index
    %c0_1261 = arith.constant 0 : index
    %940 = vector.load %arg14[%c368_1260, %c0_1261] : memref<408x128xf32, #tpu.memory_space<vmem>>, vector<8x128xf32>
    tpu.vector_store %arg14[%c368_1260, %c0_1261], %939 {strides = array<i32>} : memref<408x128xf32, #tpu.memory_space<vmem>>, vector<8x128xf32>,
    %c0_1262 = arith.constant 0 : index
    %c175_1263 = arith.constant 175 : index
    %941 = vector.load %arg12[%c0_1262, %c175_1263] : memref<8x384xf32, #tpu.memory_space<vmem>>, vector<8x128xf32>
    %c376_1264 = arith.constant 376 : index
    %c0_1265 = arith.constant 0 : index
    %942 = vector.load %arg14[%c376_1264, %c0_1265] : memref<408x128xf32, #tpu.memory_space<vmem>>, vector<8x128xf32>
    tpu.vector_store %arg14[%c376_1264, %c0_1265], %941 {strides = array<i32>} : memref<408x128xf32, #tpu.memory_space<vmem>>, vector<8x128xf32>,
    %c0_1266 = arith.constant 0 : index
    %c176_1267 = arith.constant 176 : index
    %943 = vector.load %arg12[%c0_1266, %c176_1267] : memref<8x384xf32, #tpu.memory_space<vmem>>, vector<8x128xf32>
    %c384_1268 = arith.constant 384 : index
    %c0_1269 = arith.constant 0 : index
    %944 = vector.load %arg14[%c384_1268, %c0_1269] : memref<408x128xf32, #tpu.memory_space<vmem>>, vector<8x128xf32>
    tpu.vector_store %arg14[%c384_1268, %c0_1269], %943 {strides = array<i32>} : memref<408x128xf32, #tpu.memory_space<vmem>>, vector<8x128xf32>,
    %c0_1270 = arith.constant 0 : index
    %c177_1271 = arith.constant 177 : index
    %945 = vector.load %arg12[%c0_1270, %c177_1271] : memref<8x384xf32, #tpu.memory_space<vmem>>, vector<8x128xf32>
    %c392_1272 = arith.constant 392 : index
    %c0_1273 = arith.constant 0 : index
    %946 = vector.load %arg14[%c392_1272, %c0_1273] : memref<408x128xf32, #tpu.memory_space<vmem>>, vector<8x128xf32>
    tpu.vector_store %arg14[%c392_1272, %c0_1273], %945 {strides = array<i32>} : memref<408x128xf32, #tpu.memory_space<vmem>>, vector<8x128xf32>,
    %c0_1274 = arith.constant 0 : index
    %c178_1275 = arith.constant 178 : index
    %947 = vector.load %arg12[%c0_1274, %c178_1275] : memref<8x384xf32, #tpu.memory_space<vmem>>, vector<8x128xf32>
    %c400_1276 = arith.constant 400 : index
    %c0_1277 = arith.constant 0 : index
    %948 = vector.load %arg14[%c400_1276, %c0_1277] : memref<408x128xf32, #tpu.memory_space<vmem>>, vector<8x128xf32>
    tpu.vector_store %arg14[%c400_1276, %c0_1277], %947 {strides = array<i32>} : memref<408x128xf32, #tpu.memory_space<vmem>>, vector<8x128xf32>,
    %c0_1278 = arith.constant 0 : index
    %c0_1279 = arith.constant 0 : index
    %949 = vector.load %arg8[%c0_1278, %c0_1279] : memref<8x408xf32, #tpu.memory_space<vmem>>, vector<8x408xf32>
    %c0_1280 = arith.constant 0 : index
    %c0_1281 = arith.constant 0 : index
    %950 = vector.load %arg14[%c0_1280, %c0_1281] : memref<408x128xf32, #tpu.memory_space<vmem>>, vector<408x128xf32>
    %cst_1282 = arith.constant dense<0.000000e+00> : vector<8x128xf32>
    %951 = tpu.matmul %949, %950, %cst_1282 {dimension_numbers = #tpu.dot_dimension_numbers<[1], [0], [0], [1], [0, 0, 1, 1], [], []>} : vector<8x408xf32>, vector<408x128xf32>, vector<8x128xf32> -> vector<8x128xf32>
    %c0_1283 = arith.constant 0 : index
    %c0_1284 = arith.constant 0 : index
    %952 = vector.load %arg9[%c0_1283, %c0_1284] : memref<8x1xf32, #tpu.memory_space<vmem>>, vector<8x1xf32>
    %953 = vector.broadcast %952 : vector<8x1xf32> to vector<8x128xf32>
    %954 = arith.addf %951, %953 : vector<8x128xf32>
    %955 = arith.negf %954 : vector<8x128xf32>
    %956 = math.exp %955 : vector<8x128xf32>
    %cst_1285 = arith.constant 1.000000e+00 : f32
    %957 = vector.broadcast %cst_1285 : f32 to vector<8x128xf32>
    %958 = arith.addf %957, %956 : vector<8x128xf32>
    %959 = arith.divf %957, %958 : vector<8x128xf32>
    %c0_1286 = arith.constant 0 : index
    %c0_1287 = arith.constant 0 : index
    %c0_1288 = arith.constant 0 : index
    %960 = vector.load %arg10[%c0_1286, %c0_1287, %c0_1288] : memref<1x8x128xf32, #tpu.memory_space<vmem>>, vector<1x8x128xf32>
    %961 = vector.shape_cast %960 : vector<1x8x128xf32> to vector<8x128xf32>
    %962 = vector.shape_cast %959 : vector<8x128xf32> to vector<1x8x128xf32>
    tpu.vector_store %arg10[%c0_1286, %c0_1287, %c0_1288], %962 {strides = array<i32>} : memref<1x8x128xf32, #tpu.memory_space<vmem>>, vector<1x8x128xf32>,
    return
  }
  func.func @transform_0(%arg0: i32) -> (i32, i32, i32) {
    %c0_i32 = arith.constant 0 : i32
    %c0_i32_0 = arith.constant 0 : i32
    %c0_i32_1 = arith.constant 0 : i32
    return %arg0, %c0_i32, %c0_i32_0 : i32, i32, i32
  }
  func.func @transform_1(%arg0: i32) -> (i32, i32) {
    %c0_i32 = arith.constant 0 : i32
    %c0_i32_0 = arith.constant 0 : i32
    %c0_i32_1 = arith.constant 0 : i32
    return %c0_i32, %c0_i32_0 : i32, i32
  }
  func.func @transform_2(%arg0: i32) -> (i32, i32) {
    %c0_i32 = arith.constant 0 : i32
    %c0_i32_0 = arith.constant 0 : i32
    %c0_i32_1 = arith.constant 0 : i32
    return %c0_i32, %c0_i32_0 : i32, i32
  }
  func.func @transform_3(%arg0: i32) -> (i32, i32) {
    %c0_i32 = arith.constant 0 : i32
    %c0_i32_0 = arith.constant 0 : i32
    %c0_i32_1 = arith.constant 0 : i32
    return %c0_i32, %c0_i32_0 : i32, i32
  }
  func.func @transform_4(%arg0: i32) -> (i32, i32) {
    %c0_i32 = arith.constant 0 : i32
    %c0_i32_0 = arith.constant 0 : i32
    %c0_i32_1 = arith.constant 0 : i32
    return %c0_i32, %c0_i32_0 : i32, i32
  }
  func.func @transform_5(%arg0: i32) -> (i32, i32) {
    %c0_i32 = arith.constant 0 : i32
    %c0_i32_0 = arith.constant 0 : i32
    %c0_i32_1 = arith.constant 0 : i32
    return %c0_i32, %c0_i32_0 : i32, i32
  }
  func.func @transform_6(%arg0: i32) -> (i32, i32) {
    %c0_i32 = arith.constant 0 : i32
    %c0_i32_0 = arith.constant 0 : i32
    %c0_i32_1 = arith.constant 0 : i32
    return %c0_i32, %c0_i32_0 : i32, i32
  }
  func.func @transform_7(%arg0: i32) -> (i32, i32) {
    %c0_i32 = arith.constant 0 : i32
    %c0_i32_0 = arith.constant 0 : i32
    %c0_i32_1 = arith.constant 0 : i32
    return %c0_i32, %c0_i32_0 : i32, i32
  }
  func.func @transform_8(%arg0: i32) -> (i32, i32) {
    %c0_i32 = arith.constant 0 : i32
    %c0_i32_0 = arith.constant 0 : i32
    %c0_i32_1 = arith.constant 0 : i32
    return %c0_i32, %c0_i32_0 : i32, i32
  }
  func.func @transform_9(%arg0: i32) -> (i32, i32, i32) {
    %c0_i32 = arith.constant 0 : i32
    %c0_i32_0 = arith.constant 0 : i32
    %c0_i32_1 = arith.constant 0 : i32
    return %arg0, %c0_i32, %c0_i32_0 : i32, i32, i32
  }
}

</mosaic_0001>

<bundles_post_ra>
// kernel: _encoder_forward_impl.1
= control target key start
LH: loop header
LB: loop body
LE: loop exit
PB: predicated region body
PF: predicated region fallthrough
CT: control target
= control target key end

     0   :  { %s7407_s30 = smov 0   ;;  %s9208_s0 = inlined_call_operand.vmem [shape: f32[2,8,512], index: 0, kind: input, shape index: {}]   ;;  %s9209_s1 = inlined_call_operand.vmem [shape: f32[8,1608], index: 1, kind: input, shape index: {}]   ;;  %s9210_s2 = inlined_call_operand.vmem [shape: f32[8,1], index: 2, kind: input, shape index: {}]   ;;  %s9211_s3 = inlined_call_operand.vmem [shape: f32[8,408], index: 3, kind: input, shape index: {}]   ;;  %s9212_s4 = inlined_call_operand.vmem [shape: f32[8,1], index: 4, kind: input, shape index: {}]   ;;  %s9213_s5 = inlined_call_operand.vmem [shape: f32[8,408], index: 5, kind: input, shape index: {}]   ;;  %s9214_s6 = inlined_call_operand.vmem [shape: f32[8,1], index: 6, kind: input, shape index: {}]   ;;  %s9215_s7 = inlined_call_operand.vmem [shape: f32[8,408], index: 7, kind: input, shape index: {}]   ;;  %s9216_s8 = inlined_call_operand.vmem [shape: f32[8,1], index: 8, kind: input, shape index: {}]   ;;  %s9217_s9 = inlined_call_operand.vmem [shape: f32[2,8,128], index: 9, kind: output, shape index: {}]  }
   0x1   :  { %9447 = sst [smem:[#allocation8_spill]] %s9208_s0 }
   0x2   :  { %9448 = sst [smem:[#allocation9_spill]] %s9209_s1 }
   0x3   :  { %9449 = sst [smem:[#allocation10_spill]] %s9210_s2 }
   0x4   :  { %9450 = sst [smem:[#allocation11_spill]] %s9211_s3 }
   0x5   :  { %9451 = sst [smem:[#allocation12_spill]] %s9212_s4 }
   0x6   :  { %9452 = sst [smem:[#allocation13_spill]] %s9213_s5 }
   0x7   :  { %9453 = sst [smem:[#allocation14_spill]] %s9214_s6 }
   0x8   :  { %9454 = sst [smem:[#allocation15_spill]] %s9215_s7 }
   0x9   :  { %9455 = sst [smem:[#allocation16_spill]] %s9216_s8 }
   0xa   :  { %9456 = sst [smem:[#allocation17_spill]] %s9217_s9 }
   0xb LB: > { %9457 = sst [smem:[#allocation6_spill]] %s7226_s30  ;;  %s5313_s10 = sadd.s32 4294967295, %s7226_s30   ;;  %s7226_s30 = sphi %s7407_s30, %s19_s30  }
   0xc   : > { %p5317_p0 = scmp.ge.s32.totalorder %s7226_s30, 1  ;;  %p287_p1 = scmp.lt.s32.totalorder %s7226_s30, 3 }
   0xe   : > { %p288_p2 = pnand %p5317_p0, %p287_p1 }
  0x10   : > { %291 = sbr.rel (%p288_p2) target bundleno = 2025 (0x7e9), region = 56 }
  0x15   : > { %p322_p3 = scmp.lt.s32.totalorder %s5313_s10, 1  ;;  %s9459_s0 = sld [smem:[#allocation8_spill]]  ;;  %vm522_vm0 = vcmask 80896   ;;  %vm510_vm1 = vcmask 89088   ;;  %vm498_vm2 = vcmask 97280   ;;  %vm486_vm3 = vcmask 105472  }
  0x16   : > { %s9428_s15 = smov 23   ;;  %s9423_s16 = smov 25   ;;  %vm474_vm4 = vcmask 113664   ;;  %vm462_vm5 = vcmask 121856   ;;  %vm450_vm6 = vcmask 130048   ;;  %vm438_vm7 = vcmask 138240  }
  0x17   : > { %s9800_s10 = smov (!%p322_p3, %s5313_s10), 1  ;;  %s9419_s17 = smov 21   ;;  %vm426_vm8 = vcmask 146432   ;;  %vm414_vm9 = vcmask 154624   ;;  %vm9445_vm10 = vcmask 162816   ;;  %vm9362_vm11 = vcmask 171008  }
  0x18   : > { %9458 = sst [smem:[#allocation7_spill]] %s9800_s10  ;;  %s5328_s11 = sshll.u32 %s9800_s10, 5  ;;  %vm9337_vm12 = vcmask 179200   ;;  %vm9334_vm13 = vcmask 187392   ;;  %vm9333_vm14 = vcmask 195584   ;;  %vm9332_vm15 = vcmask 203776  }
  0x19   : > { %s9417_s18 = smov 22   ;;  %s9425_s19 = smov 24  }
  0x1a   : > { %s9421_s20 = smov 20   ;;  %s9413_s21 = smov 18  }
  0x1b   : > { %s7421_s14 = scalar_lea.vmem %s9459_s0, %s5328_s11  ;;  %s9411_s22 = smov 19  }
  0x1c   : > { %v358_v0 = vld [vmem:[%s7421_s14] sm:$0xff]  ;;  %v359_v1 = vld [vmem:[%s7421_s14 + $0x8] sm:$0xff]  ;;  %s9415_s23 = smov 17   ;;  %s9226_s24 = smov 15   ;;  %v7449_v3 = vld [vmem:[%s7421_s14 + $0x10] sm:$0xff] }
  0x1d   : > { %v5479_v2 = vpack.i.bf16 %v359_v1, %v358_v0  ;;  %s9407_s25 = smov 16   ;;  %s9218_s26 = smov 14   ;;  %v7453_v4 = vpack.i.bf16 %v7449_v3, %v359_v1 }
  0x1e   : > { %s9220_s27 = smov 12   ;;  %s9222_s28 = smov 13  }
  0x1f   : > { %5480 = vrot.lane.b32.xlu1 %v5479_v2, %s9428_s15  ;;  %5470 = vrot.lane.b32.xlu0 %v5479_v2, %s9423_s16  ;;  %s9224_s29 = smov 11   ;;  %s9228_s11 = smov 9  }
  0x20   : > { %5490 = vrot.lane.b32.xlu2 %v5479_v2, %s9419_s17  ;;  %s9405_s12 = smov 10   ;;  %s9232_s13 = smov 8  }
  0x21   : > { %s9478_s0 = smov 123   ;;  %s9479_s30 = smov 121  }
  0x22   : > { %s9480_s9 = smov 119   ;;  %s9481_s10 = smov 120  }
  0x23   : > { %s9482_s7 = smov 118   ;;  %s9483_s8 = smov 116  }
  0x24   : > { %s9484_s5 = smov 117   ;;  %s9485_s6 = smov 115  }
  0x25   : > { %s9486_s3 = smov 113   ;;  %s9487_s4 = smov 114  }
  0x26   : > { %s9495_s1 = sld [smem:[#allocation9_spill]] }
  0x27   : > { %5485 = vrot.lane.b32.xlu1 %v5479_v2, %s9417_s18  ;;  %5475 = vrot.lane.b32.xlu0 %v5479_v2, %s9425_s19  ;;  %s9552_s2 = sld [smem:[#allocation10_spill]] }
  0x28   : > { %5495 = vrot.lane.b32.xlu2 %v5479_v2, %s9421_s20 }
  0x2f   : > { %5505 = vrot.lane.b32.xlu1 %v5479_v2, %s9413_s21  ;;  %5500 = vrot.lane.b32.xlu0 %v5479_v2, %s9411_s22 }
  0x30   : > { %5510 = vrot.lane.b32.xlu2 %v5479_v2, %s9415_s23 }
  0x37   : > { %5520 = vrot.lane.b32.xlu1 %v5479_v2, %s9226_s24  ;;  %5515 = vrot.lane.b32.xlu0 %v5479_v2, %s9407_s25  ;;  %s9238_s24 = smov 4  }
  0x38   : > { %5525 = vrot.lane.b32.xlu2 %v5479_v2, %s9218_s26  ;;  %s9230_s26 = smov 6  }
  0x3f   : > { %5535 = vrot.lane.b32.xlu1 %v5479_v2, %s9220_s27  ;;  %5530 = vrot.lane.b32.xlu0 %v5479_v2, %s9222_s28  ;;  %s9409_s27 = smov 7   ;;  %s9234_s28 = smov 5  }
  0x40   : > { %5540 = vrot.lane.b32.xlu2 %v5479_v2, %s9224_s29  ;;  %s9236_s29 = smov 3  }
  0x47   : > { %5550 = vrot.lane.b32.xlu1 %v5479_v2, %s9228_s11  ;;  %5545 = vrot.lane.b32.xlu0 %v5479_v2, %s9405_s12  ;;  %s9240_s11 = smov 2  }
  0x48   : > { %5555 = vrot.lane.b32.xlu2 %v5479_v2, %s9232_s13  ;;  %s9244_s13 = smov 1  }
  0x4f   : > { %5565 = vrot.lane.b32.xlu1 %v5479_v2, %s9230_s26  ;;  %5560 = vrot.lane.b32.xlu0 %v5479_v2, %s9409_s27  ;;  %s9242_s26 = smov 127  }
  0x50   : > { %5570 = vrot.lane.b32.xlu2 %v5479_v2, %s9234_s28  ;;  %s9246_s28 = smov 126  }
  0x57   : > { %5580 = vrot.lane.b32.xlu1 %v5479_v2, %s9236_s29  ;;  %5575 = vrot.lane.b32.xlu0 %v5479_v2, %s9238_s24  ;;  %s9248_s29 = smov 124   ;;  %s9250_s24 = smov 125  }
  0x58   : > { %5585 = vrot.lane.b32.xlu2 %v5479_v2, %s9240_s11  ;;  %s9252_s11 = smov 123  }
  0x5f   : > { %5595 = vrot.lane.b32.xlu1 %v7453_v4, %s9242_s26  ;;  %5590 = vrot.lane.b32.xlu0 %v5479_v2, %s9244_s13  ;;  %s9254_s26 = smov 121   ;;  %s9256_s13 = smov 122  }
  0x60   : > { %5600 = vrot.lane.b32.xlu2 %v7453_v4, %s9246_s28  ;;  %s9258_s28 = smov 120  }
  0x67   : > { %5610 = vrot.lane.b32.xlu1 %v7453_v4, %s9248_s29  ;;  %5605 = vrot.lane.b32.xlu0 %v7453_v4, %s9250_s24  ;;  %s9260_s29 = smov 118   ;;  %s9264_s24 = smov 119  }
  0x68   : > { %5615 = vrot.lane.b32.xlu2 %v7453_v4, %s9252_s11  ;;  %s9262_s11 = smov 117  }
  0x6f   : > { %5625 = vrot.lane.b32.xlu1 %v7453_v4, %s9254_s26  ;;  %5620 = vrot.lane.b32.xlu0 %v7453_v4, %s9256_s13  ;;  %s9266_s26 = smov 115   ;;  %s9270_s13 = smov 116  }
  0x70   : > { %5630 = vrot.lane.b32.xlu2 %v7453_v4, %s9258_s28  ;;  %s9268_s28 = smov 114  }
  0x77   : > { %5640 = vrot.lane.b32.xlu1 %v7453_v4, %s9260_s29  ;;  %5635 = vrot.lane.b32.xlu0 %v7453_v4, %s9264_s24  ;;  %s9274_s29 = smov 112   ;;  %s9272_s24 = smov 111  }
  0x78   : > { %5645 = vrot.lane.b32.xlu2 %v7453_v4, %s9262_s11  ;;  %s9386_s11 = smov 113  }
  0x7a   : > { %v7478_v5 = vpop.permute.xlu2 %5490 }
  0x7b   : > { %v5493_v63 = vunpack.i.h.bf16 %v7478_v5  ;;  %v5492_v0 = vunpack.i.l.bf16 %v7478_v5 }
  0x7f   : > { %5655 = vrot.lane.b32.xlu1 %v7453_v4, %s9266_s26  ;;  %5650 = vrot.lane.b32.xlu0 %v7453_v4, %s9270_s13  ;;  %s9276_s26 = smov 109   ;;  %s9278_s13 = smov 108  }
  0x80   : > { %5660 = vrot.lane.b32.xlu2 %v7453_v4, %s9268_s28  ;;  %s9280_s28 = smov 110  }
  0x82   : > { %v7486_v6 = vpop.permute.xlu2 %5495 }
  0x83   : > { %v5498_v60 = vunpack.i.h.bf16 %v7486_v6  ;;  %v5497_v61 = vunpack.i.l.bf16 %v7486_v6 }
  0x87   : > { %5670 = vrot.lane.b32.xlu1 %v7453_v4, %s9274_s29  ;;  %5665 = vrot.lane.b32.xlu0 %v7453_v4, %s9386_s11  ;;  %s9286_s29 = smov 107   ;;  %s7350_s11 = smov 30  }
  0x88   : > { %5675 = vrot.lane.b32.xlu2 %v7453_v4, %s9272_s24  ;;  %s9282_s24 = smov 106  }
  0x8a   : > { %v7494_v7 = vpop.permute.xlu2 %5510 }
  0x8b   : > { %v5513_v48 = vunpack.i.h.bf16 %v7494_v7  ;;  %v5512_v49 = vunpack.i.l.bf16 %v7494_v7 }
  0x8d   : > { %v439_v59 = vsel %vm438_vm7, %v5512_v49, %v5513_v48 }
  0x8f   : > { %5685 = vrot.lane.b32.xlu1 %v7453_v4, %s9276_s26  ;;  %5680 = vrot.lane.b32.xlu0 %v7453_v4, %s9280_s28  ;;  %s9284_s26 = smov 105   ;;  %s9292_s28 = smov 104  }
  0x90   : > { %5690 = vrot.lane.b32.xlu2 %v7453_v4, %s9278_s13  ;;  %s9288_s13 = smov 103  }
  0x91   : > { %v7502_v8 = vpop.permute.xlu1 %5480  ;;  %v7504_v9 = vpop.permute.xlu0 %5470 }
  0x92   : > { %v7506_v10 = vpop.permute.xlu2 %5525 }
  0x93   : > { %v5528_v37 = vunpack.i.h.bf16 %v7506_v10  ;;  %v5527_v38 = vunpack.i.l.bf16 %v7506_v10  ;;  %v403_v10 = vsel %vm9445_vm10, %v5497_v61, %v5498_v60 }
  0x95   : > { %v475_v47 = vsel %vm474_vm4, %v5527_v38, %v5528_v37 }
  0x97   : > { %5700 = vrot.lane.b32.xlu1 %v7453_v4, %s9282_s24  ;;  %5695 = vrot.lane.b32.xlu0 %v7453_v4, %s9286_s29  ;;  %s9290_s24 = smov 102   ;;  %s9298_s29 = smov 101  }
  0x98   : > { %5705 = vrot.lane.b32.xlu2 %v7453_v4, %s9284_s26  ;;  %s9294_s26 = smov 100  }
  0x99   : > { %v7514_v11 = vpop.permute.xlu1 %5485  ;;  %v7516_v12 = vpop.permute.xlu0 %5475 }
  0x9a   : > { %v5541_v13 = vpop.permute.xlu2 %5540  ;;  %v5488_v2 = vunpack.i.h.bf16 %v7514_v11  ;;  %v5487_v5 = vunpack.i.l.bf16 %v7514_v11  ;;  %v5478_v11 = vunpack.i.h.bf16 %v7516_v12 }
  0x9b   : > { %v5543_v23 = vunpack.i.h.bf16 %v5541_v13  ;;  %v5542_v24 = vunpack.i.l.bf16 %v5541_v13 }
  0x9d   : > { %v511_v33 = vsel %vm510_vm1, %v5542_v24, %v5543_v23  ;;  %v5472_v24 = vunpack.i.l.bf16 %v7504_v9 }
  0x9f   : > { %5715 = vrot.lane.b32.xlu1 %v7453_v4, %s9288_s13  ;;  %5710 = vrot.lane.b32.xlu0 %v7453_v4, %s9292_s28  ;;  %s9296_s13 = smov 99   ;;  %s9384_s28 = smov 98  }
  0xa0   : > { %5720 = vrot.lane.b32.xlu2 %v7453_v4, %s9290_s24  ;;  %s9300_s24 = smov 97  }
  0xa1   : > { %v7524_v14 = vpop.permute.xlu1 %5505  ;;  %v7526_v15 = vpop.permute.xlu0 %5500 }
  0xa2   : > { %v7528_v16 = vpop.permute.xlu2 %5555  ;;  %v5508_v51 = vunpack.i.h.bf16 %v7524_v14  ;;  %v5507_v52 = vunpack.i.l.bf16 %v7524_v14  ;;  %v5503_v57 = vunpack.i.h.bf16 %v7526_v15  ;;  %v5502_v58 = vunpack.i.l.bf16 %v7526_v15 }
  0xa3   : > { %v5483_v14 = vunpack.i.h.bf16 %v7502_v8  ;;  %v5482_v15 = vunpack.i.l.bf16 %v7502_v8  ;;  %v5473_v8 = vunpack.i.h.bf16 %v7504_v9 }
  0xa4   : > { %v427_v62 = vsel %vm426_vm8, %v5507_v52, %v5508_v51  ;;  %v415_v1 = vsel %vm414_vm9, %v5502_v58, %v5503_v57 }
  0xa7   : > { %5730 = vrot.lane.b32.xlu1 %v7453_v4, %s9294_s26  ;;  %5725 = vrot.lane.b32.xlu0 %v7453_v4, %s9298_s29  ;;  %s9330_s26 = smov 96   ;;  %s9306_s29 = smov 95  }
  0xa8   : > { %5735 = vrot.lane.b32.xlu2 %v7453_v4, %s9296_s13  ;;  %s9304_s13 = smov 94  }
  0xa9   : > { %v7536_v17 = vpop.permute.xlu1 %5520  ;;  %v7538_v18 = vpop.permute.xlu0 %5515 }
  0xaa   : > { %v7540_v19 = vpop.permute.xlu2 %5570  ;;  %v5523_v42 = vunpack.i.h.bf16 %v7536_v17  ;;  %v5522_v43 = vunpack.i.l.bf16 %v7536_v17  ;;  %v5518_v45 = vunpack.i.h.bf16 %v7538_v18  ;;  %v5517_v46 = vunpack.i.l.bf16 %v7538_v18  ;;  %v7629_v18 = vld [vmem:[%s7421_s14 + $0x8] sm:$0xff] }
  0xab   : > { %v391_v17 = vsel %vm9362_vm11, %v5492_v0, %v5493_v63  ;;  %v7636_v23 = vpack.i.bf16 %v7449_v3, %v7629_v18  ;;  %vm9366_vm11 = vcmask 941056  }
  0xac   : > { %v463_v50 = vsel %vm462_vm5, %v5522_v43, %v5523_v42  ;;  %v451_v55 = vsel %vm450_vm6, %v5517_v46, %v5518_v45 }
  0xaf   : > { %5745 = vrot.lane.b32.xlu1 %v7453_v4, %s9300_s24  ;;  %5740 = vrot.lane.b32.xlu0 %v7453_v4, %s9384_s28  ;;  %s9302_s24 = smov 93   ;;  %s7349_s28 = smov 32  }
  0xb0   : > { %5750 = vrot.lane.b32.xlu2 %v7453_v4, %s9330_s26  ;;  %s9338_s26 = smov 78  }
  0xb1   : > { %v5536_v20 = vpop.permute.xlu1 %5535  ;;  %v5531_v21 = vpop.permute.xlu0 %5530 }
  0xb2   : > { %v7548_v22 = vpop.permute.xlu2 %5585  ;;  %v5538_v30 = vunpack.i.h.bf16 %v5536_v20  ;;  %v5537_v31 = vunpack.i.l.bf16 %v5536_v20  ;;  %v5533_v34 = vunpack.i.h.bf16 %v5531_v21  ;;  %v5532_v35 = vunpack.i.l.bf16 %v5531_v21 }
  0xb3   : > { %v5477_v20 = vunpack.i.l.bf16 %v7516_v12  ;;  %v379_v21 = vsel %vm9337_vm12, %v5487_v5, %v5488_v2  ;;  %v367_v12 = vsel %vm9334_vm13, %v5482_v15, %v5483_v14  ;;  %vm9340_vm13 = vcmask 1014784  }
  0xb4   : > { %v499_v36 = vsel %vm498_vm2, %v5537_v31, %v5538_v30  ;;  %v487_v44 = vsel %vm486_vm3, %v5532_v35, %v5533_v34  ;;  %vm9341_vm12 = vcmask 1022976   ;;  %v5588_v61 = vunpack.i.h.bf16 %v7548_v22 }
  0xb5   : > { %v355_v9 = vsel %vm9333_vm14, %v5477_v20, %v5478_v11  ;;  %vm9339_vm14 = vcmask 1006592   ;;  %v5573_v14 = vunpack.i.h.bf16 %v7540_v19  ;;  %v5572_v15 = vunpack.i.l.bf16 %v7540_v19 }
  0xb7   : > { %5760 = vrot.lane.b32.xlu1 %v7453_v4, %s9304_s13  ;;  %5755 = vrot.lane.b32.xlu0 %v7453_v4, %s9306_s29  ;;  %s9312_s13 = smov 92   ;;  %s9308_s29 = smov 90  }
  0xb8   : > { %5765 = vrot.lane.b32.xlu2 %v7453_v4, %s9302_s24  ;;  %s9310_s24 = smov 91  }
  0xb9   : > { %v7556_v25 = vpop.permute.xlu1 %5550  ;;  %v5546_v26 = vpop.permute.xlu0 %5545 }
  0xba   : > { %v5548_v27 = vunpack.i.h.bf16 %v5546_v26  ;;  %v5547_v28 = vunpack.i.l.bf16 %v5546_v26  ;;  %v7558_v29 = vpop.permute.xlu2 %5600 }
  0xbb   : > { %v5603_v45 = vunpack.i.h.bf16 %v7558_v29  ;;  %v5602_v46 = vunpack.i.l.bf16 %v7558_v29 }
  0xbc   : > { %v523_v32 = vsel %vm522_vm0, %v5547_v28, %v5548_v27  ;;  %v343_v28 = vsel %vm9332_vm15, %v5472_v24, %v5473_v8  ;;  %vm9344_vm15 = vcmask 998400   ;;  %v5557_v24 = vunpack.i.l.bf16 %v7528_v16 }
  0xbd   : > { %2877 = vmatpush.msra.mxu0 %v523_v32 }
  0xbf   : > { %5775 = vrot.lane.b32.xlu1 %v7453_v4, %s9310_s24  ;;  %5770 = vrot.lane.b32.xlu0 %v7453_v4, %s9312_s13  ;;  %s9318_s24 = smov 89   ;;  %s9314_s13 = smov 87  }
  0xc0   : > { %2878 = vmatpush.msra.mxu0 %v511_v33  ;;  %5780 = vrot.lane.b32.xlu2 %v7453_v4, %s9308_s29  ;;  %s9316_s29 = smov 88  }
  0xc1   : > { %v7571_v39 = vpop.permute.xlu1 %5565  ;;  %v7573_v40 = vpop.permute.xlu0 %5560 }
  0xc2   : > { %2879 = vmatpush.msra.mxu0 %v499_v36  ;;  %v7575_v41 = vpop.permute.xlu2 %5615 }
  0xc3   : > { %v5618_v30 = vunpack.i.h.bf16 %v7575_v41  ;;  %v5617_v31 = vunpack.i.l.bf16 %v7575_v41 }
  0xc4   : > { %2880 = vmatpush.msra.mxu0 %v487_v44 }
  0xc5   : > { %v693_v42 = vsel %vm9339_vm14, %v5617_v31, %v5618_v30  ;;  %vm9342_vm14 = vcmask 1031168  }
  0xc6   : > { %2881 = vmatpush.msra.mxu0 %v475_v47  ;;  %v657_v29 = vsel %vm9342_vm14, %v5602_v46, %v5603_v45  ;;  %vm9346_vm14 = vcmask 15360  }
  0xc7   : > { %5790 = vrot.lane.b32.xlu1 %v7453_v4, %s9316_s29  ;;  %5785 = vrot.lane.b32.xlu0 %v7453_v4, %s9318_s24  ;;  %s9324_s29 = smov 86   ;;  %s9320_s24 = smov 84  }
  0xc8   : > { %2882 = vmatpush.msra.mxu0 %v463_v50  ;;  %5795 = vrot.lane.b32.xlu2 %v7453_v4, %s9314_s13  ;;  %s9322_s13 = smov 85  }
  0xc9   : > { %v7594_v53 = vpop.permute.xlu1 %5580  ;;  %v7596_v54 = vpop.permute.xlu0 %5575 }
  0xca   : > { %2883 = vmatpush.msra.mxu0 %v451_v55  ;;  %v7599_v56 = vpop.permute.xlu2 %5630  ;;  %v7681_v55 = vld [vmem:[%s7421_s14 + $0x10] sm:$0xff]  ;;  %v5583_v2 = vunpack.i.h.bf16 %v7594_v53  ;;  %v5582_v5 = vunpack.i.l.bf16 %v7594_v53 }
  0xcb   : > { %v7686_v57 = vpack.i.bf16 %v7681_v55, %v7629_v18 }
  0xcc   : > { %2884 = vmatpush.msra.mxu0 %v439_v59 }
  0xce   : > { %2885 = vmatpush.msra.mxu0 %v427_v62  ;;  %v5587_v62 = vunpack.i.l.bf16 %v7548_v22  ;;  %v5577_v22 = vunpack.i.l.bf16 %v7596_v54 }
  0xcf   : > { %5805 = vrot.lane.b32.xlu1 %v7453_v4, %s9322_s13  ;;  %5800 = vrot.lane.b32.xlu0 %v7453_v4, %s9324_s29  ;;  %s9328_s13 = smov 83   ;;  %s9350_s29 = smov 81  }
  0xd0   : > { %2886 = vmatpush.msra.mxu0 %v415_v1  ;;  %5810 = vrot.lane.b32.xlu2 %v7453_v4, %s9320_s24  ;;  %s9326_s24 = smov 82  }
  0xd1   : > { %v7618_v6 = vpop.permute.xlu1 %5595  ;;  %v7620_v7 = vpop.permute.xlu0 %5590 }
  0xd2   : > { %2887 = vmatpush.msra.mxu0 %v403_v10  ;;  %v7623_v13 = vpop.permute.xlu2 %5645  ;;  %v5598_v50 = vunpack.i.h.bf16 %v7618_v6  ;;  %v5597_v51 = vunpack.i.l.bf16 %v7618_v6  ;;  %v5593_v58 = vunpack.i.h.bf16 %v7620_v7  ;;  %v5592_v59 = vunpack.i.l.bf16 %v7620_v7 }
  0xd3   : > { %v5578_v7 = vunpack.i.h.bf16 %v7596_v54  ;;  %v619_v10 = vsel %vm9346_vm14, %v5587_v62, %v5588_v61  ;;  %v5568_v54 = vunpack.i.h.bf16 %v7571_v39  ;;  %vm9355_vm14 = vcmask 48128  }
  0xd4   : > { %2888 = vmatpush.msra.mxu0 %v391_v17  ;;  %v5567_v17 = vunpack.i.l.bf16 %v7571_v39  ;;  %v5558_v39 = vunpack.i.h.bf16 %v7528_v16 }
  0xd6   : > { %2889 = vmatpush.msra.mxu0 %v379_v21  ;;  %v5563_v21 = vunpack.i.h.bf16 %v7573_v40 }
  0xd7   : > { %5820 = vrot.lane.b32.xlu1 %v7453_v4, %s9326_s24  ;;  %5815 = vrot.lane.b32.xlu0 %v7453_v4, %s9328_s13  ;;  %s9336_s24 = smov 79   ;;  %s9335_s13 = smov 80  }
  0xd8   : > { %2890 = vmatpush.msra.mxu0 %v367_v12  ;;  %5825 = vrot.lane.b32.xlu2 %v7636_v23, %s9350_s29  ;;  %v571_v12 = vsel %vm9355_vm14, %v5567_v17, %v5568_v54  ;;  %s7317_s29 = smov 63   ;;  %vm9359_vm14 = vcmask 891904  }
  0xd9   : > { %v5611_v3 = vpop.permute.xlu1 %5610  ;;  %v5606_v26 = vpop.permute.xlu0 %5605 }
  0xda   : > { %2891 = vmatpush.msra.mxu0 %v355_v9  ;;  %v7648_v27 = vpop.permute.xlu2 %5660  ;;  %v5613_v37 = vunpack.i.h.bf16 %v5611_v3  ;;  %v5612_v38 = vunpack.i.l.bf16 %v5611_v3  ;;  %v5608_v43 = vunpack.i.h.bf16 %v5606_v26  ;;  %v5607_v44 = vunpack.i.l.bf16 %v5606_v26 }
  0xdb   : > { %v5553_v3 = vunpack.i.h.bf16 %v7556_v25  ;;  %v5552_v26 = vunpack.i.l.bf16 %v7556_v25 }
  0xdc   : > { %2892 = vmatpush.msra.mxu0 %v343_v28  ;;  %v681_v41 = vsel %vm9340_vm13, %v5612_v38, %v5613_v37  ;;  %v669_v52 = vsel %vm9341_vm12, %v5607_v44, %v5608_v43  ;;  %vm9343_vm13 = vcmask 1039360   ;;  %vm9345_vm12 = vcmask 7168  }
  0xdd   : > { %v645_v60 = vsel %vm9343_vm13, %v5597_v51, %v5598_v50  ;;  %v631_v6 = vsel %vm9345_vm12, %v5592_v59, %v5593_v58  ;;  %vm9347_vm13 = vcmask 23552   ;;  %vm9349_vm12 = vcmask 39936  }
  0xde   : > { %v607_v53 = vsel %vm9347_vm13, %v5582_v5, %v5583_v2  ;;  %v583_v8 = vsel %vm9349_vm12, %v5572_v15, %v5573_v14  ;;  %vm9352_vm13 = vcmask 56320   ;;  %vm9353_vm12 = vcmask 72704  }
  0xdf   : > { %5835 = vrot.lane.b32.xlu1 %v7453_v4, %s9336_s24  ;;  %5830 = vrot.lane.b32.xlu0 %v7453_v4, %s9335_s13  ;;  %s7303_s13 = smov 76   ;;  %s7304_s24 = smov 77   ;;  %v535_v25 = vsel %vm9353_vm12, %v5552_v26, %v5553_v3  ;;  %vm9357_vm12 = vcmask 875520  }
  0xe0   : > { %5840 = vrot.lane.b32.xlu2 %v7636_v23, %s9338_s26  ;;  %s7305_s26 = smov 75  }
  0xe1   : > { %v7659_v32 = vpop.permute.xlu1 %5625  ;;  %v5621_v33 = vpop.permute.xlu0 %5620 }
  0xe2   : > { %v5623_v34 = vunpack.i.h.bf16 %v5621_v33  ;;  %v5622_v35 = vunpack.i.l.bf16 %v5621_v33  ;;  %v7661_v36 = vpop.permute.xlu2 %5675 }
  0xe3   : > { %v5678_v59 = vunpack.i.h.bf16 %v7661_v36 }
  0xe4   : > { %v705_v4 = vsel %vm9344_vm15, %v5622_v35, %v5623_v34  ;;  %vm9348_vm15 = vcmask 31744  }
  0xe5   : > { %2897 = vmatpush.msra.mxu1 %v705_v4  ;;  %v595_v11 = vsel %vm9348_vm15, %v5577_v22, %v5578_v7  ;;  %vm9354_vm15 = vcmask 64512   ;;  %v5663_v22 = vunpack.i.h.bf16 %v7648_v27 }
  0xe6   : > { %v547_v28 = vsel %vm9354_vm15, %v5557_v24, %v5558_v39  ;;  %vm9358_vm15 = vcmask 883712   ;;  %v5648_v24 = vunpack.i.h.bf16 %v7623_v13 }
  0xe7   : > { %5850 = vrot.lane.b32.xlu1 %v7636_v23, %s7303_s13  ;;  %5845 = vrot.lane.b32.xlu0 %v7636_v23, %s7304_s24  ;;  %s7306_s24 = smov 73   ;;  %s7308_s13 = smov 72  }
  0xe8   : > { %2898 = vmatpush.msra.mxu1 %v693_v42  ;;  %5855 = vrot.lane.b32.xlu2 %v7636_v23, %s7305_s26  ;;  %s7307_s26 = smov 74  }
  0xe9   : > { %v7671_v47 = vpop.permute.xlu1 %5640  ;;  %v7673_v48 = vpop.permute.xlu0 %5635 }
  0xea   : > { %2899 = vmatpush.msra.mxu1 %v681_v41  ;;  %v7675_v49 = vpop.permute.xlu2 %5690  ;;  %v5642_v3 = vunpack.i.l.bf16 %v7671_v47 }
  0xeb   : > { %v5693_v43 = vunpack.i.h.bf16 %v7675_v49  ;;  %v5692_v44 = vunpack.i.l.bf16 %v7675_v49 }
  0xec   : > { %2900 = vmatpush.msra.mxu1 %v669_v52 }
  0xee   : > { %2901 = vmatpush.msra.mxu1 %v657_v29  ;;  %v873_v29 = vsel %vm9358_vm15, %v5692_v44, %v5693_v43  ;;  %vm9363_vm15 = vcmask 916480  }
  0xef   : > { %5865 = vrot.lane.b32.xlu1 %v7636_v23, %s7306_s24  ;;  %5860 = vrot.lane.b32.xlu0 %v7636_v23, %s7307_s26  ;;  %s7309_s24 = smov 70   ;;  %s7310_s26 = smov 71  }
  0xf0   : > { %2902 = vmatpush.msra.mxu1 %v645_v60  ;;  %5870 = vrot.lane.b32.xlu2 %v7686_v57, %s7308_s13  ;;  %s7311_s13 = smov 69   ;;  %v5677_v60 = vunpack.i.l.bf16 %v7661_v36 }
  0xf1   : > { %v7696_v63 = vpop.permute.xlu1 %5655  ;;  %v7698_v0 = vpop.permute.xlu0 %5650 }
  0xf2   : > { %2903 = vmatpush.msra.mxu1 %v7629_v18  ;;  %v7701_v1 = vpop.permute.xlu2 %5705  ;;  %v5658_v54 = vunpack.i.h.bf16 %v7696_v63 }
  0xf4   : > { %2904 = vmatpush.msra.mxu1 %v631_v6 }
  0xf6   : > { %2905 = vmatpush.msra.mxu1 %v619_v10  ;;  %v5662_v10 = vunpack.i.l.bf16 %v7648_v27  ;;  %v5653_v27 = vunpack.i.h.bf16 %v7698_v0 }
  0xf7   : > { %5880 = vrot.lane.b32.xlu1 %v7636_v23, %s7309_s24  ;;  %5875 = vrot.lane.b32.xlu0 %v7636_v23, %s7310_s26  ;;  %v5562_v23 = vunpack.i.l.bf16 %v7573_v40  ;;  %s7312_s24 = smov 67   ;;  %s7313_s26 = smov 68  }
  0xf8   : > { %2906 = vmatpush.msra.mxu1 %v607_v53  ;;  %5885 = vrot.lane.b32.xlu2 %v7686_v57, %s7311_s13  ;;  %s7314_s13 = smov 66  }
  0xf9   : > { %v7717_v18 = vpop.permute.xlu1 %5670  ;;  %v7719_v19 = vpop.permute.xlu0 %5665  ;;  %v559_v40 = vsel %vm9352_vm13, %v5562_v23, %v5563_v21  ;;  %vm9356_vm13 = vcmask 867328   ;;  %v5652_v23 = vunpack.i.l.bf16 %v7698_v0  ;;  %v5643_v0 = vunpack.i.h.bf16 %v7671_v47 }
  0xfa   : > { %2907 = vmatpush.msra.mxu1 %v595_v11  ;;  %v7722_v20 = vpop.permute.xlu2 %5720  ;;  %v5673_v62 = vunpack.i.h.bf16 %v7717_v18  ;;  %v5672_v2 = vunpack.i.l.bf16 %v7717_v18  ;;  %v5668_v6 = vunpack.i.h.bf16 %v7719_v19  ;;  %v5667_v7 = vunpack.i.l.bf16 %v7719_v19 }
  0xfb   : > { %v5657_v18 = vunpack.i.l.bf16 %v7696_v63  ;;  %v5647_v63 = vunpack.i.l.bf16 %v7623_v13  ;;  %v5633_v47 = vunpack.i.h.bf16 %v7599_v56 }
  0xfc   : > { %2908 = vmatpush.msra.mxu1 %v583_v8  ;;  %v825_v53 = vsel %vm9363_vm15, %v5672_v2, %v5673_v62  ;;  %vm9367_vm15 = vcmask 949248  }
  0xfe   : > { %2909 = vmatpush.msra.mxu1 %v571_v12  ;;  %v789_v12 = vsel %vm9366_vm11, %v5657_v18, %v5658_v54  ;;  %vm9369_vm11 = vcmask 973824  }
  0xff   : > { %5895 = vrot.lane.b32.xlu1 %v7686_v57, %s7312_s24  ;;  %5890 = vrot.lane.b32.xlu0 %v7686_v57, %s7313_s26  ;;  %s7315_s24 = smov 64   ;;  %s7316_s26 = smov 65  }
 0x100   : > { %2910 = vmatpush.msra.mxu1 %v559_v40  ;;  %5900 = vrot.lane.b32.xlu2 %v7686_v57, %s7314_s13  ;;  %s7319_s13 = smov 62   ;;  %v777_v40 = vsel %vm9367_vm15, %v5652_v23, %v5653_v27  ;;  %vm9371_vm15 = vcmask 982016  }
 0x101   : > { %v5686_v16 = vpop.permute.xlu1 %5685  ;;  %v5681_v9 = vpop.permute.xlu0 %5680 }
 0x102   : > { %2911 = vmatpush.msra.mxu1 %v547_v28  ;;  %v7737_v30 = vpop.permute.xlu2 %5735  ;;  %v5688_v41 = vunpack.i.h.bf16 %v5686_v16  ;;  %v5687_v45 = vunpack.i.l.bf16 %v5686_v16  ;;  %v5683_v50 = vunpack.i.h.bf16 %v5681_v9  ;;  %v5682_v51 = vunpack.i.l.bf16 %v5681_v9 }
 0x103   : > { %v5638_v9 = vunpack.i.h.bf16 %v7673_v48  ;;  %v5637_v28 = vunpack.i.l.bf16 %v7673_v48  ;;  %v5738_v27 = vunpack.i.h.bf16 %v7737_v30  ;;  %v5737_v23 = vunpack.i.l.bf16 %v7737_v30 }
 0x104   : > { %2912 = vmatpush.msra.mxu1 %v535_v25  ;;  %v861_v61 = vsel %vm9359_vm14, %v5687_v45, %v5688_v41  ;;  %vm9364_vm14 = vcmask 924672  }
 0x105   : > { %v813_v19 = vsel %vm9364_vm14, %v5667_v7, %v5668_v6  ;;  %vm9368_vm14 = vcmask 957440   ;;  %v741_v48 = vsel %vm9369_vm11, %v5637_v28, %v5638_v9  ;;  %vm9373_vm11 = vcmask 744448  }
 0x106   : > { %v765_v25 = vsel %vm9368_vm14, %v5647_v63, %v5648_v24  ;;  %vm9370_vm14 = vcmask 990208   ;;  %v5722_v9 = vunpack.i.l.bf16 %v7722_v20 }
 0x107   : > { %5910 = vrot.lane.b32.xlu1 %v7686_v57, %s7315_s24  ;;  %5905 = vrot.lane.b32.xlu0 %v7686_v57, %s7316_s26  ;;  %s7320_s24 = smov 60   ;;  %s7321_s26 = smov 58  }
 0x108   : > { %5915 = vrot.lane.b32.xlu2 %v7686_v57, %s7317_s29  ;;  %s7318_s29 = smov 61  }
 0x109   : > { %v5701_v31 = vpop.permute.xlu1 %5700  ;;  %v5696_v33 = vpop.permute.xlu0 %5695 }
 0x10a   : > { %v5703_v34 = vunpack.i.h.bf16 %v5701_v31  ;;  %v5702_v35 = vunpack.i.l.bf16 %v5701_v31  ;;  %v7743_v37 = vpop.permute.xlu2 %5750  ;;  %v5698_v38 = vunpack.i.h.bf16 %v5696_v33  ;;  %v5697_v4 = vunpack.i.l.bf16 %v5696_v33 }
 0x10b   : > { %v5632_v31 = vunpack.i.l.bf16 %v7599_v56 }
 0x10c   : > { %v897_v42 = vsel %vm9356_vm13, %v5702_v35, %v5703_v34  ;;  %v885_v46 = vsel %vm9357_vm12, %v5697_v4, %v5698_v38  ;;  %vm9360_vm13 = vcmask 900096   ;;  %vm9361_vm12 = vcmask 908288  }
 0x10d   : > { %2917 = vmatpush.msra.mxu2 %v897_v42  ;;  %v849_v5 = vsel %vm9360_vm13, %v5682_v51, %v5683_v50  ;;  %v837_v36 = vsel %vm9361_vm12, %v5677_v60, %v5678_v59  ;;  %vm9404_vm13 = vcmask 932864   ;;  %vm9365_vm12 = vcmask 736256  }
 0x10e   : > { %v801_v8 = vsel %vm9404_vm13, %v5662_v10, %v5663_v22  ;;  %v5628_v34 = vunpack.i.h.bf16 %v7659_v32  ;;  %v5627_v35 = vunpack.i.l.bf16 %v7659_v32  ;;  %v729_v4 = vsel %vm9371_vm15, %v5632_v31, %v5633_v47  ;;  %v1728_v31 = vld [vmem:[%s7421_s14 + $0x8] sm:$0xff] }
 0x10f   : > { %5925 = vrot.lane.b32.xlu1 %v7686_v57, %s7318_s29  ;;  %5920 = vrot.lane.b32.xlu0 %v7686_v57, %s7319_s13  ;;  %s7322_s29 = smov 59   ;;  %s7323_s13 = smov 57   ;;  %vm9375_vm15 = vcmask 760832   ;;  %v5753_v10 = vunpack.i.h.bf16 %v7743_v37  ;;  %vm1400_vm13 = vcmask 523264  }
 0x110   : > { %2918 = vmatpush.msra.mxu2 %v885_v46  ;;  %5930 = vrot.lane.b32.xlu2 %v7686_v57, %s7320_s24  ;;  %s7324_s24 = smov 55   ;;  %v717_v32 = vsel %vm9370_vm14, %v5627_v35, %v5628_v34  ;;  %vm9374_vm14 = vcmask 752640  }
 0x111   : > { %v7752_v49 = vpop.permute.xlu1 %5715  ;;  %v7754_v52 = vpop.permute.xlu0 %5710 }
 0x112   : > { %2919 = vmatpush.msra.mxu2 %v873_v29  ;;  %v7757_v58 = vpop.permute.xlu2 %5765  ;;  %v5717_v28 = vunpack.i.l.bf16 %v7752_v49  ;;  %v5713_v34 = vunpack.i.h.bf16 %v7754_v52  ;;  %v5712_v35 = vunpack.i.l.bf16 %v7754_v52 }
 0x113   : > { %v5768_v59 = vunpack.i.h.bf16 %v7757_v58  ;;  %v5767_v60 = vunpack.i.l.bf16 %v7757_v58 }
 0x114   : > { %2920 = vmatpush.msra.mxu2 %v861_v61 }
 0x116   : > { %2921 = vmatpush.msra.mxu2 %v849_v5 }
 0x117   : > { %5940 = vrot.lane.b32.xlu1 %v7686_v57, %s7321_s26  ;;  %5935 = vrot.lane.b32.xlu0 %v7686_v57, %s7322_s29  ;;  %s7325_s26 = smov 56   ;;  %s7326_s29 = smov 54  }
 0x118   : > { %2922 = vmatpush.msra.mxu2 %v837_v36  ;;  %5945 = vrot.lane.b32.xlu2 %v7686_v57, %s7323_s13  ;;  %s7327_s13 = smov 52   ;;  %v1053_v36 = vsel %vm9375_vm15, %v5767_v60, %v5768_v59  ;;  %vm9379_vm15 = vcmask 793600   ;;  %v7911_v60 = vld [vmem:[%s7421_s14 + $0x10] sm:$0xff] }
 0x119   : > { %v7773_v14 = vpop.permute.xlu1 %5730  ;;  %v7775_v15 = vpop.permute.xlu0 %5725 }
 0x11a   : > { %2923 = vmatpush.msra.mxu2 %v825_v53  ;;  %v5781_v17 = vpop.permute.xlu2 %5780  ;;  %v5752_v53 = vunpack.i.l.bf16 %v7743_v37  ;;  %v5728_v30 = vunpack.i.h.bf16 %v7775_v15 }
 0x11b   : > { %v5783_v11 = vunpack.i.h.bf16 %v5781_v17  ;;  %v5782_v21 = vunpack.i.l.bf16 %v5781_v17 }
 0x11c   : > { %2924 = vmatpush.msra.mxu2 %v813_v19 }
 0x11d   : > { %v1089_v39 = vsel %vm9365_vm12, %v5782_v21, %v5783_v11  ;;  %vm9372_vm12 = vcmask 965632  }
 0x11e   : > { %2925 = vmatpush.msra.mxu2 %v801_v8  ;;  %2937 = vmatpush.msra.mxu3 %v1089_v39  ;;  %v753_v33 = vsel %vm9372_vm12, %v5642_v3, %v5643_v0  ;;  %vm9376_vm12 = vcmask 769024   ;;  %v5732_v0 = vunpack.i.l.bf16 %v7773_v14 }
 0x11f   : > { %5955 = vrot.lane.b32.xlu1 %v7686_v57, %s7324_s24  ;;  %5950 = vrot.lane.b32.xlu0 %v7686_v57, %s7325_s26  ;;  %s7328_s24 = smov 53   ;;  %s7329_s26 = smov 51  }
 0x120   : > { %2926 = vmatpush.msra.mxu2 %v789_v12  ;;  %5960 = vrot.lane.b32.xlu2 %v7686_v57, %s7326_s29  ;;  %s7330_s29 = smov 49   ;;  %v5733_v12 = vunpack.i.h.bf16 %v7773_v14 }
 0x121   : > { %v7793_v26 = vpop.permute.xlu1 %5745  ;;  %v7795_v13 = vpop.permute.xlu0 %5740 }
 0x122   : > { %2927 = vmatpush.msra.mxu2 %v777_v40  ;;  %v7798_v16 = vpop.permute.xlu2 %5795  ;;  %v5748_v17 = vunpack.i.h.bf16 %v7793_v26  ;;  %v5747_v18 = vunpack.i.l.bf16 %v7793_v26  ;;  %v5743_v11 = vunpack.i.h.bf16 %v7795_v13  ;;  %v5742_v21 = vunpack.i.l.bf16 %v7795_v13 }
 0x123   : > { %v5727_v26 = vunpack.i.l.bf16 %v7775_v15  ;;  %v5723_v40 = vunpack.i.h.bf16 %v7722_v20  ;;  %v5718_v15 = vunpack.i.h.bf16 %v7752_v49  ;;  %v7882_v49 = vpack.i.bf16 %v7681_v55, %v1728_v31 }
 0x124   : > { %2928 = vmatpush.msra.mxu2 %v765_v25  ;;  %v1005_v24 = vsel %vm9379_vm15, %v5747_v18, %v5748_v17  ;;  %vm9383_vm15 = vcmask 826368  }
 0x125   : > { %v957_v47 = vsel %vm9383_vm15, %v5727_v26, %v5728_v30  ;;  %vm9388_vm15 = vcmask 859136  }
 0x126   : > { %2929 = vmatpush.msra.mxu2 %v753_v33 }
 0x127   : > { %5970 = vrot.lane.b32.xlu1 %v7686_v57, %s7327_s13  ;;  %5965 = vrot.lane.b32.xlu0 %v7686_v57, %s7328_s24  ;;  %s7331_s13 = smov 50   ;;  %s7332_s24 = smov 48  }
 0x128   : > { %2930 = vmatpush.msra.mxu2 %v741_v48  ;;  %5975 = vrot.lane.b32.xlu2 %v7686_v57, %s7329_s26  ;;  %s7333_s26 = smov 46  }
 0x129   : > { %v5761_v56 = vpop.permute.xlu1 %5760  ;;  %v5756_v38 = vpop.permute.xlu0 %5755 }
 0x12a   : > { %2931 = vmatpush.msra.mxu2 %v729_v4  ;;  %v7813_v42 = vpop.permute.xlu2 %5810  ;;  %v5763_v61 = vunpack.i.h.bf16 %v5761_v56  ;;  %v5762_v62 = vunpack.i.l.bf16 %v5761_v56  ;;  %v5758_v5 = vunpack.i.h.bf16 %v5756_v38  ;;  %v5757_v6 = vunpack.i.l.bf16 %v5756_v38 }
 0x12b   : > { %v5708_v56 = vunpack.i.h.bf16 %v7701_v1  ;;  %v5707_v38 = vunpack.i.l.bf16 %v7701_v1 }
 0x12c   : > { %2932 = vmatpush.msra.mxu2 %v717_v32  ;;  %v1041_v54 = vsel %vm9376_vm12, %v5762_v62, %v5763_v61  ;;  %vm9380_vm12 = vcmask 801792  }
 0x12d   : > { %v993_v3 = vsel %vm9380_vm12, %v5742_v21, %v5743_v11  ;;  %vm9391_vm12 = vcmask 834560   ;;  %v909_v1 = vsel %vm9388_vm15, %v5707_v38, %v5708_v56  ;;  %vm1280_vm15 = vcmask 605184  }
 0x12e   : > { %v945_v48 = vsel %vm9391_vm12, %v5722_v9, %v5723_v40  ;;  %vm1244_vm12 = vcmask 629760  }
 0x12f   : > { %5985 = vrot.lane.b32.xlu1 %v7686_v57, %s7330_s29  ;;  %5980 = vrot.lane.b32.xlu0 %v7686_v57, %s7331_s13  ;;  %s7334_s29 = smov 47   ;;  %s7335_s13 = smov 45  }
 0x130   : > { %5990 = vrot.lane.b32.xlu2 %v7686_v57, %s7332_s24  ;;  %s7336_s24 = smov 43  }
 0x131   : > { %v5776_v43 = vpop.permute.xlu1 %5775  ;;  %v5771_v44 = vpop.permute.xlu0 %5770 }
 0x132   : > { %v5778_v41 = vunpack.i.h.bf16 %v5776_v43  ;;  %v5777_v45 = vunpack.i.l.bf16 %v5776_v43  ;;  %v7819_v46 = vpop.permute.xlu2 %5825  ;;  %v5773_v50 = vunpack.i.h.bf16 %v5771_v44  ;;  %v5772_v51 = vunpack.i.l.bf16 %v5771_v44 }
 0x134   : > { %v1077_v29 = vsel %vm9373_vm11, %v5777_v45, %v5778_v41  ;;  %v1065_v2 = vsel %vm9374_vm14, %v5772_v51, %v5773_v50  ;;  %vm9377_vm11 = vcmask 777216   ;;  %vm9378_vm14 = vcmask 785408  }
 0x135   : > { %2938 = vmatpush.msra.mxu3 %v1077_v29  ;;  %v1029_v19 = vsel %vm9377_vm11, %v5757_v6, %v5758_v5  ;;  %v1017_v37 = vsel %vm9378_vm14, %v5752_v53, %v5753_v10  ;;  %vm9381_vm11 = vcmask 809984   ;;  %vm9382_vm14 = vcmask 818176  }
 0x136   : > { %v981_v13 = vsel %vm9381_vm11, %v5737_v23, %v5738_v27  ;;  %v969_v14 = vsel %vm9382_vm14, %v5732_v0, %v5733_v12  ;;  %vm9390_vm11 = vcmask 842752   ;;  %vm9389_vm14 = vcmask 850944  }
 0x137   : > { %6000 = vrot.lane.b32.xlu1 %v7686_v57, %s7333_s26  ;;  %5995 = vrot.lane.b32.xlu0 %v7686_v57, %s7334_s29  ;;  %s7337_s26 = smov 44   ;;  %s7338_s29 = smov 42   ;;  %v933_v4 = vsel %vm9390_vm11, %v5717_v28, %v5718_v15  ;;  %v921_v52 = vsel %vm9389_vm14, %v5712_v35, %v5713_v34  ;;  %vm1268_vm14 = vcmask 613376   ;;  %vm1256_vm11 = vcmask 621568  }
 0x138   : > { %2939 = vmatpush.msra.mxu3 %v1065_v2  ;;  %6005 = vrot.lane.b32.xlu2 %v7686_v57, %s7335_s13  ;;  %s7339_s13 = smov 40   ;;  %v5828_v0 = vunpack.i.h.bf16 %v7819_v46 }
 0x139   : > { %v7828_v58 = vpop.permute.xlu1 %5790  ;;  %v7830_v7 = vpop.permute.xlu0 %5785 }
 0x13a   : > { %2940 = vmatpush.msra.mxu3 %v1053_v36  ;;  %v7833_v22 = vpop.permute.xlu2 %5840  ;;  %v7916_v36 = vpack.i.bf16 %v7911_v60, %v1728_v31  ;;  %v5812_v31 = vunpack.i.l.bf16 %v7813_v42 }
 0x13b   : > { %v5843_v18 = vunpack.i.h.bf16 %v7833_v22 }
 0x13c   : > { %2941 = vmatpush.msra.mxu3 %v1041_v54 }
 0x13e   : > { %2942 = vmatpush.msra.mxu3 %v1029_v19  ;;  %v5842_v19 = vunpack.i.l.bf16 %v7833_v22 }
 0x13f   : > { %6015 = vrot.lane.b32.xlu1 %v7686_v57, %s7336_s24  ;;  %6010 = vrot.lane.b32.xlu0 %v7686_v57, %s7337_s26  ;;  %s7340_s24 = smov 41   ;;  %s7341_s26 = smov 39  }
 0x140   : > { %2943 = vmatpush.msra.mxu3 %v1017_v37  ;;  %6020 = vrot.lane.b32.xlu2 %v7686_v57, %s7338_s29  ;;  %s7342_s29 = smov 37  }
 0x141   : > { %v7849_v8 = vpop.permute.xlu1 %5805  ;;  %v7851_v39 = vpop.permute.xlu0 %5800 }
 0x142   : > { %2944 = vmatpush.msra.mxu3 %v1005_v24  ;;  %v7854_v63 = vpop.permute.xlu2 %5855  ;;  %v5808_v35 = vunpack.i.h.bf16 %v7849_v8  ;;  %v5802_v56 = vunpack.i.l.bf16 %v7851_v39 }
 0x143   : > { %v5858_v50 = vunpack.i.h.bf16 %v7854_v63  ;;  %v5857_v51 = vunpack.i.l.bf16 %v7854_v63 }
 0x144   : > { %2945 = vmatpush.msra.mxu3 %v993_v3  ;;  %v5827_v3 = vunpack.i.l.bf16 %v7819_v46 }
 0x145   : > { %v1269_v10 = vsel %vm1268_vm14, %v5857_v51, %v5858_v50  ;;  %vm9392_vm14 = vcmask 637952   ;;  %v5787_v50 = vunpack.i.l.bf16 %v7830_v7 }
 0x146   : > { %2946 = vmatpush.msra.mxu3 %v981_v13  ;;  %v1233_v22 = vsel %vm9392_vm14, %v5842_v19, %v5843_v18  ;;  %vm9396_vm14 = vcmask 670720  }
 0x147   : > { %6030 = vrot.lane.b32.xlu1 %v7686_v57, %s7339_s13  ;;  %6025 = vrot.lane.b32.xlu0 %v7686_v57, %s7340_s24  ;;  %s7343_s13 = smov 38   ;;  %s7344_s24 = smov 36  }
 0x148   : > { %2947 = vmatpush.msra.mxu3 %v969_v14  ;;  %6035 = vrot.lane.b32.xlu2 %v7686_v57, %s7341_s26  ;;  %s7345_s26 = smov 34  }
 0x149   : > { %v7870_v25 = vpop.permute.xlu1 %5820  ;;  %v7872_v20 = vpop.permute.xlu0 %5815 }
 0x14a   : > { %2948 = vmatpush.msra.mxu3 %v957_v47  ;;  %v7876_v33 = vpop.permute.xlu2 %5870  ;;  %v5823_v26 = vunpack.i.h.bf16 %v7870_v25  ;;  %v5822_v13 = vunpack.i.l.bf16 %v7870_v25  ;;  %v5818_v15 = vunpack.i.h.bf16 %v7872_v20  ;;  %v5817_v28 = vunpack.i.l.bf16 %v7872_v20 }
 0x14b   : > { %v5813_v25 = vunpack.i.h.bf16 %v7813_v42  ;;  %v5803_v42 = vunpack.i.h.bf16 %v7851_v39  ;;  %v5793_v39 = vunpack.i.h.bf16 %v7828_v58 }
 0x14c   : > { %2949 = vmatpush.msra.mxu3 %v945_v48  ;;  %v1185_v34 = vsel %vm9396_vm14, %v5822_v13, %v5823_v26  ;;  %v5807_v48 = vunpack.i.l.bf16 %v7849_v8  ;;  %vm9403_vm14 = vcmask 703488  }
 0x14e   : > { %2950 = vmatpush.msra.mxu3 %v933_v4 }
 0x14f   : > { %6045 = vrot.lane.b32.xlu1 %v7686_v57, %s7342_s29  ;;  %6040 = vrot.lane.b32.xlu0 %v7686_v57, %s7343_s13  ;;  %s7346_s29 = smov 35   ;;  %s7347_s13 = smov 33  }
 0x150   : > { %2951 = vmatpush.msra.mxu3 %v921_v52  ;;  %6050 = vrot.lane.b32.xlu2 %v7882_v49, %s7344_s24  ;;  %s7348_s24 = smov 31   ;;  %v5798_v52 = vunpack.i.h.bf16 %v7798_v16 }
 0x151   : > { %v7891_v55 = vpop.permute.xlu1 %5835  ;;  %v7893_v32 = vpop.permute.xlu0 %5830 }
 0x152   : > { %2952 = vmatpush.msra.mxu3 %v909_v1  ;;  %v7896_v43 = vpop.permute.xlu2 %5885  ;;  %v5838_v27 = vunpack.i.h.bf16 %v7891_v55  ;;  %v5837_v23 = vunpack.i.l.bf16 %v7891_v55  ;;  %v5833_v63 = vunpack.i.h.bf16 %v7893_v32  ;;  %v5832_v12 = vunpack.i.l.bf16 %v7893_v32 }
 0x153   : > { %v5797_v55 = vunpack.i.l.bf16 %v7798_v16  ;;  %v5792_v1 = vunpack.i.l.bf16 %v7828_v58 }
 0x157   : > { %6060 = vrot.lane.b32.xlu1 %v7686_v57, %s7345_s26  ;;  %6055 = vrot.lane.b32.xlu0 %v7686_v57, %s7346_s29  ;;  %s7353_s26 = smov 27   ;;  %s7354_s29 = smov 26  }
 0x158   : > { %6065 = vrot.lane.b32.xlu2 %v7882_v49, %s7347_s13  ;;  %s9460_s13 = smov 15  }
 0x159   : > { %v5851_v44 = vpop.permute.xlu1 %5850  ;;  %v5846_v41 = vpop.permute.xlu0 %5845 }
 0x15a   : > { %v7901_v45 = vpop.permute.xlu2 %5900  ;;  %v5853_v5 = vunpack.i.h.bf16 %v5851_v44  ;;  %v5848_v53 = vunpack.i.h.bf16 %v5846_v41  ;;  %v5847_v54 = vunpack.i.l.bf16 %v5846_v41  ;;  %v5788_v41 = vunpack.i.h.bf16 %v7830_v7 }
 0x15c   : > { %v1245_v24 = vsel %vm1244_vm12, %v5847_v54, %v5848_v53  ;;  %vm9395_vm12 = vcmask 662528  }
 0x15d   : > { %v1197_v47 = vsel %vm9395_vm12, %v5827_v3, %v5828_v0  ;;  %vm9399_vm12 = vcmask 695296  }
 0x15e   : > { %v1149_v32 = vsel %vm9399_vm12, %v5807_v48, %v5808_v35  ;;  %vm9401_vm12 = vcmask 728064  }
 0x15f   : > { %6075 = vrot.lane.b32.xlu1 %v7686_v57, %s7348_s24  ;;  %6070 = vrot.lane.b32.xlu0 %v7686_v57, %s7349_s28  ;;  %v5852_v57 = vunpack.i.l.bf16 %v5851_v44  ;;  %s7351_s28 = smov 28   ;;  %v1137_v44 = vsel %vm9403_vm14, %v5802_v56, %v5803_v42  ;;  %v1101_v7 = vsel %vm9401_vm12, %v5787_v50, %v5788_v41  ;;  %vm1460_vm12 = vcmask 482304   ;;  %s9461_s24 = smov 13  }
 0x160   : > { %6080 = vrot.lane.b32.xlu2 %v7882_v49, %s7350_s11  ;;  %s7352_s11 = smov 29   ;;  %vm1436_vm14 = vcmask 498688  }
 0x161   : > { %v7908_v29 = vpop.permute.xlu1 %5865  ;;  %v5861_v59 = vpop.permute.xlu0 %5860  ;;  %v1257_v17 = vsel %vm1256_vm11, %v5852_v57, %v5853_v5  ;;  %vm9393_vm11 = vcmask 646144  }
 0x162   : > { %v5863_v61 = vunpack.i.h.bf16 %v5861_v59  ;;  %v5862_v62 = vunpack.i.l.bf16 %v5861_v59  ;;  %v7913_v2 = vpop.permute.xlu2 %5915  ;;  %v1221_v30 = vsel %vm9393_vm11, %v5837_v23, %v5838_v27  ;;  %vm9397_vm11 = vcmask 678912  }
 0x163   : > { %v1173_v20 = vsel %vm9397_vm11, %v5817_v28, %v5818_v15  ;;  %vm9400_vm11 = vcmask 711680   ;;  %v5917_v26 = vunpack.i.l.bf16 %v7913_v2 }
 0x164   : > { %v1281_v6 = vsel %vm1280_vm15, %v5862_v62, %v5863_v61  ;;  %vm9394_vm15 = vcmask 654336   ;;  %v1125_v16 = vsel %vm9400_vm11, %v5797_v55, %v5798_v52  ;;  %vm1472_vm11 = vcmask 474112  }
 0x165   : > { %2957 = vmatpush.msrb.mxu0 %v1281_v6  ;;  %v1209_v9 = vsel %vm9394_vm15, %v5832_v12, %v5833_v63  ;;  %vm9398_vm15 = vcmask 687104  }
 0x166   : > { %v1161_v4 = vsel %vm9398_vm15, %v5812_v31, %v5813_v25  ;;  %vm9402_vm15 = vcmask 719872   ;;  %v5903_v31 = vunpack.i.h.bf16 %v7901_v45 }
 0x167   : > { %6090 = vrot.lane.b32.xlu1 %v7882_v49, %s7351_s28  ;;  %6085 = vrot.lane.b32.xlu0 %v7882_v49, %s7352_s11  ;;  %v1113_v59 = vsel %vm9402_vm15, %v5792_v1, %v5793_v39  ;;  %vm1448_vm15 = vcmask 490496   ;;  %s9462_s28 = smov 14   ;;  %s9463_s11 = smov 12   ;;  %v5888_v1 = vunpack.i.h.bf16 %v7896_v43 }
 0x168   : > { %2958 = vmatpush.msrb.mxu0 %v1269_v10  ;;  %6095 = vrot.lane.b32.xlu2 %v7916_v36, %s7353_s26  ;;  %s9464_s26 = smov 11  }
 0x169   : > { %v7923_v11 = vpop.permute.xlu1 %5880  ;;  %v7925_v21 = vpop.permute.xlu0 %5875 }
 0x16a   : > { %2959 = vmatpush.msrb.mxu0 %v1257_v17  ;;  %v7927_v37 = vpop.permute.xlu2 %5930  ;;  %v5882_v41 = vunpack.i.l.bf16 %v7923_v11 }
 0x16b   : > { %v5933_v18 = vunpack.i.h.bf16 %v7927_v37  ;;  %v5932_v19 = vunpack.i.l.bf16 %v7927_v37 }
 0x16c   : > { %2960 = vmatpush.msrb.mxu0 %v1245_v24 }
 0x16d   : > { %v1449_v0 = vsel %vm1448_vm15, %v5932_v19, %v5933_v18  ;;  %vm1376_vm15 = vcmask 539648   ;;  %v8070_v18 = vld [vmem:[%s7421_s14 + $0x18] sm:$0xff] }
 0x16e   : > { %2961 = vmatpush.msrb.mxu0 %v1233_v22  ;;  %v8074_v19 = vpack.i.bf16 %v8070_v18, %v7911_v60 }
 0x16f   : > { %6105 = vrot.lane.b32.xlu1 %v7882_v49, %s9423_s16  ;;  %6100 = vrot.lane.b32.xlu0 %v7882_v49, %s7354_s29  ;;  %s9465_s29 = smov 9   ;;  %s9475_s16 = smov 126  }
 0x170   : > { %2962 = vmatpush.msrb.mxu0 %v1221_v30  ;;  %6110 = vrot.lane.b32.xlu2 %v7916_v36, %s9425_s19  ;;  %v5918_v30 = vunpack.i.h.bf16 %v7913_v2  ;;  %s9476_s19 = smov 124  }
 0x171   : > { %v7944_v40 = vpop.permute.xlu1 %5895  ;;  %v7946_v46 = vpop.permute.xlu0 %5890 }
 0x172   : > { %2963 = vmatpush.msrb.mxu0 %v1209_v9  ;;  %v7949_v14 = vpop.permute.xlu2 %5945  ;;  %v5898_v42 = vunpack.i.h.bf16 %v7944_v40  ;;  %v5892_v55 = vunpack.i.l.bf16 %v7946_v46 }
 0x174   : > { %2964 = vmatpush.msrb.mxu0 %v1197_v47 }
 0x176   : > { %2965 = vmatpush.msrb.mxu0 %v1185_v34  ;;  %v5902_v34 = vunpack.i.l.bf16 %v7901_v45  ;;  %v5893_v45 = vunpack.i.h.bf16 %v7946_v46  ;;  %v5883_v46 = vunpack.i.h.bf16 %v7923_v11  ;;  %v5872_v11 = vunpack.i.l.bf16 %v7876_v33 }
 0x177   : > { %6120 = vrot.lane.b32.xlu1 %v7882_v49, %s9417_s18  ;;  %6115 = vrot.lane.b32.xlu0 %v7882_v49, %s9428_s15  ;;  %s9472_s18 = smov 2   ;;  %s9477_s15 = smov 122  }
 0x178   : > { %2966 = vmatpush.msrb.mxu0 %v1173_v20  ;;  %6125 = vrot.lane.b32.xlu2 %v7916_v36, %s9419_s17  ;;  %s9473_s17 = smov 127  }
 0x179   : > { %v7968_v38 = vpop.permute.xlu1 %5910  ;;  %v7970_v8 = vpop.permute.xlu0 %5905 }
 0x17a   : > { %2967 = vmatpush.msrb.mxu0 %v1161_v4  ;;  %v7973_v49 = vpop.permute.xlu2 %5960  ;;  %v5913_v9 = vunpack.i.h.bf16 %v7968_v38  ;;  %v5912_v15 = vunpack.i.l.bf16 %v7968_v38  ;;  %v5908_v47 = vunpack.i.h.bf16 %v7970_v8  ;;  %v5907_v25 = vunpack.i.l.bf16 %v7970_v8 }
 0x17b   : > { %v5897_v38 = vunpack.i.l.bf16 %v7944_v40 }
 0x17c   : > { %2968 = vmatpush.msrb.mxu0 %v1149_v32  ;;  %v1401_v20 = vsel %vm1400_vm13, %v5912_v15, %v5913_v9  ;;  %v1377_v32 = vsel %vm1376_vm15, %v5902_v34, %v5903_v31  ;;  %vm1352_vm13 = vcmask 556032   ;;  %vm1328_vm15 = vcmask 572416  }
 0x17e   : > { %2969 = vmatpush.msrb.mxu0 %v1137_v44  ;;  %v5887_v44 = vunpack.i.l.bf16 %v7896_v43  ;;  %v1353_v43 = vsel %vm1352_vm13, %v5892_v55, %v5893_v45  ;;  %vm1292_vm13 = vcmask 596992  }
 0x17f   : > { %6135 = vrot.lane.b32.xlu1 %v7916_v36, %s9411_s22  ;;  %6130 = vrot.lane.b32.xlu0 %v7916_v36, %s9421_s20  ;;  %s9469_s22 = smov 5   ;;  %s9474_s20 = smov 125  }
 0x180   : > { %2970 = vmatpush.msrb.mxu0 %v1125_v16  ;;  %6140 = vrot.lane.b32.xlu2 %v7916_v36, %s9413_s21  ;;  %s9470_s21 = smov 3  }
 0x181   : > { %v5926_v58 = vpop.permute.xlu1 %5925  ;;  %v5921_v51 = vpop.permute.xlu0 %5920 }
 0x182   : > { %2971 = vmatpush.msrb.mxu0 %v1113_v59  ;;  %v7991_v61 = vpop.permute.xlu2 %5975  ;;  %v5928_v27 = vunpack.i.h.bf16 %v5926_v58  ;;  %v5927_v23 = vunpack.i.l.bf16 %v5926_v58  ;;  %v5923_v63 = vunpack.i.h.bf16 %v5921_v51  ;;  %v5922_v12 = vunpack.i.l.bf16 %v5921_v51 }
 0x183   : > { %v5878_v51 = vunpack.i.h.bf16 %v7925_v21  ;;  %v5877_v59 = vunpack.i.l.bf16 %v7925_v21  ;;  %v5978_v45 = vunpack.i.h.bf16 %v7991_v61  ;;  %v5977_v55 = vunpack.i.l.bf16 %v7991_v61 }
 0x184   : > { %2972 = vmatpush.msrb.mxu0 %v1101_v7  ;;  %v1437_v13 = vsel %vm1436_vm14, %v5927_v23, %v5928_v27  ;;  %vm1388_vm14 = vcmask 531456  }
 0x185   : > { %v1389_v8 = vsel %vm1388_vm14, %v5907_v25, %v5908_v47  ;;  %vm1340_vm14 = vcmask 564224  }
 0x186   : > { %v1341_v7 = vsel %vm1340_vm14, %v5887_v44, %v5888_v1  ;;  %vm1652_vm14 = vcmask 351232  }
 0x187   : > { %6150 = vrot.lane.b32.xlu1 %v7916_v36, %s9407_s25  ;;  %6145 = vrot.lane.b32.xlu0 %v7916_v36, %s9415_s23  ;;  %s9467_s25 = smov 6   ;;  %s9471_s23 = smov 1  }
 0x188   : > { %6155 = vrot.lane.b32.xlu2 %v7916_v36, %s9460_s13 }
 0x189   : > { %v5941_v62 = vpop.permute.xlu1 %5940  ;;  %v5936_v5 = vpop.permute.xlu0 %5935 }
 0x18a   : > { %v5943_v57 = vunpack.i.h.bf16 %v5941_v62  ;;  %v5942_v6 = vunpack.i.l.bf16 %v5941_v62  ;;  %v8000_v10 = vpop.permute.xlu2 %5990  ;;  %v5938_v53 = vunpack.i.h.bf16 %v5936_v5  ;;  %v5937_v54 = vunpack.i.l.bf16 %v5936_v5 }
 0x18b   : > { %v5873_v62 = vunpack.i.h.bf16 %v7876_v33  ;;  %v1329_v5 = vsel %vm1328_vm15, %v5882_v41, %v5883_v46  ;;  %vm1640_vm15 = vcmask 359424   ;;  %v5993_v34 = vunpack.i.h.bf16 %v8000_v10 }
 0x18c   : > { %v1473_v17 = vsel %vm1472_vm11, %v5942_v6, %v5943_v57  ;;  %v1461_v24 = vsel %vm1460_vm12, %v5937_v54, %v5938_v53  ;;  %vm1424_vm11 = vcmask 506880   ;;  %vm1412_vm12 = vcmask 515072  }
 0x18d   : > { %2977 = vmatpush.msrb.mxu1 %v1473_v17  ;;  %v1425_v28 = vsel %vm1424_vm11, %v5922_v12, %v5923_v63  ;;  %v1413_v2 = vsel %vm1412_vm12, %v5917_v26, %v5918_v30  ;;  %vm1664_vm11 = vcmask 343040   ;;  %vm1364_vm12 = vcmask 547840  }
 0x18e   : > { %v1365_v40 = vsel %vm1364_vm12, %v5897_v38, %v5898_v42  ;;  %vm9427_vm12 = vcmask 588800   ;;  %v5868_v57 = vunpack.i.h.bf16 %v7908_v29  ;;  %v5867_v6 = vunpack.i.l.bf16 %v7908_v29 }
 0x18f   : > { %6165 = vrot.lane.b32.xlu1 %v7916_v36, %s9461_s24  ;;  %6160 = vrot.lane.b32.xlu0 %v7916_v36, %s9462_s28  ;;  %v1305_v54 = vsel %vm9427_vm12, %v5872_v11, %v5873_v62  ;;  %vm1580_vm12 = vcmask 400384  }
 0x190   : > { %2978 = vmatpush.msrb.mxu1 %v1461_v24  ;;  %6170 = vrot.lane.b32.xlu2 %v7916_v36, %s9463_s11  ;;  %v1293_v29 = vsel %vm1292_vm13, %v5867_v6, %v5868_v57  ;;  %vm1616_vm13 = vcmask 375808  }
 0x191   : > { %v8010_v22 = vpop.permute.xlu1 %5955  ;;  %v8012_v37 = vpop.permute.xlu0 %5950 }
 0x192   : > { %2979 = vmatpush.msrb.mxu1 %v1449_v0  ;;  %v8014_v3 = vpop.permute.xlu2 %6005  ;;  %v5952_v57 = vunpack.i.l.bf16 %v8012_v37 }
 0x193   : > { %v6008_v26 = vunpack.i.h.bf16 %v8014_v3 }
 0x194   : > { %2980 = vmatpush.msrb.mxu1 %v1437_v13  ;;  %v6007_v13 = vunpack.i.l.bf16 %v8014_v3 }
 0x196   : > { %2981 = vmatpush.msrb.mxu1 %v1425_v28 }
 0x197   : > { %6180 = vrot.lane.b32.xlu1 %v7916_v36, %s9405_s12  ;;  %6175 = vrot.lane.b32.xlu0 %v7916_v36, %s9464_s26  ;;  %s9466_s12 = smov 8  }
 0x198   : > { %2982 = vmatpush.msrb.mxu1 %v1413_v2  ;;  %6185 = vrot.lane.b32.xlu2 %v7916_v36, %s9465_s29 }
 0x199   : > { %v8030_v35 = vpop.permute.xlu1 %5970  ;;  %v8032_v48 = vpop.permute.xlu0 %5965 }
 0x19a   : > { %2983 = vmatpush.msrb.mxu1 %v1401_v20  ;;  %v6021_v56 = vpop.permute.xlu2 %6020  ;;  %v5992_v20 = vunpack.i.l.bf16 %v8000_v10  ;;  %v5972_v46 = vunpack.i.l.bf16 %v8030_v35  ;;  %v5967_v61 = vunpack.i.l.bf16 %v8032_v48 }
 0x19b   : > { %v6023_v4 = vunpack.i.h.bf16 %v6021_v56  ;;  %v6022_v52 = vunpack.i.l.bf16 %v6021_v56 }
 0x19c   : > { %2984 = vmatpush.msrb.mxu1 %v1389_v8 }
 0x19d   : > { %v1665_v39 = vsel %vm1664_vm11, %v6022_v52, %v6023_v4  ;;  %vm1316_vm11 = vcmask 580608  }
 0x19e   : > { %2985 = vmatpush.msrb.mxu1 %v1377_v32  ;;  %2997 = vmatpush.msrb.mxu2 %v1665_v39  ;;  %v1317_v21 = vsel %vm1316_vm11, %v5877_v59, %v5878_v51  ;;  %vm1628_vm11 = vcmask 367616   ;;  %v5962_v51 = vunpack.i.l.bf16 %v7973_v49  ;;  %v5957_v59 = vunpack.i.l.bf16 %v8010_v22 }
 0x19f   : > { %6195 = vrot.lane.b32.xlu1 %v7916_v36, %s9409_s27  ;;  %6190 = vrot.lane.b32.xlu0 %v7916_v36, %s9466_s12  ;;  %s9468_s27 = smov 4   ;;  %v1629_v2 = vsel %vm1628_vm11, %v6007_v13, %v6008_v26  ;;  %vm1568_vm11 = vcmask 408576  }
 0x1a0   : > { %2986 = vmatpush.msrb.mxu1 %v1365_v40  ;;  %6200 = vrot.lane.b32.xlu2 %v7916_v36, %s9467_s25  ;;  %v5973_v40 = vunpack.i.h.bf16 %v8030_v35 }
 0x1a1   : > { %v8048_v50 = vpop.permute.xlu1 %5985  ;;  %v8050_v16 = vpop.permute.xlu0 %5980 }
 0x1a2   : > { %2987 = vmatpush.msrb.mxu1 %v1353_v43  ;;  %v8052_v58 = vpop.permute.xlu2 %6035  ;;  %v5988_v56 = vunpack.i.h.bf16 %v8048_v50  ;;  %v5987_v38 = vunpack.i.l.bf16 %v8048_v50  ;;  %v5983_v4 = vunpack.i.h.bf16 %v8050_v16  ;;  %v5982_v52 = vunpack.i.l.bf16 %v8050_v16 }
 0x1a3   : > { %v5968_v50 = vunpack.i.h.bf16 %v8032_v48  ;;  %v5963_v43 = vunpack.i.h.bf16 %v7973_v49  ;;  %v5958_v48 = vunpack.i.h.bf16 %v8010_v22  ;;  %v5947_v22 = vunpack.i.l.bf16 %v7949_v14 }
 0x1a4   : > { %2988 = vmatpush.msrb.mxu1 %v1341_v7  ;;  %v1581_v1 = vsel %vm1580_vm12, %v5987_v38, %v5988_v56  ;;  %v1569_v41 = vsel %vm1568_vm11, %v5982_v52, %v5983_v4  ;;  %vm1520_vm12 = vcmask 441344   ;;  %vm1508_vm11 = vcmask 449536   ;;  %v2654_v52 = vld [vmem:[%s9495_s1] sm:$0xff] }
 0x1a5   : > { %v1521_v6 = vsel %vm1520_vm12, %v5962_v51, %v5963_v43  ;;  %vm1844_vm12 = vcmask 220160   ;;  %2893 = vmatmul.f32.vlgmr.msra.gmra.mxu0 %v2654_v52 }
 0x1a6   : > { %2989 = vmatpush.msrb.mxu1 %v1329_v5  ;;  %v5953_v5 = vunpack.i.h.bf16 %v8012_v37 }
 0x1a7   : > { %6210 = vrot.lane.b32.xlu1 %v7916_v36, %s9468_s27  ;;  %6205 = vrot.lane.b32.xlu0 %v7916_v36, %s9469_s22 }
 0x1a8   : > { %2990 = vmatpush.msrb.mxu1 %v1317_v21  ;;  %6215 = vrot.lane.b32.xlu2 %v7916_v36, %s9470_s21  ;;  %v5948_v21 = vunpack.i.h.bf16 %v7949_v14 }
 0x1a9   : > { %v6001_v33 = vpop.permute.xlu1 %6000  ;;  %v5996_v53 = vpop.permute.xlu0 %5995 }
 0x1aa   : > { %2991 = vmatpush.msrb.mxu1 %v1305_v54  ;;  %v8067_v17 = vpop.permute.xlu2 %6050  ;;  %v6002_v9 = vunpack.i.l.bf16 %v6001_v33  ;;  %v5998_v28 = vunpack.i.h.bf16 %v5996_v53  ;;  %v5997_v47 = vunpack.i.l.bf16 %v5996_v53 }
 0x1ac   : > { %2992 = vmatpush.msrb.mxu1 %v1293_v29 }
 0x1af   : > { %6225 = vrot.lane.b32.xlu1 %v7916_v36, %s9471_s23  ;;  %6220 = vrot.lane.b32.xlu0 %v7916_v36, %s9472_s18  ;;  %v6003_v36 = vunpack.i.h.bf16 %v6001_v33  ;;  %v1509_v33 = vsel %vm1508_vm11, %v5957_v59, %v5958_v48  ;;  %vm1832_vm11 = vcmask 228352  }
 0x1b0   : > { %6230 = vrot.lane.b32.xlu2 %v8074_v19, %s9473_s17 }
 0x1b1   : > { %v6016_v27 = vpop.permute.xlu1 %6015  ;;  %v6011_v23 = vpop.permute.xlu0 %6010  ;;  %v1617_v42 = vsel %vm1616_vm13, %v6002_v9, %v6003_v36  ;;  %vm1556_vm13 = vcmask 416768  }
 0x1b2   : > { %v6018_v24 = vunpack.i.h.bf16 %v6016_v27  ;;  %v6017_v63 = vunpack.i.l.bf16 %v6016_v27  ;;  %v8082_v12 = vpop.permute.xlu2 %6065  ;;  %v6013_v0 = vunpack.i.h.bf16 %v6011_v23  ;;  %v6012_v30 = vunpack.i.l.bf16 %v6011_v23 }
 0x1b3   : > { %v1557_v16 = vsel %vm1556_vm13, %v5977_v55, %v5978_v45  ;;  %vm1496_vm13 = vcmask 457728  }
 0x1b4   : > { %v1653_v60 = vsel %vm1652_vm14, %v6017_v63, %v6018_v24  ;;  %v1641_v15 = vsel %vm1640_vm15, %v6012_v30, %v6013_v0  ;;  %vm1604_vm14 = vcmask 384000   ;;  %vm1592_vm15 = vcmask 392192  }
 0x1b5   : > { %2998 = vmatpush.msrb.mxu2 %v1653_v60  ;;  %v1605_v8 = vsel %vm1604_vm14, %v5997_v47, %v5998_v28  ;;  %v1593_v10 = vsel %vm1592_vm15, %v5992_v20, %v5993_v34  ;;  %vm1544_vm14 = vcmask 424960   ;;  %vm1532_vm15 = vcmask 433152  }
 0x1b6   : > { %v1545_v35 = vsel %vm1544_vm14, %v5972_v46, %v5973_v40  ;;  %v1533_v49 = vsel %vm1532_vm15, %v5967_v61, %v5968_v50  ;;  %vm1484_vm14 = vcmask 465920   ;;  %v1497_v53 = vsel %vm1496_vm13, %v5952_v57, %v5953_v5 }
 0x1b7   : > { %6240 = vrot.lane.b32.xlu1 %v8074_v19, %s9474_s20  ;;  %6235 = vrot.lane.b32.xlu0 %v8074_v19, %s9475_s16  ;;  %v1485_v29 = vsel %vm1484_vm14, %v5947_v22, %v5948_v21  ;;  %vm1856_vm15 = vcmask 211968   ;;  %vm1820_vm13 = vcmask 236544   ;;  %vm1808_vm14 = vcmask 244736  }
 0x1b8   : > { %2999 = vmatpush.msrb.mxu2 %v1641_v15  ;;  %6245 = vrot.lane.b32.xlu2 %v8074_v19, %s9476_s19  ;;  %v6067_v50 = vunpack.i.l.bf16 %v8082_v12  ;;  %v6053_v5 = vunpack.i.h.bf16 %v8067_v17 }
 0x1b9   : > { %v8092_v25 = vpop.permute.xlu1 %6030  ;;  %v8094_v3 = vpop.permute.xlu0 %6025 }
 0x1ba   : > { %3000 = vmatpush.msrb.mxu2 %v1629_v2  ;;  %v8096_v31 = vpop.permute.xlu2 %6080 }
 0x1bb   : > { %v6082_v56 = vunpack.i.l.bf16 %v8096_v31 }
 0x1bc   : > { %3001 = vmatpush.msrb.mxu2 %v1617_v42  ;;  %v6083_v42 = vunpack.i.h.bf16 %v8096_v31 }
 0x1be   : > { %3002 = vmatpush.msrb.mxu2 %v1605_v8  ;;  %v1809_v40 = vsel %vm1808_vm14, %v6082_v56, %v6083_v42  ;;  %vm1748_vm14 = vcmask 285696  }
 0x1bf   : > { %6255 = vrot.lane.b32.xlu1 %v8074_v19, %s9477_s15  ;;  %6250 = vrot.lane.b32.xlu0 %v8074_v19, %s9478_s0 }
 0x1c0   : > { %3003 = vmatpush.msrb.mxu2 %v1593_v10  ;;  %6260 = vrot.lane.b32.xlu2 %v8074_v19, %s9479_s30 }
 0x1c1   : > { %v8112_v32 = vpop.permute.xlu1 %6045  ;;  %v8114_v39 = vpop.permute.xlu0 %6040 }
 0x1c2   : > { %3004 = vmatpush.msrb.mxu2 %v1581_v1  ;;  %v8116_v44 = vpop.permute.xlu2 %6095  ;;  %v8194_v1 = vld [vmem:[%s7421_s14 + $0x10] sm:$0xff]  ;;  %s9498_s14 = smov 103   ;;  %v6047_v21 = vunpack.i.l.bf16 %v8112_v32 }
 0x1c3   : > { %v6098_v63 = vunpack.i.h.bf16 %v8116_v44  ;;  %v6097_v0 = vunpack.i.l.bf16 %v8116_v44  ;;  %v8200_v46 = vpack.i.bf16 %v8070_v18, %v8194_v1 }
 0x1c4   : > { %3005 = vmatpush.msrb.mxu2 %v1569_v41  ;;  %v6068_v41 = vunpack.i.h.bf16 %v8082_v12 }
 0x1c5   : > { %v1845_v47 = vsel %vm1844_vm12, %v6097_v0, %v6098_v63  ;;  %vm1784_vm12 = vcmask 261120   ;;  %v6028_v0 = vunpack.i.h.bf16 %v8094_v3 }
 0x1c6   : > { %3006 = vmatpush.msrb.mxu2 %v1557_v16 }
 0x1c7   : > { %6270 = vrot.lane.b32.xlu1 %v8074_v19, %s9480_s9  ;;  %6265 = vrot.lane.b32.xlu0 %v8074_v19, %s9481_s10  ;;  %s9490_s9 = smov 111  }
 0x1c8   : > { %3007 = vmatpush.msrb.mxu2 %v1545_v35  ;;  %6275 = vrot.lane.b32.xlu2 %v8074_v19, %s9482_s7  ;;  %s9491_s7 = smov 109  }
 0x1c9   : > { %v8132_v7 = vpop.permute.xlu1 %6060  ;;  %v8134_v62 = vpop.permute.xlu0 %6055 }
 0x1ca   : > { %3008 = vmatpush.msrb.mxu2 %v1533_v49  ;;  %v8136_v11 = vpop.permute.xlu2 %6110  ;;  %v6063_v16 = vunpack.i.h.bf16 %v8132_v7  ;;  %v6062_v18 = vunpack.i.l.bf16 %v8132_v7  ;;  %v6058_v48 = vunpack.i.h.bf16 %v8134_v62  ;;  %v6057_v59 = vunpack.i.l.bf16 %v8134_v62 }
 0x1cb   : > { %v6052_v7 = vunpack.i.l.bf16 %v8067_v17  ;;  %v6043_v17 = vunpack.i.h.bf16 %v8114_v39  ;;  %v6042_v62 = vunpack.i.l.bf16 %v8114_v39  ;;  %v6032_v39 = vunpack.i.l.bf16 %v8092_v25 }
 0x1cc   : > { %3009 = vmatpush.msrb.mxu2 %v1521_v6  ;;  %v6048_v6 = vunpack.i.h.bf16 %v8112_v32  ;;  %v1749_v22 = vsel %vm1748_vm14, %v6057_v59, %v6058_v48  ;;  %vm1688_vm14 = vcmask 326656  }
 0x1ce   : > { %3010 = vmatpush.msrb.mxu2 %v1509_v33 }
 0x1cf   : > { %6285 = vrot.lane.b32.xlu1 %v8074_v19, %s9483_s8  ;;  %6280 = vrot.lane.b32.xlu0 %v8074_v19, %s9484_s5  ;;  %s9488_s8 = smov 112  }
 0x1d0   : > { %3011 = vmatpush.msrb.mxu2 %v1497_v53  ;;  %6290 = vrot.lane.b32.xlu2 %v8074_v19, %s9485_s6  ;;  %s9489_s6 = smov 110  }
 0x1d1   : > { %v8148_v37 = vpop.permute.xlu1 %6075  ;;  %v8150_v54 = vpop.permute.xlu0 %6070 }
 0x1d2   : > { %3012 = vmatpush.msrb.mxu2 %v1485_v29  ;;  %v8152_v14 = vpop.permute.xlu2 %6125  ;;  %v6078_v10 = vunpack.i.h.bf16 %v8148_v37  ;;  %v6077_v45 = vunpack.i.l.bf16 %v8148_v37  ;;  %v6073_v31 = vunpack.i.h.bf16 %v8150_v54  ;;  %v6072_v44 = vunpack.i.l.bf16 %v8150_v54 }
 0x1d3   : > { %v6038_v54 = vunpack.i.h.bf16 %v8052_v58  ;;  %v6037_v29 = vunpack.i.l.bf16 %v8052_v58 }
 0x1d4   : > { %v1785_v12 = vsel %vm1784_vm12, %v6072_v44, %v6073_v31  ;;  %vm1724_vm12 = vcmask 302080  }
 0x1d7   : > { %6300 = vrot.lane.b32.xlu1 %v8074_v19, %s9486_s3  ;;  %6295 = vrot.lane.b32.xlu0 %v8074_v19, %s9487_s4  ;;  %s9494_s3 = smov 106   ;;  %s9588_s4 = smov 21  }
 0x1d8   : > { %6305 = vrot.lane.b32.xlu2 %v8074_v19, %s9488_s8  ;;  %s9589_s8 = smov 22  }
 0x1d9   : > { %v6091_v27 = vpop.permute.xlu1 %6090  ;;  %v6086_v23 = vpop.permute.xlu0 %6085 }
 0x1da   : > { %v8160_v24 = vpop.permute.xlu2 %6140  ;;  %v6093_v9 = vunpack.i.h.bf16 %v6091_v27  ;;  %v6092_v15 = vunpack.i.l.bf16 %v6091_v27  ;;  %v6088_v2 = vunpack.i.h.bf16 %v6086_v23  ;;  %v6087_v34 = vunpack.i.l.bf16 %v6086_v23 }
 0x1db   : > { %v1725_v27 = vsel %vm1724_vm12, %v6047_v21, %v6048_v6  ;;  %v6033_v23 = vunpack.i.h.bf16 %v8092_v25  ;;  %v6142_v6 = vunpack.i.l.bf16 %v8160_v24  ;;  %vm9517_vm12 = vcmask 171008  }
 0x1dc   : > { %v1833_v20 = vsel %vm1832_vm11, %v6092_v15, %v6093_v9  ;;  %v1821_v55 = vsel %vm1820_vm13, %v6087_v34, %v6088_v2  ;;  %vm1772_vm11 = vcmask 269312   ;;  %vm1760_vm13 = vcmask 277504  }
 0x1dd   : > { %v1773_v49 = vsel %vm1772_vm11, %v6067_v50, %v6068_v41  ;;  %v1761_v57 = vsel %vm1760_vm13, %v6062_v18, %v6063_v16  ;;  %vm1712_vm11 = vcmask 310272   ;;  %vm1700_vm13 = vcmask 318464  }
 0x1de   : > { %v1713_v63 = vsel %vm1712_vm11, %v6042_v62, %v6043_v17  ;;  %vm9518_vm11 = vcmask 179200  }
 0x1df   : > { %6315 = vrot.lane.b32.xlu1 %v8074_v19, %s9489_s6  ;;  %6310 = vrot.lane.b32.xlu0 %v8074_v19, %s9490_s9  ;;  %s9492_s6 = smov 107   ;;  %s9590_s9 = smov 17  }
 0x1e0   : > { %6320 = vrot.lane.b32.xlu2 %v8074_v19, %s9491_s7  ;;  %s9493_s7 = smov 108  }
 0x1e1   : > { %v8170_v30 = vpop.permute.xlu1 %6105  ;;  %v6101_v60 = vpop.permute.xlu0 %6100 }
 0x1e2   : > { %v6103_v26 = vunpack.i.h.bf16 %v6101_v60  ;;  %v6102_v13 = vunpack.i.l.bf16 %v6101_v60  ;;  %v8172_v36 = vpop.permute.xlu2 %6155  ;;  %v6027_v60 = vunpack.i.l.bf16 %v8094_v3 }
 0x1e3   : > { %v6158_v50 = vunpack.i.h.bf16 %v8172_v36 }
 0x1e4   : > { %v1857_v28 = vsel %vm1856_vm15, %v6102_v13, %v6103_v26  ;;  %vm1796_vm15 = vcmask 252928   ;;  %v1701_v26 = vsel %vm1700_vm13, %v6037_v29, %v6038_v54  ;;  %v1689_v13 = vsel %vm1688_vm14, %v6032_v39, %v6033_v23 }
 0x1e5   : > { %3017 = vmatpush.msrb.mxu3 %v1857_v28  ;;  %v1797_v61 = vsel %vm1796_vm15, %v6077_v45, %v6078_v10  ;;  %vm1736_vm15 = vcmask 293888   ;;  %v6127_v23 = vunpack.i.l.bf16 %v8152_v14  ;;  %vm9519_vm13 = vcmask 187392  }
 0x1e6   : > { %v1737_v32 = vsel %vm1736_vm15, %v6052_v7, %v6053_v5  ;;  %vm1676_vm15 = vcmask 334848   ;;  %vm9521_vm14 = vcmask 195584  }
 0x1e7   : > { %6330 = vrot.lane.b32.xlu1 %v8074_v19, %s9492_s6  ;;  %6325 = vrot.lane.b32.xlu0 %v8074_v19, %s9493_s7  ;;  %s9496_s6 = smov 105   ;;  %s9497_s7 = smov 104   ;;  %v1677_v15 = vsel %vm1676_vm15, %v6027_v60, %v6028_v0  ;;  %vm9524_vm15 = vcmask 203776  }
 0x1e8   : > { %3018 = vmatpush.msrb.mxu3 %v1845_v47  ;;  %6335 = vrot.lane.b32.xlu2 %v8074_v19, %s9494_s3  ;;  %s9505_s3 = smov 96  }
 0x1e9   : > { %v8182_v38 = vpop.permute.xlu1 %6120  ;;  %v8184_v8 = vpop.permute.xlu0 %6115 }
 0x1ea   : > { %3019 = vmatpush.msrb.mxu3 %v1833_v20  ;;  %v8186_v4 = vpop.permute.xlu2 %6170  ;;  %v6118_v60 = vunpack.i.h.bf16 %v8184_v8 }
 0x1eb   : > { %v6173_v56 = vunpack.i.h.bf16 %v8186_v4  ;;  %v6172_v52 = vunpack.i.l.bf16 %v8186_v4 }
 0x1ec   : > { %3020 = vmatpush.msrb.mxu3 %v1821_v55 }
 0x1ee   : > { %3021 = vmatpush.msrb.mxu3 %v1809_v40  ;;  %v2011_v40 = vsel %vm498_vm2, %v6172_v52, %v6173_v56 }
 0x1ef   : > { %6340 = vrot.lane.b32.xlu0 %v8074_v19, %s9496_s6  ;;  %6345 = vrot.lane.b32.xlu1 %v8074_v19, %s9497_s7  ;;  %s9499_s7 = smov 102   ;;  %s9501_s6 = smov 100  }
 0x1f0   : > { %3022 = vmatpush.msrb.mxu3 %v1797_v61  ;;  %6350 = vrot.lane.b32.xlu2 %v8200_v46, %s9498_s14  ;;  %s9500_s14 = smov 101   ;;  %v6157_v61 = vunpack.i.l.bf16 %v8172_v36 }
 0x1f1   : > { %v8212_v43 = vpop.permute.xlu1 %6135  ;;  %v8214_v51 = vpop.permute.xlu0 %6130 }
 0x1f2   : > { %3023 = vmatpush.msrb.mxu3 %v1785_v12  ;;  %v8216_v35 = vpop.permute.xlu2 %6185  ;;  %v2655_v12 = vld [vmem:[%s9495_s1 + $0x8] sm:$0xff]  ;;  %v1978_v7 = vsel %vm462_vm5, %v6157_v61, %v6158_v50  ;;  %v6138_v62 = vunpack.i.h.bf16 %v8212_v43  ;;  %v6132_v54 = vunpack.i.l.bf16 %v8214_v51 }
 0x1f3   : > { %2913 = vmatmul.f32.vlgmr.msra.gmra.mxu1 %v2655_v12 }
 0x1f4   : > { %3024 = vmatpush.msrb.mxu3 %v1773_v49 }
 0x1f6   : > { %3025 = vmatpush.msrb.mxu3 %v1761_v57  ;;  %v6143_v57 = vunpack.i.h.bf16 %v8160_v24 }
 0x1f7   : > { %6355 = vrot.lane.b32.xlu0 %v8074_v19, %s9499_s7  ;;  %6360 = vrot.lane.b32.xlu1 %v8074_v19, %s9500_s14  ;;  %s9502_s7 = smov 99   ;;  %s9503_s14 = smov 98  }
 0x1f8   : > { %3026 = vmatpush.msrb.mxu3 %v1749_v22  ;;  %6365 = vrot.lane.b32.xlu2 %v8200_v46, %s9501_s6  ;;  %s9504_s6 = smov 97   ;;  %v1945_v29 = vsel %vm426_vm8, %v6142_v6, %v6143_v57  ;;  %v2656_v57 = vld [vmem:[%s9495_s1 + $0x10] sm:$0xff] }
 0x1f9   : > { %v8232_v33 = vpop.permute.xlu1 %6150  ;;  %v8234_v53 = vpop.permute.xlu0 %6145  ;;  %2933 = vmatmul.f32.vlgmr.msra.gmra.mxu2 %v2656_v57 }
 0x1fa   : > { %3027 = vmatpush.msrb.mxu3 %v1737_v32  ;;  %v8236_v37 = vpop.permute.xlu2 %6200  ;;  %v6153_v48 = vunpack.i.h.bf16 %v8232_v33  ;;  %v6152_v59 = vunpack.i.l.bf16 %v8232_v33  ;;  %v6148_v5 = vunpack.i.h.bf16 %v8234_v53  ;;  %v6147_v36 = vunpack.i.l.bf16 %v8234_v53 }
 0x1fb   : > { %v6137_v33 = vunpack.i.l.bf16 %v8212_v43  ;;  %v6133_v32 = vunpack.i.h.bf16 %v8214_v51  ;;  %v6123_v43 = vunpack.i.h.bf16 %v8182_v38 }
 0x1fc   : > { %3028 = vmatpush.msrb.mxu3 %v1725_v27  ;;  %v1967_v21 = vsel %vm450_vm6, %v6152_v59, %v6153_v48  ;;  %v1956_v53 = vsel %vm438_vm7, %v6147_v36, %v6148_v5  ;;  %v6128_v27 = vunpack.i.h.bf16 %v8152_v14 }
 0x1fd   : > { %v1934_v39 = vsel %vm414_vm9, %v6137_v33, %v6138_v62  ;;  %v1923_v0 = vsel %vm9445_vm10, %v6132_v54, %v6133_v32 }
 0x1fe   : > { %3029 = vmatpush.msrb.mxu3 %v1713_v63  ;;  %v6122_v63 = vunpack.i.l.bf16 %v8182_v38 }
 0x1ff   : > { %6370 = vrot.lane.b32.xlu0 %v8074_v19, %s9502_s7  ;;  %6375 = vrot.lane.b32.xlu1 %v8200_v46, %s9503_s14  ;;  %s9506_s7 = smov 95   ;;  %s9507_s14 = smov 94  }
 0x200   : > { %3030 = vmatpush.msrb.mxu3 %v1701_v26  ;;  %6380 = vrot.lane.b32.xlu2 %v8200_v46, %s9504_s6  ;;  %s9512_s6 = smov 89   ;;  %v6117_v26 = vunpack.i.l.bf16 %v8184_v8 }
 0x201   : > { %v6166_v58 = vpop.permute.xlu1 %6165  ;;  %v6161_v25 = vpop.permute.xlu0 %6160 }
 0x202   : > { %3031 = vmatpush.msrb.mxu3 %v1689_v13  ;;  %v8250_v9 = vpop.permute.xlu2 %6215  ;;  %v6168_v10 = vunpack.i.h.bf16 %v6166_v58  ;;  %v6167_v45 = vunpack.i.l.bf16 %v6166_v58  ;;  %v6163_v31 = vunpack.i.h.bf16 %v6161_v25  ;;  %v6162_v44 = vunpack.i.l.bf16 %v6161_v25 }
 0x203   : > { %v1912_v58 = vsel %vm9517_vm12, %v6127_v23, %v6128_v27  ;;  %v6113_v25 = vunpack.i.h.bf16 %v8136_v11  ;;  %v6112_v13 = vunpack.i.l.bf16 %v8136_v11  ;;  %vm9526_vm12 = vcmask 998400  }
 0x204   : > { %3032 = vmatpush.msrb.mxu3 %v1677_v15  ;;  %v2000_v16 = vsel %vm486_vm3, %v6167_v45, %v6168_v10  ;;  %v1989_v49 = vsel %vm474_vm4, %v6162_v44, %v6163_v31  ;;  %v1901_v15 = vsel %vm9518_vm11, %v6122_v63, %v6123_v43  ;;  %vm9527_vm11 = vcmask 1006592  }
 0x205   : > { %v1879_v8 = vsel %vm9521_vm14, %v6112_v13, %v6113_v25  ;;  %vm9529_vm14 = vcmask 1022976   ;;  %v6217_v27 = vunpack.i.l.bf16 %v8250_v9  ;;  %v6202_v25 = vunpack.i.l.bf16 %v8236_v37 }
 0x207   : > { %6385 = vrot.lane.b32.xlu0 %v8074_v19, %s9505_s3  ;;  %6390 = vrot.lane.b32.xlu1 %v8200_v46, %s9506_s7  ;;  %s9508_s7 = smov 93   ;;  %s9509_s3 = smov 92  }
 0x208   : > { %6395 = vrot.lane.b32.xlu2 %v8200_v46, %s9507_s14  ;;  %s9510_s14 = smov 91  }
 0x209   : > { %v6181_v3 = vpop.permute.xlu1 %6180  ;;  %v6176_v28 = vpop.permute.xlu0 %6175 }
 0x20a   : > { %v6183_v47 = vunpack.i.h.bf16 %v6181_v3  ;;  %v6182_v2 = vunpack.i.l.bf16 %v6181_v3  ;;  %v6178_v34 = vunpack.i.h.bf16 %v6176_v28  ;;  %v6177_v20 = vunpack.i.l.bf16 %v6176_v28  ;;  %v8258_v42 = vpop.permute.xlu2 %6230 }
 0x20b   : > { %v6108_v3 = vunpack.i.h.bf16 %v8170_v30  ;;  %v6107_v28 = vunpack.i.l.bf16 %v8170_v30  ;;  %v6233_v5 = vunpack.i.h.bf16 %v8258_v42 }
 0x20c   : > { %v2033_v19 = vsel %vm522_vm0, %v6182_v2, %v6183_v47  ;;  %v2022_v55 = vsel %vm510_vm1, %v6177_v20, %v6178_v34  ;;  %v1890_v47 = vsel %vm9519_vm13, %v6117_v26, %v6118_v60  ;;  %vm9528_vm13 = vcmask 1014784  }
 0x20d   : > { %3037 = vmatpush.msra.mxu0 %v2033_v19  ;;  %v1868_v34 = vsel %vm9524_vm15, %v6107_v28, %v6108_v3  ;;  %vm9530_vm15 = vcmask 1031168  }
 0x20f   : > { %6400 = vrot.lane.b32.xlu0 %v8200_v46, %s9508_s7  ;;  %3038 = vmatpush.msra.mxu0 %v2022_v55  ;;  %s9513_s7 = smov 88  }
 0x210   : > { %6405 = vrot.lane.b32.xlu1 %v8200_v46, %s9509_s3  ;;  %6410 = vrot.lane.b32.xlu2 %v8200_v46, %s9510_s14  ;;  %s9511_s3 = smov 90   ;;  %s9514_s14 = smov 87  }
 0x211   : > { %v8271_v4 = vpop.permute.xlu1 %6195  ;;  %v8273_v41 = vpop.permute.xlu0 %6190  ;;  %3039 = vmatpush.msra.mxu0 %v2011_v40 }
 0x212   : > { %v8278_v18 = vpop.permute.xlu2 %6245  ;;  %v6198_v3 = vunpack.i.h.bf16 %v8271_v4  ;;  %v6197_v28 = vunpack.i.l.bf16 %v8271_v4 }
 0x213   : > { %3040 = vmatpush.msra.mxu0 %v2000_v16  ;;  %v6248_v31 = vunpack.i.h.bf16 %v8278_v18  ;;  %v6247_v44 = vunpack.i.l.bf16 %v8278_v18  ;;  %v6232_v18 = vunpack.i.l.bf16 %v8258_v42 }
 0x215   : > { %3041 = vmatpush.msra.mxu0 %v1989_v49  ;;  %v2178_v48 = vsel %vm9528_vm13, %v6247_v44, %v6248_v31  ;;  %vm9533_vm13 = vcmask 15360  }
 0x217   : > { %6415 = vrot.lane.b32.xlu0 %v8200_v46, %s9511_s3  ;;  %3042 = vmatpush.msra.mxu0 %v1978_v7  ;;  %s9516_s3 = smov 85  }
 0x218   : > { %6420 = vrot.lane.b32.xlu1 %v8200_v46, %s9512_s6  ;;  %6425 = vrot.lane.b32.xlu2 %v8200_v46, %s9513_s7  ;;  %s9515_s6 = smov 86   ;;  %s9520_s7 = smov 84  }
 0x219   : > { %v8298_v22 = vpop.permute.xlu1 %6210  ;;  %v8300_v17 = vpop.permute.xlu0 %6205  ;;  %3043 = vmatpush.msra.mxu0 %v1967_v21 }
 0x21a   : > { %v8305_v24 = vpop.permute.xlu2 %6260  ;;  %v6207_v26 = vunpack.i.l.bf16 %v8300_v17 }
 0x21b   : > { %3044 = vmatpush.msra.mxu0 %v1956_v53 }
 0x21d   : > { %3045 = vmatpush.msra.mxu0 %v1945_v29  ;;  %v6218_v29 = vunpack.i.h.bf16 %v8250_v9 }
 0x21f   : > { %6430 = vrot.lane.b32.xlu0 %v8200_v46, %s9514_s14  ;;  %3046 = vmatpush.msra.mxu0 %v1934_v39  ;;  %s9523_s14 = smov 82  }
 0x220   : > { %6435 = vrot.lane.b32.xlu1 %v8200_v46, %s9515_s6  ;;  %6440 = vrot.lane.b32.xlu2 %v8200_v46, %s9516_s3  ;;  %s9522_s6 = smov 83   ;;  %s9525_s3 = smov 81  }
 0x221   : > { %v8322_v51 = vpop.permute.xlu1 %6225  ;;  %v8324_v14 = vpop.permute.xlu0 %6220  ;;  %3047 = vmatpush.msra.mxu0 %v1923_v0  ;;  %v6213_v0 = vunpack.i.h.bf16 %v8298_v22 }
 0x222   : > { %v8329_v38 = vpop.permute.xlu2 %6275  ;;  %v6228_v21 = vunpack.i.h.bf16 %v8322_v51  ;;  %v6227_v62 = vunpack.i.l.bf16 %v8322_v51  ;;  %v6223_v42 = vunpack.i.h.bf16 %v8324_v14  ;;  %v6222_v53 = vunpack.i.l.bf16 %v8324_v14 }
 0x223   : > { %3048 = vmatpush.msra.mxu0 %v1912_v58  ;;  %v6212_v51 = vunpack.i.l.bf16 %v8298_v22  ;;  %v6203_v58 = vunpack.i.h.bf16 %v8236_v37  ;;  %v6188_v37 = vunpack.i.h.bf16 %v8216_v35 }
 0x224   : > { %v2121_v14 = vsel %vm9533_vm13, %v6222_v53, %v6223_v42  ;;  %vm9538_vm13 = vcmask 48128  }
 0x225   : > { %3049 = vmatpush.msra.mxu0 %v1901_v15 }
 0x227   : > { %6445 = vrot.lane.b32.xlu0 %v8200_v46, %s9520_s7  ;;  %3050 = vmatpush.msra.mxu0 %v1890_v47  ;;  %v6193_v47 = vunpack.i.h.bf16 %v8273_v41  ;;  %s9586_s7 = smov 25  }
 0x228   : > { %6450 = vrot.lane.b32.xlu1 %v8200_v46, %s9522_s6  ;;  %6455 = vrot.lane.b32.xlu2 %v8200_v46, %s9523_s14  ;;  %s9584_s14 = smov 23   ;;  %s9585_s6 = smov 24  }
 0x229   : > { %v6241_v11 = vpop.permute.xlu1 %6240  ;;  %v6236_v2 = vpop.permute.xlu0 %6235  ;;  %3051 = vmatpush.msra.mxu0 %v1879_v8  ;;  %v6192_v8 = vunpack.i.l.bf16 %v8273_v41 }
 0x22a   : > { %v8345_v30 = vpop.permute.xlu2 %6290  ;;  %v6243_v50 = vunpack.i.h.bf16 %v6241_v11  ;;  %v6242_v61 = vunpack.i.l.bf16 %v6241_v11  ;;  %v6237_v12 = vunpack.i.l.bf16 %v6236_v2  ;;  %v2077_v11 = vsel %vm9538_vm13, %v6202_v25, %v6203_v58 }
 0x22b   : > { %3052 = vmatpush.msra.mxu0 %v1868_v34  ;;  %vm9543_vm13 = vcmask 883712  }
 0x22c   : > { %v2167_v36 = vsel %vm9529_vm14, %v6242_v61, %v6243_v50  ;;  %vm9534_vm14 = vcmask 867328  }
 0x22f   : > { %6460 = vrot.lane.b32.xlu0 %v8200_v46, %s9525_s3  ;;  %v6238_v46 = vunpack.i.h.bf16 %v6236_v2  ;;  %v6187_v2 = vunpack.i.l.bf16 %v8216_v35  ;;  %s9587_s3 = smov 20  }
 0x231   : > { %v6256_v20 = vpop.permute.xlu1 %6255  ;;  %v6251_v56 = vpop.permute.xlu0 %6250  ;;  %v2156_v6 = vsel %vm9530_vm15, %v6237_v12, %v6238_v46  ;;  %vm9535_vm15 = vcmask 23552  }
 0x232   : > { %v6258_v52 = vunpack.i.h.bf16 %v6256_v20  ;;  %v6257_v19 = vunpack.i.l.bf16 %v6256_v20  ;;  %v6253_v10 = vunpack.i.h.bf16 %v6251_v56  ;;  %v6252_v45 = vunpack.i.l.bf16 %v6251_v56  ;;  %v8349_v55 = vpop.permute.xlu2 %6305 }
 0x233   : > { %v2110_v9 = vsel %vm9535_vm15, %v6217_v27, %v6218_v29  ;;  %vm9540_vm15 = vcmask 64512  }
 0x234   : > { %v2200_v40 = vsel %vm9526_vm12, %v6257_v19, %v6258_v52  ;;  %v2189_v16 = vsel %vm9527_vm11, %v6252_v45, %v6253_v10  ;;  %vm9531_vm12 = vcmask 1039360   ;;  %vm9532_vm11 = vcmask 7168  }
 0x235   : > { %3057 = vmatpush.msra.mxu1 %v2200_v40  ;;  %v2145_v33 = vsel %vm9531_vm12, %v6232_v18, %v6233_v5  ;;  %v2132_v23 = vsel %vm9532_vm11, %v6227_v62, %v6228_v21  ;;  %vm9536_vm12 = vcmask 31744   ;;  %vm9537_vm11 = vcmask 39936  }
 0x236   : > { %v2099_v13 = vsel %vm9536_vm12, %v6212_v51, %v6213_v0  ;;  %v2055_v20 = vsel %vm9540_vm15, %v6192_v8, %v6193_v47  ;;  %vm9541_vm12 = vcmask 72704   ;;  %v6307_v21 = vunpack.i.l.bf16 %v8349_v55 }
 0x237   : > { %3058 = vmatpush.msra.mxu1 %v2189_v16  ;;  %v2044_v52 = vsel %vm9541_vm12, %v6187_v2, %v6188_v37  ;;  %vm9545_vm15 = vcmask 900096   ;;  %vm9546_vm12 = vcmask 908288  }
 0x239   : > { %v8356_v59 = vpop.permute.xlu1 %6270  ;;  %v8358_v49 = vpop.permute.xlu0 %6265  ;;  %3059 = vmatpush.msra.mxu1 %v2178_v48 }
 0x23a   : > { %v8363_v7 = vpop.permute.xlu2 %6320  ;;  %v6272_v47 = vunpack.i.l.bf16 %v8356_v59  ;;  %v6268_v2 = vunpack.i.h.bf16 %v8358_v49 }
 0x23b   : > { %3060 = vmatpush.msra.mxu1 %v2167_v36  ;;  %v6323_v35 = vunpack.i.h.bf16 %v8363_v7  ;;  %v6322_v50 = vunpack.i.l.bf16 %v8363_v7  ;;  %v6308_v7 = vunpack.i.h.bf16 %v8349_v55  ;;  %v6293_v55 = vunpack.i.h.bf16 %v8345_v30 }
 0x23d   : > { %3061 = vmatpush.msra.mxu1 %v2156_v6 }
 0x23f   : > { %3062 = vmatpush.msra.mxu1 %v2145_v33  ;;  %v2657_v33 = vld [vmem:[%s9495_s1 + $0x18] sm:$0xff] }
 0x240   : > { %2953 = vmatmul.f32.vlgmr.msra.gmra.mxu3 %v2657_v33 }
 0x241   : > { %v8374_v32 = vpop.permute.xlu1 %6285  ;;  %v8376_v54 = vpop.permute.xlu0 %6280  ;;  %3063 = vmatpush.msra.mxu1 %v8194_v1  ;;  %v6208_v1 = vunpack.i.h.bf16 %v8300_v17 }
 0x242   : > { %v6336_v39 = vpop.permute.xlu2 %6335  ;;  %v6282_v58 = vunpack.i.l.bf16 %v8376_v54 }
 0x243   : > { %3064 = vmatpush.msra.mxu1 %v2132_v23  ;;  %v6338_v43 = vunpack.i.h.bf16 %v6336_v39  ;;  %v6337_v63 = vunpack.i.l.bf16 %v6336_v39  ;;  %v2088_v17 = vsel %vm9537_vm11, %v6207_v26, %v6208_v1  ;;  %vm9542_vm11 = vcmask 875520   ;;  %v2660_v26 = vld [vmem:[%s9495_s1 + $0x30] sm:$0xff] }
 0x244   : > { %3013 = vmatmul.f32.vlgmr.msrb.gmra.mxu2 %v2660_v26 }
 0x245   : > { %3065 = vmatpush.msra.mxu1 %v2121_v14  ;;  %v2376_v60 = vsel %vm9534_vm14, %v6337_v63, %v6338_v43  ;;  %vm9539_vm14 = vcmask 56320   ;;  %v6292_v43 = vunpack.i.l.bf16 %v8345_v30  ;;  %v6288_v14 = vunpack.i.h.bf16 %v8374_v32 }
 0x246   : > { %3077 = vmatpush.msra.mxu2 %v2376_v60  ;;  %v2066_v34 = vsel %vm9539_vm14, %v6197_v28, %v6198_v3  ;;  %vm9544_vm14 = vcmask 891904   ;;  %v6287_v60 = vunpack.i.l.bf16 %v8374_v32  ;;  %v6283_v30 = vunpack.i.h.bf16 %v8376_v54  ;;  %v2658_v32 = vld [vmem:[%s9495_s1 + $0x20] sm:$0xff]  ;;  %v2659_v54 = vld [vmem:[%s9495_s1 + $0x28] sm:$0xff] }
 0x247   : > { %3066 = vmatpush.msra.mxu1 %v2110_v9  ;;  %v2343_v18 = vsel %vm9544_vm14, %v6322_v50, %v6323_v35  ;;  %vm9549_vm14 = vcmask 932864   ;;  %2973 = vmatmul.f32.vlgmr.msrb.gmra.mxu0 %v2658_v32  ;;  %v2868_v28 = vld [vmem:[%s9552_s2] sm:$0xff]  ;;  %s9592_s2 = smov 19  }
 0x248   : > { %2993 = vmatmul.f32.vlgmr.msrb.gmra.mxu1 %v2659_v54 }
 0x249   : > { %v6301_v22 = vpop.permute.xlu1 %6300  ;;  %v8392_v15 = vpop.permute.xlu0 %6295  ;;  %3067 = vmatpush.msra.mxu1 %v2099_v13  ;;  %v2661_v13 = vld [vmem:[%s9495_s1 + $0x38] sm:$0xff] }
 0x24a   : > { %v8405_v19 = vpop.permute.xlu2 %6350  ;;  %v6303_v42 = vunpack.i.h.bf16 %v6301_v22  ;;  %v6302_v53 = vunpack.i.l.bf16 %v6301_v22  ;;  %v6298_v27 = vunpack.i.h.bf16 %v8392_v15  ;;  %v6297_v23 = vunpack.i.l.bf16 %v8392_v15  ;;  %3033 = vmatmul.f32.vlgmr.msrb.gmra.mxu3 %v2661_v13 }
 0x24b   : > { %3068 = vmatpush.msra.mxu1 %v2088_v17  ;;  %v6278_v22 = vunpack.i.h.bf16 %v8329_v38  ;;  %v6277_v15 = vunpack.i.l.bf16 %v8329_v38  ;;  %v6273_v17 = vunpack.i.h.bf16 %v8356_v59  ;;  %v7355_v38 = vmov 0  }
 0x24c   : > { %v2288_v1 = vsel %vm9549_vm14, %v6297_v23, %v6298_v27  ;;  %6464 = vset.pattern.permute.xlu1 %v7355_v38  ;;  %7215 = vset.pattern.permute.xlu0 %v7355_v38  ;;  %v6263_v59 = vunpack.i.h.bf16 %v8305_v24  ;;  %vm9555_vm14 = vcmask 973824  }
 0x24d   : > { %3069 = vmatpush.msra.mxu1 %v2077_v11  ;;  %2871 = vperm.xlu1 %6464, %v2868_v28  }
 0x24f   : > { %3070 = vmatpush.msra.mxu1 %v2066_v34  ;;  %v6267_v34 = vunpack.i.l.bf16 %v8358_v49  ;;  %v2664_v49 = vld [vmem:[%s9495_s1 + $0x50] sm:$0xff] }
 0x251   : > { %v6316_v4 = vpop.permute.xlu1 %6315  ;;  %v6311_v56 = vpop.permute.xlu0 %6310  ;;  %3071 = vmatpush.msra.mxu1 %v2055_v20 }
 0x252   : > { %v6318_v16 = vunpack.i.h.bf16 %v6316_v4  ;;  %v6317_v46 = vunpack.i.l.bf16 %v6316_v4  ;;  %v6313_v48 = vunpack.i.h.bf16 %v6311_v56  ;;  %v6312_v5 = vunpack.i.l.bf16 %v6311_v56  ;;  %v8412_v36 = vpop.permute.xlu2 %6365 }
 0x253   : > { %3072 = vmatpush.msra.mxu1 %v2044_v52  ;;  %v6262_v4 = vunpack.i.l.bf16 %v8305_v24  ;;  %v2233_v56 = vsel %vm9555_vm14, %v6272_v47, %v6273_v17  ;;  %v2663_v24 = vld [vmem:[%s9495_s1 + $0x48] sm:$0xff]  ;;  %vm9560_vm14 = vcmask 752640   ;;  %v6368_v47 = vunpack.i.h.bf16 %v8412_v36 }
 0x254   : > { %v2332_v62 = vsel %vm9545_vm15, %v6317_v46, %v6318_v16  ;;  %v2321_v29 = vsel %vm9546_vm12, %v6312_v5, %v6313_v48  ;;  %vm9550_vm15 = vcmask 941056   ;;  %vm9551_vm12 = vcmask 949248   ;;  %3073 = vmatmul.f32.vlgmr.msra.gmra.mxu1 %v2663_v24 }
 0x255   : > { %v2277_v25 = vsel %vm9550_vm15, %v6292_v43, %v6293_v55  ;;  %v2266_v3 = vsel %vm9551_vm12, %v6287_v60, %v6288_v14  ;;  %vm9556_vm15 = vcmask 982016   ;;  %vm9557_vm12 = vcmask 990208  }
 0x259   : > { %v6331_v41 = vpop.permute.xlu1 %6330  ;;  %v6326_v10 = vpop.permute.xlu0 %6325 }
 0x25a   : > { %v6333_v45 = vunpack.i.h.bf16 %v6331_v41  ;;  %v6332_v31 = vunpack.i.l.bf16 %v6331_v41  ;;  %v6328_v44 = vunpack.i.h.bf16 %v6326_v10  ;;  %v6327_v40 = vunpack.i.l.bf16 %v6326_v10  ;;  %v8441_v9 = vpop.permute.xlu2 %6380  ;;  %v2662_v41 = vld [vmem:[%s9495_s1 + $0x40] sm:$0xff] }
 0x25b   : > { %v2222_v10 = vsel %vm9556_vm15, %v6267_v34, %v6268_v2  ;;  %3053 = vmatmul.f32.vlgmr.msra.gmra.mxu0 %v2662_v41  ;;  %vm9561_vm15 = vcmask 760832   ;;  %v6352_v41 = vunpack.i.l.bf16 %v8405_v19 }
 0x25c   : > { %v2365_v61 = vsel %vm9542_vm11, %v6332_v31, %v6333_v45  ;;  %v2354_v12 = vsel %vm9543_vm13, %v6327_v40, %v6328_v44  ;;  %vm9547_vm11 = vcmask 916480   ;;  %vm9548_vm13 = vcmask 924672  }
 0x25d   : > { %3078 = vmatpush.msra.mxu2 %v2365_v61  ;;  %v2310_v39 = vsel %vm9547_vm11, %v6307_v21, %v6308_v7  ;;  %v2299_v63 = vsel %vm9548_vm13, %v6302_v53, %v6303_v42  ;;  %vm9553_vm11 = vcmask 957440   ;;  %vm9554_vm13 = vcmask 965632  }
 0x25e   : > { %v2255_v8 = vsel %vm9553_vm11, %v6282_v58, %v6283_v30  ;;  %v2244_v20 = vsel %vm9554_vm13, %v6277_v15, %v6278_v22  ;;  %v2211_v45 = vsel %vm9557_vm12, %v6262_v4, %v6263_v59  ;;  %vm9558_vm11 = vcmask 736256  }
 0x25f   : > { %3079 = vmatpush.msra.mxu2 %v2354_v12  ;;  %vm9559_vm13 = vcmask 744448   ;;  %vm9562_vm12 = vcmask 769024   ;;  %v6383_v58 = vunpack.i.h.bf16 %v8441_v9 }
 0x261   : > { %v8414_v57 = vpop.permute.xlu0 %6340  ;;  %3080 = vmatpush.msra.mxu2 %v2343_v18  ;;  %v8416_v6 = vpop.permute.xlu1 %6345 }
 0x262   : > { %v6396_v52 = vpop.permute.xlu2 %6395 }
 0x263   : > { %3081 = vmatpush.msra.mxu2 %v2332_v62  ;;  %v6398_v27 = vunpack.i.h.bf16 %v6396_v52  ;;  %v6397_v23 = vunpack.i.l.bf16 %v6396_v52  ;;  %v6353_v52 = vunpack.i.h.bf16 %v8405_v19  ;;  %v6343_v19 = vunpack.i.h.bf16 %v8414_v57 }
 0x265   : > { %3082 = vmatpush.msra.mxu2 %v2321_v29  ;;  %v2508_v26 = vsel %vm9562_vm12, %v6397_v23, %v6398_v27  ;;  %vm9567_vm12 = vcmask 809984  }
 0x267   : > { %3083 = vmatpush.msra.mxu2 %v2310_v39 }
 0x269   : > { %v8431_v0 = vpop.permute.xlu0 %6355  ;;  %3084 = vmatpush.msra.mxu2 %v2299_v63  ;;  %v8433_v51 = vpop.permute.xlu1 %6360 }
 0x26a   : > { %v6411_v40 = vpop.permute.xlu2 %6410  ;;  %v6363_v38 = vunpack.i.h.bf16 %v8433_v51  ;;  %v6358_v59 = vunpack.i.h.bf16 %v8431_v0  ;;  %v6357_v4 = vunpack.i.l.bf16 %v8431_v0 }
 0x26b   : > { %3085 = vmatpush.msra.mxu2 %v2288_v1  ;;  %v6413_v61 = vunpack.i.h.bf16 %v6411_v40  ;;  %v6412_v16 = vunpack.i.l.bf16 %v6411_v40  ;;  %v6347_v40 = vunpack.i.l.bf16 %v8416_v6 }
 0x26d   : > { %3086 = vmatpush.msra.mxu2 %v2277_v25  ;;  %v2541_v33 = vsel %vm9559_vm13, %v6412_v16, %v6413_v61  ;;  %v6382_v25 = vunpack.i.l.bf16 %v8441_v9  ;;  %vm9564_vm13 = vcmask 785408   ;;  %v6367_v9 = vunpack.i.l.bf16 %v8412_v36 }
 0x26e   : > { %v6342_v16 = vunpack.i.l.bf16 %v8414_v57 }
 0x26f   : > { %3087 = vmatpush.msra.mxu2 %v2266_v3 }
 0x271   : > { %v8464_v11 = vpop.permute.xlu0 %6370  ;;  %3088 = vmatpush.msra.mxu2 %v2255_v8  ;;  %v8466_v37 = vpop.permute.xlu1 %6375 }
 0x272   : > { %v8485_v12 = vpop.permute.xlu2 %6425  ;;  %v6378_v13 = vunpack.i.h.bf16 %v8466_v37  ;;  %v6377_v22 = vunpack.i.l.bf16 %v8466_v37  ;;  %v6373_v54 = vunpack.i.h.bf16 %v8464_v11  ;;  %v6372_v28 = vunpack.i.l.bf16 %v8464_v11 }
 0x273   : > { %3089 = vmatpush.msra.mxu2 %v2244_v20  ;;  %v6362_v37 = vunpack.i.l.bf16 %v8433_v51 }
 0x274   : > { %v2453_v34 = vsel %vm9567_vm12, %v6372_v28, %v6373_v54  ;;  %vm9572_vm12 = vcmask 670720  }
 0x275   : > { %3090 = vmatpush.msra.mxu2 %v2233_v56 }
 0x277   : > { %3091 = vmatpush.msra.mxu2 %v2222_v10 }
 0x279   : > { %v6386_v31 = vpop.permute.xlu0 %6385  ;;  %3092 = vmatpush.msra.mxu2 %v2211_v45  ;;  %v6391_v44 = vpop.permute.xlu1 %6390 }
 0x27a   : > { %3093 = vmatmul.f32.vlgmr.msra.gmra.mxu2 %v2664_v49  ;;  %v6393_v55 = vunpack.i.h.bf16 %v6391_v44  ;;  %v6392_v43 = vunpack.i.l.bf16 %v6391_v44  ;;  %v8495_v14 = vpop.permute.xlu2 %6440  ;;  %v6388_v60 = vunpack.i.h.bf16 %v6386_v31  ;;  %v6387_v1 = vunpack.i.l.bf16 %v6386_v31 }
 0x27b   : > { %v6348_v44 = vunpack.i.h.bf16 %v8416_v6  ;;  %v6443_v6 = vunpack.i.h.bf16 %v8495_v14 }
 0x27c   : > { %v2486_v15 = vsel %vm9564_vm13, %v6387_v1, %v6388_v60  ;;  %vm9569_vm13 = vcmask 826368  }
 0x27d   : > { %v2431_v51 = vsel %vm9569_vm13, %v6362_v37, %v6363_v38  ;;  %vm9574_vm13 = vcmask 678912  }
 0x281   : > { %v6401_v35 = vpop.permute.xlu0 %6400 }
 0x282   : > { %v6406_v50 = vpop.permute.xlu1 %6405  ;;  %v6403_v42 = vunpack.i.h.bf16 %v6401_v35  ;;  %v6402_v53 = vunpack.i.l.bf16 %v6401_v35  ;;  %v6456_v2 = vpop.permute.xlu2 %6455 }
 0x283   : > { %v6408_v18 = vunpack.i.h.bf16 %v6406_v50  ;;  %v6407_v7 = vunpack.i.l.bf16 %v6406_v50  ;;  %v6458_v36 = vunpack.i.h.bf16 %v6456_v2  ;;  %v6457_v56 = vunpack.i.l.bf16 %v6456_v2 }
 0x284   : > { %v2519_v63 = vsel %vm9561_vm15, %v6402_v53, %v6403_v42  ;;  %vm9566_vm15 = vcmask 801792  }
 0x285   : > { %v2530_v29 = vsel %vm9560_vm14, %v6407_v7, %v6408_v18  ;;  %vm9565_vm14 = vcmask 793600   ;;  %v2464_v8 = vsel %vm9566_vm15, %v6377_v22, %v6378_v13  ;;  %vm9571_vm15 = vcmask 662528   ;;  %v2934_v13 = vpop.f32.mrf.mxu2 }
 0x286   : > { %v2475_v17 = vsel %vm9565_vm14, %v6382_v25, %v6383_v58  ;;  %vm9570_vm14 = vcmask 834560   ;;  %v2640_v50 = vsel %vm9572_vm12, %v6457_v56, %v6458_v36  ;;  %v6442_v18 = vunpack.i.l.bf16 %v8495_v14  ;;  %v2894_v58 = vpop.f32.mrf.mxu0 }
 0x287   : > { %v2420_v0 = vsel %vm9570_vm14, %v6357_v4, %v6358_v59  ;;  %vm9575_vm14 = vcmask 850944   ;;  %vm9577_vm12 = vcmask 687104   ;;  %v331_v4 = vlaneseq }
 0x288   : > { %v2398_v7 = vsel %vm9575_vm14, %v6347_v40, %v6348_v44  ;;  %vm9580_vm14 = vcmask 711680  }
 0x289   : > { %v6416_v46 = vpop.permute.xlu0 %6415 }
 0x28a   : > { %v6418_v48 = vunpack.i.h.bf16 %v6416_v46  ;;  %v6417_v5 = vunpack.i.l.bf16 %v6416_v46  ;;  %v8487_v21 = vpop.permute.xlu1 %6420 }
 0x28b   : > { %v6423_v14 = vunpack.i.h.bf16 %v8487_v21  ;;  %v6422_v60 = vunpack.i.l.bf16 %v8487_v21 }
 0x28c   : > { %v2552_v62 = vsel %vm9558_vm11, %v6417_v5, %v6418_v48  ;;  %vm9563_vm11 = vcmask 777216  }
 0x28d   : > { %3097 = vmatpush.msra.mxu3 %v2552_v62  ;;  %v2497_v32 = vsel %vm9563_vm11, %v6392_v43, %v6393_v55  ;;  %vm9568_vm11 = vcmask 818176   ;;  %v2665_v62 = vld [vmem:[%s9495_s1 + $0x58] sm:$0xff]  ;;  %v6428_v55 = vunpack.i.h.bf16 %v8485_v12  ;;  %v6427_v43 = vunpack.i.l.bf16 %v8485_v12 }
 0x28e   : > { %v2442_v11 = vsel %vm9568_vm11, %v6367_v9, %v6368_v47  ;;  %vm9573_vm11 = vcmask 842752  }
 0x28f   : > { %3098 = vmatpush.msra.mxu3 %v2541_v33  ;;  %v2409_v61 = vsel %vm9573_vm11, %v6352_v41, %v6353_v52  ;;  %vm9578_vm11 = vcmask 695296   ;;  %v8555_v52 = vand.u32 127, %v331_v4 }
 0x290   : > { %v2607_v23 = vsel %vm9578_vm11, %v6442_v18, %v6443_v6  ;;  %vm9583_vm11 = vcmask 588800  }
 0x291   : > { %v8492_v39 = vpop.permute.xlu0 %6430  ;;  %3099 = vmatpush.msra.mxu3 %v2530_v29 }
 0x292   : > { %v8498_v30 = vpop.permute.xlu1 %6435  ;;  %v6433_v29 = vunpack.i.h.bf16 %v8492_v39  ;;  %v6432_v27 = vunpack.i.l.bf16 %v8492_v39 }
 0x293   : > { %3100 = vmatpush.msra.mxu3 %v2519_v63  ;;  %v6438_v57 = vunpack.i.h.bf16 %v8498_v30  ;;  %v6437_v33 = vunpack.i.l.bf16 %v8498_v30 }
 0x294   : > { %v2585_v1 = vsel %vm9580_vm14, %v6432_v27, %v6433_v29  ;;  %vm9613_vm14 = vcmask 171008  }
 0x295   : > { %3101 = vmatpush.msra.mxu3 %v2508_v26  ;;  %v2666_v26 = vld [vmem:[%s9495_s1 + $0x60] sm:$0xff]  ;;  %s9591_s1 = smov 18  }
 0x297   : > { %3102 = vmatpush.msra.mxu3 %v2497_v32  ;;  %v2914_v32 = vpop.f32.mrf.mxu1 }
 0x299   : > { %v6446_v3 = vpop.permute.xlu0 %6445  ;;  %3103 = vmatpush.msra.mxu3 %v2486_v15 }
 0x29a   : > { %v6451_v20 = vpop.permute.xlu1 %6450  ;;  %v6448_v46 = vunpack.i.h.bf16 %v6446_v3  ;;  %v6447_v48 = vunpack.i.l.bf16 %v6446_v3 }
 0x29b   : > { %3104 = vmatpush.msra.mxu3 %v2475_v17  ;;  %v6453_v45 = vunpack.i.h.bf16 %v6451_v20  ;;  %v6452_v31 = vunpack.i.l.bf16 %v6451_v20 }
 0x29c   : > { %v2618_v53 = vsel %vm9577_vm12, %v6447_v48, %v6448_v46  ;;  %vm9582_vm12 = vcmask 728064  }
 0x29d   : > { %3105 = vmatpush.msra.mxu3 %v2464_v8  ;;  %v2629_v5 = vsel %vm9574_vm13, %v6452_v31, %v6453_v45  ;;  %vm9579_vm13 = vcmask 703488   ;;  %v2563_v30 = vsel %vm9582_vm12, %v6422_v60, %v6423_v14  ;;  %v7356_v45 = vmov 0.0  }
 0x29e   : > { %v2596_v63 = vsel %vm9579_vm13, %v6437_v33, %v6438_v57  ;;  %vm333_vm13 = vcmp.lt.s32.totalorder %v8555_v52, 106  ;;  %vm9615_vm12 = vcmask 187392  }
 0x29f   : > { %3106 = vmatpush.msra.mxu3 %v2453_v34 }
 0x2a1   : > { %v6461_v10 = vpop.permute.xlu0 %6460  ;;  %3107 = vmatpush.msra.mxu3 %v2442_v11 }
 0x2a2   : > { %v6463_v49 = vunpack.i.h.bf16 %v6461_v10  ;;  %v6462_v24 = vunpack.i.l.bf16 %v6461_v10 }
 0x2a3   : > { %3108 = vmatpush.msra.mxu3 %v2431_v51 }
 0x2a4   : > { %v2651_v35 = vsel %vm9571_vm15, %v6462_v24, %v6463_v49  ;;  %vm9576_vm15 = vcmask 859136  }
 0x2a5   : > { %3109 = vmatpush.msra.mxu3 %v2420_v0  ;;  %3124 = vmatpush.msrb.mxu0 %v2651_v35  ;;  %v2387_v42 = vsel %vm9576_vm15, %v6342_v16, %v6343_v19  ;;  %vm9581_vm15 = vcmask 719872  }
 0x2a6   : > { %v2574_v39 = vsel %vm9581_vm15, %v6427_v43, %v6428_v55  ;;  %vm9614_vm15 = vcmask 179200  }
 0x2a7   : > { %3110 = vmatpush.msra.mxu3 %v2409_v61  ;;  %3125 = vmatpush.msrb.mxu0 %v2640_v50 }
 0x2a9   : > { %3111 = vmatpush.msra.mxu3 %v2398_v7  ;;  %3126 = vmatpush.msrb.mxu0 %v2629_v5 }
 0x2ab   : > { %3112 = vmatpush.msra.mxu3 %v2387_v42  ;;  %3127 = vmatpush.msrb.mxu0 %v2618_v53 }
 0x2ac   : > { %3113 = vmatmul.f32.vlgmr.msra.gmra.mxu3 %v2665_v62 }
 0x2ad   : > { %3128 = vmatpush.msrb.mxu0 %v2607_v23 }
 0x2af   : > { %3129 = vmatpush.msrb.mxu0 %v2596_v63 }
 0x2b1   : > { %3130 = vmatpush.msrb.mxu0 %v2585_v1 }
 0x2b3   : > { %3131 = vmatpush.msrb.mxu0 %v2574_v39 }
 0x2b5   : > { %3132 = vmatpush.msrb.mxu0 %v2563_v30 }
 0x2b6   : > { %5321 = vmatmul.msk.f32.vlgmr.msrb.gmra.mxu0 %vm9583_vm11, %v2666_v26  ;;  %vm9616_vm11 = vcmask 998400  }
 0x2bf   : > { %v2872_v12 = vpop.permute.xlu1 %2871 }
 0x2c0   : > { %v2895_v25 = vadd.f32 %v2894_v58, %v2872_v12 }
 0x2c2   : > { %v2915_v21 = vadd.f32 %v2914_v32, %v2895_v25 }
 0x2c3   : > { %v2954_v15 = vpop.f32.mrf.mxu3 }
 0x2c4   : > { %v2935_v22 = vadd.f32 %v2934_v13, %v2915_v21  ;;  %v2974_v54 = vpop.f32.mrf.mxu0 }
 0x2c5   : > { %v2994_v17 = vpop.f32.mrf.mxu1 }
 0x2c6   : > { %v2955_v3 = vadd.f32 %v2954_v15, %v2935_v22 }
 0x2c7   : > { %v3014_v9 = vpop.f32.mrf.mxu2 }
 0x2c8   : > { %v2975_v28 = vadd.f32 %v2974_v54, %v2955_v3 }
 0x2ca   : > { %v2995_v47 = vadd.f32 %v2994_v17, %v2975_v28 }
 0x2cc   : > { %v3015_v8 = vadd.f32 %v3014_v9, %v2995_v47 }
 0x2cd   : > { %v3034_v38 = vpop.f32.mrf.mxu3 }
 0x2ce   : > { %v3035_v37 = vadd.f32 %v3034_v38, %v3015_v8 }
 0x2d1   : > { %v3074_v11 = vpop.f32.mrf.mxu1 }
 0x2d8   : > { %v3054_v2 = vpop.f32.mrf.mxu0 }
 0x2d9   : > { %v3055_v34 = vadd.f32 %v3054_v2, %v3035_v37 }
 0x2db   : > { %v3075_v20 = vadd.f32 %v3074_v11, %v3055_v34 }
 0x2fd   : > { %v3094_v59 = vpop.f32.mrf.mxu2 }
 0x2fe   : > { %v3095_v56 = vadd.f32 %v3094_v59, %v3075_v20 }
 0x32f   : > { %v3114_v36 = vpop.f32.mrf.mxu3 }
 0x330   : > { %v3115_v41 = vadd.f32 %v3114_v36, %v3095_v56 }
 0x333   : > { %v3134_v10 = vpop.f32.mrf.mxu0 }
 0x334   : > { %v8557_v51 = vadd.f32 %v3134_v10, %v3115_v41 }
 0x336   : > { %v3137_v49 = vmax.f32 %v8557_v51, 0.0 }
 0x338   : > { %v3138_v24 = vsel %vm333_vm13, %v3137_v49, 0.0 }
 0x339   : > { %v6475_v31 = vpack.i.bf16 %v3138_v24, %v7356_v45  ;;  %v6595_v44 = vpack.i.bf16 0.0, %v3138_v24 }
 0x33b   : > { %6476 = vrot.lane.b32.xlu1 %v6475_v31, %s9584_s14  ;;  %6471 = vrot.lane.b32.xlu0 %v6475_v31, %s9585_s6  ;;  %s9593_s14 = smov 16  }
 0x33c   : > { %6466 = vrot.lane.b32.xlu2 %v6475_v31, %s9586_s7 }
 0x343   : > { %6491 = vrot.lane.b32.xlu1 %v6475_v31, %s9587_s3  ;;  %6486 = vrot.lane.b32.xlu0 %v6475_v31, %s9588_s4 }
 0x344   : > { %6481 = vrot.lane.b32.xlu2 %v6475_v31, %s9589_s8 }
 0x34b   : > { %6506 = vrot.lane.b32.xlu1 %v6475_v31, %s9590_s9  ;;  %6501 = vrot.lane.b32.xlu0 %v6475_v31, %s9591_s1  ;;  %s9594_s9 = smov 10  }
 0x34c   : > { %6496 = vrot.lane.b32.xlu2 %v6475_v31, %s9592_s2 }
 0x353   : > { %6521 = vrot.lane.b32.xlu1 %v6475_v31, %s9462_s28  ;;  %6516 = vrot.lane.b32.xlu0 %v6475_v31, %s9460_s13  ;;  %s9595_s28 = smov 7  }
 0x354   : > { %6511 = vrot.lane.b32.xlu2 %v6475_v31, %s9593_s14 }
 0x35b   : > { %6536 = vrot.lane.b32.xlu1 %v6475_v31, %s9464_s26  ;;  %6531 = vrot.lane.b32.xlu0 %v6475_v31, %s9463_s11 }
 0x35c   : > { %6526 = vrot.lane.b32.xlu2 %v6475_v31, %s9461_s24 }
 0x363   : > { %6551 = vrot.lane.b32.xlu1 %v6475_v31, %s9466_s12  ;;  %6546 = vrot.lane.b32.xlu0 %v6475_v31, %s9465_s29 }
 0x364   : > { %6541 = vrot.lane.b32.xlu2 %v6475_v31, %s9594_s9 }
 0x36b   : > { %6566 = vrot.lane.b32.xlu1 %v6475_v31, %s9469_s22  ;;  %6561 = vrot.lane.b32.xlu0 %v6475_v31, %s9467_s25 }
 0x36c   : > { %6556 = vrot.lane.b32.xlu2 %v6475_v31, %s9595_s28 }
 0x373   : > { %6581 = vrot.lane.b32.xlu1 %v6475_v31, %s9472_s18  ;;  %6576 = vrot.lane.b32.xlu0 %v6475_v31, %s9470_s21 }
 0x374   : > { %6571 = vrot.lane.b32.xlu2 %v6475_v31, %s9468_s27  ;;  %s9596_s27 = smov 118  }
 0x37b   : > { %6596 = vrot.lane.b32.xlu1 %v6595_v44, %s9475_s16  ;;  %6591 = vrot.lane.b32.xlu0 %v6595_v44, %s9473_s17  ;;  %s9597_s16 = smov 119  }
 0x37c   : > { %6586 = vrot.lane.b32.xlu2 %v6475_v31, %s9471_s23  ;;  %s9598_s23 = smov 114  }
 0x383   : > { %6611 = vrot.lane.b32.xlu1 %v6595_v44, %s9478_s0  ;;  %6606 = vrot.lane.b32.xlu0 %v6595_v44, %s9476_s19  ;;  %s9599_s0 = smov 115   ;;  %s9600_s19 = smov 116  }
 0x384   : > { %6601 = vrot.lane.b32.xlu2 %v6595_v44, %s9474_s20 }
 0x38b   : > { %6626 = vrot.lane.b32.xlu1 %v6595_v44, %s9481_s10  ;;  %6621 = vrot.lane.b32.xlu0 %v6595_v44, %s9479_s30  ;;  %s9601_s10 = smov 111   ;;  %s9602_s30 = smov 112  }
 0x38c   : > { %6616 = vrot.lane.b32.xlu2 %v6595_v44, %s9477_s15  ;;  %s9603_s15 = smov 113  }
 0x393   : > { %6641 = vrot.lane.b32.xlu1 %v6595_v44, %s9484_s5  ;;  %6636 = vrot.lane.b32.xlu0 %v6595_v44, %s9596_s27  ;;  %s9604_s5 = smov 106   ;;  %s9605_s27 = smov 109  }
 0x394   : > { %6631 = vrot.lane.b32.xlu2 %v6595_v44, %s9597_s16  ;;  %s9606_s16 = smov 110  }
 0x396   : > { %v8602_v40 = vpop.permute.xlu2 %6466 }
 0x39b   : > { %6656 = vrot.lane.b32.xlu1 %v6595_v44, %s9598_s23  ;;  %6651 = vrot.lane.b32.xlu0 %v6595_v44, %s9599_s0  ;;  %s9607_s23 = smov 105   ;;  %s9608_s0 = smov 108  }
 0x39c   : > { %6646 = vrot.lane.b32.xlu2 %v6595_v44, %s9600_s19  ;;  %s9609_s19 = smov 107  }
 0x39e   : > { %v8607_v0 = vpop.permute.xlu2 %6481 }
 0x3a3   : > { %6671 = vrot.lane.b32.xlu1 %v6595_v44, %s9601_s10  ;;  %6666 = vrot.lane.b32.xlu0 %v6595_v44, %s9602_s30  ;;  %s9654_s30 = smov 23   ;;  %s9655_s10 = smov 17  }
 0x3a4   : > { %6661 = vrot.lane.b32.xlu2 %v6595_v44, %s9603_s15  ;;  %s9610_s15 = sld [smem:[#allocation12_spill]] }
 0x3a6   : > { %v8612_v35 = vpop.permute.xlu2 %6496 }
 0x3a7   : > { %v6499_v2 = vunpack.i.h.bf16 %v8612_v35  ;;  %v6498_v34 = vunpack.i.l.bf16 %v8612_v35  ;;  %v6483_v35 = vunpack.i.l.bf16 %v8607_v0 }
 0x3a9   : > { %v3217_v31 = vsel %vm414_vm9, %v6498_v34, %v6499_v2 }
 0x3aa   : > { %v3750_v5 = vld [vmem:[%s9610_s15] sm:$0xff]  ;;  %s9618_s15 = sld [smem:[#allocation11_spill]] }
 0x3ab   : > { %6686 = vrot.lane.b32.xlu1 %v6595_v44, %s9604_s5  ;;  %6681 = vrot.lane.b32.xlu0 %v6595_v44, %s9605_s27  ;;  %s9611_s27 = smov 103  }
 0x3ac   : > { %6676 = vrot.lane.b32.xlu2 %v6595_v44, %s9606_s16  ;;  %s9612_s16 = smov 104  }
 0x3ad   : > { %v8617_v50 = vpop.permute.xlu1 %6476  ;;  %v8619_v19 = vpop.permute.xlu0 %6471 }
 0x3ae   : > { %v6512_v61 = vpop.permute.xlu2 %6511 }
 0x3af   : > { %v6514_v15 = vunpack.i.h.bf16 %v6512_v61  ;;  %v6513_v3 = vunpack.i.l.bf16 %v6512_v61 }
 0x3b1   : > { %v3250_v37 = vsel %vm450_vm6, %v6513_v3, %v6514_v15 }
 0x3b3   : > { %6701 = vrot.lane.b32.xlu1 %v6595_v44, %s9607_s23  ;;  %6696 = vrot.lane.b32.xlu0 %v6595_v44, %s9608_s0 }
 0x3b4   : > { %6691 = vrot.lane.b32.xlu2 %v6595_v44, %s9609_s19 }
 0x3b5   : > { %v8624_v16 = vpop.permute.xlu1 %6491  ;;  %v8626_v46 = vpop.permute.xlu0 %6486 }
 0x3b6   : > { %v6527_v48 = vpop.permute.xlu2 %6526  ;;  %v6494_v4 = vunpack.i.h.bf16 %v8624_v16  ;;  %v6493_v36 = vunpack.i.l.bf16 %v8624_v16  ;;  %v6489_v10 = vunpack.i.h.bf16 %v8626_v46  ;;  %v6488_v24 = vunpack.i.l.bf16 %v8626_v46 }
 0x3b7   : > { %v6529_v1 = vunpack.i.h.bf16 %v6527_v48  ;;  %v6528_v39 = vunpack.i.l.bf16 %v6527_v48  ;;  %v6479_v16 = vunpack.i.h.bf16 %v8617_v50  ;;  %v6478_v48 = vunpack.i.l.bf16 %v8617_v50 }
 0x3b8   : > { %v3206_v61 = vsel %vm9445_vm10, %v6493_v36, %v6494_v4  ;;  %v6474_v46 = vunpack.i.h.bf16 %v8619_v19  ;;  %v6468_v50 = vunpack.i.l.bf16 %v8602_v40  ;;  %vm9648_vm10 = vcmask 949248  }
 0x3b9   : > { %v3283_v21 = vsel %vm486_vm3, %v6528_v39, %v6529_v1 }
 0x3bb   : > { %3753 = vperm.xlu1 %6464, %v3750_v5   ;;  %6711 = vrot.lane.b32.xlu0 %v6595_v44, %s9611_s27  ;;  %v3195_v5 = vsel %vm9613_vm14, %v6488_v24, %v6489_v10  ;;  %vm9617_vm14 = vcmask 195584  }
 0x3bc   : > { %6706 = vrot.lane.b32.xlu2 %v6595_v44, %s9612_s16  ;;  %v6484_v44 = vunpack.i.h.bf16 %v8607_v0 }
 0x3bd   : > { %v6507_v6 = vpop.permute.xlu1 %6506  ;;  %v6502_v18 = vpop.permute.xlu0 %6501 }
 0x3be   : > { %v6542_v7 = vpop.permute.xlu2 %6541  ;;  %v6509_v17 = vunpack.i.h.bf16 %v6507_v6  ;;  %v6508_v47 = vunpack.i.l.bf16 %v6507_v6  ;;  %v6504_v8 = vunpack.i.h.bf16 %v6502_v18  ;;  %v6503_v38 = vunpack.i.l.bf16 %v6502_v18 }
 0x3bf   : > { %v6544_v62 = vunpack.i.h.bf16 %v6542_v7  ;;  %v6543_v57 = vunpack.i.l.bf16 %v6542_v7  ;;  %v6473_v7 = vunpack.i.l.bf16 %v8619_v19  ;;  %v3184_v0 = vsel %vm9614_vm15, %v6483_v35, %v6484_v44  ;;  %v3695_v19 = vld [vmem:[%s9618_s15] sm:$0xff] }
 0x3c0   : > { %v3239_v11 = vsel %vm438_vm7, %v6508_v47, %v6509_v17  ;;  %v3228_v41 = vsel %vm426_vm8, %v6503_v38, %v6504_v8  ;;  %vm9619_vm15 = vcmask 203776  }
 0x3c1   : > { %v3316_v33 = vsel %vm522_vm0, %v6543_v57, %v6544_v62 }
 0x3c2   : > { %3759 = vmatpush.msrb.mxu1 %v3316_v33 }
 0x3c5   : > { %v6522_v42 = vpop.permute.xlu1 %6521  ;;  %v6517_v53 = vpop.permute.xlu0 %6516 }
 0x3c6   : > { %v8634_v29 = vpop.permute.xlu2 %6556  ;;  %v6524_v30 = vunpack.i.h.bf16 %v6522_v42  ;;  %v6523_v12 = vunpack.i.l.bf16 %v6522_v42  ;;  %v6519_v25 = vunpack.i.h.bf16 %v6517_v53  ;;  %v6518_v32 = vunpack.i.l.bf16 %v6517_v53 }
 0x3c7   : > { %v6469_v42 = vunpack.i.h.bf16 %v8602_v40  ;;  %v3173_v53 = vsel %vm9615_vm12, %v6478_v48, %v6479_v16  ;;  %vm9620_vm12 = vcmask 1006592  }
 0x3c8   : > { %v3272_v28 = vsel %vm474_vm4, %v6523_v12, %v6524_v30  ;;  %v3261_v9 = vsel %vm462_vm5, %v6518_v32, %v6519_v25 }
 0x3cd   : > { %v6537_v27 = vpop.permute.xlu1 %6536  ;;  %v6532_v23 = vpop.permute.xlu0 %6531 }
 0x3ce   : > { %v6539_v55 = vunpack.i.h.bf16 %v6537_v27  ;;  %v6538_v43 = vunpack.i.l.bf16 %v6537_v27  ;;  %v6534_v63 = vunpack.i.h.bf16 %v6532_v23  ;;  %v6533_v14 = vunpack.i.l.bf16 %v6532_v23  ;;  %v8636_v60 = vpop.permute.xlu2 %6571 }
 0x3cf   : > { %v3162_v23 = vsel %vm9617_vm14, %v6473_v7, %v6474_v46  ;;  %vm9622_vm14 = vcmask 1022976   ;;  %v6573_v44 = vunpack.i.l.bf16 %v8636_v60 }
 0x3d0   : > { %v3305_v26 = vsel %vm510_vm1, %v6538_v43, %v6539_v55  ;;  %v3294_v58 = vsel %vm498_vm2, %v6533_v14, %v6534_v63  ;;  %v3151_v55 = vsel %vm9619_vm15, %v6468_v50, %v6469_v42  ;;  %vm9623_vm15 = vcmask 1031168  }
 0x3d1   : > { %3760 = vmatpush.msrb.mxu1 %v3305_v26 }
 0x3d3   : > { %3761 = vmatpush.msrb.mxu1 %v3294_v58 }
 0x3d5   : > { %v8641_v13 = vpop.permute.xlu1 %6551  ;;  %v8643_v22 = vpop.permute.xlu0 %6546  ;;  %3762 = vmatpush.msrb.mxu1 %v3283_v21 }
 0x3d6   : > { %v8645_v54 = vpop.permute.xlu2 %6586 }
 0x3d7   : > { %3763 = vmatpush.msrb.mxu1 %v3272_v28  ;;  %v6589_v2 = vunpack.i.h.bf16 %v8645_v54  ;;  %v6588_v34 = vunpack.i.l.bf16 %v8645_v54 }
 0x3d9   : > { %3764 = vmatpush.msrb.mxu1 %v3261_v9 }
 0x3db   : > { %3765 = vmatpush.msrb.mxu1 %v3250_v37 }
 0x3dd   : > { %v8653_v20 = vpop.permute.xlu1 %6566  ;;  %v8655_v59 = vpop.permute.xlu0 %6561  ;;  %3766 = vmatpush.msrb.mxu1 %v3239_v11 }
 0x3de   : > { %v6602_v56 = vpop.permute.xlu2 %6601  ;;  %v6564_v48 = vunpack.i.h.bf16 %v8655_v59 }
 0x3df   : > { %3767 = vmatpush.msrb.mxu1 %v3228_v41  ;;  %v6604_v58 = vunpack.i.h.bf16 %v6602_v56  ;;  %v6603_v25 = vunpack.i.l.bf16 %v6602_v56 }
 0x3e1   : > { %3768 = vmatpush.msrb.mxu1 %v3217_v31  ;;  %v3450_v9 = vsel %vm9622_vm14, %v6603_v25, %v6604_v58  ;;  %v6574_v31 = vunpack.i.h.bf16 %v8636_v60  ;;  %vm9626_vm14 = vcmask 15360   ;;  %v6559_v60 = vunpack.i.h.bf16 %v8634_v29 }
 0x3e3   : > { %3769 = vmatpush.msrb.mxu1 %v3206_v61  ;;  %v6568_v61 = vunpack.i.l.bf16 %v8653_v20 }
 0x3e5   : > { %v8669_v6 = vpop.permute.xlu1 %6581  ;;  %v8671_v18 = vpop.permute.xlu0 %6576  ;;  %3770 = vmatpush.msrb.mxu1 %v3195_v5  ;;  %v6563_v5 = vunpack.i.l.bf16 %v8655_v59 }
 0x3e6   : > { %v6617_v62 = vpop.permute.xlu2 %6616  ;;  %v6584_v4 = vunpack.i.h.bf16 %v8669_v6  ;;  %v6583_v36 = vunpack.i.l.bf16 %v8669_v6  ;;  %v6579_v56 = vunpack.i.h.bf16 %v8671_v18  ;;  %v6578_v41 = vunpack.i.l.bf16 %v8671_v18 }
 0x3e7   : > { %v6619_v57 = vunpack.i.h.bf16 %v6617_v62  ;;  %v6618_v33 = vunpack.i.l.bf16 %v6617_v62  ;;  %3771 = vmatpush.msrb.mxu1 %v3184_v0  ;;  %v6558_v18 = vunpack.i.l.bf16 %v8634_v29  ;;  %v6553_v0 = vunpack.i.l.bf16 %v8641_v13 }
 0x3e8   : > { %v3404_v51 = vsel %vm9626_vm14, %v6583_v36, %v6584_v4  ;;  %vm9630_vm14 = vcmask 48128  }
 0x3e9   : > { %3772 = vmatpush.msrb.mxu1 %v3173_v53  ;;  %v3483_v27 = vsel %vm9616_vm11, %v6618_v33, %v6619_v57  ;;  %vm9621_vm11 = vcmask 1014784   ;;  %v3360_v59 = vsel %vm9630_vm14, %v6563_v5, %v6564_v48  ;;  %v6549_v57 = vunpack.i.h.bf16 %v8643_v22  ;;  %v3696_v53 = vld [vmem:[%s9618_s15 + $0x8] sm:$0xff] }
 0x3ea   : > { %3779 = vmatpush.msrb.mxu2 %v3483_v27  ;;  %v6548_v33 = vunpack.i.l.bf16 %v8643_v22  ;;  %vm9634_vm14 = vcmask 867328  }
 0x3eb   : > { %3773 = vmatpush.msrb.mxu1 %v3162_v23 }
 0x3ed   : > { %v6597_v43 = vpop.permute.xlu1 %6596  ;;  %v6592_v63 = vpop.permute.xlu0 %6591  ;;  %3774 = vmatpush.msrb.mxu1 %v3151_v55 }
 0x3ee   : > { %3775 = vmatmul.f32.vlgmr.msrb.gmra.mxu1 %v3695_v19  ;;  %v8685_v40 = vpop.permute.xlu2 %6631  ;;  %v6599_v21 = vunpack.i.h.bf16 %v6597_v43  ;;  %v6598_v15 = vunpack.i.l.bf16 %v6597_v43  ;;  %v6594_v28 = vunpack.i.h.bf16 %v6592_v63  ;;  %v6593_v17 = vunpack.i.l.bf16 %v6592_v63 }
 0x3f0   : > { %v3439_v37 = vsel %vm9623_vm15, %v6598_v15, %v6599_v21  ;;  %vm9627_vm15 = vcmask 23552  }
 0x3f1   : > { %v3393_v16 = vsel %vm9627_vm15, %v6578_v41, %v6579_v56  ;;  %vm9631_vm15 = vcmask 56320  }
 0x3f2   : > { %v3349_v29 = vsel %vm9631_vm15, %v6558_v18, %v6559_v60  ;;  %vm9635_vm15 = vcmask 875520  }
 0x3f5   : > { %v6612_v14 = vpop.permute.xlu1 %6611  ;;  %v6607_v1 = vpop.permute.xlu0 %6606 }
 0x3f6   : > { %v6614_v39 = vunpack.i.h.bf16 %v6612_v14  ;;  %v6613_v26 = vunpack.i.l.bf16 %v6612_v14  ;;  %v6609_v30 = vunpack.i.h.bf16 %v6607_v1  ;;  %v6608_v12 = vunpack.i.l.bf16 %v6607_v1  ;;  %v8689_v47 = vpop.permute.xlu2 %6646 }
 0x3f8   : > { %v3472_v32 = vsel %vm9620_vm12, %v6613_v26, %v6614_v39  ;;  %v3461_v3 = vsel %vm9621_vm11, %v6608_v12, %v6609_v30  ;;  %vm9624_vm12 = vcmask 1039360   ;;  %vm9625_vm11 = vcmask 7168  }
 0x3f9   : > { %3780 = vmatpush.msrb.mxu2 %v3472_v32  ;;  %v3428_v11 = vsel %vm9624_vm12, %v6593_v17, %v6594_v28  ;;  %v3415_v10 = vsel %vm9625_vm11, %v6588_v34, %v6589_v2  ;;  %vm9628_vm12 = vcmask 31744   ;;  %vm9629_vm11 = vcmask 39936  }
 0x3fa   : > { %v3382_v6 = vsel %vm9628_vm12, %v6573_v44, %v6574_v31  ;;  %vm9632_vm12 = vcmask 64512  }
 0x3fb   : > { %3781 = vmatpush.msrb.mxu2 %v3461_v3 }
 0x3fd   : > { %v8692_v8 = vpop.permute.xlu1 %6626  ;;  %v8694_v38 = vpop.permute.xlu0 %6621  ;;  %3782 = vmatpush.msrb.mxu2 %v3450_v9 }
 0x3fe   : > { %v8716_v35 = vpop.permute.xlu2 %6661 }
 0x3ff   : > { %3783 = vmatpush.msrb.mxu2 %v3439_v37  ;;  %v6664_v4 = vunpack.i.h.bf16 %v8716_v35  ;;  %v6663_v36 = vunpack.i.l.bf16 %v8716_v35 }
 0x401   : > { %3784 = vmatpush.msrb.mxu2 %v3428_v11 }
 0x403   : > { %5329 = vmatpush.msk.msrb.mxu2 %vm333_vm13, %v3137_v49  ;;  %v6569_v49 = vunpack.i.h.bf16 %v8653_v20  ;;  %v6554_v20 = vunpack.i.h.bf16 %v8641_v13 }
 0x405   : > { %v8709_v24 = vpop.permute.xlu1 %6641  ;;  %v8711_v54 = vpop.permute.xlu0 %6636  ;;  %3786 = vmatpush.msrb.mxu2 %v3415_v10  ;;  %v3371_v46 = vsel %vm9629_vm11, %v6568_v61, %v6569_v49  ;;  %v3338_v50 = vsel %vm9632_vm12, %v6553_v0, %v6554_v20  ;;  %vm9633_vm11 = vcmask 72704   ;;  %vm9636_vm12 = vcmask 883712  }
 0x406   : > { %v6677_v42 = vpop.permute.xlu2 %6676  ;;  %v3327_v13 = vsel %vm9633_vm11, %v6548_v33, %v6549_v57  ;;  %vm9637_vm11 = vcmask 891904   ;;  %v6649_v0 = vunpack.i.h.bf16 %v8689_v47 }
 0x407   : > { %3787 = vmatpush.msrb.mxu2 %v3404_v51  ;;  %v6679_v21 = vunpack.i.h.bf16 %v6677_v42  ;;  %v6678_v15 = vunpack.i.l.bf16 %v6677_v42 }
 0x409   : > { %3788 = vmatpush.msrb.mxu2 %v3393_v16 }
 0x40b   : > { %3789 = vmatpush.msrb.mxu2 %v3382_v6 }
 0x40d   : > { %v8727_v7 = vpop.permute.xlu1 %6656  ;;  %v8729_v62 = vpop.permute.xlu0 %6651  ;;  %3790 = vmatpush.msrb.mxu2 %v3371_v46 }
 0x40e   : > { %v6692_v19 = vpop.permute.xlu2 %6691  ;;  %v6659_v61 = vunpack.i.h.bf16 %v8727_v7  ;;  %v6658_v16 = vunpack.i.l.bf16 %v8727_v7  ;;  %v6654_v60 = vunpack.i.h.bf16 %v8729_v62  ;;  %v6653_v18 = vunpack.i.l.bf16 %v8729_v62  ;;  %v3698_v7 = vld [vmem:[%s9618_s15 + $0x18] sm:$0xff] }
 0x40f   : > { %3791 = vmatpush.msrb.mxu2 %v3360_v59  ;;  %v6694_v43 = vunpack.i.h.bf16 %v6692_v19  ;;  %v6693_v63 = vunpack.i.l.bf16 %v6692_v19  ;;  %v6648_v59 = vunpack.i.l.bf16 %v8689_v47  ;;  %v6644_v62 = vunpack.i.h.bf16 %v8709_v24 }
 0x410   : > { %v6628_v19 = vunpack.i.l.bf16 %v8692_v8 }
 0x411   : > { %3792 = vmatpush.msrb.mxu2 %v3349_v29  ;;  %v3648_v26 = vsel %vm9635_vm15, %v6693_v63, %v6694_v43  ;;  %vm9639_vm15 = vcmask 908288   ;;  %v6643_v29 = vunpack.i.l.bf16 %v8709_v24  ;;  %v3549_v47 = vsel %vm9648_vm10, %v6648_v59, %v6649_v0 }
 0x412   : > { %v6629_v24 = vunpack.i.h.bf16 %v8692_v8  ;;  %vm9651_vm10 = vcmask 973824  }
 0x413   : > { %3793 = vmatpush.msrb.mxu2 %v3338_v50  ;;  %v6639_v50 = vunpack.i.h.bf16 %v8711_v54 }
 0x415   : > { %v6672_v27 = vpop.permute.xlu1 %6671  ;;  %v6667_v23 = vpop.permute.xlu0 %6666  ;;  %3794 = vmatpush.msrb.mxu2 %v3327_v13  ;;  %v6634_v13 = vunpack.i.h.bf16 %v8685_v40 }
 0x416   : > { %3795 = vmatmul.f32.vlgmr.msrb.gmra.mxu2 %v3696_v53  ;;  %v6674_v28 = vunpack.i.h.bf16 %v6672_v27  ;;  %v6673_v17 = vunpack.i.l.bf16 %v6672_v27  ;;  %v6707_v9 = vpop.permute.xlu2 %6706  ;;  %v6669_v2 = vunpack.i.h.bf16 %v6667_v23  ;;  %v6668_v34 = vunpack.i.l.bf16 %v6667_v23 }
 0x417   : > { %v6709_v56 = vunpack.i.h.bf16 %v6707_v9  ;;  %v6708_v31 = vunpack.i.l.bf16 %v6707_v9  ;;  %v6638_v53 = vunpack.i.l.bf16 %v8711_v54  ;;  %v6633_v27 = vunpack.i.l.bf16 %v8685_v40  ;;  %v3697_v40 = vld [vmem:[%s9618_s15 + $0x10] sm:$0xff]  ;;  %s9656_s15 = smov 14  }
 0x418   : > { %v3604_v49 = vsel %vm9639_vm15, %v6673_v17, %v6674_v28  ;;  %vm9643_vm15 = vcmask 850944   ;;  %v6623_v54 = vunpack.i.l.bf16 %v8694_v38 }
 0x419   : > { %v3681_v20 = vsel %vm9643_vm15, %v6708_v31, %v6709_v56  ;;  %vm9647_vm15 = vcmask 195584   ;;  %v3516_v43 = vsel %vm9651_vm10, %v6633_v27, %v6634_v13  ;;  %vm9690_vm10 = vcmask 1014784  }
 0x41d   : > { %v6687_v55 = vpop.permute.xlu1 %6686  ;;  %v6682_v22 = vpop.permute.xlu0 %6681 }
 0x41e   : > { %v6689_v14 = vunpack.i.h.bf16 %v6687_v55  ;;  %v6688_v1 = vunpack.i.l.bf16 %v6687_v55  ;;  %v6684_v12 = vunpack.i.h.bf16 %v6682_v22  ;;  %v6683_v58 = vunpack.i.l.bf16 %v6682_v22 }
 0x41f   : > { %v6624_v22 = vunpack.i.h.bf16 %v8694_v38 }
 0x420   : > { %v3659_v39 = vsel %vm9634_vm14, %v6688_v1, %v6689_v14  ;;  %v3626_v37 = vsel %vm9637_vm11, %v6683_v58, %v6684_v12  ;;  %vm9638_vm14 = vcmask 900096   ;;  %vm9641_vm11 = vcmask 842752  }
 0x421   : > { %3799 = vmatpush.msrb.mxu3 %v3659_v39  ;;  %v3615_v11 = vsel %vm9638_vm14, %v6678_v15, %v6679_v21  ;;  %vm9642_vm14 = vcmask 924672  }
 0x422   : > { %v3582_v46 = vsel %vm9642_vm14, %v6663_v36, %v6664_v4  ;;  %vm9646_vm14 = vcmask 941056  }
 0x423   : > { %3800 = vmatpush.msrb.mxu3 %v3648_v26  ;;  %v3560_v42 = vsel %vm9646_vm14, %v6653_v18, %v6654_v60  ;;  %vm9652_vm14 = vcmask 982016  }
 0x424   : > { %v3505_v63 = vsel %vm9652_vm14, %v6628_v19, %v6629_v24  ;;  %vm9691_vm14 = vcmask 900096  }
 0x425   : > { %v6697_v30 = vpop.permute.xlu0 %6696  ;;  %v6702_v41 = vpop.permute.xlu1 %6701 }
 0x426   : > { %v6699_v25 = vunpack.i.h.bf16 %v6697_v30  ;;  %v6698_v32 = vunpack.i.l.bf16 %v6697_v30  ;;  %v6704_v48 = vunpack.i.h.bf16 %v6702_v41  ;;  %v6703_v5 = vunpack.i.l.bf16 %v6702_v41 }
 0x428   : > { %v3637_v3 = vsel %vm9636_vm12, %v6698_v32, %v6699_v25  ;;  %vm9640_vm12 = vcmask 916480  }
 0x429   : > { %3801 = vmatpush.msrb.mxu3 %v3637_v3  ;;  %v3593_v6 = vsel %vm9640_vm12, %v6668_v34, %v6669_v2  ;;  %vm9644_vm12 = vcmask 932864  }
 0x42a   : > { %v3571_v57 = vsel %vm9644_vm12, %v6658_v16, %v6659_v61  ;;  %vm9649_vm12 = vcmask 957440  }
 0x42b   : > { %3802 = vmatpush.msrb.mxu3 %v3626_v37  ;;  %v3538_v23 = vsel %vm9649_vm12, %v6643_v29, %v6644_v62  ;;  %vm9688_vm12 = vcmask 883712  }
 0x42d   : > { %v6712_v10 = vpop.permute.xlu0 %6711  ;;  %3803 = vmatpush.msrb.mxu3 %v3615_v11  ;;  %v3754_v1 = vpop.permute.xlu1 %3753 }
 0x42e   : > { %v6714_v44 = vunpack.i.h.bf16 %v6712_v10  ;;  %v6713_v51 = vunpack.i.l.bf16 %v6712_v10 }
 0x42f   : > { %3804 = vmatpush.msrb.mxu3 %v3604_v49 }
 0x430   : > { %v3692_v35 = vsel %vm9641_vm11, %v6713_v51, %v6714_v44  ;;  %vm9645_vm11 = vcmask 859136  }
 0x431   : > { %3805 = vmatpush.msrb.mxu3 %v3593_v6  ;;  %3832 = vmatpush.msra.mxu0 %v3692_v35  ;;  %v3670_v33 = vsel %vm9645_vm11, %v6703_v5, %v6704_v48  ;;  %vm9650_vm11 = vcmask 965632  }
 0x432   : > { %v3527_v55 = vsel %vm9650_vm11, %v6638_v53, %v6639_v50  ;;  %vm9689_vm11 = vcmask 891904  }
 0x433   : > { %3806 = vmatpush.msrb.mxu3 %v3582_v46  ;;  %3833 = vmatpush.msra.mxu0 %v3681_v20 }
 0x435   : > { %3807 = vmatpush.msrb.mxu3 %v3571_v57  ;;  %3834 = vmatpush.msra.mxu0 %v3670_v33 }
 0x436   : > { %5322 = vmatmul.msk.f32.vlgmr.msra.gmra.mxu0 %vm9647_vm15, %v3698_v7  ;;  %vm9653_vm15 = vcmask 990208  }
 0x437   : > { %3808 = vmatpush.msrb.mxu3 %v3560_v42  ;;  %v3494_v14 = vsel %vm9653_vm15, %v6623_v54, %v6624_v22  ;;  %vm9692_vm15 = vcmask 1022976  }
 0x439   : > { %3809 = vmatpush.msrb.mxu3 %v3549_v47 }
 0x43b   : > { %3810 = vmatpush.msrb.mxu3 %v3538_v23 }
 0x43d   : > { %3811 = vmatpush.msrb.mxu3 %v3527_v55 }
 0x43f   : > { %3812 = vmatpush.msrb.mxu3 %v3516_v43 }
 0x441   : > { %3813 = vmatpush.msrb.mxu3 %v3505_v63 }
 0x443   : > { %3814 = vmatpush.msrb.mxu3 %v3494_v14 }
 0x444   : > { %3815 = vmatmul.f32.vlgmr.msrb.gmra.mxu3 %v3697_v40 }
 0x46b   : > { %v3776_v8 = vpop.f32.mrf.mxu1 }
 0x46c   : > { %v3777_v26 = vadd.f32 %v3776_v8, %v3754_v1 }
 0x499   : > { %v3796_v39 = vpop.f32.mrf.mxu2 }
 0x49a   : > { %v3797_v30 = vadd.f32 %v3796_v39, %v3777_v26 }
 0x4b3   : > { %v3836_v12 = vpop.f32.mrf.mxu0 }
 0x4c7   : > { %v3816_v38 = vpop.f32.mrf.mxu3 }
 0x4c8   : > { %v3817_v58 = vadd.f32 %v3816_v38, %v3797_v30 }
 0x4ca   : > { %v8786_v25 = vadd.f32 %v3836_v12, %v3817_v58 }
 0x4cc   : > { %v3839_v32 = vmax.f32 %v8786_v25, 0.0 }
 0x4ce   : > { %v3840_v21 = vsel %vm333_vm13, %v3839_v32, 0.0 }
 0x4cf   : > { %v6725_v15 = vpack.i.bf16 %v3840_v21, %v7356_v45  ;;  %v6845_v45 = vpack.i.bf16 0.0, %v3840_v21 }
 0x4d1   : > { %6726 = vrot.lane.b32.xlu1 %v6725_v15, %s9654_s30  ;;  %6721 = vrot.lane.b32.xlu0 %v6725_v15, %s9585_s6  ;;  %s9671_s6 = smov 119   ;;  %s9676_s30 = sld [smem:[#allocation14_spill]] }
 0x4d2   : > { %6716 = vrot.lane.b32.xlu2 %v6725_v15, %s9586_s7  ;;  %s9672_s7 = smov 118  }
 0x4d7   : > { %v4452_v36 = vld [vmem:[%s9676_s30] sm:$0xff]  ;;  %s9742_s30 = sld [smem:[#allocation16_spill]] }
 0x4d9   : > { %6741 = vrot.lane.b32.xlu1 %v6725_v15, %s9587_s3  ;;  %6736 = vrot.lane.b32.xlu0 %v6725_v15, %s9588_s4  ;;  %s9673_s3 = smov 117   ;;  %s9674_s4 = smov 121  }
 0x4da   : > { %6731 = vrot.lane.b32.xlu2 %v6725_v15, %s9589_s8  ;;  %s9675_s8 = smov 120  }
 0x4e1   : > { %6756 = vrot.lane.b32.xlu1 %v6725_v15, %s9655_s10  ;;  %6751 = vrot.lane.b32.xlu0 %v6725_v15, %s9591_s1  ;;  %s9657_s1 = smov 4   ;;  %s9745_s10 = smov 95  }
 0x4e2   : > { %6746 = vrot.lane.b32.xlu2 %v6725_v15, %s9592_s2  ;;  %s9658_s2 = smov 126  }
 0x4e9   : > { %6771 = vrot.lane.b32.xlu1 %v6725_v15, %s9656_s15  ;;  %6766 = vrot.lane.b32.xlu0 %v6725_v15, %s9460_s13  ;;  %s9664_s13 = smov 109  }
 0x4ea   : > { %6761 = vrot.lane.b32.xlu2 %v6725_v15, %s9593_s14  ;;  %s9670_s14 = smov 114  }
 0x4f1   : > { %6786 = vrot.lane.b32.xlu1 %v6725_v15, %s9464_s26  ;;  %6781 = vrot.lane.b32.xlu0 %v6725_v15, %s9463_s11  ;;  %s9667_s11 = smov 111   ;;  %s9668_s26 = smov 116  }
 0x4f2   : > { %6776 = vrot.lane.b32.xlu2 %v6725_v15, %s9461_s24  ;;  %s9665_s24 = smov 113  }
 0x4f9   : > { %6801 = vrot.lane.b32.xlu1 %v6725_v15, %s9466_s12  ;;  %6796 = vrot.lane.b32.xlu0 %v6725_v15, %s9465_s29  ;;  %s9659_s12 = smov 1   ;;  %s9669_s29 = smov 115  }
 0x4fa   : > { %6791 = vrot.lane.b32.xlu2 %v6725_v15, %s9594_s9 }
 0x501   : > { %6816 = vrot.lane.b32.xlu1 %v6725_v15, %s9469_s22  ;;  %6811 = vrot.lane.b32.xlu0 %v6725_v15, %s9467_s25  ;;  %s9660_s22 = smov 123   ;;  %s9663_s25 = smov 124  }
 0x502   : > { %6806 = vrot.lane.b32.xlu2 %v6725_v15, %s9595_s28  ;;  %s9666_s28 = smov 112  }
 0x509   : > { %6831 = vrot.lane.b32.xlu1 %v6725_v15, %s9472_s18  ;;  %6826 = vrot.lane.b32.xlu0 %v6725_v15, %s9470_s21  ;;  %s9661_s18 = smov 122   ;;  %s9662_s21 = smov 110  }
 0x50a   : > { %6821 = vrot.lane.b32.xlu2 %v6725_v15, %s9657_s1 }
 0x511   : > { %6846 = vrot.lane.b32.xlu1 %v6845_v45, %s9658_s2  ;;  %6841 = vrot.lane.b32.xlu0 %v6845_v45, %s9473_s17 }
 0x512   : > { %6836 = vrot.lane.b32.xlu2 %v6725_v15, %s9659_s12  ;;  %s9683_s12 = sld [smem:[#allocation13_spill]] }
 0x519   : > { %6861 = vrot.lane.b32.xlu1 %v6845_v45, %s9609_s19  ;;  %6856 = vrot.lane.b32.xlu0 %v6845_v45, %s9604_s5 }
 0x51a   : > { %6851 = vrot.lane.b32.xlu2 %v6845_v45, %s9474_s20 }
 0x521   : > { %6876 = vrot.lane.b32.xlu1 %v6845_v45, %s9660_s22  ;;  %6871 = vrot.lane.b32.xlu0 %v6845_v45, %s9608_s0 }
 0x522   : > { %6866 = vrot.lane.b32.xlu2 %v6845_v45, %s9661_s18 }
 0x529   : > { %6891 = vrot.lane.b32.xlu1 %v6845_v45, %s9662_s21  ;;  %6886 = vrot.lane.b32.xlu0 %v6845_v45, %s9663_s25 }
 0x52a   : > { %6881 = vrot.lane.b32.xlu2 %v6845_v45, %s9664_s13 }
 0x52c   : > { %v8830_v3 = vpop.permute.xlu2 %6716 }
 0x531   : > { %6906 = vrot.lane.b32.xlu1 %v6845_v45, %s9665_s24  ;;  %6901 = vrot.lane.b32.xlu0 %v6845_v45, %s9666_s28 }
 0x532   : > { %6896 = vrot.lane.b32.xlu2 %v6845_v45, %s9667_s11 }
 0x534   : > { %v8835_v28 = vpop.permute.xlu2 %6731 }
 0x535   : > { %v6734_v15 = vunpack.i.h.bf16 %v8835_v28 }
 0x539   : > { %6921 = vrot.lane.b32.xlu1 %v6845_v45, %s9668_s26  ;;  %6916 = vrot.lane.b32.xlu0 %v6845_v45, %s9669_s29 }
 0x53a   : > { %6911 = vrot.lane.b32.xlu2 %v6845_v45, %s9670_s14 }
 0x53c   : > { %v8840_v17 = vpop.permute.xlu2 %6746 }
 0x53d   : > { %v6749_v63 = vunpack.i.h.bf16 %v8840_v17  ;;  %v6748_v40 = vunpack.i.l.bf16 %v8840_v17 }
 0x53f   : > { %v3919_v21 = vsel %vm414_vm9, %v6748_v40, %v6749_v63  ;;  %vm9687_vm9 = vcmask 1006592  }
 0x541   : > { %6936 = vrot.lane.b32.xlu1 %v6845_v45, %s9671_s6  ;;  %6931 = vrot.lane.b32.xlu0 %v6845_v45, %s9672_s7 }
 0x542   : > { %6926 = vrot.lane.b32.xlu2 %v6845_v45, %s9673_s3 }
 0x543   : > { %v8845_v9 = vpop.permute.xlu1 %6726  ;;  %v8847_v37 = vpop.permute.xlu0 %6721 }
 0x544   : > { %v6762_v2 = vpop.permute.xlu2 %6761 }
 0x545   : > { %v6764_v47 = vunpack.i.h.bf16 %v6762_v2  ;;  %v6763_v13 = vunpack.i.l.bf16 %v6762_v2  ;;  %v6729_v2 = vunpack.i.h.bf16 %v8845_v9 }
 0x547   : > { %v3952_v43 = vsel %vm450_vm6, %v6763_v13, %v6764_v47  ;;  %vm9684_vm6 = vcmask 203776  }
 0x549   : > { %6951 = vrot.lane.b32.xlu1 %v6845_v45, %s9674_s4  ;;  %6946 = vrot.lane.b32.xlu0 %v6845_v45, %s9611_s27 }
 0x54a   : > { %6941 = vrot.lane.b32.xlu2 %v6845_v45, %s9675_s8 }
 0x54b   : > { %v8852_v34 = vpop.permute.xlu1 %6741  ;;  %v8854_v11 = vpop.permute.xlu0 %6736 }
 0x54c   : > { %v6777_v4 = vpop.permute.xlu2 %6776  ;;  %v6744_v39 = vunpack.i.h.bf16 %v8852_v34  ;;  %v6743_v26 = vunpack.i.l.bf16 %v8852_v34  ;;  %v6739_v12 = vunpack.i.h.bf16 %v8854_v11  ;;  %v6738_v58 = vunpack.i.l.bf16 %v8854_v11 }
 0x54d   : > { %v6779_v20 = vunpack.i.h.bf16 %v6777_v4  ;;  %v6778_v7 = vunpack.i.l.bf16 %v6777_v4  ;;  %v6728_v34 = vunpack.i.l.bf16 %v8845_v9  ;;  %v6724_v11 = vunpack.i.h.bf16 %v8847_v37 }
 0x54e   : > { %v6718_v9 = vunpack.i.l.bf16 %v8830_v3 }
 0x54f   : > { %v3985_v42 = vsel %vm486_vm3, %v6778_v7, %v6779_v20  ;;  %vm9680_vm3 = vcmask 187392  }
 0x551   : > { %4455 = vperm.xlu1 %6464, %v4452_v36   ;;  %6961 = vrot.lane.b32.xlu0 %v6845_v45, %s9607_s23 }
 0x552   : > { %6956 = vrot.lane.b32.xlu2 %v6845_v45, %s9612_s16  ;;  %v6733_v45 = vunpack.i.l.bf16 %v8835_v28 }
 0x553   : > { %v6757_v56 = vpop.permute.xlu1 %6756  ;;  %v6752_v41 = vpop.permute.xlu0 %6751 }
 0x554   : > { %v6792_v10 = vpop.permute.xlu2 %6791  ;;  %v6759_v24 = vunpack.i.h.bf16 %v6757_v56  ;;  %v6758_v19 = vunpack.i.l.bf16 %v6757_v56  ;;  %v6754_v22 = vunpack.i.h.bf16 %v6752_v41  ;;  %v6753_v54 = vunpack.i.l.bf16 %v6752_v41 }
 0x555   : > { %v6794_v31 = vunpack.i.h.bf16 %v6792_v10  ;;  %v6793_v44 = vunpack.i.l.bf16 %v6792_v10  ;;  %v6723_v41 = vunpack.i.l.bf16 %v8847_v37  ;;  %v4397_v37 = vld [vmem:[%s9683_s12] sm:$0xff] }
 0x556   : > { %v3941_v14 = vsel %vm438_vm7, %v6758_v19, %v6759_v24  ;;  %v3930_v38 = vsel %vm426_vm8, %v6753_v54, %v6754_v22  ;;  %vm9685_vm7 = vcmask 867328   ;;  %vm9686_vm8 = vcmask 875520  }
 0x557   : > { %v4018_v51 = vsel %vm522_vm0, %v6793_v44, %v6794_v31  ;;  %vm9677_vm0 = vcmask 162816  }
 0x558   : > { %4461 = vmatpush.msrb.mxu0 %v4018_v51  ;;  %v3908_v17 = vsel %vm9677_vm0, %v6743_v26, %v6744_v39  ;;  %v6719_v51 = vunpack.i.h.bf16 %v8830_v3  ;;  %vm9693_vm0 = vcmask 908288  }
 0x55b   : > { %v6772_v49 = vpop.permute.xlu1 %6771  ;;  %v6767_v61 = vpop.permute.xlu0 %6766 }
 0x55c   : > { %v8862_v16 = vpop.permute.xlu2 %6806  ;;  %v6774_v59 = vunpack.i.h.bf16 %v6772_v49  ;;  %v6773_v57 = vunpack.i.l.bf16 %v6772_v49  ;;  %v6769_v62 = vunpack.i.h.bf16 %v6767_v61  ;;  %v6768_v29 = vunpack.i.l.bf16 %v6767_v61 }
 0x55d   : > { %v3875_v49 = vsel %vm9680_vm3, %v6728_v34, %v6729_v2  ;;  %vm9696_vm3 = vcmask 916480  }
 0x55e   : > { %v3974_v23 = vsel %vm474_vm4, %v6773_v57, %v6774_v59  ;;  %v3963_v55 = vsel %vm462_vm5, %v6768_v29, %v6769_v62  ;;  %vm9681_vm4 = vcmask 998400   ;;  %vm9682_vm5 = vcmask 195584  }
 0x563   : > { %v6787_v48 = vpop.permute.xlu1 %6786  ;;  %v6782_v5 = vpop.permute.xlu0 %6781 }
 0x564   : > { %v6789_v6 = vunpack.i.h.bf16 %v6787_v48  ;;  %v6788_v35 = vunpack.i.l.bf16 %v6787_v48  ;;  %v6784_v60 = vunpack.i.h.bf16 %v6782_v5  ;;  %v6783_v18 = vunpack.i.l.bf16 %v6782_v5  ;;  %v8864_v46 = vpop.permute.xlu2 %6821 }
 0x565   : > { %v3864_v48 = vsel %vm9682_vm5, %v6723_v41, %v6724_v11  ;;  %v3853_v5 = vsel %vm9684_vm6, %v6718_v9, %v6719_v51  ;;  %vm9698_vm5 = vcmask 924672   ;;  %vm9699_vm6 = vcmask 15360  }
 0x566   : > { %v4007_v0 = vsel %vm510_vm1, %v6788_v35, %v6789_v6  ;;  %v3996_v33 = vsel %vm498_vm2, %v6783_v18, %v6784_v60  ;;  %vm9678_vm1 = vcmask 171008   ;;  %vm9679_vm2 = vcmask 179200  }
 0x567   : > { %4462 = vmatpush.msrb.mxu0 %v4007_v0  ;;  %v3897_v4 = vsel %vm9678_vm1, %v6738_v58, %v6739_v12  ;;  %v3886_v28 = vsel %vm9679_vm2, %v6733_v45, %v6734_v15  ;;  %vm9694_vm1 = vcmask 1031168   ;;  %vm9695_vm2 = vcmask 1039360  }
 0x569   : > { %4463 = vmatpush.msrb.mxu0 %v3996_v33 }
 0x56b   : > { %v8869_v50 = vpop.permute.xlu1 %6801  ;;  %v8871_v53 = vpop.permute.xlu0 %6796  ;;  %4464 = vmatpush.msrb.mxu0 %v3985_v42 }
 0x56c   : > { %v8873_v27 = vpop.permute.xlu2 %6836 }
 0x56d   : > { %4465 = vmatpush.msrb.mxu0 %v3974_v23 }
 0x56f   : > { %4466 = vmatpush.msrb.mxu0 %v3963_v55 }
 0x571   : > { %4467 = vmatpush.msrb.mxu0 %v3952_v43 }
 0x573   : > { %v8881_v8 = vpop.permute.xlu1 %6816  ;;  %v8883_v1 = vpop.permute.xlu0 %6811  ;;  %4468 = vmatpush.msrb.mxu0 %v3941_v14 }
 0x574   : > { %v8887_v30 = vpop.permute.xlu2 %6851  ;;  %v6819_v25 = vunpack.i.h.bf16 %v8881_v8 }
 0x575   : > { %4469 = vmatpush.msrb.mxu0 %v3930_v38  ;;  %v6854_v40 = vunpack.i.h.bf16 %v8887_v30  ;;  %v6853_v14 = vunpack.i.l.bf16 %v8887_v30 }
 0x577   : > { %4470 = vmatpush.msrb.mxu0 %v3919_v21  ;;  %v4152_v30 = vsel %vm9692_vm15, %v6853_v14, %v6854_v40  ;;  %v6808_v40 = vunpack.i.l.bf16 %v8862_v16  ;;  %vm9707_vm15 = vcmask 957440  }
 0x579   : > { %4471 = vmatpush.msrb.mxu0 %v3908_v17 }
 0x57b   : > { %v8899_v36 = vpop.permute.xlu1 %6831  ;;  %v8901_v56 = vpop.permute.xlu0 %6826  ;;  %4472 = vmatpush.msrb.mxu0 %v3897_v4 }
 0x57c   : > { %v6867_v10 = vpop.permute.xlu2 %6866 }
 0x57d   : > { %v6869_v31 = vunpack.i.h.bf16 %v6867_v10  ;;  %v6868_v44 = vunpack.i.l.bf16 %v6867_v10  ;;  %4473 = vmatpush.msrb.mxu0 %v3886_v28 }
 0x57f   : > { %4474 = vmatpush.msrb.mxu0 %v3875_v49  ;;  %v4185_v61 = vsel %vm9681_vm4, %v6868_v44, %v6869_v31  ;;  %v6839_v31 = vunpack.i.h.bf16 %v8873_v27  ;;  %v6838_v44 = vunpack.i.l.bf16 %v8873_v27  ;;  %v6829_v27 = vunpack.i.h.bf16 %v8901_v56 }
 0x580   : > { %4481 = vmatpush.msra.mxu1 %v4185_v61  ;;  %vm9697_vm4 = vcmask 7168  }
 0x581   : > { %4475 = vmatpush.msrb.mxu0 %v3864_v48 }
 0x583   : > { %v6847_v6 = vpop.permute.xlu1 %6846  ;;  %v6842_v35 = vpop.permute.xlu0 %6841  ;;  %4476 = vmatpush.msrb.mxu0 %v3853_v5 }
 0x584   : > { %4477 = vmatmul.f32.vlgmr.msrb.gmra.mxu0 %v4397_v37  ;;  %v6882_v3 = vpop.permute.xlu2 %6881  ;;  %v6849_v17 = vunpack.i.h.bf16 %v6847_v6  ;;  %v6848_v2 = vunpack.i.l.bf16 %v6847_v6  ;;  %v6844_v11 = vunpack.i.h.bf16 %v6842_v35  ;;  %v6843_v41 = vunpack.i.l.bf16 %v6842_v35 }
 0x585   : > { %v6884_v29 = vunpack.i.h.bf16 %v6882_v3  ;;  %v6883_v42 = vunpack.i.l.bf16 %v6882_v3  ;;  %v6834_v35 = vunpack.i.h.bf16 %v8899_v36  ;;  %v6833_v3 = vunpack.i.l.bf16 %v8899_v36 }
 0x586   : > { %v4141_v28 = vsel %vm9694_vm1, %v6848_v2, %v6849_v17  ;;  %v4130_v49 = vsel %vm9695_vm2, %v6843_v41, %v6844_v11  ;;  %v6824_v36 = vunpack.i.h.bf16 %v8864_v46  ;;  %vm9709_vm1 = vcmask 64512  }
 0x587   : > { %v4328_v43 = vsel %vm9689_vm11, %v6883_v42, %v6884_v29  ;;  %vm9704_vm11 = vcmask 39936   ;;  %vm9710_vm2 = vcmask 965632  }
 0x58b   : > { %v6862_v60 = vpop.permute.xlu1 %6861  ;;  %v6857_v18 = vpop.permute.xlu0 %6856 }
 0x58c   : > { %v6864_v20 = vunpack.i.h.bf16 %v6862_v60  ;;  %v6863_v7 = vunpack.i.l.bf16 %v6862_v60  ;;  %v6859_v0 = vunpack.i.h.bf16 %v6857_v18  ;;  %v6858_v59 = vunpack.i.l.bf16 %v6857_v18  ;;  %v6897_v33 = vpop.permute.xlu2 %6896 }
 0x58d   : > { %v6899_v39 = vunpack.i.h.bf16 %v6897_v33  ;;  %v6898_v26 = vunpack.i.l.bf16 %v6897_v33  ;;  %v4106_v33 = vsel %vm9699_vm6, %v6833_v3, %v6834_v35  ;;  %v4399_v35 = vld [vmem:[%s9683_s12 + $0x10] sm:$0xff]  ;;  %vm9714_vm6 = vcmask 990208  }
 0x58e   : > { %v4361_v57 = vsel %vm9685_vm7, %v6858_v59, %v6859_v0  ;;  %v4350_v62 = vsel %vm9686_vm8, %v6863_v7, %v6864_v20  ;;  %v6828_v7 = vunpack.i.l.bf16 %v8901_v56  ;;  %v4117_v0 = vsel %vm9697_vm4, %v6838_v44, %v6839_v31 }
 0x58f   : > { %4501 = vmatpush.msra.mxu2 %v4361_v57  ;;  %v4306_v10 = vsel %vm9693_vm0, %v6898_v26, %v6899_v39  ;;  %v6823_v57 = vunpack.i.l.bf16 %v8864_v46  ;;  %vm9700_vm7 = vcmask 932864   ;;  %vm9701_vm8 = vcmask 23552  }
 0x590   : > { %v4095_v42 = vsel %vm9701_vm8, %v6828_v7, %v6829_v27  ;;  %v6804_v26 = vunpack.i.h.bf16 %v8869_v50  ;;  %vm9708_vm0 = vcmask 56320   ;;  %vm9712_vm4 = vcmask 973824  }
 0x591   : > { %4502 = vmatpush.msra.mxu2 %v4350_v62  ;;  %v6818_v62 = vunpack.i.l.bf16 %v8881_v8  ;;  %vm9716_vm8 = vcmask 850944  }
 0x593   : > { %v6877_v47 = vpop.permute.xlu1 %6876  ;;  %v6872_v13 = vpop.permute.xlu0 %6871  ;;  %v4073_v14 = vsel %vm9704_vm11, %v6818_v62, %v6819_v25  ;;  %vm9743_vm11 = vcmask 924672  }
 0x594   : > { %v6879_v23 = vunpack.i.h.bf16 %v6877_v47  ;;  %v6878_v24 = vunpack.i.l.bf16 %v6877_v47  ;;  %v6874_v19 = vunpack.i.h.bf16 %v6872_v13  ;;  %v6873_v55 = vunpack.i.l.bf16 %v6872_v13  ;;  %v6912_v63 = vpop.permute.xlu2 %6911 }
 0x595   : > { %v6914_v60 = vunpack.i.h.bf16 %v6912_v63  ;;  %v6913_v18 = vunpack.i.l.bf16 %v6912_v63  ;;  %v6809_v63 = vunpack.i.h.bf16 %v8862_v16  ;;  %v6798_v16 = vunpack.i.l.bf16 %v8871_v53 }
 0x596   : > { %v4174_v22 = vsel %vm9687_vm9, %v6878_v24, %v6879_v23  ;;  %v4339_v54 = vsel %vm9688_vm12, %v6873_v55, %v6874_v19  ;;  %v6814_v24 = vunpack.i.h.bf16 %v8883_v1  ;;  %vm9702_vm9 = vcmask 31744  }
 0x597   : > { %4482 = vmatpush.msra.mxu1 %v4174_v22  ;;  %4503 = vmatpush.msra.mxu2 %v4339_v54  ;;  %v4273_v56 = vsel %vm9700_vm7, %v6913_v18, %v6914_v60  ;;  %v4084_v19 = vsel %vm9702_vm9, %v6823_v57, %v6824_v36  ;;  %v6813_v55 = vunpack.i.l.bf16 %v8883_v1  ;;  %vm9703_vm12 = vcmask 941056  }
 0x598   : > { %v6803_v1 = vunpack.i.l.bf16 %v8869_v50  ;;  %vm9715_vm7 = vcmask 842752   ;;  %vm9717_vm9 = vcmask 859136  }
 0x599   : > { %4504 = vmatpush.msra.mxu2 %v4328_v43 }
 0x59a   : > { %v4040_v41 = vsel %vm9709_vm1, %v6803_v1, %v6804_v26  ;;  %vm9750_vm1 = vcmask 957440  }
 0x59b   : > { %v6892_v38 = vpop.permute.xlu1 %6891  ;;  %v6887_v12 = vpop.permute.xlu0 %6886 }
 0x59c   : > { %v6894_v58 = vunpack.i.h.bf16 %v6892_v38  ;;  %v6893_v21 = vunpack.i.l.bf16 %v6892_v38  ;;  %v6889_v15 = vunpack.i.h.bf16 %v6887_v12  ;;  %v6888_v45 = vunpack.i.l.bf16 %v6887_v12  ;;  %v6927_v61 = vpop.permute.xlu2 %6926 }
 0x59d   : > { %v6929_v22 = vunpack.i.h.bf16 %v6927_v61  ;;  %v6928_v54 = vunpack.i.l.bf16 %v6927_v61 }
 0x59e   : > { %v4163_v34 = vsel %vm9690_vm10, %v6888_v45, %v6889_v15  ;;  %v4317_v4 = vsel %vm9691_vm14, %v6893_v21, %v6894_v58  ;;  %vm9705_vm10 = vcmask 949248   ;;  %vm9706_vm14 = vcmask 48128  }
 0x59f   : > { %4483 = vmatpush.msra.mxu1 %v4163_v34  ;;  %4505 = vmatpush.msra.mxu2 %v4317_v4  ;;  %v4062_v38 = vsel %vm9706_vm14, %v6813_v55, %v6814_v24  ;;  %v4240_v12 = vsel %vm9707_vm15, %v6928_v54, %v6929_v22  ;;  %v6799_v58 = vunpack.i.h.bf16 %v8871_v53  ;;  %v4051_v45 = vsel %vm9708_vm0, %v6808_v40, %v6809_v63  ;;  %v4398_v53 = vld [vmem:[%s9683_s12 + $0x8] sm:$0xff] }
 0x5a0   : > { %vm9747_vm14 = vcmask 932864   ;;  %vm9748_vm15 = vcmask 941056   ;;  %vm9749_vm0 = vcmask 949248  }
 0x5a1   : > { %4484 = vmatpush.msra.mxu1 %v4152_v30  ;;  %4506 = vmatpush.msra.mxu2 %v4306_v10 }
 0x5a3   : > { %v6907_v51 = vpop.permute.xlu1 %6906  ;;  %v6902_v9 = vpop.permute.xlu0 %6901  ;;  %4485 = vmatpush.msra.mxu1 %v4141_v28 }
 0x5a4   : > { %v6909_v48 = vunpack.i.h.bf16 %v6907_v51  ;;  %v6908_v37 = vunpack.i.l.bf16 %v6907_v51  ;;  %v6904_v5 = vunpack.i.h.bf16 %v6902_v9  ;;  %v6903_v6 = vunpack.i.l.bf16 %v6902_v9  ;;  %v6942_v8 = vpop.permute.xlu2 %6941 }
 0x5a5   : > { %4486 = vmatpush.msra.mxu1 %v4130_v49  ;;  %v6944_v50 = vunpack.i.h.bf16 %v6942_v8  ;;  %v6943_v11 = vunpack.i.l.bf16 %v6942_v8 }
 0x5a6   : > { %v4295_v20 = vsel %vm9696_vm3, %v6903_v6, %v6904_v5  ;;  %v4284_v59 = vsel %vm9698_vm5, %v6908_v37, %v6909_v48  ;;  %vm9711_vm3 = vcmask 72704   ;;  %vm9713_vm5 = vcmask 982016  }
 0x5a7   : > { %5330 = vmatpush.msk.msra.mxu1 %vm333_vm13, %v3839_v32  ;;  %4507 = vmatpush.msra.mxu2 %v4295_v20  ;;  %v4029_v28 = vsel %vm9711_vm3, %v6798_v16, %v6799_v58  ;;  %v4207_v44 = vsel %vm9713_vm5, %v6943_v11, %v6944_v50  ;;  %vm9751_vm3 = vcmask 801792   ;;  %vm9753_vm5 = vcmask 973824  }
 0x5a9   : > { %4488 = vmatpush.msra.mxu1 %v4117_v0  ;;  %4508 = vmatpush.msra.mxu2 %v4284_v59  ;;  %v4400_v0 = vld [vmem:[%s9683_s12 + $0x18] sm:$0xff] }
 0x5ab   : > { %v6922_v32 = vpop.permute.xlu1 %6921  ;;  %v6917_v29 = vpop.permute.xlu0 %6916  ;;  %4489 = vmatpush.msra.mxu1 %v4106_v33  ;;  %4509 = vmatpush.msra.mxu2 %v4273_v56 }
 0x5ac   : > { %v6924_v47 = vunpack.i.h.bf16 %v6922_v32  ;;  %v6923_v13 = vunpack.i.l.bf16 %v6922_v32  ;;  %v6919_v23 = vunpack.i.h.bf16 %v6917_v29  ;;  %v6918_v46 = vunpack.i.l.bf16 %v6917_v29  ;;  %v6957_v10 = vpop.permute.xlu2 %6956 }
 0x5ad   : > { %4490 = vmatpush.msra.mxu1 %v4095_v42  ;;  %v6959_v51 = vunpack.i.h.bf16 %v6957_v10  ;;  %v6958_v9 = vunpack.i.l.bf16 %v6957_v10 }
 0x5ae   : > { %v4262_v43 = vsel %vm9703_vm12, %v6918_v46, %v6919_v23  ;;  %v4251_v39 = vsel %vm9705_vm10, %v6923_v13, %v6924_v47  ;;  %vm9718_vm12 = vcmask 195584   ;;  %vm9746_vm10 = vcmask 793600  }
 0x5af   : > { %4491 = vmatpush.msra.mxu1 %v4084_v19  ;;  %4510 = vmatpush.msra.mxu2 %v4262_v43  ;;  %v4383_v18 = vsel %vm9716_vm8, %v6958_v9, %v6959_v51  ;;  %vm9756_vm8 = vcmask 990208  }
 0x5b1   : > { %4492 = vmatpush.msra.mxu1 %v4073_v14  ;;  %4511 = vmatpush.msra.mxu2 %v4251_v39  ;;  %v5151_v39 = vld [vmem:[%s9742_s30] sm:$0xff] }
 0x5b3   : > { %v6937_v21 = vpop.permute.xlu1 %6936  ;;  %v6932_v15 = vpop.permute.xlu0 %6931  ;;  %4493 = vmatpush.msra.mxu1 %v4062_v38  ;;  %4512 = vmatpush.msra.mxu2 %v4240_v12 }
 0x5b4   : > { %v6939_v17 = vunpack.i.h.bf16 %v6937_v21  ;;  %v6938_v2 = vunpack.i.l.bf16 %v6937_v21  ;;  %v6934_v34 = vunpack.i.h.bf16 %v6932_v15  ;;  %v6933_v4 = vunpack.i.l.bf16 %v6932_v15 }
 0x5b5   : > { %4494 = vmatpush.msra.mxu1 %v4051_v45 }
 0x5b6   : > { %v4229_v30 = vsel %vm9710_vm2, %v6933_v4, %v6934_v34  ;;  %v4218_v31 = vsel %vm9712_vm4, %v6938_v2, %v6939_v17  ;;  %vm9752_vm4 = vcmask 662528  }
 0x5b7   : > { %4495 = vmatpush.msra.mxu1 %v4040_v41  ;;  %4513 = vmatpush.msra.mxu2 %v4229_v30 }
 0x5b9   : > { %4496 = vmatpush.msra.mxu1 %v4029_v28  ;;  %4514 = vmatpush.msra.mxu2 %v4218_v31 }
 0x5ba   : > { %4497 = vmatmul.f32.vlgmr.msra.gmra.mxu1 %v4398_v53 }
 0x5bb   : > { %v6952_v49 = vpop.permute.xlu1 %6951  ;;  %v6947_v61 = vpop.permute.xlu0 %6946  ;;  %4515 = vmatpush.msra.mxu2 %v4207_v44 }
 0x5bc   : > { %v6954_v48 = vunpack.i.h.bf16 %v6952_v49  ;;  %v6953_v37 = vunpack.i.l.bf16 %v6952_v49  ;;  %v6949_v5 = vunpack.i.h.bf16 %v6947_v61  ;;  %v6948_v6 = vunpack.i.l.bf16 %v6947_v61 }
 0x5be   : > { %v4196_v3 = vsel %vm9714_vm6, %v6953_v37, %v6954_v48  ;;  %v4394_v60 = vsel %vm9715_vm7, %v6948_v6, %v6949_v5  ;;  %vm9754_vm6 = vcmask 809984   ;;  %vm9755_vm7 = vcmask 982016  }
 0x5bf   : > { %4516 = vmatpush.msra.mxu2 %v4196_v3  ;;  %4534 = vmatpush.msra.mxu3 %v4394_v60 }
 0x5c0   : > { %4517 = vmatmul.f32.vlgmr.msra.gmra.mxu2 %v4399_v35 }
 0x5c1   : > { %4535 = vmatpush.msra.mxu3 %v4383_v18 }
 0x5c3   : > { %v6962_v20 = vpop.permute.xlu0 %6961  ;;  %v4456_v57 = vpop.permute.xlu1 %4455 }
 0x5c4   : > { %v6964_v27 = vunpack.i.h.bf16 %v6962_v20  ;;  %v6963_v7 = vunpack.i.l.bf16 %v6962_v20 }
 0x5c6   : > { %v4372_v59 = vsel %vm9717_vm9, %v6963_v7, %v6964_v27  ;;  %vm9757_vm9 = vcmask 998400  }
 0x5c7   : > { %4536 = vmatpush.msra.mxu3 %v4372_v59 }
 0x5c8   : > { %5323 = vmatmul.msk.f32.vlgmr.msra.gmra.mxu3 %vm9718_vm12, %v4400_v0  ;;  %vm9758_vm12 = vcmask 818176  }
 0x601   : > { %v4478_v36 = vpop.f32.mrf.mxu0 }
 0x602   : > { %v4479_v56 = vadd.f32 %v4478_v36, %v4456_v57 }
 0x637   : > { %v4498_v33 = vpop.f32.mrf.mxu1 }
 0x638   : > { %v4499_v62 = vadd.f32 %v4498_v33, %v4479_v56 }
 0x643   : > { %v4518_v25 = vpop.f32.mrf.mxu2 }
 0x644   : > { %v4519_v32 = vadd.f32 %v4518_v25, %v4499_v62 }
 0x64b   : > { %v4538_v29 = vpop.f32.mrf.mxu3 }
 0x64c   : > { %v8982_v42 = vadd.f32 %v4538_v29, %v4519_v32 }
 0x64e   : > { %v4541_v47 = vmax.f32 %v8982_v42, 0.0 }
 0x650   : > { %v4542_v13 = vsel %vm333_vm13, %v4541_v47, 0.0 }
 0x651   : > { %v8989_v23 = vpack.i.bf16 0.0, %v4542_v13 }
 0x653   : > { %6976 = vrot.lane.b32.xlu1 %v8989_v23, %s9474_s20  ;;  %6971 = vrot.lane.b32.xlu0 %v8989_v23, %s9658_s2  ;;  %s9720_s20 = smov 98   ;;  %s9721_s2 = smov 97  }
 0x654   : > { %6966 = vrot.lane.b32.xlu2 %v8989_v23, %s9473_s17  ;;  %s9719_s17 = smov 81  }
 0x65b   : > { %6991 = vrot.lane.b32.xlu1 %v8989_v23, %s9661_s18  ;;  %6986 = vrot.lane.b32.xlu0 %v8989_v23, %s9660_s22  ;;  %s9722_s22 = smov 100   ;;  %s9723_s18 = smov 82  }
 0x65c   : > { %6981 = vrot.lane.b32.xlu2 %v8989_v23, %s9663_s25  ;;  %s9724_s25 = smov 99  }
 0x663   : > { %7006 = vrot.lane.b32.xlu1 %v8989_v23, %s9671_s6  ;;  %7001 = vrot.lane.b32.xlu0 %v8989_v23, %s9675_s8  ;;  %s9729_s6 = smov 102   ;;  %s9734_s8 = smov 89  }
 0x664   : > { %6996 = vrot.lane.b32.xlu2 %v8989_v23, %s9674_s4  ;;  %s9732_s4 = smov 88  }
 0x66b   : > { %7021 = vrot.lane.b32.xlu1 %v8989_v23, %s9668_s26  ;;  %7016 = vrot.lane.b32.xlu0 %v8989_v23, %s9673_s3  ;;  %s9725_s26 = smov 84   ;;  %s9731_s3 = smov 86  }
 0x66c   : > { %7011 = vrot.lane.b32.xlu2 %v8989_v23, %s9672_s7  ;;  %s9730_s7 = smov 87  }
 0x673   : > { %7036 = vrot.lane.b32.xlu1 %v8989_v23, %s9669_s29  ;;  %7031 = vrot.lane.b32.xlu0 %v8989_v23, %s9670_s14  ;;  %s9727_s29 = smov 83   ;;  %s9728_s14 = smov 85  }
 0x674   : > { %7026 = vrot.lane.b32.xlu2 %v8989_v23, %s9665_s24  ;;  %s9726_s24 = smov 101  }
 0x67b   : > { %7051 = vrot.lane.b32.xlu1 %v8989_v23, %s9719_s17  ;;  %7046 = vrot.lane.b32.xlu0 %v8989_v23, %s9720_s20  ;;  %s9769_s17 = sld [smem:[#allocation15_spill]] }
 0x67c   : > { %7041 = vrot.lane.b32.xlu2 %v8989_v23, %s9721_s2 }
 0x683   : > { %7066 = vrot.lane.b32.xlu1 %v8989_v23, %s9722_s22  ;;  %7061 = vrot.lane.b32.xlu0 %v8989_v23, %s9723_s18 }
 0x684   : > { %7056 = vrot.lane.b32.xlu2 %v8989_v23, %s9724_s25 }
 0x68b   : > { %7081 = vrot.lane.b32.xlu1 %v8989_v23, %s9725_s26  ;;  %7076 = vrot.lane.b32.xlu0 %v8989_v23, %s9726_s24  ;;  %s9796_s24 = sld [smem:[#allocation7_spill]] }
 0x68c   : > { %7071 = vrot.lane.b32.xlu2 %v8989_v23, %s9727_s29 }
 0x691   : > { %s5320_s29 = sshll.u32 %s9796_s24, 3 }
 0x693   : > { %7096 = vrot.lane.b32.xlu1 %v8989_v23, %s9611_s27  ;;  %7091 = vrot.lane.b32.xlu0 %v8989_v23, %s9728_s14  ;;  %s9733_s27 = smov 90  }
 0x694   : > { %7086 = vrot.lane.b32.xlu2 %v8989_v23, %s9729_s6 }
 0x69b   : > { %7111 = vrot.lane.b32.xlu1 %v8989_v23, %s9730_s7  ;;  %7106 = vrot.lane.b32.xlu0 %v8989_v23, %s9612_s16  ;;  %s9736_s16 = smov 78   ;;  %s9797_s7 = sld [smem:[#allocation17_spill]] }
 0x69c   : > { %7101 = vrot.lane.b32.xlu2 %v8989_v23, %s9731_s3 }
 0x6a1   : > { %s330_s3 = scalar_lea.vmem %s9797_s7, %s5320_s29 }
 0x6a3   : > { %7126 = vrot.lane.b32.xlu1 %v8989_v23, %s9604_s5  ;;  %7121 = vrot.lane.b32.xlu0 %v8989_v23, %s9732_s4  ;;  %s9735_s5 = smov 91  }
 0x6a4   : > { %7116 = vrot.lane.b32.xlu2 %v8989_v23, %s9607_s23  ;;  %s9738_s23 = smov 79  }
 0x6ab   : > { %7141 = vrot.lane.b32.xlu1 %v8989_v23, %s9733_s27  ;;  %7136 = vrot.lane.b32.xlu0 %v8989_v23, %s9609_s19  ;;  %s9737_s19 = smov 92  }
 0x6ac   : > { %7131 = vrot.lane.b32.xlu2 %v8989_v23, %s9734_s8 }
 0x6ae   : > { %v9063_v46 = vpop.permute.xlu2 %6966 }
 0x6b3   : > { %7156 = vrot.lane.b32.xlu1 %v8989_v23, %s9664_s13  ;;  %7151 = vrot.lane.b32.xlu0 %v8989_v23, %s9735_s5  ;;  %s9741_s13 = smov 94  }
 0x6b4   : > { %7146 = vrot.lane.b32.xlu2 %v8989_v23, %s9608_s0  ;;  %s9739_s0 = smov 93  }
 0x6b6   : > { %v9071_v24 = vpop.permute.xlu2 %6981 }
 0x6bb   : > { %7171 = vrot.lane.b32.xlu1 %v8989_v23, %s9662_s21  ;;  %7166 = vrot.lane.b32.xlu0 %v8989_v23, %s9736_s16  ;;  %s9740_s21 = smov 80  }
 0x6bc   : > { %7161 = vrot.lane.b32.xlu2 %v8989_v23, %s9737_s19 }
 0x6be   : > { %v9079_v19 = vpop.permute.xlu2 %6996 }
 0x6bf   : > { %v6999_v25 = vunpack.i.h.bf16 %v9079_v19  ;;  %v6998_v62 = vunpack.i.l.bf16 %v9079_v19 }
 0x6c3   : > { %7186 = vrot.lane.b32.xlu1 %v8989_v23, %s9667_s11  ;;  %7181 = vrot.lane.b32.xlu0 %v8989_v23, %s9738_s23 }
 0x6c4   : > { %7176 = vrot.lane.b32.xlu2 %v8989_v23, %s9739_s0 }
 0x6c5   : > { %v9087_v55 = vpop.permute.xlu1 %6976  ;;  %v9089_v22 = vpop.permute.xlu0 %6971 }
 0x6c6   : > { %v7012_v54 = vpop.permute.xlu2 %7011 }
 0x6c7   : > { %v7014_v9 = vunpack.i.h.bf16 %v7012_v54  ;;  %v7013_v49 = vunpack.i.l.bf16 %v7012_v54 }
 0x6c9   : > { %v4653_v59 = vsel %vm9710_vm2, %v7013_v49, %v7014_v9  ;;  %vm9765_vm2 = vcmask 826368  }
 0x6cb   : > { %7201 = vrot.lane.b32.xlu1 %v8989_v23, %s9666_s28  ;;  %7196 = vrot.lane.b32.xlu0 %v8989_v23, %s9740_s21  ;;  %s9744_s28 = smov 96  }
 0x6cc   : > { %7191 = vrot.lane.b32.xlu2 %v8989_v23, %s9741_s13 }
 0x6cd   : > { %v9097_v8 = vpop.permute.xlu1 %6991  ;;  %v9099_v43 = vpop.permute.xlu0 %6986 }
 0x6ce   : > { %v7027_v63 = vpop.permute.xlu2 %7026  ;;  %v6994_v13 = vunpack.i.h.bf16 %v9097_v8 }
 0x6cf   : > { %v7029_v40 = vunpack.i.h.bf16 %v7027_v63  ;;  %v7028_v14 = vunpack.i.l.bf16 %v7027_v63  ;;  %v6989_v63 = vunpack.i.h.bf16 %v9099_v43 }
 0x6d1   : > { %v4708_v26 = vsel %vm9743_vm11, %v7028_v14, %v7029_v40  ;;  %v6988_v40 = vunpack.i.l.bf16 %v9099_v43  ;;  %v6983_v43 = vunpack.i.l.bf16 %v9071_v24  ;;  %vm9759_vm11 = vcmask 670720  }
 0x6d2   : > { %5160 = vmatpush.msrb.mxu3 %v4708_v26 }
 0x6d3   : > { %5154 = vperm.xlu1 %6464, %v5151_v39   ;;  %7211 = vrot.lane.b32.xlu0 %v8989_v23, %s9744_s28  ;;  %v4620_v39 = vsel %vm9756_vm8, %v6998_v62, %v6999_v25  ;;  %vm9772_vm8 = vcmask 703488  }
 0x6d4   : > { %7206 = vrot.lane.b32.xlu2 %v8989_v23, %s9745_s10  ;;  %v6993_v23 = vunpack.i.l.bf16 %v9097_v8 }
 0x6d5   : > { %v7007_v1 = vpop.permute.xlu1 %7006  ;;  %v7002_v38 = vpop.permute.xlu0 %7001 }
 0x6d6   : > { %v7042_v12 = vpop.permute.xlu2 %7041  ;;  %v7009_v61 = vunpack.i.h.bf16 %v7007_v1  ;;  %v7008_v37 = vunpack.i.l.bf16 %v7007_v1  ;;  %v7004_v36 = vunpack.i.h.bf16 %v7002_v38  ;;  %v7003_v57 = vunpack.i.l.bf16 %v7002_v38 }
 0x6d7   : > { %v7044_v58 = vunpack.i.h.bf16 %v7042_v12  ;;  %v7043_v16 = vunpack.i.l.bf16 %v7042_v12 }
 0x6d8   : > { %v4642_v32 = vsel %vm9753_vm5, %v7008_v37, %v7009_v61  ;;  %v4631_v54 = vsel %vm9755_vm7, %v7003_v57, %v7004_v36  ;;  %vm9768_vm5 = vcmask 834560   ;;  %vm9771_vm7 = vcmask 695296  }
 0x6d9   : > { %v4884_v21 = vsel %vm9746_vm10, %v7043_v16, %v7044_v58  ;;  %v6984_v16 = vunpack.i.h.bf16 %v9071_v24  ;;  %vm9760_vm10 = vcmask 1006592   ;;  %v6969_v24 = vunpack.i.h.bf16 %v9063_v46 }
 0x6da   : > { %5180 = vmatpush.msra.mxu0 %v4884_v21 }
 0x6dd   : > { %v7022_v15 = vpop.permute.xlu1 %7021  ;;  %v7017_v45 = vpop.permute.xlu0 %7016 }
 0x6de   : > { %v7057_v17 = vpop.permute.xlu2 %7056  ;;  %v7024_v53 = vunpack.i.h.bf16 %v7022_v15  ;;  %v7023_v10 = vunpack.i.l.bf16 %v7022_v15  ;;  %v7019_v31 = vunpack.i.h.bf16 %v7017_v45  ;;  %v7018_v44 = vunpack.i.l.bf16 %v7017_v45 }
 0x6df   : > { %v7059_v5 = vunpack.i.h.bf16 %v7057_v17  ;;  %v7058_v6 = vunpack.i.l.bf16 %v7057_v17  ;;  %v4609_v15 = vsel %vm9757_vm9, %v6993_v23, %v6994_v13  ;;  %vm9774_vm9 = vcmask 711680  }
 0x6e0   : > { %v4675_v48 = vsel %vm9749_vm0, %v7023_v10, %v7024_v53  ;;  %v4664_v60 = vsel %vm9750_vm1, %v7018_v44, %v7019_v31  ;;  %v6968_v53 = vunpack.i.l.bf16 %v9063_v46  ;;  %vm9763_vm0 = vcmask 1022976  }
 0x6e1   : > { %v4862_v29 = vsel %vm9754_vm6, %v7058_v6, %v7059_v5  ;;  %vm9764_vm1 = vcmask 1031168   ;;  %vm9770_vm6 = vcmask 842752  }
 0x6e5   : > { %v7037_v2 = vpop.permute.xlu1 %7036  ;;  %v7032_v34 = vpop.permute.xlu0 %7031 }
 0x6e6   : > { %v7039_v4 = vunpack.i.h.bf16 %v7037_v2  ;;  %v7038_v50 = vunpack.i.l.bf16 %v7037_v2  ;;  %v7034_v11 = vunpack.i.h.bf16 %v7032_v34  ;;  %v7033_v41 = vunpack.i.l.bf16 %v7032_v34  ;;  %v9110_v30 = vpop.permute.xlu2 %7071 }
 0x6e7   : > { %v7074_v8 = vunpack.i.h.bf16 %v9110_v30  ;;  %v7073_v21 = vunpack.i.l.bf16 %v9110_v30  ;;  %v6979_v2 = vunpack.i.h.bf16 %v9087_v55  ;;  %v6978_v34 = vunpack.i.l.bf16 %v9087_v55 }
 0x6e8   : > { %v4697_v28 = vsel %vm9747_vm14, %v7033_v41, %v7034_v11  ;;  %v4686_v51 = vsel %vm9748_vm15, %v7038_v50, %v7039_v4  ;;  %v4598_v4 = vsel %vm9760_vm10, %v6988_v40, %v6989_v63  ;;  %vm9761_vm14 = vcmask 678912  }
 0x6e9   : > { %5161 = vmatpush.msrb.mxu3 %v4697_v28  ;;  %v5038_v50 = vsel %vm9761_vm14, %v7073_v21, %v7074_v8  ;;  %v6974_v11 = vunpack.i.h.bf16 %v9089_v22  ;;  %v6973_v41 = vunpack.i.l.bf16 %v9089_v22  ;;  %vm9762_vm15 = vcmask 1014784  }
 0x6ea   : > { %v4587_v30 = vsel %vm9762_vm15, %v6983_v43, %v6984_v16  ;;  %v4576_v44 = vsel %vm9763_vm0, %v6978_v34, %v6979_v2  ;;  %vm9777_vm10 = vcmask 719872   ;;  %vm9778_vm14 = vcmask 728064  }
 0x6eb   : > { %5162 = vmatpush.msrb.mxu3 %v4686_v51  ;;  %v4565_v22 = vsel %vm9764_vm1, %v6973_v41, %v6974_v11  ;;  %vm9779_vm15 = vcmask 875520   ;;  %vm9780_vm0 = vcmask 736256   ;;  %vm9781_vm1 = vcmask 883712  }
 0x6ed   : > { %v7052_v35 = vpop.permute.xlu1 %7051  ;;  %v7047_v3 = vpop.permute.xlu0 %7046  ;;  %5163 = vmatpush.msrb.mxu3 %v4675_v48 }
 0x6ee   : > { %v7054_v18 = vunpack.i.h.bf16 %v7052_v35  ;;  %v7053_v20 = vunpack.i.l.bf16 %v7052_v35  ;;  %v7049_v27 = vunpack.i.h.bf16 %v7047_v3  ;;  %v7048_v7 = vunpack.i.l.bf16 %v7047_v3  ;;  %v9116_v0 = vpop.permute.xlu2 %7086  ;;  %v5096_v35 = vld [vmem:[%s9769_s17] sm:$0xff] }
 0x6ef   : > { %5164 = vmatpush.msrb.mxu3 %v4664_v60  ;;  %v7089_v55 = vunpack.i.h.bf16 %v9116_v0  ;;  %v7088_v10 = vunpack.i.l.bf16 %v9116_v0 }
 0x6f0   : > { %v4873_v33 = vsel %vm9751_vm3, %v7048_v7, %v7049_v27  ;;  %v5060_v56 = vsel %vm9752_vm4, %v7053_v20, %v7054_v18  ;;  %vm9766_vm3 = vcmask 687104   ;;  %vm9767_vm4 = vcmask 1039360  }
 0x6f1   : > { %5165 = vmatpush.msrb.mxu3 %v4653_v59  ;;  %5181 = vmatpush.msra.mxu0 %v4873_v33  ;;  %v4554_v5 = vsel %vm9767_vm4, %v6968_v53, %v6969_v24  ;;  %v4829_v6 = vsel %vm9768_vm5, %v7088_v10, %v7089_v55  ;;  %vm9784_vm4 = vcmask 752640   ;;  %vm9785_vm5 = vcmask 760832  }
 0x6f2   : > { %5200 = vmatpush.msrb.mxu1 %v5060_v56 }
 0x6f3   : > { %5166 = vmatpush.msrb.mxu3 %v4642_v32  ;;  %5182 = vmatpush.msra.mxu0 %v4862_v29 }
 0x6f5   : > { %v7067_v19 = vpop.permute.xlu1 %7066  ;;  %v7062_v14 = vpop.permute.xlu0 %7061  ;;  %5167 = vmatpush.msrb.mxu3 %v4631_v54 }
 0x6f6   : > { %v7069_v26 = vunpack.i.h.bf16 %v7067_v19  ;;  %v7068_v1 = vunpack.i.l.bf16 %v7067_v19  ;;  %v7064_v38 = vunpack.i.h.bf16 %v7062_v14  ;;  %v7063_v12 = vunpack.i.l.bf16 %v7062_v14  ;;  %v9131_v58 = vpop.permute.xlu2 %7101 }
 0x6f7   : > { %5168 = vmatpush.msrb.mxu3 %v4620_v39  ;;  %v7104_v3 = vunpack.i.h.bf16 %v9131_v58  ;;  %v7103_v60 = vunpack.i.l.bf16 %v9131_v58 }
 0x6f8   : > { %v4851_v45 = vsel %vm9758_vm12, %v7068_v1, %v7069_v26  ;;  %v5049_v17 = vsel %vm9759_vm11, %v7063_v12, %v7064_v38  ;;  %vm9775_vm12 = vcmask 859136   ;;  %vm9776_vm11 = vcmask 867328  }
 0x6f9   : > { %5169 = vmatpush.msrb.mxu3 %v4609_v15  ;;  %5183 = vmatpush.msra.mxu0 %v4851_v45  ;;  %v5005_v56 = vsel %vm9772_vm8, %v7103_v60, %v7104_v3  ;;  %vm9788_vm8 = vcmask 637952  }
 0x6fa   : > { %5201 = vmatpush.msrb.mxu1 %v5049_v17 }
 0x6fb   : > { %5170 = vmatpush.msrb.mxu3 %v4598_v4 }
 0x6fc   : > { %5202 = vmatpush.msrb.mxu1 %v5038_v50 }
 0x6fd   : > { %v7082_v28 = vpop.permute.xlu1 %7081  ;;  %v7077_v31 = vpop.permute.xlu0 %7076  ;;  %5171 = vmatpush.msrb.mxu3 %v4587_v30 }
 0x6fe   : > { %v7084_v51 = vunpack.i.h.bf16 %v7082_v28  ;;  %v7083_v9 = vunpack.i.l.bf16 %v7082_v28  ;;  %v7079_v49 = vunpack.i.h.bf16 %v7077_v31  ;;  %v7078_v61 = vunpack.i.l.bf16 %v7077_v31  ;;  %v7117_v48 = vpop.permute.xlu2 %7116 }
 0x6ff   : > { %5172 = vmatpush.msrb.mxu3 %v4576_v44  ;;  %v7119_v25 = vunpack.i.h.bf16 %v7117_v48  ;;  %v7118_v42 = vunpack.i.l.bf16 %v7117_v48 }
 0x700   : > { %v4840_v37 = vsel %vm9765_vm2, %v7078_v61, %v7079_v49  ;;  %v5027_v46 = vsel %vm9766_vm3, %v7083_v9, %v7084_v51  ;;  %vm9782_vm2 = vcmask 891904   ;;  %vm9783_vm3 = vcmask 744448  }
 0x701   : > { %5173 = vmatpush.msrb.mxu3 %v4565_v22  ;;  %5184 = vmatpush.msra.mxu0 %v4840_v37  ;;  %v4796_v40 = vsel %vm9775_vm12, %v7118_v42, %v7119_v25  ;;  %vm9791_vm12 = vcmask 646144  }
 0x702   : > { %5203 = vmatpush.msrb.mxu1 %v5027_v46 }
 0x703   : > { %5174 = vmatpush.msrb.mxu3 %v4554_v5  ;;  %5185 = vmatpush.msra.mxu0 %v4829_v6 }
 0x705   : > { %v7097_v18 = vpop.permute.xlu1 %7096  ;;  %v7092_v20 = vpop.permute.xlu0 %7091  ;;  %5331 = vmatpush.msk.msrb.mxu3 %vm333_vm13, %v4541_v47  ;;  %vm9773_vm13 = vcmask 850944  }
 0x706   : > { %v7099_v27 = vunpack.i.h.bf16 %v7097_v18  ;;  %v7098_v7 = vunpack.i.l.bf16 %v7097_v18  ;;  %v7094_v0 = vunpack.i.h.bf16 %v7092_v20  ;;  %v7093_v59 = vunpack.i.l.bf16 %v7092_v20  ;;  %v7132_v36 = vpop.permute.xlu2 %7131  ;;  %5176 = vmatmul.f32.vlgmr.msrb.gmra.mxu3 %v5096_v35 }
 0x707   : > { %v7134_v19 = vunpack.i.h.bf16 %v7132_v36  ;;  %v7133_v14 = vunpack.i.l.bf16 %v7132_v36 }
 0x708   : > { %v4818_v57 = vsel %vm9770_vm6, %v7098_v7, %v7099_v27  ;;  %v5016_v33 = vsel %vm9771_vm7, %v7093_v59, %v7094_v0  ;;  %vm9786_vm6 = vcmask 769024   ;;  %vm9787_vm7 = vcmask 900096  }
 0x709   : > { %5186 = vmatpush.msra.mxu0 %v4818_v57  ;;  %5204 = vmatpush.msrb.mxu1 %v5016_v33  ;;  %v4972_v43 = vsel %vm9778_vm14, %v7133_v14, %v7134_v19  ;;  %vm9794_vm14 = vcmask 195584  }
 0x70b   : > { %5205 = vmatpush.msrb.mxu1 %v5005_v56 }
 0x70d   : > { %v7112_v62 = vpop.permute.xlu1 %7111  ;;  %v7107_v52 = vpop.permute.xlu0 %7106 }
 0x70e   : > { %v7114_v47 = vunpack.i.h.bf16 %v7112_v62  ;;  %v7113_v32 = vunpack.i.l.bf16 %v7112_v62  ;;  %v7109_v29 = vunpack.i.h.bf16 %v7107_v52  ;;  %v7108_v13 = vunpack.i.l.bf16 %v7107_v52  ;;  %v7147_v23 = vpop.permute.xlu2 %7146 }
 0x70f   : > { %v7149_v15 = vunpack.i.h.bf16 %v7147_v23  ;;  %v7148_v45 = vunpack.i.l.bf16 %v7147_v23 }
 0x710   : > { %v4807_v54 = vsel %vm9773_vm13, %v7108_v13, %v7109_v29  ;;  %v4994_v63 = vsel %vm9774_vm9, %v7113_v32, %v7114_v47  ;;  %vm9789_vm13 = vcmask 777216   ;;  %vm9790_vm9 = vcmask 908288  }
 0x711   : > { %5187 = vmatpush.msra.mxu0 %v4807_v54  ;;  %5206 = vmatpush.msrb.mxu1 %v4994_v63  ;;  %v4763_v53 = vsel %vm9781_vm1, %v7148_v45, %v7149_v15 }
 0x713   : > { %5188 = vmatpush.msra.mxu0 %v4796_v40 }
 0x715   : > { %v7127_v39 = vpop.permute.xlu1 %7126  ;;  %v7122_v26 = vpop.permute.xlu0 %7121 }
 0x716   : > { %v7129_v1 = vunpack.i.h.bf16 %v7127_v39  ;;  %v7128_v38 = vunpack.i.l.bf16 %v7127_v39  ;;  %v7124_v12 = vunpack.i.h.bf16 %v7122_v26  ;;  %v7123_v58 = vunpack.i.l.bf16 %v7122_v26  ;;  %v7162_v16 = vpop.permute.xlu2 %7161 }
 0x717   : > { %v7164_v55 = vunpack.i.h.bf16 %v7162_v16  ;;  %v7163_v10 = vunpack.i.l.bf16 %v7162_v16 }
 0x718   : > { %v4785_v8 = vsel %vm9776_vm11, %v7128_v38, %v7129_v1  ;;  %v4983_v21 = vsel %vm9777_vm10, %v7123_v58, %v7124_v12  ;;  %v5097_v1 = vld [vmem:[%s9769_s17 + $0x8] sm:$0xff]  ;;  %v5099_v38 = vld [vmem:[%s9769_s17 + $0x18] sm:$0xff]  ;;  %vm9792_vm11 = vcmask 916480   ;;  %vm9793_vm10 = vcmask 654336  }
 0x719   : > { %5189 = vmatpush.msra.mxu0 %v4785_v8  ;;  %5207 = vmatpush.msrb.mxu1 %v4983_v21  ;;  %v4939_v35 = vsel %vm9784_vm4, %v7163_v10, %v7164_v55 }
 0x71b   : > { %5208 = vmatpush.msrb.mxu1 %v4972_v43  ;;  %v5098_v43 = vld [vmem:[%s9769_s17 + $0x10] sm:$0xff] }
 0x71d   : > { %v7142_v17 = vpop.permute.xlu1 %7141  ;;  %v7137_v2 = vpop.permute.xlu0 %7136 }
 0x71e   : > { %v7144_v34 = vunpack.i.h.bf16 %v7142_v17  ;;  %v7143_v4 = vunpack.i.l.bf16 %v7142_v17  ;;  %v7139_v50 = vunpack.i.h.bf16 %v7137_v2  ;;  %v7138_v24 = vunpack.i.l.bf16 %v7137_v2  ;;  %v7177_v11 = vpop.permute.xlu2 %7176 }
 0x71f   : > { %v7179_v48 = vunpack.i.h.bf16 %v7177_v11  ;;  %v7178_v22 = vunpack.i.l.bf16 %v7177_v11 }
 0x720   : > { %v4774_v41 = vsel %vm9779_vm15, %v7138_v24, %v7139_v50  ;;  %v4961_v30 = vsel %vm9780_vm0, %v7143_v4, %v7144_v34  ;;  %vm9795_vm15 = vcmask 785408  }
 0x721   : > { %5190 = vmatpush.msra.mxu0 %v4774_v41  ;;  %5209 = vmatpush.msrb.mxu1 %v4961_v30  ;;  %v4928_v3 = vsel %vm9785_vm5, %v7178_v22, %v7179_v48 }
 0x723   : > { %5191 = vmatpush.msra.mxu0 %v4763_v53 }
 0x725   : > { %v7157_v28 = vpop.permute.xlu1 %7156  ;;  %v7152_v31 = vpop.permute.xlu0 %7151 }
 0x726   : > { %v7159_v44 = vunpack.i.h.bf16 %v7157_v28  ;;  %v7158_v51 = vunpack.i.l.bf16 %v7157_v28  ;;  %v7154_v9 = vunpack.i.h.bf16 %v7152_v31  ;;  %v7153_v49 = vunpack.i.l.bf16 %v7152_v31  ;;  %v7192_v61 = vpop.permute.xlu2 %7191 }
 0x727   : > { %v7194_v5 = vunpack.i.h.bf16 %v7192_v61  ;;  %v7193_v6 = vunpack.i.l.bf16 %v7192_v61 }
 0x728   : > { %v4752_v37 = vsel %vm9782_vm2, %v7158_v51, %v7159_v44  ;;  %v4950_v46 = vsel %vm9783_vm3, %v7153_v49, %v7154_v9 }
 0x729   : > { %5192 = vmatpush.msra.mxu0 %v4752_v37  ;;  %5210 = vmatpush.msrb.mxu1 %v4950_v46  ;;  %v4917_v20 = vsel %vm9786_vm6, %v7193_v6, %v7194_v5 }
 0x72b   : > { %5211 = vmatpush.msrb.mxu1 %v4939_v35 }
 0x72d   : > { %v7172_v60 = vpop.permute.xlu1 %7171  ;;  %v7167_v18 = vpop.permute.xlu0 %7166  ;;  %5212 = vmatpush.msrb.mxu1 %v4928_v3 }
 0x72e   : > { %v7174_v27 = vunpack.i.h.bf16 %v7172_v60  ;;  %v7173_v7 = vunpack.i.l.bf16 %v7172_v60  ;;  %v7169_v0 = vunpack.i.h.bf16 %v7167_v18  ;;  %v7168_v59 = vunpack.i.l.bf16 %v7167_v18  ;;  %v7207_v36 = vpop.permute.xlu2 %7206 }
 0x72f   : > { %v7209_v57 = vunpack.i.h.bf16 %v7207_v36  ;;  %v7208_v33 = vunpack.i.l.bf16 %v7207_v36  ;;  %5213 = vmatpush.msrb.mxu1 %v4917_v20 }
 0x730   : > { %v4741_v56 = vsel %vm9787_vm7, %v7173_v7, %v7174_v27  ;;  %v5093_v25 = vsel %vm9788_vm8, %v7168_v59, %v7169_v0 }
 0x731   : > { %5193 = vmatpush.msra.mxu0 %v4741_v56  ;;  %v4906_v42 = vsel %vm9789_vm13, %v7208_v33, %v7209_v57  ;;  %5233 = vmatpush.msrb.mxu2 %v5093_v25 }
 0x732   : > { %5214 = vmatpush.msrb.mxu1 %v4906_v42 }
 0x735   : > { %v7187_v62 = vpop.permute.xlu1 %7186  ;;  %v7182_v52 = vpop.permute.xlu0 %7181 }
 0x736   : > { %v7189_v47 = vunpack.i.h.bf16 %v7187_v62  ;;  %v7188_v32 = vunpack.i.l.bf16 %v7187_v62  ;;  %v7184_v29 = vunpack.i.h.bf16 %v7182_v52  ;;  %v7183_v13 = vunpack.i.l.bf16 %v7182_v52 }
 0x738   : > { %v4730_v23 = vsel %vm9790_vm9, %v7188_v32, %v7189_v47  ;;  %v5082_v54 = vsel %vm9791_vm12, %v7183_v13, %v7184_v29 }
 0x739   : > { %5194 = vmatpush.msra.mxu0 %v4730_v23  ;;  %5234 = vmatpush.msrb.mxu2 %v5082_v54 }
 0x73d   : > { %v7202_v63 = vpop.permute.xlu1 %7201  ;;  %v7197_v40 = vpop.permute.xlu0 %7196 }
 0x73e   : > { %v7204_v19 = vunpack.i.h.bf16 %v7202_v63  ;;  %v7203_v14 = vunpack.i.l.bf16 %v7202_v63  ;;  %v7199_v39 = vunpack.i.h.bf16 %v7197_v40  ;;  %v7198_v26 = vunpack.i.l.bf16 %v7197_v40 }
 0x740   : > { %v4719_v12 = vsel %vm9792_vm11, %v7203_v14, %v7204_v19  ;;  %v5071_v58 = vsel %vm9793_vm10, %v7198_v26, %v7199_v39 }
 0x741   : > { %5195 = vmatpush.msra.mxu0 %v4719_v12  ;;  %5235 = vmatpush.msrb.mxu2 %v5071_v58 }
 0x742   : > { %5196 = vmatmul.f32.vlgmr.msra.gmra.mxu0 %v5097_v1  ;;  %5324 = vmatmul.msk.f32.vlgmr.msrb.gmra.mxu2 %vm9794_vm14, %v5099_v38 }
 0x745   : > { %v7212_v16 = vpop.permute.xlu0 %7211  ;;  %v5155_v17 = vpop.permute.xlu1 %5154 }
 0x746   : > { %v7214_v8 = vunpack.i.h.bf16 %v7212_v16  ;;  %v7213_v21 = vunpack.i.l.bf16 %v7212_v16 }
 0x748   : > { %v4895_v15 = vsel %vm9795_vm15, %v7213_v21, %v7214_v8 }
 0x749   : > { %5215 = vmatpush.msrb.mxu1 %v4895_v15 }
 0x74a   : > { %5216 = vmatmul.f32.vlgmr.msrb.gmra.mxu1 %v5098_v43 }
 0x789   : > { %v5177_v45 = vpop.f32.mrf.mxu3 }
 0x78a   : > { %v5178_v34 = vadd.f32 %v5177_v45, %v5155_v17 }
 0x7bf   : > { %v5197_v2 = vpop.f32.mrf.mxu0 }
 0x7c0   : > { %v5198_v4 = vadd.f32 %v5197_v2, %v5178_v34 }
 0x7c5   : > { %v5237_v24 = vpop.f32.mrf.mxu2 }
 0x7c7   : > { %v5217_v50 = vpop.f32.mrf.mxu1 }
 0x7c8   : > { %v5218_v11 = vadd.f32 %v5217_v50, %v5198_v4 }
 0x7ca   : > { %v5238_v41 = vadd.f32 %v5237_v24, %v5218_v11 }
 0x7cc   : > { %v5325_v30 = vmul.f32 -1.442695, %v5238_v41 }
 0x7ce   : > { %7216 = vpow2.f32 %v5325_v30 }
 0x7d4   : > { %v7217_v53 = vpop.eup %7216 }
 0x7d5   : > { %v5243_v55 = vadd.f32 1.0, %v7217_v53 }
 0x7d7   : > { %7218 = vrcp.f32 %v5243_v55  ;;  %v5255_v44 = vand.u32 2147483648, %v5243_v55  ;;  %v5253_v9 = vand.u32 2147483647, %v5243_v55  ;;  %vm5249_vm1 = vweird.f32 %v5243_v55 }
 0x7d9   : > { %v5256_v61 = vor.u32 1.1754944e-38, %v5255_v44  ;;  %vm5254_vm3 = vcmp.eq.f32.partialorder %v5253_v9, 8.507059e+37 }
 0x7dd   : > { %v7219_v10 = vpop.eup %7218 }
 0x7de   : > { %v5245_v28 = vmul.f32 %v7219_v10, %v5243_v55  ;;  %vm5250_vm0 = vweird.f32 %v7219_v10 }
 0x7df   : > { %vm5251_vm2 = vmor %vm5249_vm1, %vm5250_vm0 }
 0x7e0   : > { %v5246_v31 = vsub.f32 1.0, %v5245_v28 }
 0x7e2   : > { %v5247_v51 = vmul.f32 %v7219_v10, %v5246_v31 }
 0x7e4   : > { %v5248_v49 = vadd.f32 %v7219_v10, %v5247_v51 }
 0x7e6   : > { %v5252_v48 = vsel %vm5251_vm2, %v7219_v10, %v5248_v49 }
 0x7e7   : > { %v5257_v22 = vsel %vm5254_vm3, %v5256_v61, %v5252_v48 }
 0x7e8   : > { %5259 = vst [vmem:[%s330_s3] sm:$0xff] %v5257_v22 }
 0x7e9 PF: > { %s9798_s4 = sld [smem:[#allocation6_spill]] }
 0x7ef   : > { %s19_s30 = sadd.s32 1, %s9798_s4  }
 0x7f0   : > { %p16_p4 = scmp.ge.s32.totalorder %s19_s30, 4  }
 0x7f2   :  { %18 = sbr.rel (!%p16_p4) target bundleno = 11 (0xb), region = 86 }

</bundles_post_ra>
